<compile_context>
chip_gen: v6e
topology: v6e:2x2x1
jax: 0.10.0
libtpu: 0.0.40
codegen_flags: <defaults>
</compile_context>

<pallas_src>
import jax
import jax.numpy as jnp
from jax.experimental import pallas as pl
from jax.experimental.pallas import tpu as pltpu

LANE = 128


def _round_up(x, m):
    return (x + m - 1) // m * m


# ----------------------------- Pallas kernels ------------------------------

def _make_conv3x3x3_kernel(h, w, cp, coutp, add_residual):
    """Fused 3x3x3 conv (27 tap matmuls) + folded-BN bias + (residual add) + ReLU."""

    def kernel(*refs):
        if add_residual:
            x0, x1, x2, w_ref, b_ref, r_ref, o_ref = refs
        else:
            x0, x1, x2, w_ref, b_ref, o_ref = refs

        acc = jnp.zeros((h * w, coutp), jnp.float32)
        for dz, xr in enumerate((x0, x1, x2)):           # depth taps (shifted refs)
            for dy in range(3):                          # height taps
                for dx in range(3):                      # width taps
                    # (h, w, cp) bf16 window -> (h*w, cp) bf16 patch.
                    # The f32 round-trip keeps the (h, w) collapse a clean
                    # tile-relabeling shape cast; the casts are cheap VPU work.
                    patch = (xr[dy:dy + h, dx:dx + w, :]
                             .astype(jnp.float32)
                             .reshape(h * w, cp)
                             .astype(jnp.bfloat16))
                    tap = (dz * 3 + dy) * 3 + dx
                    acc = acc + jnp.dot(patch, w_ref[tap],
                                        preferred_element_type=jnp.float32)

        out = acc + b_ref[...]                           # folded BN bias (f32)
        if add_residual:
            out = out + r_ref[...].astype(jnp.float32).reshape(h * w, cp)
        out = jnp.maximum(out, 0.0)                      # ReLU
        o_ref[...] = out.reshape(h, w, coutp).astype(o_ref.dtype)

    return kernel


def _fused_conv3x3x3(x_pad, w_taps, bias, residual=None):
    """One fused conv + BN + (residual) + ReLU pallas_call.

    x_pad:    (N, D+2, H+2, W+2, Cp)  bf16, spatially zero-padded, channel-padded.
    w_taps:   (27, Cp, Coutp)         bf16, BN scale already folded in.
    bias:     (1, Coutp)              f32, folded BN bias.
    residual: optional (N, D, H, W, Cp) bf16 added before the final ReLU.
    Returns   (N, D, H, W, Coutp)     bf16.
    """
    n, dp2, hp2, wp2, cp = x_pad.shape
    d, h, w = dp2 - 2, hp2 - 2, wp2 - 2
    coutp = w_taps.shape[-1]

    def x_spec(off):
        # One padded depth plane per grid step, shifted by `off` in depth.
        return pl.BlockSpec((None, None, hp2, wp2, cp),
                            lambda nn, dd: (nn, dd + off, 0, 0, 0))

    in_specs = [
        x_spec(0), x_spec(1), x_spec(2),
        pl.BlockSpec((27, cp, coutp), lambda nn, dd: (0, 0, 0)),  # resident weights
        pl.BlockSpec((1, coutp), lambda nn, dd: (0, 0)),          # resident bias
    ]
    args = [x_pad, x_pad, x_pad, w_taps, bias]
    if residual is not None:
        in_specs.append(pl.BlockSpec((None, None, h, w, cp),
                                     lambda nn, dd: (nn, dd, 0, 0, 0)))
        args.append(residual)

    kernel = _make_conv3x3x3_kernel(h, w, cp, coutp, residual is not None)

    return pl.pallas_call(
        kernel,
        out_shape=jax.ShapeDtypeStruct((n, d, h, w, coutp), jnp.bfloat16),
        grid_spec=pltpu.PrefetchScalarGridSpec(
            num_scalar_prefetch=0,
            grid=(n, d),
            in_specs=in_specs,
            out_specs=pl.BlockSpec((None, None, h, w, coutp),
                                   lambda nn, dd: (nn, dd, 0, 0, 0)),
        ),
        compiler_params=pltpu.CompilerParams(
            dimension_semantics=("parallel", "parallel"),
            vmem_limit_bytes=48 * 1024 * 1024,   # headroom under v7x's 64 MiB physical
        ),
    )(*args)


# ------------------------------- JAX glue -----------------------------------

def _fold_bn(gamma, beta, mean, var, eps=1e-5):
    scale = gamma / jnp.sqrt(var + eps)
    bias = beta - mean * scale
    return scale, bias


def _prep_weight(w_pt, scale, cp, coutp):
    """PyTorch conv3d weight (Cout, Cin, 3,3,3) + BN scale -> (27, Cp, Coutp) bf16."""
    cout, cin, kd, kh, kw = w_pt.shape
    wm = jnp.transpose(w_pt, (2, 3, 4, 1, 0))                 # (kd, kh, kw, cin, cout)
    wm = wm * scale.reshape(1, 1, 1, 1, cout)                 # fold BN scale in f32
    wm = jnp.pad(wm, ((0, 0), (0, 0), (0, 0), (0, cp - cin), (0, coutp - cout)))
    return wm.reshape(kd * kh * kw, cp, coutp).astype(jnp.bfloat16)


def _prep_bias(bias, coutp):
    cout = bias.shape[0]
    return jnp.pad(bias, (0, coutp - cout)).reshape(1, coutp).astype(jnp.float32)


def basic_block_forward(x_ncdhw, params):
    """BasicBlockBase.forward, stride=1, dilation=1, downsample=None (eval-mode BN)."""
    x = jnp.transpose(x_ncdhw, (0, 2, 3, 4, 1))               # NCDHW -> NDHWC
    n, d, h, w, cin = x.shape
    planes = params["w1"].shape[0]
    assert params["w1"].shape[1] == cin
    assert cin == planes, "downsample=None path requires inplanes == planes"

    cp = _round_up(cin, LANE)                                 # lane-dense channels
    coutp = _round_up(planes, LANE)

    scale1, bias1 = _fold_bn(*params["bn1"])
    scale2, bias2 = _fold_bn(*params["bn2"])
    w1 = _prep_weight(params["w1"], scale1, cp, coutp)
    w2 = _prep_weight(params["w2"], scale2, coutp, coutp)
    b1 = _prep_bias(bias1, coutp)
    b2 = _prep_bias(bias2, coutp)

    # Channel-pad + cast to bf16 once; spatial "same" padding for the 3x3x3 window.
    x_cp = jnp.pad(x, ((0, 0),) * 4 + ((0, cp - cin),)).astype(jnp.bfloat16)
    x_sp = jnp.pad(x_cp, ((0, 0), (1, 1), (1, 1), (1, 1), (0, 0)))

    # conv1 -> norm1 -> relu   (one fused Pallas kernel)
    out1 = _fused_conv3x3x3(x_sp, w1, b1)

    # conv2 -> norm2 -> += residual -> relu   (one fused Pallas kernel; out1 stays bf16 NDHWC)
    out1_sp = jnp.pad(out1, ((0, 0), (1, 1), (1, 1), (1, 1), (0, 0)))
    out2 = _fused_conv3x3x3(out1_sp, w2, b2, residual=x_cp)

    out = out2[..., :planes].astype(x_ncdhw.dtype)            # drop channel padding
    return jnp.transpose(out, (0, 4, 1, 2, 3))                # NDHWC -> NCDHW


# --------------------------- pure-JAX reference ------------------------------

def _ref_conv3d(x_ndhwc, w_pt):
    wm = jnp.transpose(w_pt, (2, 3, 4, 1, 0))                 # DHWIO
    return jax.lax.conv_general_dilated(
        x_ndhwc, wm, window_strides=(1, 1, 1), padding="SAME",
        dimension_numbers=("NDHWC", "DHWIO", "NDHWC"),
        precision=jax.lax.Precision.HIGHEST)


def _ref_block(x_ndhwc, params):
    s1, b1 = _fold_bn(*params["bn1"])
    s2, b2 = _fold_bn(*params["bn2"])
    out = jnp.maximum(_ref_conv3d(x_ndhwc, params["w1"]) * s1 + b1, 0.0)
    out = _ref_conv3d(out, params["w2"]) * s2 + b2 + x_ndhwc
    return jnp.maximum(out, 0.0)


def init_params(key, inplanes, planes, k=3):
    k1, k2 = jax.random.split(key)
    fan1 = inplanes * k ** 3
    fan2 = planes * k ** 3
    w1 = jax.random.normal(k1, (planes, inplanes, k, k, k), jnp.float32) / jnp.sqrt(fan1)
    w2 = jax.random.normal(k2, (planes, planes, k, k, k), jnp.float32) / jnp.sqrt(fan2)
    idx = jnp.arange(planes, dtype=jnp.float32)
    bn1 = (1.0 + 0.10 * idx, 0.05 * idx, 0.01 * idx, jnp.ones((planes,), jnp.float32))
    bn2 = (1.0 - 0.05 * idx, -0.02 * idx, 0.02 * idx, 1.0 + 0.10 * idx)
    return {"w1": w1, "w2": w2, "bn1": bn1, "bn2": bn2}


if __name__ == "__main__":
    key = jax.random.PRNGKey(0)
    kx, kp = jax.random.split(key)

    batch, planes, spatial = 2, 8, 8   # inplanes == planes, stride=1, downsample=None
    x = jax.random.normal(kx, (batch, planes, spatial, spatial, spatial), jnp.float32)
    params = init_params(kp, planes, planes)

    fwd = jax.jit(basic_block_forward)
    out = jax.block_until_ready(fwd(x, params))

    assert out.shape == (batch, planes, spatial, spatial, spatial)
    assert bool(jnp.all(out >= 0.0))   # final ReLU

    # Loose-tolerance check vs. f32 reference (operands run through bf16 on the MXU;
    # any layout/tap bug would produce O(1) errors, bf16 noise here is ~1e-1 worst case).
    ref = _ref_block(jnp.transpose(x, (0, 2, 3, 4, 1)), params)
    ref = jnp.transpose(ref, (0, 4, 1, 2, 3))
    max_err = float(jnp.max(jnp.abs(out - ref)))
    assert max_err < 0.5, f"max abs err vs reference: {max_err}"

    print("KERNEL_OK")
</pallas_src>

<mosaic_0001>
module attributes {stable_mosaic.version = 11 : i64} {
  func.func @kernel(%arg0: i32, %arg1: i32, %arg2: memref<1x1x10x10x128xbf16, #tpu.memory_space<vmem>>, %arg3: memref<1x1x10x10x128xbf16, #tpu.memory_space<vmem>>, %arg4: memref<1x1x10x10x128xbf16, #tpu.memory_space<vmem>>, %arg5: memref<27x128x128xbf16, #tpu.memory_space<vmem>>, %arg6: memref<1x128xf32, #tpu.memory_space<vmem>>, %arg7: memref<1x1x8x8x128xbf16, #tpu.memory_space<vmem>>) attributes {dimension_semantics = [#tpu.dimension_semantics<parallel>, #tpu.dimension_semantics<parallel>], iteration_bounds = array<i64: 2, 8>, scalar_prefetch = 0 : i64, scratch_operands = 0 : i64, tpu.core_type = #tpu.core_type<tc>, window_params = [{transform_indices = @transform_0, window_bounds = array<i64: 1, 1, 10, 10, 128>}, {transform_indices = @transform_1, window_bounds = array<i64: 1, 1, 10, 10, 128>}, {transform_indices = @transform_2, window_bounds = array<i64: 1, 1, 10, 10, 128>}, {pipeline_mode = #tpu.pipeline_mode<synchronous>, transform_indices = @transform_3, window_bounds = array<i64: 27, 128, 128>}, {pipeline_mode = #tpu.pipeline_mode<synchronous>, transform_indices = @transform_4, window_bounds = array<i64: 1, 128>}, {transform_indices = @transform_5, window_bounds = array<i64: 1, 1, 8, 8, 128>}]} {
    %cst = arith.constant 0.000000e+00 : f32
    %0 = vector.broadcast %cst : f32 to vector<64x128xf32>
    %c0 = arith.constant 0 : index
    %c0_0 = arith.constant 0 : index
    %c0_1 = arith.constant 0 : index
    %c0_2 = arith.constant 0 : index
    %c0_3 = arith.constant 0 : index
    %1 = vector.load %arg2[%c0, %c0_0, %c0_1, %c0_2, %c0_3] : memref<1x1x10x10x128xbf16, #tpu.memory_space<vmem>>, vector<1x1x8x8x128xbf16>
    %2 = vector.shape_cast %1 : vector<1x1x8x8x128xbf16> to vector<8x8x128xbf16>
    %3 = arith.extf %2 : vector<8x8x128xbf16> to vector<8x8x128xf32>
    %4 = vector.shape_cast %3 : vector<8x8x128xf32> to vector<64x128xf32>
    %5 = arith.truncf %4 : vector<64x128xf32> to vector<64x128xbf16>
    %c0_4 = arith.constant 0 : index
    %c0_5 = arith.constant 0 : index
    %c0_6 = arith.constant 0 : index
    %6 = vector.load %arg5[%c0_4, %c0_5, %c0_6] : memref<27x128x128xbf16, #tpu.memory_space<vmem>>, vector<1x128x128xbf16>
    %7 = vector.shape_cast %6 : vector<1x128x128xbf16> to vector<128x128xbf16>
    %cst_7 = arith.constant dense<0.000000e+00> : vector<64x128xf32>
    %8 = tpu.matmul %5, %7, %cst_7 {dimension_numbers = #tpu.dot_dimension_numbers<[1], [0], [0], [1], [0, 0, 1, 1], [], []>} : vector<64x128xbf16>, vector<128x128xbf16>, vector<64x128xf32> -> vector<64x128xf32>
    %9 = arith.addf %0, %8 : vector<64x128xf32>
    %c0_8 = arith.constant 0 : index
    %c0_9 = arith.constant 0 : index
    %c0_10 = arith.constant 0 : index
    %c1 = arith.constant 1 : index
    %c0_11 = arith.constant 0 : index
    %10 = vector.load %arg2[%c0_8, %c0_9, %c0_10, %c1, %c0_11] : memref<1x1x10x10x128xbf16, #tpu.memory_space<vmem>>, vector<1x1x8x8x128xbf16>
    %11 = vector.shape_cast %10 : vector<1x1x8x8x128xbf16> to vector<8x8x128xbf16>
    %12 = arith.extf %11 : vector<8x8x128xbf16> to vector<8x8x128xf32>
    %13 = vector.shape_cast %12 : vector<8x8x128xf32> to vector<64x128xf32>
    %14 = arith.truncf %13 : vector<64x128xf32> to vector<64x128xbf16>
    %c1_12 = arith.constant 1 : index
    %c0_13 = arith.constant 0 : index
    %c0_14 = arith.constant 0 : index
    %15 = vector.load %arg5[%c1_12, %c0_13, %c0_14] : memref<27x128x128xbf16, #tpu.memory_space<vmem>>, vector<1x128x128xbf16>
    %16 = vector.shape_cast %15 : vector<1x128x128xbf16> to vector<128x128xbf16>
    %cst_15 = arith.constant dense<0.000000e+00> : vector<64x128xf32>
    %17 = tpu.matmul %14, %16, %cst_15 {dimension_numbers = #tpu.dot_dimension_numbers<[1], [0], [0], [1], [0, 0, 1, 1], [], []>} : vector<64x128xbf16>, vector<128x128xbf16>, vector<64x128xf32> -> vector<64x128xf32>
    %18 = arith.addf %9, %17 : vector<64x128xf32>
    %c0_16 = arith.constant 0 : index
    %c0_17 = arith.constant 0 : index
    %c0_18 = arith.constant 0 : index
    %c2 = arith.constant 2 : index
    %c0_19 = arith.constant 0 : index
    %19 = vector.load %arg2[%c0_16, %c0_17, %c0_18, %c2, %c0_19] : memref<1x1x10x10x128xbf16, #tpu.memory_space<vmem>>, vector<1x1x8x8x128xbf16>
    %20 = vector.shape_cast %19 : vector<1x1x8x8x128xbf16> to vector<8x8x128xbf16>
    %21 = arith.extf %20 : vector<8x8x128xbf16> to vector<8x8x128xf32>
    %22 = vector.shape_cast %21 : vector<8x8x128xf32> to vector<64x128xf32>
    %23 = arith.truncf %22 : vector<64x128xf32> to vector<64x128xbf16>
    %c2_20 = arith.constant 2 : index
    %c0_21 = arith.constant 0 : index
    %c0_22 = arith.constant 0 : index
    %24 = vector.load %arg5[%c2_20, %c0_21, %c0_22] : memref<27x128x128xbf16, #tpu.memory_space<vmem>>, vector<1x128x128xbf16>
    %25 = vector.shape_cast %24 : vector<1x128x128xbf16> to vector<128x128xbf16>
    %cst_23 = arith.constant dense<0.000000e+00> : vector<64x128xf32>
    %26 = tpu.matmul %23, %25, %cst_23 {dimension_numbers = #tpu.dot_dimension_numbers<[1], [0], [0], [1], [0, 0, 1, 1], [], []>} : vector<64x128xbf16>, vector<128x128xbf16>, vector<64x128xf32> -> vector<64x128xf32>
    %27 = arith.addf %18, %26 : vector<64x128xf32>
    %c0_24 = arith.constant 0 : index
    %c0_25 = arith.constant 0 : index
    %c1_26 = arith.constant 1 : index
    %c0_27 = arith.constant 0 : index
    %c0_28 = arith.constant 0 : index
    %28 = vector.load %arg2[%c0_24, %c0_25, %c1_26, %c0_27, %c0_28] : memref<1x1x10x10x128xbf16, #tpu.memory_space<vmem>>, vector<1x1x8x8x128xbf16>
    %29 = vector.shape_cast %28 : vector<1x1x8x8x128xbf16> to vector<8x8x128xbf16>
    %30 = arith.extf %29 : vector<8x8x128xbf16> to vector<8x8x128xf32>
    %31 = vector.shape_cast %30 : vector<8x8x128xf32> to vector<64x128xf32>
    %32 = arith.truncf %31 : vector<64x128xf32> to vector<64x128xbf16>
    %c3 = arith.constant 3 : index
    %c0_29 = arith.constant 0 : index
    %c0_30 = arith.constant 0 : index
    %33 = vector.load %arg5[%c3, %c0_29, %c0_30] : memref<27x128x128xbf16, #tpu.memory_space<vmem>>, vector<1x128x128xbf16>
    %34 = vector.shape_cast %33 : vector<1x128x128xbf16> to vector<128x128xbf16>
    %cst_31 = arith.constant dense<0.000000e+00> : vector<64x128xf32>
    %35 = tpu.matmul %32, %34, %cst_31 {dimension_numbers = #tpu.dot_dimension_numbers<[1], [0], [0], [1], [0, 0, 1, 1], [], []>} : vector<64x128xbf16>, vector<128x128xbf16>, vector<64x128xf32> -> vector<64x128xf32>
    %36 = arith.addf %27, %35 : vector<64x128xf32>
    %c0_32 = arith.constant 0 : index
    %c0_33 = arith.constant 0 : index
    %c1_34 = arith.constant 1 : index
    %c1_35 = arith.constant 1 : index
    %c0_36 = arith.constant 0 : index
    %37 = vector.load %arg2[%c0_32, %c0_33, %c1_34, %c1_35, %c0_36] : memref<1x1x10x10x128xbf16, #tpu.memory_space<vmem>>, vector<1x1x8x8x128xbf16>
    %38 = vector.shape_cast %37 : vector<1x1x8x8x128xbf16> to vector<8x8x128xbf16>
    %39 = arith.extf %38 : vector<8x8x128xbf16> to vector<8x8x128xf32>
    %40 = vector.shape_cast %39 : vector<8x8x128xf32> to vector<64x128xf32>
    %41 = arith.truncf %40 : vector<64x128xf32> to vector<64x128xbf16>
    %c4 = arith.constant 4 : index
    %c0_37 = arith.constant 0 : index
    %c0_38 = arith.constant 0 : index
    %42 = vector.load %arg5[%c4, %c0_37, %c0_38] : memref<27x128x128xbf16, #tpu.memory_space<vmem>>, vector<1x128x128xbf16>
    %43 = vector.shape_cast %42 : vector<1x128x128xbf16> to vector<128x128xbf16>
    %cst_39 = arith.constant dense<0.000000e+00> : vector<64x128xf32>
    %44 = tpu.matmul %41, %43, %cst_39 {dimension_numbers = #tpu.dot_dimension_numbers<[1], [0], [0], [1], [0, 0, 1, 1], [], []>} : vector<64x128xbf16>, vector<128x128xbf16>, vector<64x128xf32> -> vector<64x128xf32>
    %45 = arith.addf %36, %44 : vector<64x128xf32>
    %c0_40 = arith.constant 0 : index
    %c0_41 = arith.constant 0 : index
    %c1_42 = arith.constant 1 : index
    %c2_43 = arith.constant 2 : index
    %c0_44 = arith.constant 0 : index
    %46 = vector.load %arg2[%c0_40, %c0_41, %c1_42, %c2_43, %c0_44] : memref<1x1x10x10x128xbf16, #tpu.memory_space<vmem>>, vector<1x1x8x8x128xbf16>
    %47 = vector.shape_cast %46 : vector<1x1x8x8x128xbf16> to vector<8x8x128xbf16>
    %48 = arith.extf %47 : vector<8x8x128xbf16> to vector<8x8x128xf32>
    %49 = vector.shape_cast %48 : vector<8x8x128xf32> to vector<64x128xf32>
    %50 = arith.truncf %49 : vector<64x128xf32> to vector<64x128xbf16>
    %c5 = arith.constant 5 : index
    %c0_45 = arith.constant 0 : index
    %c0_46 = arith.constant 0 : index
    %51 = vector.load %arg5[%c5, %c0_45, %c0_46] : memref<27x128x128xbf16, #tpu.memory_space<vmem>>, vector<1x128x128xbf16>
    %52 = vector.shape_cast %51 : vector<1x128x128xbf16> to vector<128x128xbf16>
    %cst_47 = arith.constant dense<0.000000e+00> : vector<64x128xf32>
    %53 = tpu.matmul %50, %52, %cst_47 {dimension_numbers = #tpu.dot_dimension_numbers<[1], [0], [0], [1], [0, 0, 1, 1], [], []>} : vector<64x128xbf16>, vector<128x128xbf16>, vector<64x128xf32> -> vector<64x128xf32>
    %54 = arith.addf %45, %53 : vector<64x128xf32>
    %c0_48 = arith.constant 0 : index
    %c0_49 = arith.constant 0 : index
    %c2_50 = arith.constant 2 : index
    %c0_51 = arith.constant 0 : index
    %c0_52 = arith.constant 0 : index
    %55 = vector.load %arg2[%c0_48, %c0_49, %c2_50, %c0_51, %c0_52] : memref<1x1x10x10x128xbf16, #tpu.memory_space<vmem>>, vector<1x1x8x8x128xbf16>
    %56 = vector.shape_cast %55 : vector<1x1x8x8x128xbf16> to vector<8x8x128xbf16>
    %57 = arith.extf %56 : vector<8x8x128xbf16> to vector<8x8x128xf32>
    %58 = vector.shape_cast %57 : vector<8x8x128xf32> to vector<64x128xf32>
    %59 = arith.truncf %58 : vector<64x128xf32> to vector<64x128xbf16>
    %c6 = arith.constant 6 : index
    %c0_53 = arith.constant 0 : index
    %c0_54 = arith.constant 0 : index
    %60 = vector.load %arg5[%c6, %c0_53, %c0_54] : memref<27x128x128xbf16, #tpu.memory_space<vmem>>, vector<1x128x128xbf16>
    %61 = vector.shape_cast %60 : vector<1x128x128xbf16> to vector<128x128xbf16>
    %cst_55 = arith.constant dense<0.000000e+00> : vector<64x128xf32>
    %62 = tpu.matmul %59, %61, %cst_55 {dimension_numbers = #tpu.dot_dimension_numbers<[1], [0], [0], [1], [0, 0, 1, 1], [], []>} : vector<64x128xbf16>, vector<128x128xbf16>, vector<64x128xf32> -> vector<64x128xf32>
    %63 = arith.addf %54, %62 : vector<64x128xf32>
    %c0_56 = arith.constant 0 : index
    %c0_57 = arith.constant 0 : index
    %c2_58 = arith.constant 2 : index
    %c1_59 = arith.constant 1 : index
    %c0_60 = arith.constant 0 : index
    %64 = vector.load %arg2[%c0_56, %c0_57, %c2_58, %c1_59, %c0_60] : memref<1x1x10x10x128xbf16, #tpu.memory_space<vmem>>, vector<1x1x8x8x128xbf16>
    %65 = vector.shape_cast %64 : vector<1x1x8x8x128xbf16> to vector<8x8x128xbf16>
    %66 = arith.extf %65 : vector<8x8x128xbf16> to vector<8x8x128xf32>
    %67 = vector.shape_cast %66 : vector<8x8x128xf32> to vector<64x128xf32>
    %68 = arith.truncf %67 : vector<64x128xf32> to vector<64x128xbf16>
    %c7 = arith.constant 7 : index
    %c0_61 = arith.constant 0 : index
    %c0_62 = arith.constant 0 : index
    %69 = vector.load %arg5[%c7, %c0_61, %c0_62] : memref<27x128x128xbf16, #tpu.memory_space<vmem>>, vector<1x128x128xbf16>
    %70 = vector.shape_cast %69 : vector<1x128x128xbf16> to vector<128x128xbf16>
    %cst_63 = arith.constant dense<0.000000e+00> : vector<64x128xf32>
    %71 = tpu.matmul %68, %70, %cst_63 {dimension_numbers = #tpu.dot_dimension_numbers<[1], [0], [0], [1], [0, 0, 1, 1], [], []>} : vector<64x128xbf16>, vector<128x128xbf16>, vector<64x128xf32> -> vector<64x128xf32>
    %72 = arith.addf %63, %71 : vector<64x128xf32>
    %c0_64 = arith.constant 0 : index
    %c0_65 = arith.constant 0 : index
    %c2_66 = arith.constant 2 : index
    %c2_67 = arith.constant 2 : index
    %c0_68 = arith.constant 0 : index
    %73 = vector.load %arg2[%c0_64, %c0_65, %c2_66, %c2_67, %c0_68] : memref<1x1x10x10x128xbf16, #tpu.memory_space<vmem>>, vector<1x1x8x8x128xbf16>
    %74 = vector.shape_cast %73 : vector<1x1x8x8x128xbf16> to vector<8x8x128xbf16>
    %75 = arith.extf %74 : vector<8x8x128xbf16> to vector<8x8x128xf32>
    %76 = vector.shape_cast %75 : vector<8x8x128xf32> to vector<64x128xf32>
    %77 = arith.truncf %76 : vector<64x128xf32> to vector<64x128xbf16>
    %c8 = arith.constant 8 : index
    %c0_69 = arith.constant 0 : index
    %c0_70 = arith.constant 0 : index
    %78 = vector.load %arg5[%c8, %c0_69, %c0_70] : memref<27x128x128xbf16, #tpu.memory_space<vmem>>, vector<1x128x128xbf16>
    %79 = vector.shape_cast %78 : vector<1x128x128xbf16> to vector<128x128xbf16>
    %cst_71 = arith.constant dense<0.000000e+00> : vector<64x128xf32>
    %80 = tpu.matmul %77, %79, %cst_71 {dimension_numbers = #tpu.dot_dimension_numbers<[1], [0], [0], [1], [0, 0, 1, 1], [], []>} : vector<64x128xbf16>, vector<128x128xbf16>, vector<64x128xf32> -> vector<64x128xf32>
    %81 = arith.addf %72, %80 : vector<64x128xf32>
    %c0_72 = arith.constant 0 : index
    %c0_73 = arith.constant 0 : index
    %c0_74 = arith.constant 0 : index
    %c0_75 = arith.constant 0 : index
    %c0_76 = arith.constant 0 : index
    %82 = vector.load %arg3[%c0_72, %c0_73, %c0_74, %c0_75, %c0_76] : memref<1x1x10x10x128xbf16, #tpu.memory_space<vmem>>, vector<1x1x8x8x128xbf16>
    %83 = vector.shape_cast %82 : vector<1x1x8x8x128xbf16> to vector<8x8x128xbf16>
    %84 = arith.extf %83 : vector<8x8x128xbf16> to vector<8x8x128xf32>
    %85 = vector.shape_cast %84 : vector<8x8x128xf32> to vector<64x128xf32>
    %86 = arith.truncf %85 : vector<64x128xf32> to vector<64x128xbf16>
    %c9 = arith.constant 9 : index
    %c0_77 = arith.constant 0 : index
    %c0_78 = arith.constant 0 : index
    %87 = vector.load %arg5[%c9, %c0_77, %c0_78] : memref<27x128x128xbf16, #tpu.memory_space<vmem>>, vector<1x128x128xbf16>
    %88 = vector.shape_cast %87 : vector<1x128x128xbf16> to vector<128x128xbf16>
    %cst_79 = arith.constant dense<0.000000e+00> : vector<64x128xf32>
    %89 = tpu.matmul %86, %88, %cst_79 {dimension_numbers = #tpu.dot_dimension_numbers<[1], [0], [0], [1], [0, 0, 1, 1], [], []>} : vector<64x128xbf16>, vector<128x128xbf16>, vector<64x128xf32> -> vector<64x128xf32>
    %90 = arith.addf %81, %89 : vector<64x128xf32>
    %c0_80 = arith.constant 0 : index
    %c0_81 = arith.constant 0 : index
    %c0_82 = arith.constant 0 : index
    %c1_83 = arith.constant 1 : index
    %c0_84 = arith.constant 0 : index
    %91 = vector.load %arg3[%c0_80, %c0_81, %c0_82, %c1_83, %c0_84] : memref<1x1x10x10x128xbf16, #tpu.memory_space<vmem>>, vector<1x1x8x8x128xbf16>
    %92 = vector.shape_cast %91 : vector<1x1x8x8x128xbf16> to vector<8x8x128xbf16>
    %93 = arith.extf %92 : vector<8x8x128xbf16> to vector<8x8x128xf32>
    %94 = vector.shape_cast %93 : vector<8x8x128xf32> to vector<64x128xf32>
    %95 = arith.truncf %94 : vector<64x128xf32> to vector<64x128xbf16>
    %c10 = arith.constant 10 : index
    %c0_85 = arith.constant 0 : index
    %c0_86 = arith.constant 0 : index
    %96 = vector.load %arg5[%c10, %c0_85, %c0_86] : memref<27x128x128xbf16, #tpu.memory_space<vmem>>, vector<1x128x128xbf16>
    %97 = vector.shape_cast %96 : vector<1x128x128xbf16> to vector<128x128xbf16>
    %cst_87 = arith.constant dense<0.000000e+00> : vector<64x128xf32>
    %98 = tpu.matmul %95, %97, %cst_87 {dimension_numbers = #tpu.dot_dimension_numbers<[1], [0], [0], [1], [0, 0, 1, 1], [], []>} : vector<64x128xbf16>, vector<128x128xbf16>, vector<64x128xf32> -> vector<64x128xf32>
    %99 = arith.addf %90, %98 : vector<64x128xf32>
    %c0_88 = arith.constant 0 : index
    %c0_89 = arith.constant 0 : index
    %c0_90 = arith.constant 0 : index
    %c2_91 = arith.constant 2 : index
    %c0_92 = arith.constant 0 : index
    %100 = vector.load %arg3[%c0_88, %c0_89, %c0_90, %c2_91, %c0_92] : memref<1x1x10x10x128xbf16, #tpu.memory_space<vmem>>, vector<1x1x8x8x128xbf16>
    %101 = vector.shape_cast %100 : vector<1x1x8x8x128xbf16> to vector<8x8x128xbf16>
    %102 = arith.extf %101 : vector<8x8x128xbf16> to vector<8x8x128xf32>
    %103 = vector.shape_cast %102 : vector<8x8x128xf32> to vector<64x128xf32>
    %104 = arith.truncf %103 : vector<64x128xf32> to vector<64x128xbf16>
    %c11 = arith.constant 11 : index
    %c0_93 = arith.constant 0 : index
    %c0_94 = arith.constant 0 : index
    %105 = vector.load %arg5[%c11, %c0_93, %c0_94] : memref<27x128x128xbf16, #tpu.memory_space<vmem>>, vector<1x128x128xbf16>
    %106 = vector.shape_cast %105 : vector<1x128x128xbf16> to vector<128x128xbf16>
    %cst_95 = arith.constant dense<0.000000e+00> : vector<64x128xf32>
    %107 = tpu.matmul %104, %106, %cst_95 {dimension_numbers = #tpu.dot_dimension_numbers<[1], [0], [0], [1], [0, 0, 1, 1], [], []>} : vector<64x128xbf16>, vector<128x128xbf16>, vector<64x128xf32> -> vector<64x128xf32>
    %108 = arith.addf %99, %107 : vector<64x128xf32>
    %c0_96 = arith.constant 0 : index
    %c0_97 = arith.constant 0 : index
    %c1_98 = arith.constant 1 : index
    %c0_99 = arith.constant 0 : index
    %c0_100 = arith.constant 0 : index
    %109 = vector.load %arg3[%c0_96, %c0_97, %c1_98, %c0_99, %c0_100] : memref<1x1x10x10x128xbf16, #tpu.memory_space<vmem>>, vector<1x1x8x8x128xbf16>
    %110 = vector.shape_cast %109 : vector<1x1x8x8x128xbf16> to vector<8x8x128xbf16>
    %111 = arith.extf %110 : vector<8x8x128xbf16> to vector<8x8x128xf32>
    %112 = vector.shape_cast %111 : vector<8x8x128xf32> to vector<64x128xf32>
    %113 = arith.truncf %112 : vector<64x128xf32> to vector<64x128xbf16>
    %c12 = arith.constant 12 : index
    %c0_101 = arith.constant 0 : index
    %c0_102 = arith.constant 0 : index
    %114 = vector.load %arg5[%c12, %c0_101, %c0_102] : memref<27x128x128xbf16, #tpu.memory_space<vmem>>, vector<1x128x128xbf16>
    %115 = vector.shape_cast %114 : vector<1x128x128xbf16> to vector<128x128xbf16>
    %cst_103 = arith.constant dense<0.000000e+00> : vector<64x128xf32>
    %116 = tpu.matmul %113, %115, %cst_103 {dimension_numbers = #tpu.dot_dimension_numbers<[1], [0], [0], [1], [0, 0, 1, 1], [], []>} : vector<64x128xbf16>, vector<128x128xbf16>, vector<64x128xf32> -> vector<64x128xf32>
    %117 = arith.addf %108, %116 : vector<64x128xf32>
    %c0_104 = arith.constant 0 : index
    %c0_105 = arith.constant 0 : index
    %c1_106 = arith.constant 1 : index
    %c1_107 = arith.constant 1 : index
    %c0_108 = arith.constant 0 : index
    %118 = vector.load %arg3[%c0_104, %c0_105, %c1_106, %c1_107, %c0_108] : memref<1x1x10x10x128xbf16, #tpu.memory_space<vmem>>, vector<1x1x8x8x128xbf16>
    %119 = vector.shape_cast %118 : vector<1x1x8x8x128xbf16> to vector<8x8x128xbf16>
    %120 = arith.extf %119 : vector<8x8x128xbf16> to vector<8x8x128xf32>
    %121 = vector.shape_cast %120 : vector<8x8x128xf32> to vector<64x128xf32>
    %122 = arith.truncf %121 : vector<64x128xf32> to vector<64x128xbf16>
    %c13 = arith.constant 13 : index
    %c0_109 = arith.constant 0 : index
    %c0_110 = arith.constant 0 : index
    %123 = vector.load %arg5[%c13, %c0_109, %c0_110] : memref<27x128x128xbf16, #tpu.memory_space<vmem>>, vector<1x128x128xbf16>
    %124 = vector.shape_cast %123 : vector<1x128x128xbf16> to vector<128x128xbf16>
    %cst_111 = arith.constant dense<0.000000e+00> : vector<64x128xf32>
    %125 = tpu.matmul %122, %124, %cst_111 {dimension_numbers = #tpu.dot_dimension_numbers<[1], [0], [0], [1], [0, 0, 1, 1], [], []>} : vector<64x128xbf16>, vector<128x128xbf16>, vector<64x128xf32> -> vector<64x128xf32>
    %126 = arith.addf %117, %125 : vector<64x128xf32>
    %c0_112 = arith.constant 0 : index
    %c0_113 = arith.constant 0 : index
    %c1_114 = arith.constant 1 : index
    %c2_115 = arith.constant 2 : index
    %c0_116 = arith.constant 0 : index
    %127 = vector.load %arg3[%c0_112, %c0_113, %c1_114, %c2_115, %c0_116] : memref<1x1x10x10x128xbf16, #tpu.memory_space<vmem>>, vector<1x1x8x8x128xbf16>
    %128 = vector.shape_cast %127 : vector<1x1x8x8x128xbf16> to vector<8x8x128xbf16>
    %129 = arith.extf %128 : vector<8x8x128xbf16> to vector<8x8x128xf32>
    %130 = vector.shape_cast %129 : vector<8x8x128xf32> to vector<64x128xf32>
    %131 = arith.truncf %130 : vector<64x128xf32> to vector<64x128xbf16>
    %c14 = arith.constant 14 : index
    %c0_117 = arith.constant 0 : index
    %c0_118 = arith.constant 0 : index
    %132 = vector.load %arg5[%c14, %c0_117, %c0_118] : memref<27x128x128xbf16, #tpu.memory_space<vmem>>, vector<1x128x128xbf16>
    %133 = vector.shape_cast %132 : vector<1x128x128xbf16> to vector<128x128xbf16>
    %cst_119 = arith.constant dense<0.000000e+00> : vector<64x128xf32>
    %134 = tpu.matmul %131, %133, %cst_119 {dimension_numbers = #tpu.dot_dimension_numbers<[1], [0], [0], [1], [0, 0, 1, 1], [], []>} : vector<64x128xbf16>, vector<128x128xbf16>, vector<64x128xf32> -> vector<64x128xf32>
    %135 = arith.addf %126, %134 : vector<64x128xf32>
    %c0_120 = arith.constant 0 : index
    %c0_121 = arith.constant 0 : index
    %c2_122 = arith.constant 2 : index
    %c0_123 = arith.constant 0 : index
    %c0_124 = arith.constant 0 : index
    %136 = vector.load %arg3[%c0_120, %c0_121, %c2_122, %c0_123, %c0_124] : memref<1x1x10x10x128xbf16, #tpu.memory_space<vmem>>, vector<1x1x8x8x128xbf16>
    %137 = vector.shape_cast %136 : vector<1x1x8x8x128xbf16> to vector<8x8x128xbf16>
    %138 = arith.extf %137 : vector<8x8x128xbf16> to vector<8x8x128xf32>
    %139 = vector.shape_cast %138 : vector<8x8x128xf32> to vector<64x128xf32>
    %140 = arith.truncf %139 : vector<64x128xf32> to vector<64x128xbf16>
    %c15 = arith.constant 15 : index
    %c0_125 = arith.constant 0 : index
    %c0_126 = arith.constant 0 : index
    %141 = vector.load %arg5[%c15, %c0_125, %c0_126] : memref<27x128x128xbf16, #tpu.memory_space<vmem>>, vector<1x128x128xbf16>
    %142 = vector.shape_cast %141 : vector<1x128x128xbf16> to vector<128x128xbf16>
    %cst_127 = arith.constant dense<0.000000e+00> : vector<64x128xf32>
    %143 = tpu.matmul %140, %142, %cst_127 {dimension_numbers = #tpu.dot_dimension_numbers<[1], [0], [0], [1], [0, 0, 1, 1], [], []>} : vector<64x128xbf16>, vector<128x128xbf16>, vector<64x128xf32> -> vector<64x128xf32>
    %144 = arith.addf %135, %143 : vector<64x128xf32>
    %c0_128 = arith.constant 0 : index
    %c0_129 = arith.constant 0 : index
    %c2_130 = arith.constant 2 : index
    %c1_131 = arith.constant 1 : index
    %c0_132 = arith.constant 0 : index
    %145 = vector.load %arg3[%c0_128, %c0_129, %c2_130, %c1_131, %c0_132] : memref<1x1x10x10x128xbf16, #tpu.memory_space<vmem>>, vector<1x1x8x8x128xbf16>
    %146 = vector.shape_cast %145 : vector<1x1x8x8x128xbf16> to vector<8x8x128xbf16>
    %147 = arith.extf %146 : vector<8x8x128xbf16> to vector<8x8x128xf32>
    %148 = vector.shape_cast %147 : vector<8x8x128xf32> to vector<64x128xf32>
    %149 = arith.truncf %148 : vector<64x128xf32> to vector<64x128xbf16>
    %c16 = arith.constant 16 : index
    %c0_133 = arith.constant 0 : index
    %c0_134 = arith.constant 0 : index
    %150 = vector.load %arg5[%c16, %c0_133, %c0_134] : memref<27x128x128xbf16, #tpu.memory_space<vmem>>, vector<1x128x128xbf16>
    %151 = vector.shape_cast %150 : vector<1x128x128xbf16> to vector<128x128xbf16>
    %cst_135 = arith.constant dense<0.000000e+00> : vector<64x128xf32>
    %152 = tpu.matmul %149, %151, %cst_135 {dimension_numbers = #tpu.dot_dimension_numbers<[1], [0], [0], [1], [0, 0, 1, 1], [], []>} : vector<64x128xbf16>, vector<128x128xbf16>, vector<64x128xf32> -> vector<64x128xf32>
    %153 = arith.addf %144, %152 : vector<64x128xf32>
    %c0_136 = arith.constant 0 : index
    %c0_137 = arith.constant 0 : index
    %c2_138 = arith.constant 2 : index
    %c2_139 = arith.constant 2 : index
    %c0_140 = arith.constant 0 : index
    %154 = vector.load %arg3[%c0_136, %c0_137, %c2_138, %c2_139, %c0_140] : memref<1x1x10x10x128xbf16, #tpu.memory_space<vmem>>, vector<1x1x8x8x128xbf16>
    %155 = vector.shape_cast %154 : vector<1x1x8x8x128xbf16> to vector<8x8x128xbf16>
    %156 = arith.extf %155 : vector<8x8x128xbf16> to vector<8x8x128xf32>
    %157 = vector.shape_cast %156 : vector<8x8x128xf32> to vector<64x128xf32>
    %158 = arith.truncf %157 : vector<64x128xf32> to vector<64x128xbf16>
    %c17 = arith.constant 17 : index
    %c0_141 = arith.constant 0 : index
    %c0_142 = arith.constant 0 : index
    %159 = vector.load %arg5[%c17, %c0_141, %c0_142] : memref<27x128x128xbf16, #tpu.memory_space<vmem>>, vector<1x128x128xbf16>
    %160 = vector.shape_cast %159 : vector<1x128x128xbf16> to vector<128x128xbf16>
    %cst_143 = arith.constant dense<0.000000e+00> : vector<64x128xf32>
    %161 = tpu.matmul %158, %160, %cst_143 {dimension_numbers = #tpu.dot_dimension_numbers<[1], [0], [0], [1], [0, 0, 1, 1], [], []>} : vector<64x128xbf16>, vector<128x128xbf16>, vector<64x128xf32> -> vector<64x128xf32>
    %162 = arith.addf %153, %161 : vector<64x128xf32>
    %c0_144 = arith.constant 0 : index
    %c0_145 = arith.constant 0 : index
    %c0_146 = arith.constant 0 : index
    %c0_147 = arith.constant 0 : index
    %c0_148 = arith.constant 0 : index
    %163 = vector.load %arg4[%c0_144, %c0_145, %c0_146, %c0_147, %c0_148] : memref<1x1x10x10x128xbf16, #tpu.memory_space<vmem>>, vector<1x1x8x8x128xbf16>
    %164 = vector.shape_cast %163 : vector<1x1x8x8x128xbf16> to vector<8x8x128xbf16>
    %165 = arith.extf %164 : vector<8x8x128xbf16> to vector<8x8x128xf32>
    %166 = vector.shape_cast %165 : vector<8x8x128xf32> to vector<64x128xf32>
    %167 = arith.truncf %166 : vector<64x128xf32> to vector<64x128xbf16>
    %c18 = arith.constant 18 : index
    %c0_149 = arith.constant 0 : index
    %c0_150 = arith.constant 0 : index
    %168 = vector.load %arg5[%c18, %c0_149, %c0_150] : memref<27x128x128xbf16, #tpu.memory_space<vmem>>, vector<1x128x128xbf16>
    %169 = vector.shape_cast %168 : vector<1x128x128xbf16> to vector<128x128xbf16>
    %cst_151 = arith.constant dense<0.000000e+00> : vector<64x128xf32>
    %170 = tpu.matmul %167, %169, %cst_151 {dimension_numbers = #tpu.dot_dimension_numbers<[1], [0], [0], [1], [0, 0, 1, 1], [], []>} : vector<64x128xbf16>, vector<128x128xbf16>, vector<64x128xf32> -> vector<64x128xf32>
    %171 = arith.addf %162, %170 : vector<64x128xf32>
    %c0_152 = arith.constant 0 : index
    %c0_153 = arith.constant 0 : index
    %c0_154 = arith.constant 0 : index
    %c1_155 = arith.constant 1 : index
    %c0_156 = arith.constant 0 : index
    %172 = vector.load %arg4[%c0_152, %c0_153, %c0_154, %c1_155, %c0_156] : memref<1x1x10x10x128xbf16, #tpu.memory_space<vmem>>, vector<1x1x8x8x128xbf16>
    %173 = vector.shape_cast %172 : vector<1x1x8x8x128xbf16> to vector<8x8x128xbf16>
    %174 = arith.extf %173 : vector<8x8x128xbf16> to vector<8x8x128xf32>
    %175 = vector.shape_cast %174 : vector<8x8x128xf32> to vector<64x128xf32>
    %176 = arith.truncf %175 : vector<64x128xf32> to vector<64x128xbf16>
    %c19 = arith.constant 19 : index
    %c0_157 = arith.constant 0 : index
    %c0_158 = arith.constant 0 : index
    %177 = vector.load %arg5[%c19, %c0_157, %c0_158] : memref<27x128x128xbf16, #tpu.memory_space<vmem>>, vector<1x128x128xbf16>
    %178 = vector.shape_cast %177 : vector<1x128x128xbf16> to vector<128x128xbf16>
    %cst_159 = arith.constant dense<0.000000e+00> : vector<64x128xf32>
    %179 = tpu.matmul %176, %178, %cst_159 {dimension_numbers = #tpu.dot_dimension_numbers<[1], [0], [0], [1], [0, 0, 1, 1], [], []>} : vector<64x128xbf16>, vector<128x128xbf16>, vector<64x128xf32> -> vector<64x128xf32>
    %180 = arith.addf %171, %179 : vector<64x128xf32>
    %c0_160 = arith.constant 0 : index
    %c0_161 = arith.constant 0 : index
    %c0_162 = arith.constant 0 : index
    %c2_163 = arith.constant 2 : index
    %c0_164 = arith.constant 0 : index
    %181 = vector.load %arg4[%c0_160, %c0_161, %c0_162, %c2_163, %c0_164] : memref<1x1x10x10x128xbf16, #tpu.memory_space<vmem>>, vector<1x1x8x8x128xbf16>
    %182 = vector.shape_cast %181 : vector<1x1x8x8x128xbf16> to vector<8x8x128xbf16>
    %183 = arith.extf %182 : vector<8x8x128xbf16> to vector<8x8x128xf32>
    %184 = vector.shape_cast %183 : vector<8x8x128xf32> to vector<64x128xf32>
    %185 = arith.truncf %184 : vector<64x128xf32> to vector<64x128xbf16>
    %c20 = arith.constant 20 : index
    %c0_165 = arith.constant 0 : index
    %c0_166 = arith.constant 0 : index
    %186 = vector.load %arg5[%c20, %c0_165, %c0_166] : memref<27x128x128xbf16, #tpu.memory_space<vmem>>, vector<1x128x128xbf16>
    %187 = vector.shape_cast %186 : vector<1x128x128xbf16> to vector<128x128xbf16>
    %cst_167 = arith.constant dense<0.000000e+00> : vector<64x128xf32>
    %188 = tpu.matmul %185, %187, %cst_167 {dimension_numbers = #tpu.dot_dimension_numbers<[1], [0], [0], [1], [0, 0, 1, 1], [], []>} : vector<64x128xbf16>, vector<128x128xbf16>, vector<64x128xf32> -> vector<64x128xf32>
    %189 = arith.addf %180, %188 : vector<64x128xf32>
    %c0_168 = arith.constant 0 : index
    %c0_169 = arith.constant 0 : index
    %c1_170 = arith.constant 1 : index
    %c0_171 = arith.constant 0 : index
    %c0_172 = arith.constant 0 : index
    %190 = vector.load %arg4[%c0_168, %c0_169, %c1_170, %c0_171, %c0_172] : memref<1x1x10x10x128xbf16, #tpu.memory_space<vmem>>, vector<1x1x8x8x128xbf16>
    %191 = vector.shape_cast %190 : vector<1x1x8x8x128xbf16> to vector<8x8x128xbf16>
    %192 = arith.extf %191 : vector<8x8x128xbf16> to vector<8x8x128xf32>
    %193 = vector.shape_cast %192 : vector<8x8x128xf32> to vector<64x128xf32>
    %194 = arith.truncf %193 : vector<64x128xf32> to vector<64x128xbf16>
    %c21 = arith.constant 21 : index
    %c0_173 = arith.constant 0 : index
    %c0_174 = arith.constant 0 : index
    %195 = vector.load %arg5[%c21, %c0_173, %c0_174] : memref<27x128x128xbf16, #tpu.memory_space<vmem>>, vector<1x128x128xbf16>
    %196 = vector.shape_cast %195 : vector<1x128x128xbf16> to vector<128x128xbf16>
    %cst_175 = arith.constant dense<0.000000e+00> : vector<64x128xf32>
    %197 = tpu.matmul %194, %196, %cst_175 {dimension_numbers = #tpu.dot_dimension_numbers<[1], [0], [0], [1], [0, 0, 1, 1], [], []>} : vector<64x128xbf16>, vector<128x128xbf16>, vector<64x128xf32> -> vector<64x128xf32>
    %198 = arith.addf %189, %197 : vector<64x128xf32>
    %c0_176 = arith.constant 0 : index
    %c0_177 = arith.constant 0 : index
    %c1_178 = arith.constant 1 : index
    %c1_179 = arith.constant 1 : index
    %c0_180 = arith.constant 0 : index
    %199 = vector.load %arg4[%c0_176, %c0_177, %c1_178, %c1_179, %c0_180] : memref<1x1x10x10x128xbf16, #tpu.memory_space<vmem>>, vector<1x1x8x8x128xbf16>
    %200 = vector.shape_cast %199 : vector<1x1x8x8x128xbf16> to vector<8x8x128xbf16>
    %201 = arith.extf %200 : vector<8x8x128xbf16> to vector<8x8x128xf32>
    %202 = vector.shape_cast %201 : vector<8x8x128xf32> to vector<64x128xf32>
    %203 = arith.truncf %202 : vector<64x128xf32> to vector<64x128xbf16>
    %c22 = arith.constant 22 : index
    %c0_181 = arith.constant 0 : index
    %c0_182 = arith.constant 0 : index
    %204 = vector.load %arg5[%c22, %c0_181, %c0_182] : memref<27x128x128xbf16, #tpu.memory_space<vmem>>, vector<1x128x128xbf16>
    %205 = vector.shape_cast %204 : vector<1x128x128xbf16> to vector<128x128xbf16>
    %cst_183 = arith.constant dense<0.000000e+00> : vector<64x128xf32>
    %206 = tpu.matmul %203, %205, %cst_183 {dimension_numbers = #tpu.dot_dimension_numbers<[1], [0], [0], [1], [0, 0, 1, 1], [], []>} : vector<64x128xbf16>, vector<128x128xbf16>, vector<64x128xf32> -> vector<64x128xf32>
    %207 = arith.addf %198, %206 : vector<64x128xf32>
    %c0_184 = arith.constant 0 : index
    %c0_185 = arith.constant 0 : index
    %c1_186 = arith.constant 1 : index
    %c2_187 = arith.constant 2 : index
    %c0_188 = arith.constant 0 : index
    %208 = vector.load %arg4[%c0_184, %c0_185, %c1_186, %c2_187, %c0_188] : memref<1x1x10x10x128xbf16, #tpu.memory_space<vmem>>, vector<1x1x8x8x128xbf16>
    %209 = vector.shape_cast %208 : vector<1x1x8x8x128xbf16> to vector<8x8x128xbf16>
    %210 = arith.extf %209 : vector<8x8x128xbf16> to vector<8x8x128xf32>
    %211 = vector.shape_cast %210 : vector<8x8x128xf32> to vector<64x128xf32>
    %212 = arith.truncf %211 : vector<64x128xf32> to vector<64x128xbf16>
    %c23 = arith.constant 23 : index
    %c0_189 = arith.constant 0 : index
    %c0_190 = arith.constant 0 : index
    %213 = vector.load %arg5[%c23, %c0_189, %c0_190] : memref<27x128x128xbf16, #tpu.memory_space<vmem>>, vector<1x128x128xbf16>
    %214 = vector.shape_cast %213 : vector<1x128x128xbf16> to vector<128x128xbf16>
    %cst_191 = arith.constant dense<0.000000e+00> : vector<64x128xf32>
    %215 = tpu.matmul %212, %214, %cst_191 {dimension_numbers = #tpu.dot_dimension_numbers<[1], [0], [0], [1], [0, 0, 1, 1], [], []>} : vector<64x128xbf16>, vector<128x128xbf16>, vector<64x128xf32> -> vector<64x128xf32>
    %216 = arith.addf %207, %215 : vector<64x128xf32>
    %c0_192 = arith.constant 0 : index
    %c0_193 = arith.constant 0 : index
    %c2_194 = arith.constant 2 : index
    %c0_195 = arith.constant 0 : index
    %c0_196 = arith.constant 0 : index
    %217 = vector.load %arg4[%c0_192, %c0_193, %c2_194, %c0_195, %c0_196] : memref<1x1x10x10x128xbf16, #tpu.memory_space<vmem>>, vector<1x1x8x8x128xbf16>
    %218 = vector.shape_cast %217 : vector<1x1x8x8x128xbf16> to vector<8x8x128xbf16>
    %219 = arith.extf %218 : vector<8x8x128xbf16> to vector<8x8x128xf32>
    %220 = vector.shape_cast %219 : vector<8x8x128xf32> to vector<64x128xf32>
    %221 = arith.truncf %220 : vector<64x128xf32> to vector<64x128xbf16>
    %c24 = arith.constant 24 : index
    %c0_197 = arith.constant 0 : index
    %c0_198 = arith.constant 0 : index
    %222 = vector.load %arg5[%c24, %c0_197, %c0_198] : memref<27x128x128xbf16, #tpu.memory_space<vmem>>, vector<1x128x128xbf16>
    %223 = vector.shape_cast %222 : vector<1x128x128xbf16> to vector<128x128xbf16>
    %cst_199 = arith.constant dense<0.000000e+00> : vector<64x128xf32>
    %224 = tpu.matmul %221, %223, %cst_199 {dimension_numbers = #tpu.dot_dimension_numbers<[1], [0], [0], [1], [0, 0, 1, 1], [], []>} : vector<64x128xbf16>, vector<128x128xbf16>, vector<64x128xf32> -> vector<64x128xf32>
    %225 = arith.addf %216, %224 : vector<64x128xf32>
    %c0_200 = arith.constant 0 : index
    %c0_201 = arith.constant 0 : index
    %c2_202 = arith.constant 2 : index
    %c1_203 = arith.constant 1 : index
    %c0_204 = arith.constant 0 : index
    %226 = vector.load %arg4[%c0_200, %c0_201, %c2_202, %c1_203, %c0_204] : memref<1x1x10x10x128xbf16, #tpu.memory_space<vmem>>, vector<1x1x8x8x128xbf16>
    %227 = vector.shape_cast %226 : vector<1x1x8x8x128xbf16> to vector<8x8x128xbf16>
    %228 = arith.extf %227 : vector<8x8x128xbf16> to vector<8x8x128xf32>
    %229 = vector.shape_cast %228 : vector<8x8x128xf32> to vector<64x128xf32>
    %230 = arith.truncf %229 : vector<64x128xf32> to vector<64x128xbf16>
    %c25 = arith.constant 25 : index
    %c0_205 = arith.constant 0 : index
    %c0_206 = arith.constant 0 : index
    %231 = vector.load %arg5[%c25, %c0_205, %c0_206] : memref<27x128x128xbf16, #tpu.memory_space<vmem>>, vector<1x128x128xbf16>
    %232 = vector.shape_cast %231 : vector<1x128x128xbf16> to vector<128x128xbf16>
    %cst_207 = arith.constant dense<0.000000e+00> : vector<64x128xf32>
    %233 = tpu.matmul %230, %232, %cst_207 {dimension_numbers = #tpu.dot_dimension_numbers<[1], [0], [0], [1], [0, 0, 1, 1], [], []>} : vector<64x128xbf16>, vector<128x128xbf16>, vector<64x128xf32> -> vector<64x128xf32>
    %234 = arith.addf %225, %233 : vector<64x128xf32>
    %c0_208 = arith.constant 0 : index
    %c0_209 = arith.constant 0 : index
    %c2_210 = arith.constant 2 : index
    %c2_211 = arith.constant 2 : index
    %c0_212 = arith.constant 0 : index
    %235 = vector.load %arg4[%c0_208, %c0_209, %c2_210, %c2_211, %c0_212] : memref<1x1x10x10x128xbf16, #tpu.memory_space<vmem>>, vector<1x1x8x8x128xbf16>
    %236 = vector.shape_cast %235 : vector<1x1x8x8x128xbf16> to vector<8x8x128xbf16>
    %237 = arith.extf %236 : vector<8x8x128xbf16> to vector<8x8x128xf32>
    %238 = vector.shape_cast %237 : vector<8x8x128xf32> to vector<64x128xf32>
    %239 = arith.truncf %238 : vector<64x128xf32> to vector<64x128xbf16>
    %c26 = arith.constant 26 : index
    %c0_213 = arith.constant 0 : index
    %c0_214 = arith.constant 0 : index
    %240 = vector.load %arg5[%c26, %c0_213, %c0_214] : memref<27x128x128xbf16, #tpu.memory_space<vmem>>, vector<1x128x128xbf16>
    %241 = vector.shape_cast %240 : vector<1x128x128xbf16> to vector<128x128xbf16>
    %cst_215 = arith.constant dense<0.000000e+00> : vector<64x128xf32>
    %242 = tpu.matmul %239, %241, %cst_215 {dimension_numbers = #tpu.dot_dimension_numbers<[1], [0], [0], [1], [0, 0, 1, 1], [], []>} : vector<64x128xbf16>, vector<128x128xbf16>, vector<64x128xf32> -> vector<64x128xf32>
    %243 = arith.addf %234, %242 : vector<64x128xf32>
    %c0_216 = arith.constant 0 : index
    %c0_217 = arith.constant 0 : index
    %244 = vector.load %arg6[%c0_216, %c0_217] : memref<1x128xf32, #tpu.memory_space<vmem>>, vector<1x128xf32>
    %245 = vector.broadcast %244 : vector<1x128xf32> to vector<64x128xf32>
    %246 = arith.addf %243, %245 : vector<64x128xf32>
    %cst_218 = arith.constant 0.000000e+00 : f32
    %247 = vector.broadcast %cst_218 : f32 to vector<64x128xf32>
    %248 = arith.maximumf %246, %247 : vector<64x128xf32>
    %249 = vector.shape_cast %248 : vector<64x128xf32> to vector<8x8x128xf32>
    %250 = arith.truncf %249 : vector<8x8x128xf32> to vector<8x8x128xbf16>
    %c0_219 = arith.constant 0 : index
    %c0_220 = arith.constant 0 : index
    %c0_221 = arith.constant 0 : index
    %c0_222 = arith.constant 0 : index
    %c0_223 = arith.constant 0 : index
    %251 = vector.load %arg7[%c0_219, %c0_220, %c0_221, %c0_222, %c0_223] : memref<1x1x8x8x128xbf16, #tpu.memory_space<vmem>>, vector<1x1x8x8x128xbf16>
    %252 = vector.shape_cast %251 : vector<1x1x8x8x128xbf16> to vector<8x8x128xbf16>
    %253 = vector.shape_cast %250 : vector<8x8x128xbf16> to vector<1x1x8x8x128xbf16>
    tpu.vector_store %arg7[%c0_219, %c0_220, %c0_221, %c0_222, %c0_223], %253 {strides = array<i32>} : memref<1x1x8x8x128xbf16, #tpu.memory_space<vmem>>, vector<1x1x8x8x128xbf16>,
    return
  }
  func.func @transform_0(%arg0: i32, %arg1: i32) -> (i32, i32, i32, i32, i32) {
    %c0_i32 = arith.constant 0 : i32
    %0 = arith.addi %arg1, %c0_i32 : i32
    %c0_i32_0 = arith.constant 0 : i32
    %c0_i32_1 = arith.constant 0 : i32
    %c0_i32_2 = arith.constant 0 : i32
    %c0_i32_3 = arith.constant 0 : i32
    return %arg0, %0, %c0_i32_0, %c0_i32_1, %c0_i32_2 : i32, i32, i32, i32, i32
  }
  func.func @transform_1(%arg0: i32, %arg1: i32) -> (i32, i32, i32, i32, i32) {
    %c1_i32 = arith.constant 1 : i32
    %0 = arith.addi %arg1, %c1_i32 : i32
    %c0_i32 = arith.constant 0 : i32
    %c0_i32_0 = arith.constant 0 : i32
    %c0_i32_1 = arith.constant 0 : i32
    %c0_i32_2 = arith.constant 0 : i32
    return %arg0, %0, %c0_i32, %c0_i32_0, %c0_i32_1 : i32, i32, i32, i32, i32
  }
  func.func @transform_2(%arg0: i32, %arg1: i32) -> (i32, i32, i32, i32, i32) {
    %c2_i32 = arith.constant 2 : i32
    %0 = arith.addi %arg1, %c2_i32 : i32
    %c0_i32 = arith.constant 0 : i32
    %c0_i32_0 = arith.constant 0 : i32
    %c0_i32_1 = arith.constant 0 : i32
    %c0_i32_2 = arith.constant 0 : i32
    return %arg0, %0, %c0_i32, %c0_i32_0, %c0_i32_1 : i32, i32, i32, i32, i32
  }
  func.func @transform_3(%arg0: i32, %arg1: i32) -> (i32, i32, i32) {
    %c0_i32 = arith.constant 0 : i32
    %c0_i32_0 = arith.constant 0 : i32
    %c0_i32_1 = arith.constant 0 : i32
    %c0_i32_2 = arith.constant 0 : i32
    return %c0_i32, %c0_i32_0, %c0_i32_1 : i32, i32, i32
  }
  func.func @transform_4(%arg0: i32, %arg1: i32) -> (i32, i32) {
    %c0_i32 = arith.constant 0 : i32
    %c0_i32_0 = arith.constant 0 : i32
    %c0_i32_1 = arith.constant 0 : i32
    return %c0_i32, %c0_i32_0 : i32, i32
  }
  func.func @transform_5(%arg0: i32, %arg1: i32) -> (i32, i32, i32, i32, i32) {
    %c0_i32 = arith.constant 0 : i32
    %c0_i32_0 = arith.constant 0 : i32
    %c0_i32_1 = arith.constant 0 : i32
    %c0_i32_2 = arith.constant 0 : i32
    return %arg0, %arg1, %c0_i32, %c0_i32_0, %c0_i32_1 : i32, i32, i32, i32, i32
  }
}

module attributes {stable_mosaic.version = 11 : i64} {
  func.func @kernel(%arg0: i32, %arg1: i32, %arg2: memref<1x1x10x10x128xbf16, #tpu.memory_space<vmem>>, %arg3: memref<1x1x10x10x128xbf16, #tpu.memory_space<vmem>>, %arg4: memref<1x1x10x10x128xbf16, #tpu.memory_space<vmem>>, %arg5: memref<27x128x128xbf16, #tpu.memory_space<vmem>>, %arg6: memref<1x128xf32, #tpu.memory_space<vmem>>, %arg7: memref<1x1x8x8x128xbf16, #tpu.memory_space<vmem>>, %arg8: memref<1x1x8x8x128xbf16, #tpu.memory_space<vmem>>) attributes {dimension_semantics = [#tpu.dimension_semantics<parallel>, #tpu.dimension_semantics<parallel>], iteration_bounds = array<i64: 2, 8>, scalar_prefetch = 0 : i64, scratch_operands = 0 : i64, tpu.core_type = #tpu.core_type<tc>, window_params = [{transform_indices = @transform_0, window_bounds = array<i64: 1, 1, 10, 10, 128>}, {transform_indices = @transform_1, window_bounds = array<i64: 1, 1, 10, 10, 128>}, {transform_indices = @transform_2, window_bounds = array<i64: 1, 1, 10, 10, 128>}, {pipeline_mode = #tpu.pipeline_mode<synchronous>, transform_indices = @transform_3, window_bounds = array<i64: 27, 128, 128>}, {pipeline_mode = #tpu.pipeline_mode<synchronous>, transform_indices = @transform_4, window_bounds = array<i64: 1, 128>}, {transform_indices = @transform_5, window_bounds = array<i64: 1, 1, 8, 8, 128>}, {transform_indices = @transform_6, window_bounds = array<i64: 1, 1, 8, 8, 128>}]} {
    %cst = arith.constant 0.000000e+00 : f32
    %0 = vector.broadcast %cst : f32 to vector<64x128xf32>
    %c0 = arith.constant 0 : index
    %c0_0 = arith.constant 0 : index
    %c0_1 = arith.constant 0 : index
    %c0_2 = arith.constant 0 : index
    %c0_3 = arith.constant 0 : index
    %1 = vector.load %arg2[%c0, %c0_0, %c0_1, %c0_2, %c0_3] : memref<1x1x10x10x128xbf16, #tpu.memory_space<vmem>>, vector<1x1x8x8x128xbf16>
    %2 = vector.shape_cast %1 : vector<1x1x8x8x128xbf16> to vector<8x8x128xbf16>
    %3 = arith.extf %2 : vector<8x8x128xbf16> to vector<8x8x128xf32>
    %4 = vector.shape_cast %3 : vector<8x8x128xf32> to vector<64x128xf32>
    %5 = arith.truncf %4 : vector<64x128xf32> to vector<64x128xbf16>
    %c0_4 = arith.constant 0 : index
    %c0_5 = arith.constant 0 : index
    %c0_6 = arith.constant 0 : index
    %6 = vector.load %arg5[%c0_4, %c0_5, %c0_6] : memref<27x128x128xbf16, #tpu.memory_space<vmem>>, vector<1x128x128xbf16>
    %7 = vector.shape_cast %6 : vector<1x128x128xbf16> to vector<128x128xbf16>
    %cst_7 = arith.constant dense<0.000000e+00> : vector<64x128xf32>
    %8 = tpu.matmul %5, %7, %cst_7 {dimension_numbers = #tpu.dot_dimension_numbers<[1], [0], [0], [1], [0, 0, 1, 1], [], []>} : vector<64x128xbf16>, vector<128x128xbf16>, vector<64x128xf32> -> vector<64x128xf32>
    %9 = arith.addf %0, %8 : vector<64x128xf32>
    %c0_8 = arith.constant 0 : index
    %c0_9 = arith.constant 0 : index
    %c0_10 = arith.constant 0 : index
    %c1 = arith.constant 1 : index
    %c0_11 = arith.constant 0 : index
    %10 = vector.load %arg2[%c0_8, %c0_9, %c0_10, %c1, %c0_11] : memref<1x1x10x10x128xbf16, #tpu.memory_space<vmem>>, vector<1x1x8x8x128xbf16>
    %11 = vector.shape_cast %10 : vector<1x1x8x8x128xbf16> to vector<8x8x128xbf16>
    %12 = arith.extf %11 : vector<8x8x128xbf16> to vector<8x8x128xf32>
    %13 = vector.shape_cast %12 : vector<8x8x128xf32> to vector<64x128xf32>
    %14 = arith.truncf %13 : vector<64x128xf32> to vector<64x128xbf16>
    %c1_12 = arith.constant 1 : index
    %c0_13 = arith.constant 0 : index
    %c0_14 = arith.constant 0 : index
    %15 = vector.load %arg5[%c1_12, %c0_13, %c0_14] : memref<27x128x128xbf16, #tpu.memory_space<vmem>>, vector<1x128x128xbf16>
    %16 = vector.shape_cast %15 : vector<1x128x128xbf16> to vector<128x128xbf16>
    %cst_15 = arith.constant dense<0.000000e+00> : vector<64x128xf32>
    %17 = tpu.matmul %14, %16, %cst_15 {dimension_numbers = #tpu.dot_dimension_numbers<[1], [0], [0], [1], [0, 0, 1, 1], [], []>} : vector<64x128xbf16>, vector<128x128xbf16>, vector<64x128xf32> -> vector<64x128xf32>
    %18 = arith.addf %9, %17 : vector<64x128xf32>
    %c0_16 = arith.constant 0 : index
    %c0_17 = arith.constant 0 : index
    %c0_18 = arith.constant 0 : index
    %c2 = arith.constant 2 : index
    %c0_19 = arith.constant 0 : index
    %19 = vector.load %arg2[%c0_16, %c0_17, %c0_18, %c2, %c0_19] : memref<1x1x10x10x128xbf16, #tpu.memory_space<vmem>>, vector<1x1x8x8x128xbf16>
    %20 = vector.shape_cast %19 : vector<1x1x8x8x128xbf16> to vector<8x8x128xbf16>
    %21 = arith.extf %20 : vector<8x8x128xbf16> to vector<8x8x128xf32>
    %22 = vector.shape_cast %21 : vector<8x8x128xf32> to vector<64x128xf32>
    %23 = arith.truncf %22 : vector<64x128xf32> to vector<64x128xbf16>
    %c2_20 = arith.constant 2 : index
    %c0_21 = arith.constant 0 : index
    %c0_22 = arith.constant 0 : index
    %24 = vector.load %arg5[%c2_20, %c0_21, %c0_22] : memref<27x128x128xbf16, #tpu.memory_space<vmem>>, vector<1x128x128xbf16>
    %25 = vector.shape_cast %24 : vector<1x128x128xbf16> to vector<128x128xbf16>
    %cst_23 = arith.constant dense<0.000000e+00> : vector<64x128xf32>
    %26 = tpu.matmul %23, %25, %cst_23 {dimension_numbers = #tpu.dot_dimension_numbers<[1], [0], [0], [1], [0, 0, 1, 1], [], []>} : vector<64x128xbf16>, vector<128x128xbf16>, vector<64x128xf32> -> vector<64x128xf32>
    %27 = arith.addf %18, %26 : vector<64x128xf32>
    %c0_24 = arith.constant 0 : index
    %c0_25 = arith.constant 0 : index
    %c1_26 = arith.constant 1 : index
    %c0_27 = arith.constant 0 : index
    %c0_28 = arith.constant 0 : index
    %28 = vector.load %arg2[%c0_24, %c0_25, %c1_26, %c0_27, %c0_28] : memref<1x1x10x10x128xbf16, #tpu.memory_space<vmem>>, vector<1x1x8x8x128xbf16>
    %29 = vector.shape_cast %28 : vector<1x1x8x8x128xbf16> to vector<8x8x128xbf16>
    %30 = arith.extf %29 : vector<8x8x128xbf16> to vector<8x8x128xf32>
    %31 = vector.shape_cast %30 : vector<8x8x128xf32> to vector<64x128xf32>
    %32 = arith.truncf %31 : vector<64x128xf32> to vector<64x128xbf16>
    %c3 = arith.constant 3 : index
    %c0_29 = arith.constant 0 : index
    %c0_30 = arith.constant 0 : index
    %33 = vector.load %arg5[%c3, %c0_29, %c0_30] : memref<27x128x128xbf16, #tpu.memory_space<vmem>>, vector<1x128x128xbf16>
    %34 = vector.shape_cast %33 : vector<1x128x128xbf16> to vector<128x128xbf16>
    %cst_31 = arith.constant dense<0.000000e+00> : vector<64x128xf32>
    %35 = tpu.matmul %32, %34, %cst_31 {dimension_numbers = #tpu.dot_dimension_numbers<[1], [0], [0], [1], [0, 0, 1, 1], [], []>} : vector<64x128xbf16>, vector<128x128xbf16>, vector<64x128xf32> -> vector<64x128xf32>
    %36 = arith.addf %27, %35 : vector<64x128xf32>
    %c0_32 = arith.constant 0 : index
    %c0_33 = arith.constant 0 : index
    %c1_34 = arith.constant 1 : index
    %c1_35 = arith.constant 1 : index
    %c0_36 = arith.constant 0 : index
    %37 = vector.load %arg2[%c0_32, %c0_33, %c1_34, %c1_35, %c0_36] : memref<1x1x10x10x128xbf16, #tpu.memory_space<vmem>>, vector<1x1x8x8x128xbf16>
    %38 = vector.shape_cast %37 : vector<1x1x8x8x128xbf16> to vector<8x8x128xbf16>
    %39 = arith.extf %38 : vector<8x8x128xbf16> to vector<8x8x128xf32>
    %40 = vector.shape_cast %39 : vector<8x8x128xf32> to vector<64x128xf32>
    %41 = arith.truncf %40 : vector<64x128xf32> to vector<64x128xbf16>
    %c4 = arith.constant 4 : index
    %c0_37 = arith.constant 0 : index
    %c0_38 = arith.constant 0 : index
    %42 = vector.load %arg5[%c4, %c0_37, %c0_38] : memref<27x128x128xbf16, #tpu.memory_space<vmem>>, vector<1x128x128xbf16>
    %43 = vector.shape_cast %42 : vector<1x128x128xbf16> to vector<128x128xbf16>
    %cst_39 = arith.constant dense<0.000000e+00> : vector<64x128xf32>
    %44 = tpu.matmul %41, %43, %cst_39 {dimension_numbers = #tpu.dot_dimension_numbers<[1], [0], [0], [1], [0, 0, 1, 1], [], []>} : vector<64x128xbf16>, vector<128x128xbf16>, vector<64x128xf32> -> vector<64x128xf32>
    %45 = arith.addf %36, %44 : vector<64x128xf32>
    %c0_40 = arith.constant 0 : index
    %c0_41 = arith.constant 0 : index
    %c1_42 = arith.constant 1 : index
    %c2_43 = arith.constant 2 : index
    %c0_44 = arith.constant 0 : index
    %46 = vector.load %arg2[%c0_40, %c0_41, %c1_42, %c2_43, %c0_44] : memref<1x1x10x10x128xbf16, #tpu.memory_space<vmem>>, vector<1x1x8x8x128xbf16>
    %47 = vector.shape_cast %46 : vector<1x1x8x8x128xbf16> to vector<8x8x128xbf16>
    %48 = arith.extf %47 : vector<8x8x128xbf16> to vector<8x8x128xf32>
    %49 = vector.shape_cast %48 : vector<8x8x128xf32> to vector<64x128xf32>
    %50 = arith.truncf %49 : vector<64x128xf32> to vector<64x128xbf16>
    %c5 = arith.constant 5 : index
    %c0_45 = arith.constant 0 : index
    %c0_46 = arith.constant 0 : index
    %51 = vector.load %arg5[%c5, %c0_45, %c0_46] : memref<27x128x128xbf16, #tpu.memory_space<vmem>>, vector<1x128x128xbf16>
    %52 = vector.shape_cast %51 : vector<1x128x128xbf16> to vector<128x128xbf16>
    %cst_47 = arith.constant dense<0.000000e+00> : vector<64x128xf32>
    %53 = tpu.matmul %50, %52, %cst_47 {dimension_numbers = #tpu.dot_dimension_numbers<[1], [0], [0], [1], [0, 0, 1, 1], [], []>} : vector<64x128xbf16>, vector<128x128xbf16>, vector<64x128xf32> -> vector<64x128xf32>
    %54 = arith.addf %45, %53 : vector<64x128xf32>
    %c0_48 = arith.constant 0 : index
    %c0_49 = arith.constant 0 : index
    %c2_50 = arith.constant 2 : index
    %c0_51 = arith.constant 0 : index
    %c0_52 = arith.constant 0 : index
    %55 = vector.load %arg2[%c0_48, %c0_49, %c2_50, %c0_51, %c0_52] : memref<1x1x10x10x128xbf16, #tpu.memory_space<vmem>>, vector<1x1x8x8x128xbf16>
    %56 = vector.shape_cast %55 : vector<1x1x8x8x128xbf16> to vector<8x8x128xbf16>
    %57 = arith.extf %56 : vector<8x8x128xbf16> to vector<8x8x128xf32>
    %58 = vector.shape_cast %57 : vector<8x8x128xf32> to vector<64x128xf32>
    %59 = arith.truncf %58 : vector<64x128xf32> to vector<64x128xbf16>
    %c6 = arith.constant 6 : index
    %c0_53 = arith.constant 0 : index
    %c0_54 = arith.constant 0 : index
    %60 = vector.load %arg5[%c6, %c0_53, %c0_54] : memref<27x128x128xbf16, #tpu.memory_space<vmem>>, vector<1x128x128xbf16>
    %61 = vector.shape_cast %60 : vector<1x128x128xbf16> to vector<128x128xbf16>
    %cst_55 = arith.constant dense<0.000000e+00> : vector<64x128xf32>
    %62 = tpu.matmul %59, %61, %cst_55 {dimension_numbers = #tpu.dot_dimension_numbers<[1], [0], [0], [1], [0, 0, 1, 1], [], []>} : vector<64x128xbf16>, vector<128x128xbf16>, vector<64x128xf32> -> vector<64x128xf32>
    %63 = arith.addf %54, %62 : vector<64x128xf32>
    %c0_56 = arith.constant 0 : index
    %c0_57 = arith.constant 0 : index
    %c2_58 = arith.constant 2 : index
    %c1_59 = arith.constant 1 : index
    %c0_60 = arith.constant 0 : index
    %64 = vector.load %arg2[%c0_56, %c0_57, %c2_58, %c1_59, %c0_60] : memref<1x1x10x10x128xbf16, #tpu.memory_space<vmem>>, vector<1x1x8x8x128xbf16>
    %65 = vector.shape_cast %64 : vector<1x1x8x8x128xbf16> to vector<8x8x128xbf16>
    %66 = arith.extf %65 : vector<8x8x128xbf16> to vector<8x8x128xf32>
    %67 = vector.shape_cast %66 : vector<8x8x128xf32> to vector<64x128xf32>
    %68 = arith.truncf %67 : vector<64x128xf32> to vector<64x128xbf16>
    %c7 = arith.constant 7 : index
    %c0_61 = arith.constant 0 : index
    %c0_62 = arith.constant 0 : index
    %69 = vector.load %arg5[%c7, %c0_61, %c0_62] : memref<27x128x128xbf16, #tpu.memory_space<vmem>>, vector<1x128x128xbf16>
    %70 = vector.shape_cast %69 : vector<1x128x128xbf16> to vector<128x128xbf16>
    %cst_63 = arith.constant dense<0.000000e+00> : vector<64x128xf32>
    %71 = tpu.matmul %68, %70, %cst_63 {dimension_numbers = #tpu.dot_dimension_numbers<[1], [0], [0], [1], [0, 0, 1, 1], [], []>} : vector<64x128xbf16>, vector<128x128xbf16>, vector<64x128xf32> -> vector<64x128xf32>
    %72 = arith.addf %63, %71 : vector<64x128xf32>
    %c0_64 = arith.constant 0 : index
    %c0_65 = arith.constant 0 : index
    %c2_66 = arith.constant 2 : index
    %c2_67 = arith.constant 2 : index
    %c0_68 = arith.constant 0 : index
    %73 = vector.load %arg2[%c0_64, %c0_65, %c2_66, %c2_67, %c0_68] : memref<1x1x10x10x128xbf16, #tpu.memory_space<vmem>>, vector<1x1x8x8x128xbf16>
    %74 = vector.shape_cast %73 : vector<1x1x8x8x128xbf16> to vector<8x8x128xbf16>
    %75 = arith.extf %74 : vector<8x8x128xbf16> to vector<8x8x128xf32>
    %76 = vector.shape_cast %75 : vector<8x8x128xf32> to vector<64x128xf32>
    %77 = arith.truncf %76 : vector<64x128xf32> to vector<64x128xbf16>
    %c8 = arith.constant 8 : index
    %c0_69 = arith.constant 0 : index
    %c0_70 = arith.constant 0 : index
    %78 = vector.load %arg5[%c8, %c0_69, %c0_70] : memref<27x128x128xbf16, #tpu.memory_space<vmem>>, vector<1x128x128xbf16>
    %79 = vector.shape_cast %78 : vector<1x128x128xbf16> to vector<128x128xbf16>
    %cst_71 = arith.constant dense<0.000000e+00> : vector<64x128xf32>
    %80 = tpu.matmul %77, %79, %cst_71 {dimension_numbers = #tpu.dot_dimension_numbers<[1], [0], [0], [1], [0, 0, 1, 1], [], []>} : vector<64x128xbf16>, vector<128x128xbf16>, vector<64x128xf32> -> vector<64x128xf32>
    %81 = arith.addf %72, %80 : vector<64x128xf32>
    %c0_72 = arith.constant 0 : index
    %c0_73 = arith.constant 0 : index
    %c0_74 = arith.constant 0 : index
    %c0_75 = arith.constant 0 : index
    %c0_76 = arith.constant 0 : index
    %82 = vector.load %arg3[%c0_72, %c0_73, %c0_74, %c0_75, %c0_76] : memref<1x1x10x10x128xbf16, #tpu.memory_space<vmem>>, vector<1x1x8x8x128xbf16>
    %83 = vector.shape_cast %82 : vector<1x1x8x8x128xbf16> to vector<8x8x128xbf16>
    %84 = arith.extf %83 : vector<8x8x128xbf16> to vector<8x8x128xf32>
    %85 = vector.shape_cast %84 : vector<8x8x128xf32> to vector<64x128xf32>
    %86 = arith.truncf %85 : vector<64x128xf32> to vector<64x128xbf16>
    %c9 = arith.constant 9 : index
    %c0_77 = arith.constant 0 : index
    %c0_78 = arith.constant 0 : index
    %87 = vector.load %arg5[%c9, %c0_77, %c0_78] : memref<27x128x128xbf16, #tpu.memory_space<vmem>>, vector<1x128x128xbf16>
    %88 = vector.shape_cast %87 : vector<1x128x128xbf16> to vector<128x128xbf16>
    %cst_79 = arith.constant dense<0.000000e+00> : vector<64x128xf32>
    %89 = tpu.matmul %86, %88, %cst_79 {dimension_numbers = #tpu.dot_dimension_numbers<[1], [0], [0], [1], [0, 0, 1, 1], [], []>} : vector<64x128xbf16>, vector<128x128xbf16>, vector<64x128xf32> -> vector<64x128xf32>
    %90 = arith.addf %81, %89 : vector<64x128xf32>
    %c0_80 = arith.constant 0 : index
    %c0_81 = arith.constant 0 : index
    %c0_82 = arith.constant 0 : index
    %c1_83 = arith.constant 1 : index
    %c0_84 = arith.constant 0 : index
    %91 = vector.load %arg3[%c0_80, %c0_81, %c0_82, %c1_83, %c0_84] : memref<1x1x10x10x128xbf16, #tpu.memory_space<vmem>>, vector<1x1x8x8x128xbf16>
    %92 = vector.shape_cast %91 : vector<1x1x8x8x128xbf16> to vector<8x8x128xbf16>
    %93 = arith.extf %92 : vector<8x8x128xbf16> to vector<8x8x128xf32>
    %94 = vector.shape_cast %93 : vector<8x8x128xf32> to vector<64x128xf32>
    %95 = arith.truncf %94 : vector<64x128xf32> to vector<64x128xbf16>
    %c10 = arith.constant 10 : index
    %c0_85 = arith.constant 0 : index
    %c0_86 = arith.constant 0 : index
    %96 = vector.load %arg5[%c10, %c0_85, %c0_86] : memref<27x128x128xbf16, #tpu.memory_space<vmem>>, vector<1x128x128xbf16>
    %97 = vector.shape_cast %96 : vector<1x128x128xbf16> to vector<128x128xbf16>
    %cst_87 = arith.constant dense<0.000000e+00> : vector<64x128xf32>
    %98 = tpu.matmul %95, %97, %cst_87 {dimension_numbers = #tpu.dot_dimension_numbers<[1], [0], [0], [1], [0, 0, 1, 1], [], []>} : vector<64x128xbf16>, vector<128x128xbf16>, vector<64x128xf32> -> vector<64x128xf32>
    %99 = arith.addf %90, %98 : vector<64x128xf32>
    %c0_88 = arith.constant 0 : index
    %c0_89 = arith.constant 0 : index
    %c0_90 = arith.constant 0 : index
    %c2_91 = arith.constant 2 : index
    %c0_92 = arith.constant 0 : index
    %100 = vector.load %arg3[%c0_88, %c0_89, %c0_90, %c2_91, %c0_92] : memref<1x1x10x10x128xbf16, #tpu.memory_space<vmem>>, vector<1x1x8x8x128xbf16>
    %101 = vector.shape_cast %100 : vector<1x1x8x8x128xbf16> to vector<8x8x128xbf16>
    %102 = arith.extf %101 : vector<8x8x128xbf16> to vector<8x8x128xf32>
    %103 = vector.shape_cast %102 : vector<8x8x128xf32> to vector<64x128xf32>
    %104 = arith.truncf %103 : vector<64x128xf32> to vector<64x128xbf16>
    %c11 = arith.constant 11 : index
    %c0_93 = arith.constant 0 : index
    %c0_94 = arith.constant 0 : index
    %105 = vector.load %arg5[%c11, %c0_93, %c0_94] : memref<27x128x128xbf16, #tpu.memory_space<vmem>>, vector<1x128x128xbf16>
    %106 = vector.shape_cast %105 : vector<1x128x128xbf16> to vector<128x128xbf16>
    %cst_95 = arith.constant dense<0.000000e+00> : vector<64x128xf32>
    %107 = tpu.matmul %104, %106, %cst_95 {dimension_numbers = #tpu.dot_dimension_numbers<[1], [0], [0], [1], [0, 0, 1, 1], [], []>} : vector<64x128xbf16>, vector<128x128xbf16>, vector<64x128xf32> -> vector<64x128xf32>
    %108 = arith.addf %99, %107 : vector<64x128xf32>
    %c0_96 = arith.constant 0 : index
    %c0_97 = arith.constant 0 : index
    %c1_98 = arith.constant 1 : index
    %c0_99 = arith.constant 0 : index
    %c0_100 = arith.constant 0 : index
    %109 = vector.load %arg3[%c0_96, %c0_97, %c1_98, %c0_99, %c0_100] : memref<1x1x10x10x128xbf16, #tpu.memory_space<vmem>>, vector<1x1x8x8x128xbf16>
    %110 = vector.shape_cast %109 : vector<1x1x8x8x128xbf16> to vector<8x8x128xbf16>
    %111 = arith.extf %110 : vector<8x8x128xbf16> to vector<8x8x128xf32>
    %112 = vector.shape_cast %111 : vector<8x8x128xf32> to vector<64x128xf32>
    %113 = arith.truncf %112 : vector<64x128xf32> to vector<64x128xbf16>
    %c12 = arith.constant 12 : index
    %c0_101 = arith.constant 0 : index
    %c0_102 = arith.constant 0 : index
    %114 = vector.load %arg5[%c12, %c0_101, %c0_102] : memref<27x128x128xbf16, #tpu.memory_space<vmem>>, vector<1x128x128xbf16>
    %115 = vector.shape_cast %114 : vector<1x128x128xbf16> to vector<128x128xbf16>
    %cst_103 = arith.constant dense<0.000000e+00> : vector<64x128xf32>
    %116 = tpu.matmul %113, %115, %cst_103 {dimension_numbers = #tpu.dot_dimension_numbers<[1], [0], [0], [1], [0, 0, 1, 1], [], []>} : vector<64x128xbf16>, vector<128x128xbf16>, vector<64x128xf32> -> vector<64x128xf32>
    %117 = arith.addf %108, %116 : vector<64x128xf32>
    %c0_104 = arith.constant 0 : index
    %c0_105 = arith.constant 0 : index
    %c1_106 = arith.constant 1 : index
    %c1_107 = arith.constant 1 : index
    %c0_108 = arith.constant 0 : index
    %118 = vector.load %arg3[%c0_104, %c0_105, %c1_106, %c1_107, %c0_108] : memref<1x1x10x10x128xbf16, #tpu.memory_space<vmem>>, vector<1x1x8x8x128xbf16>
    %119 = vector.shape_cast %118 : vector<1x1x8x8x128xbf16> to vector<8x8x128xbf16>
    %120 = arith.extf %119 : vector<8x8x128xbf16> to vector<8x8x128xf32>
    %121 = vector.shape_cast %120 : vector<8x8x128xf32> to vector<64x128xf32>
    %122 = arith.truncf %121 : vector<64x128xf32> to vector<64x128xbf16>
    %c13 = arith.constant 13 : index
    %c0_109 = arith.constant 0 : index
    %c0_110 = arith.constant 0 : index
    %123 = vector.load %arg5[%c13, %c0_109, %c0_110] : memref<27x128x128xbf16, #tpu.memory_space<vmem>>, vector<1x128x128xbf16>
    %124 = vector.shape_cast %123 : vector<1x128x128xbf16> to vector<128x128xbf16>
    %cst_111 = arith.constant dense<0.000000e+00> : vector<64x128xf32>
    %125 = tpu.matmul %122, %124, %cst_111 {dimension_numbers = #tpu.dot_dimension_numbers<[1], [0], [0], [1], [0, 0, 1, 1], [], []>} : vector<64x128xbf16>, vector<128x128xbf16>, vector<64x128xf32> -> vector<64x128xf32>
    %126 = arith.addf %117, %125 : vector<64x128xf32>
    %c0_112 = arith.constant 0 : index
    %c0_113 = arith.constant 0 : index
    %c1_114 = arith.constant 1 : index
    %c2_115 = arith.constant 2 : index
    %c0_116 = arith.constant 0 : index
    %127 = vector.load %arg3[%c0_112, %c0_113, %c1_114, %c2_115, %c0_116] : memref<1x1x10x10x128xbf16, #tpu.memory_space<vmem>>, vector<1x1x8x8x128xbf16>
    %128 = vector.shape_cast %127 : vector<1x1x8x8x128xbf16> to vector<8x8x128xbf16>
    %129 = arith.extf %128 : vector<8x8x128xbf16> to vector<8x8x128xf32>
    %130 = vector.shape_cast %129 : vector<8x8x128xf32> to vector<64x128xf32>
    %131 = arith.truncf %130 : vector<64x128xf32> to vector<64x128xbf16>
    %c14 = arith.constant 14 : index
    %c0_117 = arith.constant 0 : index
    %c0_118 = arith.constant 0 : index
    %132 = vector.load %arg5[%c14, %c0_117, %c0_118] : memref<27x128x128xbf16, #tpu.memory_space<vmem>>, vector<1x128x128xbf16>
    %133 = vector.shape_cast %132 : vector<1x128x128xbf16> to vector<128x128xbf16>
    %cst_119 = arith.constant dense<0.000000e+00> : vector<64x128xf32>
    %134 = tpu.matmul %131, %133, %cst_119 {dimension_numbers = #tpu.dot_dimension_numbers<[1], [0], [0], [1], [0, 0, 1, 1], [], []>} : vector<64x128xbf16>, vector<128x128xbf16>, vector<64x128xf32> -> vector<64x128xf32>
    %135 = arith.addf %126, %134 : vector<64x128xf32>
    %c0_120 = arith.constant 0 : index
    %c0_121 = arith.constant 0 : index
    %c2_122 = arith.constant 2 : index
    %c0_123 = arith.constant 0 : index
    %c0_124 = arith.constant 0 : index
    %136 = vector.load %arg3[%c0_120, %c0_121, %c2_122, %c0_123, %c0_124] : memref<1x1x10x10x128xbf16, #tpu.memory_space<vmem>>, vector<1x1x8x8x128xbf16>
    %137 = vector.shape_cast %136 : vector<1x1x8x8x128xbf16> to vector<8x8x128xbf16>
    %138 = arith.extf %137 : vector<8x8x128xbf16> to vector<8x8x128xf32>
    %139 = vector.shape_cast %138 : vector<8x8x128xf32> to vector<64x128xf32>
    %140 = arith.truncf %139 : vector<64x128xf32> to vector<64x128xbf16>
    %c15 = arith.constant 15 : index
    %c0_125 = arith.constant 0 : index
    %c0_126 = arith.constant 0 : index
    %141 = vector.load %arg5[%c15, %c0_125, %c0_126] : memref<27x128x128xbf16, #tpu.memory_space<vmem>>, vector<1x128x128xbf16>
    %142 = vector.shape_cast %141 : vector<1x128x128xbf16> to vector<128x128xbf16>
    %cst_127 = arith.constant dense<0.000000e+00> : vector<64x128xf32>
    %143 = tpu.matmul %140, %142, %cst_127 {dimension_numbers = #tpu.dot_dimension_numbers<[1], [0], [0], [1], [0, 0, 1, 1], [], []>} : vector<64x128xbf16>, vector<128x128xbf16>, vector<64x128xf32> -> vector<64x128xf32>
    %144 = arith.addf %135, %143 : vector<64x128xf32>
    %c0_128 = arith.constant 0 : index
    %c0_129 = arith.constant 0 : index
    %c2_130 = arith.constant 2 : index
    %c1_131 = arith.constant 1 : index
    %c0_132 = arith.constant 0 : index
    %145 = vector.load %arg3[%c0_128, %c0_129, %c2_130, %c1_131, %c0_132] : memref<1x1x10x10x128xbf16, #tpu.memory_space<vmem>>, vector<1x1x8x8x128xbf16>
    %146 = vector.shape_cast %145 : vector<1x1x8x8x128xbf16> to vector<8x8x128xbf16>
    %147 = arith.extf %146 : vector<8x8x128xbf16> to vector<8x8x128xf32>
    %148 = vector.shape_cast %147 : vector<8x8x128xf32> to vector<64x128xf32>
    %149 = arith.truncf %148 : vector<64x128xf32> to vector<64x128xbf16>
    %c16 = arith.constant 16 : index
    %c0_133 = arith.constant 0 : index
    %c0_134 = arith.constant 0 : index
    %150 = vector.load %arg5[%c16, %c0_133, %c0_134] : memref<27x128x128xbf16, #tpu.memory_space<vmem>>, vector<1x128x128xbf16>
    %151 = vector.shape_cast %150 : vector<1x128x128xbf16> to vector<128x128xbf16>
    %cst_135 = arith.constant dense<0.000000e+00> : vector<64x128xf32>
    %152 = tpu.matmul %149, %151, %cst_135 {dimension_numbers = #tpu.dot_dimension_numbers<[1], [0], [0], [1], [0, 0, 1, 1], [], []>} : vector<64x128xbf16>, vector<128x128xbf16>, vector<64x128xf32> -> vector<64x128xf32>
    %153 = arith.addf %144, %152 : vector<64x128xf32>
    %c0_136 = arith.constant 0 : index
    %c0_137 = arith.constant 0 : index
    %c2_138 = arith.constant 2 : index
    %c2_139 = arith.constant 2 : index
    %c0_140 = arith.constant 0 : index
    %154 = vector.load %arg3[%c0_136, %c0_137, %c2_138, %c2_139, %c0_140] : memref<1x1x10x10x128xbf16, #tpu.memory_space<vmem>>, vector<1x1x8x8x128xbf16>
    %155 = vector.shape_cast %154 : vector<1x1x8x8x128xbf16> to vector<8x8x128xbf16>
    %156 = arith.extf %155 : vector<8x8x128xbf16> to vector<8x8x128xf32>
    %157 = vector.shape_cast %156 : vector<8x8x128xf32> to vector<64x128xf32>
    %158 = arith.truncf %157 : vector<64x128xf32> to vector<64x128xbf16>
    %c17 = arith.constant 17 : index
    %c0_141 = arith.constant 0 : index
    %c0_142 = arith.constant 0 : index
    %159 = vector.load %arg5[%c17, %c0_141, %c0_142] : memref<27x128x128xbf16, #tpu.memory_space<vmem>>, vector<1x128x128xbf16>
    %160 = vector.shape_cast %159 : vector<1x128x128xbf16> to vector<128x128xbf16>
    %cst_143 = arith.constant dense<0.000000e+00> : vector<64x128xf32>
    %161 = tpu.matmul %158, %160, %cst_143 {dimension_numbers = #tpu.dot_dimension_numbers<[1], [0], [0], [1], [0, 0, 1, 1], [], []>} : vector<64x128xbf16>, vector<128x128xbf16>, vector<64x128xf32> -> vector<64x128xf32>
    %162 = arith.addf %153, %161 : vector<64x128xf32>
    %c0_144 = arith.constant 0 : index
    %c0_145 = arith.constant 0 : index
    %c0_146 = arith.constant 0 : index
    %c0_147 = arith.constant 0 : index
    %c0_148 = arith.constant 0 : index
    %163 = vector.load %arg4[%c0_144, %c0_145, %c0_146, %c0_147, %c0_148] : memref<1x1x10x10x128xbf16, #tpu.memory_space<vmem>>, vector<1x1x8x8x128xbf16>
    %164 = vector.shape_cast %163 : vector<1x1x8x8x128xbf16> to vector<8x8x128xbf16>
    %165 = arith.extf %164 : vector<8x8x128xbf16> to vector<8x8x128xf32>
    %166 = vector.shape_cast %165 : vector<8x8x128xf32> to vector<64x128xf32>
    %167 = arith.truncf %166 : vector<64x128xf32> to vector<64x128xbf16>
    %c18 = arith.constant 18 : index
    %c0_149 = arith.constant 0 : index
    %c0_150 = arith.constant 0 : index
    %168 = vector.load %arg5[%c18, %c0_149, %c0_150] : memref<27x128x128xbf16, #tpu.memory_space<vmem>>, vector<1x128x128xbf16>
    %169 = vector.shape_cast %168 : vector<1x128x128xbf16> to vector<128x128xbf16>
    %cst_151 = arith.constant dense<0.000000e+00> : vector<64x128xf32>
    %170 = tpu.matmul %167, %169, %cst_151 {dimension_numbers = #tpu.dot_dimension_numbers<[1], [0], [0], [1], [0, 0, 1, 1], [], []>} : vector<64x128xbf16>, vector<128x128xbf16>, vector<64x128xf32> -> vector<64x128xf32>
    %171 = arith.addf %162, %170 : vector<64x128xf32>
    %c0_152 = arith.constant 0 : index
    %c0_153 = arith.constant 0 : index
    %c0_154 = arith.constant 0 : index
    %c1_155 = arith.constant 1 : index
    %c0_156 = arith.constant 0 : index
    %172 = vector.load %arg4[%c0_152, %c0_153, %c0_154, %c1_155, %c0_156] : memref<1x1x10x10x128xbf16, #tpu.memory_space<vmem>>, vector<1x1x8x8x128xbf16>
    %173 = vector.shape_cast %172 : vector<1x1x8x8x128xbf16> to vector<8x8x128xbf16>
    %174 = arith.extf %173 : vector<8x8x128xbf16> to vector<8x8x128xf32>
    %175 = vector.shape_cast %174 : vector<8x8x128xf32> to vector<64x128xf32>
    %176 = arith.truncf %175 : vector<64x128xf32> to vector<64x128xbf16>
    %c19 = arith.constant 19 : index
    %c0_157 = arith.constant 0 : index
    %c0_158 = arith.constant 0 : index
    %177 = vector.load %arg5[%c19, %c0_157, %c0_158] : memref<27x128x128xbf16, #tpu.memory_space<vmem>>, vector<1x128x128xbf16>
    %178 = vector.shape_cast %177 : vector<1x128x128xbf16> to vector<128x128xbf16>
    %cst_159 = arith.constant dense<0.000000e+00> : vector<64x128xf32>
    %179 = tpu.matmul %176, %178, %cst_159 {dimension_numbers = #tpu.dot_dimension_numbers<[1], [0], [0], [1], [0, 0, 1, 1], [], []>} : vector<64x128xbf16>, vector<128x128xbf16>, vector<64x128xf32> -> vector<64x128xf32>
    %180 = arith.addf %171, %179 : vector<64x128xf32>
    %c0_160 = arith.constant 0 : index
    %c0_161 = arith.constant 0 : index
    %c0_162 = arith.constant 0 : index
    %c2_163 = arith.constant 2 : index
    %c0_164 = arith.constant 0 : index
    %181 = vector.load %arg4[%c0_160, %c0_161, %c0_162, %c2_163, %c0_164] : memref<1x1x10x10x128xbf16, #tpu.memory_space<vmem>>, vector<1x1x8x8x128xbf16>
    %182 = vector.shape_cast %181 : vector<1x1x8x8x128xbf16> to vector<8x8x128xbf16>
    %183 = arith.extf %182 : vector<8x8x128xbf16> to vector<8x8x128xf32>
    %184 = vector.shape_cast %183 : vector<8x8x128xf32> to vector<64x128xf32>
    %185 = arith.truncf %184 : vector<64x128xf32> to vector<64x128xbf16>
    %c20 = arith.constant 20 : index
    %c0_165 = arith.constant 0 : index
    %c0_166 = arith.constant 0 : index
    %186 = vector.load %arg5[%c20, %c0_165, %c0_166] : memref<27x128x128xbf16, #tpu.memory_space<vmem>>, vector<1x128x128xbf16>
    %187 = vector.shape_cast %186 : vector<1x128x128xbf16> to vector<128x128xbf16>
    %cst_167 = arith.constant dense<0.000000e+00> : vector<64x128xf32>
    %188 = tpu.matmul %185, %187, %cst_167 {dimension_numbers = #tpu.dot_dimension_numbers<[1], [0], [0], [1], [0, 0, 1, 1], [], []>} : vector<64x128xbf16>, vector<128x128xbf16>, vector<64x128xf32> -> vector<64x128xf32>
    %189 = arith.addf %180, %188 : vector<64x128xf32>
    %c0_168 = arith.constant 0 : index
    %c0_169 = arith.constant 0 : index
    %c1_170 = arith.constant 1 : index
    %c0_171 = arith.constant 0 : index
    %c0_172 = arith.constant 0 : index
    %190 = vector.load %arg4[%c0_168, %c0_169, %c1_170, %c0_171, %c0_172] : memref<1x1x10x10x128xbf16, #tpu.memory_space<vmem>>, vector<1x1x8x8x128xbf16>
    %191 = vector.shape_cast %190 : vector<1x1x8x8x128xbf16> to vector<8x8x128xbf16>
    %192 = arith.extf %191 : vector<8x8x128xbf16> to vector<8x8x128xf32>
    %193 = vector.shape_cast %192 : vector<8x8x128xf32> to vector<64x128xf32>
    %194 = arith.truncf %193 : vector<64x128xf32> to vector<64x128xbf16>
    %c21 = arith.constant 21 : index
    %c0_173 = arith.constant 0 : index
    %c0_174 = arith.constant 0 : index
    %195 = vector.load %arg5[%c21, %c0_173, %c0_174] : memref<27x128x128xbf16, #tpu.memory_space<vmem>>, vector<1x128x128xbf16>
    %196 = vector.shape_cast %195 : vector<1x128x128xbf16> to vector<128x128xbf16>
    %cst_175 = arith.constant dense<0.000000e+00> : vector<64x128xf32>
    %197 = tpu.matmul %194, %196, %cst_175 {dimension_numbers = #tpu.dot_dimension_numbers<[1], [0], [0], [1], [0, 0, 1, 1], [], []>} : vector<64x128xbf16>, vector<128x128xbf16>, vector<64x128xf32> -> vector<64x128xf32>
    %198 = arith.addf %189, %197 : vector<64x128xf32>
    %c0_176 = arith.constant 0 : index
    %c0_177 = arith.constant 0 : index
    %c1_178 = arith.constant 1 : index
    %c1_179 = arith.constant 1 : index
    %c0_180 = arith.constant 0 : index
    %199 = vector.load %arg4[%c0_176, %c0_177, %c1_178, %c1_179, %c0_180] : memref<1x1x10x10x128xbf16, #tpu.memory_space<vmem>>, vector<1x1x8x8x128xbf16>
    %200 = vector.shape_cast %199 : vector<1x1x8x8x128xbf16> to vector<8x8x128xbf16>
    %201 = arith.extf %200 : vector<8x8x128xbf16> to vector<8x8x128xf32>
    %202 = vector.shape_cast %201 : vector<8x8x128xf32> to vector<64x128xf32>
    %203 = arith.truncf %202 : vector<64x128xf32> to vector<64x128xbf16>
    %c22 = arith.constant 22 : index
    %c0_181 = arith.constant 0 : index
    %c0_182 = arith.constant 0 : index
    %204 = vector.load %arg5[%c22, %c0_181, %c0_182] : memref<27x128x128xbf16, #tpu.memory_space<vmem>>, vector<1x128x128xbf16>
    %205 = vector.shape_cast %204 : vector<1x128x128xbf16> to vector<128x128xbf16>
    %cst_183 = arith.constant dense<0.000000e+00> : vector<64x128xf32>
    %206 = tpu.matmul %203, %205, %cst_183 {dimension_numbers = #tpu.dot_dimension_numbers<[1], [0], [0], [1], [0, 0, 1, 1], [], []>} : vector<64x128xbf16>, vector<128x128xbf16>, vector<64x128xf32> -> vector<64x128xf32>
    %207 = arith.addf %198, %206 : vector<64x128xf32>
    %c0_184 = arith.constant 0 : index
    %c0_185 = arith.constant 0 : index
    %c1_186 = arith.constant 1 : index
    %c2_187 = arith.constant 2 : index
    %c0_188 = arith.constant 0 : index
    %208 = vector.load %arg4[%c0_184, %c0_185, %c1_186, %c2_187, %c0_188] : memref<1x1x10x10x128xbf16, #tpu.memory_space<vmem>>, vector<1x1x8x8x128xbf16>
    %209 = vector.shape_cast %208 : vector<1x1x8x8x128xbf16> to vector<8x8x128xbf16>
    %210 = arith.extf %209 : vector<8x8x128xbf16> to vector<8x8x128xf32>
    %211 = vector.shape_cast %210 : vector<8x8x128xf32> to vector<64x128xf32>
    %212 = arith.truncf %211 : vector<64x128xf32> to vector<64x128xbf16>
    %c23 = arith.constant 23 : index
    %c0_189 = arith.constant 0 : index
    %c0_190 = arith.constant 0 : index
    %213 = vector.load %arg5[%c23, %c0_189, %c0_190] : memref<27x128x128xbf16, #tpu.memory_space<vmem>>, vector<1x128x128xbf16>
    %214 = vector.shape_cast %213 : vector<1x128x128xbf16> to vector<128x128xbf16>
    %cst_191 = arith.constant dense<0.000000e+00> : vector<64x128xf32>
    %215 = tpu.matmul %212, %214, %cst_191 {dimension_numbers = #tpu.dot_dimension_numbers<[1], [0], [0], [1], [0, 0, 1, 1], [], []>} : vector<64x128xbf16>, vector<128x128xbf16>, vector<64x128xf32> -> vector<64x128xf32>
    %216 = arith.addf %207, %215 : vector<64x128xf32>
    %c0_192 = arith.constant 0 : index
    %c0_193 = arith.constant 0 : index
    %c2_194 = arith.constant 2 : index
    %c0_195 = arith.constant 0 : index
    %c0_196 = arith.constant 0 : index
    %217 = vector.load %arg4[%c0_192, %c0_193, %c2_194, %c0_195, %c0_196] : memref<1x1x10x10x128xbf16, #tpu.memory_space<vmem>>, vector<1x1x8x8x128xbf16>
    %218 = vector.shape_cast %217 : vector<1x1x8x8x128xbf16> to vector<8x8x128xbf16>
    %219 = arith.extf %218 : vector<8x8x128xbf16> to vector<8x8x128xf32>
    %220 = vector.shape_cast %219 : vector<8x8x128xf32> to vector<64x128xf32>
    %221 = arith.truncf %220 : vector<64x128xf32> to vector<64x128xbf16>
    %c24 = arith.constant 24 : index
    %c0_197 = arith.constant 0 : index
    %c0_198 = arith.constant 0 : index
    %222 = vector.load %arg5[%c24, %c0_197, %c0_198] : memref<27x128x128xbf16, #tpu.memory_space<vmem>>, vector<1x128x128xbf16>
    %223 = vector.shape_cast %222 : vector<1x128x128xbf16> to vector<128x128xbf16>
    %cst_199 = arith.constant dense<0.000000e+00> : vector<64x128xf32>
    %224 = tpu.matmul %221, %223, %cst_199 {dimension_numbers = #tpu.dot_dimension_numbers<[1], [0], [0], [1], [0, 0, 1, 1], [], []>} : vector<64x128xbf16>, vector<128x128xbf16>, vector<64x128xf32> -> vector<64x128xf32>
    %225 = arith.addf %216, %224 : vector<64x128xf32>
    %c0_200 = arith.constant 0 : index
    %c0_201 = arith.constant 0 : index
    %c2_202 = arith.constant 2 : index
    %c1_203 = arith.constant 1 : index
    %c0_204 = arith.constant 0 : index
    %226 = vector.load %arg4[%c0_200, %c0_201, %c2_202, %c1_203, %c0_204] : memref<1x1x10x10x128xbf16, #tpu.memory_space<vmem>>, vector<1x1x8x8x128xbf16>
    %227 = vector.shape_cast %226 : vector<1x1x8x8x128xbf16> to vector<8x8x128xbf16>
    %228 = arith.extf %227 : vector<8x8x128xbf16> to vector<8x8x128xf32>
    %229 = vector.shape_cast %228 : vector<8x8x128xf32> to vector<64x128xf32>
    %230 = arith.truncf %229 : vector<64x128xf32> to vector<64x128xbf16>
    %c25 = arith.constant 25 : index
    %c0_205 = arith.constant 0 : index
    %c0_206 = arith.constant 0 : index
    %231 = vector.load %arg5[%c25, %c0_205, %c0_206] : memref<27x128x128xbf16, #tpu.memory_space<vmem>>, vector<1x128x128xbf16>
    %232 = vector.shape_cast %231 : vector<1x128x128xbf16> to vector<128x128xbf16>
    %cst_207 = arith.constant dense<0.000000e+00> : vector<64x128xf32>
    %233 = tpu.matmul %230, %232, %cst_207 {dimension_numbers = #tpu.dot_dimension_numbers<[1], [0], [0], [1], [0, 0, 1, 1], [], []>} : vector<64x128xbf16>, vector<128x128xbf16>, vector<64x128xf32> -> vector<64x128xf32>
    %234 = arith.addf %225, %233 : vector<64x128xf32>
    %c0_208 = arith.constant 0 : index
    %c0_209 = arith.constant 0 : index
    %c2_210 = arith.constant 2 : index
    %c2_211 = arith.constant 2 : index
    %c0_212 = arith.constant 0 : index
    %235 = vector.load %arg4[%c0_208, %c0_209, %c2_210, %c2_211, %c0_212] : memref<1x1x10x10x128xbf16, #tpu.memory_space<vmem>>, vector<1x1x8x8x128xbf16>
    %236 = vector.shape_cast %235 : vector<1x1x8x8x128xbf16> to vector<8x8x128xbf16>
    %237 = arith.extf %236 : vector<8x8x128xbf16> to vector<8x8x128xf32>
    %238 = vector.shape_cast %237 : vector<8x8x128xf32> to vector<64x128xf32>
    %239 = arith.truncf %238 : vector<64x128xf32> to vector<64x128xbf16>
    %c26 = arith.constant 26 : index
    %c0_213 = arith.constant 0 : index
    %c0_214 = arith.constant 0 : index
    %240 = vector.load %arg5[%c26, %c0_213, %c0_214] : memref<27x128x128xbf16, #tpu.memory_space<vmem>>, vector<1x128x128xbf16>
    %241 = vector.shape_cast %240 : vector<1x128x128xbf16> to vector<128x128xbf16>
    %cst_215 = arith.constant dense<0.000000e+00> : vector<64x128xf32>
    %242 = tpu.matmul %239, %241, %cst_215 {dimension_numbers = #tpu.dot_dimension_numbers<[1], [0], [0], [1], [0, 0, 1, 1], [], []>} : vector<64x128xbf16>, vector<128x128xbf16>, vector<64x128xf32> -> vector<64x128xf32>
    %243 = arith.addf %234, %242 : vector<64x128xf32>
    %c0_216 = arith.constant 0 : index
    %c0_217 = arith.constant 0 : index
    %244 = vector.load %arg6[%c0_216, %c0_217] : memref<1x128xf32, #tpu.memory_space<vmem>>, vector<1x128xf32>
    %245 = vector.broadcast %244 : vector<1x128xf32> to vector<64x128xf32>
    %246 = arith.addf %243, %245 : vector<64x128xf32>
    %c0_218 = arith.constant 0 : index
    %c0_219 = arith.constant 0 : index
    %c0_220 = arith.constant 0 : index
    %c0_221 = arith.constant 0 : index
    %c0_222 = arith.constant 0 : index
    %247 = vector.load %arg7[%c0_218, %c0_219, %c0_220, %c0_221, %c0_222] : memref<1x1x8x8x128xbf16, #tpu.memory_space<vmem>>, vector<1x1x8x8x128xbf16>
    %248 = vector.shape_cast %247 : vector<1x1x8x8x128xbf16> to vector<8x8x128xbf16>
    %249 = arith.extf %248 : vector<8x8x128xbf16> to vector<8x8x128xf32>
    %250 = vector.shape_cast %249 : vector<8x8x128xf32> to vector<64x128xf32>
    %251 = arith.addf %246, %250 : vector<64x128xf32>
    %cst_223 = arith.constant 0.000000e+00 : f32
    %252 = vector.broadcast %cst_223 : f32 to vector<64x128xf32>
    %253 = arith.maximumf %251, %252 : vector<64x128xf32>
    %254 = vector.shape_cast %253 : vector<64x128xf32> to vector<8x8x128xf32>
    %255 = arith.truncf %254 : vector<8x8x128xf32> to vector<8x8x128xbf16>
    %c0_224 = arith.constant 0 : index
    %c0_225 = arith.constant 0 : index
    %c0_226 = arith.constant 0 : index
    %c0_227 = arith.constant 0 : index
    %c0_228 = arith.constant 0 : index
    %256 = vector.load %arg8[%c0_224, %c0_225, %c0_226, %c0_227, %c0_228] : memref<1x1x8x8x128xbf16, #tpu.memory_space<vmem>>, vector<1x1x8x8x128xbf16>
    %257 = vector.shape_cast %256 : vector<1x1x8x8x128xbf16> to vector<8x8x128xbf16>
    %258 = vector.shape_cast %255 : vector<8x8x128xbf16> to vector<1x1x8x8x128xbf16>
    tpu.vector_store %arg8[%c0_224, %c0_225, %c0_226, %c0_227, %c0_228], %258 {strides = array<i32>} : memref<1x1x8x8x128xbf16, #tpu.memory_space<vmem>>, vector<1x1x8x8x128xbf16>,
    return
  }
  func.func @transform_0(%arg0: i32, %arg1: i32) -> (i32, i32, i32, i32, i32) {
    %c0_i32 = arith.constant 0 : i32
    %0 = arith.addi %arg1, %c0_i32 : i32
    %c0_i32_0 = arith.constant 0 : i32
    %c0_i32_1 = arith.constant 0 : i32
    %c0_i32_2 = arith.constant 0 : i32
    %c0_i32_3 = arith.constant 0 : i32
    return %arg0, %0, %c0_i32_0, %c0_i32_1, %c0_i32_2 : i32, i32, i32, i32, i32
  }
  func.func @transform_1(%arg0: i32, %arg1: i32) -> (i32, i32, i32, i32, i32) {
    %c1_i32 = arith.constant 1 : i32
    %0 = arith.addi %arg1, %c1_i32 : i32
    %c0_i32 = arith.constant 0 : i32
    %c0_i32_0 = arith.constant 0 : i32
    %c0_i32_1 = arith.constant 0 : i32
    %c0_i32_2 = arith.constant 0 : i32
    return %arg0, %0, %c0_i32, %c0_i32_0, %c0_i32_1 : i32, i32, i32, i32, i32
  }
  func.func @transform_2(%arg0: i32, %arg1: i32) -> (i32, i32, i32, i32, i32) {
    %c2_i32 = arith.constant 2 : i32
    %0 = arith.addi %arg1, %c2_i32 : i32
    %c0_i32 = arith.constant 0 : i32
    %c0_i32_0 = arith.constant 0 : i32
    %c0_i32_1 = arith.constant 0 : i32
    %c0_i32_2 = arith.constant 0 : i32
    return %arg0, %0, %c0_i32, %c0_i32_0, %c0_i32_1 : i32, i32, i32, i32, i32
  }
  func.func @transform_3(%arg0: i32, %arg1: i32) -> (i32, i32, i32) {
    %c0_i32 = arith.constant 0 : i32
    %c0_i32_0 = arith.constant 0 : i32
    %c0_i32_1 = arith.constant 0 : i32
    %c0_i32_2 = arith.constant 0 : i32
    return %c0_i32, %c0_i32_0, %c0_i32_1 : i32, i32, i32
  }
  func.func @transform_4(%arg0: i32, %arg1: i32) -> (i32, i32) {
    %c0_i32 = arith.constant 0 : i32
    %c0_i32_0 = arith.constant 0 : i32
    %c0_i32_1 = arith.constant 0 : i32
    return %c0_i32, %c0_i32_0 : i32, i32
  }
  func.func @transform_5(%arg0: i32, %arg1: i32) -> (i32, i32, i32, i32, i32) {
    %c0_i32 = arith.constant 0 : i32
    %c0_i32_0 = arith.constant 0 : i32
    %c0_i32_1 = arith.constant 0 : i32
    %c0_i32_2 = arith.constant 0 : i32
    return %arg0, %arg1, %c0_i32, %c0_i32_0, %c0_i32_1 : i32, i32, i32, i32, i32
  }
  func.func @transform_6(%arg0: i32, %arg1: i32) -> (i32, i32, i32, i32, i32) {
    %c0_i32 = arith.constant 0 : i32
    %c0_i32_0 = arith.constant 0 : i32
    %c0_i32_1 = arith.constant 0 : i32
    %c0_i32_2 = arith.constant 0 : i32
    return %arg0, %arg1, %c0_i32, %c0_i32_0, %c0_i32_1 : i32, i32, i32, i32, i32
  }
}

</mosaic_0001>

<bundles_post_ra>
// kernel: basic_block_forward.2
= control target key start
LH: loop header
LB: loop body
LE: loop exit
PB: predicated region body
PF: predicated region fallthrough
CT: control target
= control target key end

     0   :  { %s7948_s18 = smov 0   ;;  %s7950_s19 = smov 0   ;;  %s9761_s0 = inlined_call_operand.vmem [shape: bf16[2,10,10,10,128], index: 0, kind: input, shape index: {}, may-alias: {0,1,2}]   ;;  %s9762_s1 = inlined_call_operand.vmem [shape: bf16[2,10,10,10,128], index: 1, kind: input, shape index: {}, may-alias: {0,1,2}]   ;;  %s9763_s2 = inlined_call_operand.vmem [shape: bf16[2,10,10,10,128], index: 2, kind: input, shape index: {}, may-alias: {0,1,2}]   ;;  %s9764_s3 = inlined_call_operand.vmem [shape: bf16[27,128,128], index: 3, kind: input, shape index: {}]   ;;  %s9765_s4 = inlined_call_operand.vmem [shape: f32[1,128], index: 4, kind: input, shape index: {}]   ;;  %s9766_s5 = inlined_call_operand.vmem [shape: bf16[2,8,8,8,128], index: 5, kind: output, shape index: {}]  }
   0x1   :  { %s7952_s20 = smov 0   ;;  %s7954_s21 = smov 0  }
   0x2   :  { %s7956_s22 = smov 0  }
   0x3 LB: > { %s24_s23 = sadd.s32 1, %s7908_s20  ;;  %s27_s24 = sadd.s32 1, %s7912_s21  ;;  %s7916_s22 = sphi %s7956_s22, %s15_s22   ;;  %s7912_s21 = sphi %s7954_s21, %s9804_s21   ;;  %s7908_s20 = sphi %s7952_s20, %s9803_s20   ;;  %s7904_s19 = sphi %s7950_s19, %s9802_s19   ;;  %s7900_s18 = sphi %s7948_s18, %s9801_s18  }
   0x4   : > { %p25_p0 = scmp.ge.s32.totalorder %s24_s23, 8  ;;  %p5701_p1 = scmp.ge.s32.totalorder %s7916_s22, 1 }
   0x5   : > { %p247_p2 = scmp.lt.s32.totalorder %s7916_s22, 17 }
   0x6   : > { %s9806_s23 = smov (%p25_p0, %s24_s23), 0  ;;  %s9808_s24 = smov (!%p25_p0, %s27_s24), %s7912_s21 }
   0x7   : > { %p248_p3 = pnand %p5701_p1, %p247_p2  ;;  %p29_p4 = scmp.ge.s32.totalorder %s9808_s24, 2 }
   0x9   : > { %s9810_s24 = smov (%p29_p4, %s9808_s24), 0  ;;  %251 = sbr.rel (%p248_p3) target bundleno = 672 (0x2a0), region = 40 }
   0xe   : > { %v7626_v0 = vld [vmem:[%s9764_s3 + $0x78] sm:$0xff]   ;;  %p303_p5 = scmp.lt.s32.totalorder %s7904_s19, 1  ;;  %p305_p6 = scmp.lt.s32.totalorder %s7900_s18, 9  ;;  %v7628_v2 = vld [vmem:[%s9764_s3 + $0x70] sm:$0xff]   ;;  %v7630_v4 = vld [vmem:[%s9764_s3 + $0x68] sm:$0xff]   ;;  %vm412_vm0 = vcmask 1046528  }
   0xf   : > { %v7627_v1 = vld [vmem:[%s9764_s3 + $0x38] sm:$0xff]   ;;  %6918 = vmatprep.subr.bf16.mxu0 %v7626_v0  ;;  %v7629_v3 = vld [vmem:[%s9764_s3 + $0x30] sm:$0xff]   ;;  %v7631_v5 = vld [vmem:[%s9764_s3 + $0x28] sm:$0xff]   ;;  %vm716_vm1 = vcmask 1045504   ;;  %s312_s10 = sadd.s32 1, %s7900_s18  ;;  %p336_p9 = scmp.lt.s32.totalorder %s7900_s18, 7 }
  0x10   : > { %s9812_s19 = smov (!%p303_p5, %s7904_s19), 1  ;;  %6942 = vmatprep.subr.bf16.mxu1 %v7627_v1  ;;  %6919 = vmatpush3.bf16.msra.mxu0 %v7626_v0  ;;  %v7632_v6 = vld [vmem:[%s9764_s3 + $0x60] sm:$0xff]   ;;  %v7634_v8 = vld [vmem:[%s9764_s3 + $0x58] sm:$0xff]   ;;  %v7636_v10 = vld [vmem:[%s9764_s3 + $0x50] sm:$0xff]   ;;  %p8298_p7 = scmp.lt.s32.totalorder %s312_s10, 9 }
  0x11   : > { %s306_s8 = scalar_select %p305_p6, %s7900_s18, 9  ;;  %6943 = vmatpush3.bf16.msra.mxu1 %v7627_v1  ;;  %6920 = vmatprep.subr.bf16.mxu0 %v7628_v2  ;;  %v7633_v7 = vld [vmem:[%s9764_s3 + $0x20] sm:$0xff]   ;;  %v7635_v9 = vld [vmem:[%s9764_s3 + $0x18] sm:$0xff]   ;;  %v7637_v11 = vld [vmem:[%s9764_s3 + $0x10] sm:$0xff]  }
  0x12   : > { %s8000_s11 = smul.u32 200, %s9812_s19  ;;  %6944 = vmatprep.subr.bf16.mxu1 %v7629_v3  ;;  %v7638_v30 = vld [vmem:[%s9764_s3 + $0x48] sm:$0xff]   ;;  %v7640_v42 = vld [vmem:[%s9764_s3 + $0x40] sm:$0xff]   ;;  %v7644_v46 = vld [vmem:[%s9764_s3 + $0xb8] sm:$0xff]   ;;  %s9814_s10 = smov (!%p8298_p7, %s312_s10), 9 }
  0x13   : > { %s7582_s14 = smul.u32 20, %s306_s8  ;;  %v7639_v34 = vld [vmem:[%s9764_s3 + $0x8] sm:$0xff]   ;;  %v7641_v43 = vld [vmem:[%s9764_s3] sm:$0xff]   ;;  %v7645_v47 = vld [vmem:[%s9764_s3 + $0xf8] sm:$0xff]  }
  0x14   : > { %6921 = vmatpush3.bf16.msra.mxu0 %v7628_v2  ;;  %v7646_v49 = vld [vmem:[%s9764_s3 + $0xb0] sm:$0xff]   ;;  %s7584_s30 = smul.u32 20, %s9814_s10 }
  0x15   : > { %s309_s15 = sadd.s32 %s8000_s11, %s7582_s14  ;;  %6945 = vmatpush3.bf16.msra.mxu1 %v7629_v3  ;;  %6922 = vmatprep.subr.bf16.mxu0 %v7630_v4  ;;  %v7647_v2 = vld [vmem:[%s9764_s3 + $0xf0] sm:$0xff]  }
  0x16   : > { %6946 = vmatprep.subr.bf16.mxu1 %v7631_v5  ;;  %s5702_s27 = sshll.u32 %s309_s15, 2  ;;  %s319_s14 = sadd.s32 %s7584_s30, %s8000_s11 }
  0x17   : > { %s8021_s9 = scalar_lea.vmem %s9761_s0, %s5702_s27  ;;  %s5703_s15 = sshll.u32 %s319_s14, 2 }
  0x18   : > { %6923 = vmatpush3.bf16.msra.mxu0 %v7630_v4  ;;  %v344_v12 = vld [vmem:[%s8021_s9] sm:$0xf]  ;;  %v345_v13 = vld [vmem:[%s8021_s9 + $0x8] sm:$0xf]  ;;  %v8032_v16 = vld [vmem:[%s8021_s9 + $0x4] sm:$0x1]  ;;  %s8360_s6 = scalar_lea.vmem %s9762_s1, %s5703_s15 }
  0x19   : > { %6947 = vmatpush3.bf16.msra.mxu1 %v7631_v5  ;;  %6924 = vmatprep.subr.bf16.mxu0 %v7632_v6  ;;  %v352_v14 = vunpack.c.l.bf16 %v344_v12  ;;  %v353_v15 = vunpack.c.l.bf16 %v345_v13  ;;  %v8035_v17 = vld [vmem:[%s8021_s9 + $0xc] sm:$0x1]  ;;  %v5708_v18 = vcombine.low %v344_v12, %v345_v13  ;;  %v8038_v19 = vld [vmem:[%s8021_s9 + $0x10] sm:$0xf]  ;;  %v388_v20 = vunpack.c.l.bf16 %v8032_v16  ;;  %v8043_v22 = vld [vmem:[%s8021_s9 + $0x18] sm:$0xf] }
  0x1a   : > { %6948 = vmatprep.subr.bf16.mxu1 %v7633_v7  ;;  %v389_v21 = vunpack.c.l.bf16 %v8035_v17  ;;  %v354_v23 = vunpack.c.l.bf16 %v8038_v19  ;;  %v8047_v24 = vld [vmem:[%s8021_s9 + $0x14] sm:$0x1]  ;;  %v8050_v25 = vld [vmem:[%s8021_s9 + $0x1c] sm:$0x1]  ;;  %v355_v28 = vunpack.c.l.bf16 %v8043_v22  ;;  %v348_v50 = vld [vmem:[%s8021_s9 + $0x20] sm:$0xf]  ;;  %v5709_v53 = vcombine.low %v8038_v19, %v8043_v22 }
  0x1b   : > { %v413_v26 = vrot.slane %v352_v14, 1  ;;  %v416_v27 = vrot.slane %v353_v15, 1  ;;  %6958 = vmatprep.mubr.bf16.mxu1 %v5708_v18  ;;  %v390_v29 = vunpack.c.l.bf16 %v8047_v24  ;;  %v414_v31 = vrot.slane %v388_v20, 1  ;;  %v349_v51 = vld [vmem:[%s8021_s9 + $0x28] sm:$0xf]  ;;  %v7652_v17 = vld [vmem:[%s9764_s3 + $0x98] sm:$0xff]  }
  0x1c   : > { %6925 = vmatpush3.bf16.msra.mxu0 %v7632_v6  ;;  %v417_v32 = vrot.slane %v389_v21, 1  ;;  %v391_v33 = vunpack.c.l.bf16 %v8050_v25  ;;  %v419_v35 = vrot.slane %v354_v23, 1  ;;  %v422_v39 = vrot.slane %v355_v28, 1  ;;  %v8091_v52 = vld [vmem:[%s8021_s9 + $0x24] sm:$0x1]  ;;  %v7649_v14 = vld [vmem:[%s9764_s3 + $0xe8] sm:$0xff]  }
  0x1d   : > { %6949 = vmatpush3.bf16.msra.mxu1 %v7633_v7  ;;  %6926 = vmatprep.subr.bf16.mxu0 %v7634_v8  ;;  %v420_v36 = vrot.slane %v390_v29, 1  ;;  %v415_v37 = vsel %vm412_vm0, %v413_v26, %v414_v31  ;;  %v356_v54 = vunpack.c.l.bf16 %v348_v50  ;;  %v357_v55 = vunpack.c.l.bf16 %v349_v51  ;;  %v8096_v56 = vld [vmem:[%s8021_s9 + $0x2c] sm:$0x1]  ;;  %v350_v58 = vld [vmem:[%s8021_s9 + $0x30] sm:$0xf]  ;;  %s5706_s15 = sshll.u32 %s9812_s19, 6 }
  0x1e   : > { %6950 = vmatprep.subr.bf16.mxu1 %v7635_v9  ;;  %v418_v38 = vsel %vm412_vm0, %v416_v27, %v417_v32  ;;  %v423_v40 = vrot.slane %v391_v33, 1  ;;  %v392_v57 = vunpack.c.l.bf16 %v8091_v52  ;;  %v351_v59 = vld [vmem:[%s8021_s9 + $0x38] sm:$0xf]  ;;  %v393_v60 = vunpack.c.l.bf16 %v8096_v56  ;;  %v8103_v0 = vld [vmem:[%s8021_s9 + $0x34] sm:$0x1]  ;;  %v7650_v32 = vld [vmem:[%s9764_s3 + $0xa0] sm:$0xff]  }
  0x1f   : > { %v445_v41 = vpack.c.bf16 %v418_v38, %v415_v37  ;;  %v421_v44 = vsel %vm412_vm0, %v419_v35, %v420_v36  ;;  %v5710_v61 = vcombine.low %v348_v50, %v349_v51  ;;  %v358_v62 = vunpack.c.l.bf16 %v350_v58  ;;  %v8106_v1 = vld [vmem:[%s8021_s9 + $0x3c] sm:$0x1]  ;;  %v692_v28 = vld [vmem:[%s8021_s9] sm:$0xe]  ;;  %v7662_v38 = vld [vmem:[%s8021_s9 + $0x8] ss:$8 sps:$4 sm:$0xff]  }
  0x20   : > { %6927 = vmatpush3.bf16.msra.mxu0 %v7634_v8  ;;  %v424_v45 = vsel %vm412_vm0, %v422_v39, %v423_v40  ;;  %v359_v63 = vunpack.c.l.bf16 %v351_v59  ;;  %v425_v3 = vrot.slane %v356_v54, 1  ;;  %v426_v4 = vrot.slane %v392_v57, 1  ;;  %v7651_v37 = vld [vmem:[%s9764_s3 + $0xe0] sm:$0xff]   ;;  %v7653_v40 = vld [vmem:[%s9764_s3 + $0xd8] sm:$0xff]   ;;  %v7659_v51 = vld [vmem:[%s9764_s3 + $0xc8] sm:$0xff]  }
  0x21   : > { %6951 = vmatpush3.bf16.msra.mxu1 %v7635_v9  ;;  %6928 = vmatprep.subr.bf16.mxu0 %v7636_v10  ;;  %v446_v48 = vpack.c.bf16 %v424_v45, %v421_v44  ;;  %v428_v5 = vrot.slane %v357_v55, 1  ;;  %v394_v6 = vunpack.c.l.bf16 %v8103_v0  ;;  %v429_v7 = vrot.slane %v393_v60, 1  ;;  %v694_v44 = vld [vmem:[%s8021_s9 + $0x10] sm:$0xe]  ;;  %v695_v45 = vld [vmem:[%s8021_s9 + $0x18] sm:$0xe] }
  0x22   : > { %6952 = vmatprep.subr.bf16.mxu1 %v7637_v11  ;;  %6934 = vmatprep.mubr.bf16.mxu0 %v445_v41  ;;  %v395_v8 = vunpack.c.l.bf16 %v8106_v1  ;;  %v431_v9 = vrot.slane %v358_v62, 1  ;;  %v427_v12 = vsel %vm412_vm0, %v425_v3, %v426_v4  ;;  %v5711_v27 = vcombine.low %v350_v58, %v351_v59  ;;  %v698_v25 = vld [vmem:[%s8021_s9 + $0x30] sm:$0xe]  ;;  %v699_v59 = vld [vmem:[%s8021_s9 + $0x38] sm:$0xe]  ;;  %v7661_v52 = vld [vmem:[%s9764_s3 + $0xc0] sm:$0xff]  }
  0x23   : > { %v432_v13 = vrot.slane %v394_v6, 1  ;;  %v430_v15 = vsel %vm412_vm0, %v428_v5, %v429_v7  ;;  %v718_v31 = vrot.slane %v388_v20, 2  ;;  %v721_v36 = vrot.slane %v389_v21, 2  ;;  %v7664_v4 = vld [vmem:[%s9764_s3 + $0x138] sm:$0xff]   ;;  %v7666_v1 = vld [vmem:[%s9764_s3 + $0x130] sm:$0xff]  }
  0x24   : > { %6929 = vmatpush3.bf16.msra.mxu0 %v7636_v10  ;;  %v434_v10 = vrot.slane %v359_v63, 1  ;;  %v435_v18 = vrot.slane %v395_v8, 1  ;;  %v447_v19 = vpack.c.bf16 %v430_v15, %v427_v12  ;;  %v727_v50 = vrot.slane %v391_v33, 2  ;;  %v7660_v33 = vld [vmem:[%s9764_s3 + $0x80] sm:$0xff]   ;;  %v7665_v7 = vld [vmem:[%s9764_s3 + $0x178] sm:$0xff]  }
  0x25   : > { %6953 = vmatpush3.bf16.msra.mxu1 %v7637_v11  ;;  %6930 = vmatprep.subr.bf16.mxu0 %v7638_v30  ;;  %v7648_v11 = vld [vmem:[%s9764_s3 + $0xa8] sm:$0xff]   ;;  %v433_v22 = vsel %vm412_vm0, %v431_v9, %v432_v13  ;;  %v703_v54 = vunpack.c.l.bf16 %v695_v45  ;;  %v733_v58 = vrot.slane %v393_v60, 2  ;;  %v706_v56 = vunpack.c.l.bf16 %v698_v25  ;;  %v7663_v13 = vld [vmem:[%s8021_s9 + $0x18] ss:$8 sps:$4 sm:$0xff]  }
  0x26   : > { %6954 = vmatprep.subr.bf16.mxu1 %v7639_v34  ;;  %v436_v23 = vsel %vm412_vm0, %v434_v10, %v435_v18  ;;  %v736_v5 = vrot.slane %v394_v6, 2  ;;  %v5804_v15 = vld [vmem:[%s8021_s9 + $0x8] ss:$8 sps:$4 sm:$0xff]   ;;  %v5805_v18 = vld [vmem:[%s8021_s9 + $0xc] sm:$0x1] }
  0x27   : > { %v448_v26 = vpack.c.bf16 %v436_v23, %v433_v22  ;;  %v726_v62 = vrot.slane %v703_v54, 2  ;;  %v735_v12 = vrot.slane %v706_v56, 2  ;;  %v1067_v22 = vunpack.c.l.bf16 %v5805_v18  ;;  %v7673_v54 = vld [vmem:[%s9764_s3 + $0x160] sm:$0xff]  }
  0x28   : > { %6931 = vmatpush3.bf16.msra.mxu0 %v7638_v30  ;;  %v693_v30 = vld [vmem:[%s8021_s9 + $0x8] sm:$0xe]  ;;  %v1068_v23 = vunpack.c.h.bf16 %v5804_v15  ;;  %v5847_v25 = vld [vmem:[%s8021_s9 + $0x20] sm:$0xe] }
  0x29   : > { %6955 = vmatpush3.bf16.msra.mxu1 %v7639_v34  ;;  %6932 = vmatprep.subr.bf16.mxu0 %v7640_v42  ;;  %v700_v34 = vunpack.c.l.bf16 %v692_v28  ;;  %v701_v35 = vunpack.c.l.bf16 %v693_v30  ;;  %v728_v3 = vsel %vm716_vm1, %v726_v62, %v727_v50  ;;  %v5845_v28 = vld [vmem:[%s8021_s9 + $0x10] sm:$0xe]  ;;  %v7674_v62 = vld [vmem:[%s9764_s3 + $0x118] sm:$0xff]  }
  0x2a   : > { %6956 = vmatprep.subr.bf16.mxu1 %v7641_v43  ;;  %v7667_v30 = vld [vmem:[%s9764_s3 + $0x170] sm:$0xff]  }
  0x2b   : > { %v717_v16 = vrot.slane %v700_v34, 2  ;;  %v720_v20 = vrot.slane %v701_v35, 2  ;;  %v1281_v35 = vunpack.c.l.bf16 %v5845_v28 }
  0x2c   : > { %6933 = vmatpush3.bf16.msra.mxu0 %v7640_v42  ;;  %v7656_v42 = vld [vmem:[%s9764_s3 + $0x90] sm:$0xff]  }
  0x2d   : > { %6957 = vmatpush3.bf16.msra.mxu1 %v7641_v43  ;;  %6966 = vmatprep.subr.bf16.mxu0 %v7644_v46  ;;  %v719_v21 = vsel %vm716_vm1, %v717_v16, %v718_v31  ;;  %v722_v39 = vsel %vm716_vm1, %v720_v20, %v721_v36  ;;  %v7657_v43 = vld [vmem:[%s9764_s3 + $0xd0] sm:$0xff]   ;;  %v737_v31 = vsel %vm716_vm1, %v735_v12, %v736_v5  ;;  %v7668_v36 = vld [vmem:[%s9764_s3 + $0x128] sm:$0xff]   ;;  %v1099_v16 = vrot.slane %v1067_v22, 1 }
  0x2e   : > { %6990 = vmatprep.subr.bf16.mxu1 %v7645_v47  ;;  %v749_v41 = vpack.c.bf16 %v722_v39, %v719_v21  ;;  %v1101_v20 = vrot.slane %v1068_v23, 1  ;;  %v1297_v39 = vrot.slane %v1067_v22, 2  ;;  %v5848_v23 = vld [vmem:[%s8021_s9 + $0x28] sm:$0xe] }
  0x2f   : > { %6935 = vmatmul.mubr.bf16.vlgmr.msra.gmra.mxu0 %v446_v48  ;;  %v724_v48 = vrot.slane %v390_v29, 2  ;;  %v730_v29 = vrot.slane %v392_v57, 2  ;;  %v707_v57 = vunpack.c.l.bf16 %v699_v59 }
  0x30   : > { %6959 = vmatmul.mubr.bf16.vlgmr.msra.gmra.mxu1 %v5709_v53  ;;  %6967 = vmatpush3.bf16.msra.mxu0 %v7644_v46  ;;  %v696_v46 = vld [vmem:[%s8021_s9 + $0x20] sm:$0xe]  ;;  %v702_v53 = vunpack.c.l.bf16 %v694_v44 }
  0x31   : > { %6991 = vmatpush3.bf16.msra.mxu1 %v7645_v47  ;;  %6968 = vmatprep.subr.bf16.mxu0 %v7646_v49  ;;  %v697_v47 = vld [vmem:[%s8021_s9 + $0x28] sm:$0xe]  ;;  %v704_v55 = vunpack.c.l.bf16 %v696_v46  ;;  %v738_v0 = vrot.slane %v707_v57, 2 }
  0x32   : > { %6992 = vmatprep.subr.bf16.mxu1 %v7647_v2  ;;  %6962 = vmatprep.mubr.bf16.mxu1 %v5710_v61  ;;  %v705_v24 = vunpack.c.l.bf16 %v697_v47  ;;  %v723_v61 = vrot.slane %v702_v53, 2  ;;  %v5808_v47 = vld [vmem:[%s8021_s9 + $0x18] ss:$8 sps:$4 sm:$0xff]  }
  0x33   : > { %6938 = vmatprep.mubr.bf16.mxu0 %v447_v19  ;;  %v729_v63 = vrot.slane %v704_v55, 2  ;;  %v5807_v19 = vld [vmem:[%s8021_s9 + $0x14] sm:$0x1]  ;;  %v7672_v53 = vld [vmem:[%s9764_s3 + $0x120] sm:$0xff]   ;;  %v1072_v59 = vunpack.c.h.bf16 %v5808_v47 }
  0x34   : > { %6969 = vmatpush3.bf16.msra.mxu0 %v7646_v49  ;;  %v7658_v49 = vld [vmem:[%s9764_s3 + $0x88] sm:$0xff]   ;;  %v725_v60 = vsel %vm716_vm1, %v723_v61, %v724_v48  ;;  %v5809_v48 = vld [vmem:[%s8021_s9 + $0x1c] sm:$0x1] }
  0x35   : > { %6993 = vmatpush3.bf16.msra.mxu1 %v7647_v2  ;;  %6970 = vmatprep.subr.bf16.mxu0 %v7648_v11  ;;  %v732_v2 = vrot.slane %v705_v24, 2  ;;  %v731_v9 = vsel %vm716_vm1, %v729_v63, %v730_v29  ;;  %v750_v6 = vpack.c.bf16 %v728_v3, %v725_v60  ;;  %v1070_v24 = vunpack.c.l.bf16 %v5808_v47  ;;  %v7676_v60 = vld [vmem:[%s9764_s3 + $0x110] sm:$0xff]  }
  0x36   : > { %6994 = vmatprep.subr.bf16.mxu1 %v7649_v14  ;;  %v1071_v29 = vunpack.c.l.bf16 %v5809_v48  ;;  %v1107_v3 = vrot.slane %v1072_v59, 1 }
  0x37   : > { %6939 = vmatmul.mubr.bf16.gmra.mxu0 %v448_v26  ;;  %v734_v10 = vsel %vm716_vm1, %v732_v2, %v733_v58  ;;  %v1069_v26 = vunpack.c.l.bf16 %v5807_v19  ;;  %v5846_v58 = vld [vmem:[%s8021_s9 + $0x18] sm:$0xe]  ;;  %v1283_v2 = vunpack.c.l.bf16 %v5847_v25  ;;  %v1104_v56 = vrot.slane %v1070_v24, 1  ;;  %v5817_v19 = vld [vmem:[%s8021_s9 + $0x3c] sm:$0x1] }
  0x38   : > { %6971 = vmatpush3.bf16.msra.mxu0 %v7648_v11  ;;  %6963 = vmatmul.mubr.bf16.gmra.mxu1 %v5711_v27  ;;  %v739_v11 = vrot.slane %v395_v8, 2  ;;  %v1066_v8 = vunpack.c.l.bf16 %v5804_v15  ;;  %v5844_v27 = vld [vmem:[%s8021_s9 + $0x8] sm:$0xe]  ;;  %v1282_v63 = vunpack.c.l.bf16 %v5846_v58  ;;  %v1105_v57 = vrot.slane %v1071_v29, 1  ;;  %v8281_v58 = vld [vmem:[%s8021_s9 + $0x1c] sm:$0x1] }
  0x39   : > { %6995 = vmatpush3.bf16.msra.mxu1 %v7649_v14  ;;  %6972 = vmatprep.subr.bf16.mxu0 %v7650_v32  ;;  %v751_v14 = vpack.c.bf16 %v734_v10, %v731_v9  ;;  %v1280_v34 = vunpack.c.l.bf16 %v5844_v27  ;;  %v1303_v5 = vrot.slane %v1071_v29, 2  ;;  %v7677_v9 = vld [vmem:[%s9764_s3 + $0x150] sm:$0xff]   ;;  %v5819_v27 = vld [vmem:[%s8021_s9 + $0x44] sm:$0x1]  ;;  %v7683_v25 = vld [vmem:[%s9764_s3 + $0x1f8] sm:$0xff]  }
  0x3a   : > { %6996 = vmatprep.subr.bf16.mxu1 %v7651_v37  ;;  %7006 = vmatprep.mubr.bf16.mxu1 %v7662_v38  ;;  %v1098_v38 = vrot.slane %v1066_v8, 1  ;;  %v5812_v10 = vld [vmem:[%s8021_s9 + $0x28] ss:$8 sps:$4 sm:$0xff]   ;;  %v1302_v12 = vrot.slane %v1282_v63, 2  ;;  %v8278_v29 = vld [vmem:[%s8021_s9 + $0x14] sm:$0x1] }
  0x3b   : > { %6982 = vmatprep.mubr.bf16.mxu0 %v749_v41  ;;  %v1296_v21 = vrot.slane %v1280_v34, 2  ;;  %v1300_v41 = vrot.slane %v1069_v26, 2  ;;  %v1074_v15 = vunpack.c.l.bf16 %v5812_v10  ;;  %v1076_v8 = vunpack.c.h.bf16 %v5812_v10  ;;  %v7685_v10 = vld [vmem:[%s9764_s3 + $0x1f0] sm:$0xff]  }
  0x3c   : > { %6973 = vmatpush3.bf16.msra.mxu0 %v7650_v32  ;;  %v740_v32 = vsel %vm716_vm1, %v738_v0, %v739_v11  ;;  %v1100_v45 = vsel %vm412_vm0, %v1098_v38, %v1099_v16  ;;  %v5813_v11 = vld [vmem:[%s8021_s9 + $0x2c] sm:$0x1]  ;;  %v1305_v0 = vrot.slane %v1283_v2, 2  ;;  %v1079_v34 = vunpack.c.l.bf16 %v5817_v19 }
  0x3d   : > { %6997 = vmatpush3.bf16.msra.mxu1 %v7651_v37  ;;  %6974 = vmatprep.subr.bf16.mxu0 %v7652_v17  ;;  %v7670_v37 = vld [vmem:[%s8021_s9 + $0x28] ss:$8 sps:$4 sm:$0xff]   ;;  %v752_v44 = vpack.c.bf16 %v740_v32, %v737_v31  ;;  %v1075_v18 = vunpack.c.l.bf16 %v5813_v11  ;;  %v1110_v31 = vrot.slane %v1074_v15, 1 }
  0x3e   : > { %6998 = vmatprep.subr.bf16.mxu1 %v7653_v40  ;;  %v1315_v2 = vrot.slane %v1079_v34, 2  ;;  %v7686_v19 = vld [vmem:[%s9764_s3 + $0x1a8] sm:$0xff]  }
  0x3f   : > { %v1111_v32 = vrot.slane %v1075_v18, 1  ;;  %v1309_v48 = vrot.slane %v1075_v18, 2 }
  0x40   : > { %6975 = vmatpush3.bf16.msra.mxu0 %v7652_v17  ;;  %v1102_v17 = vrot.slane %v1069_v26, 1  ;;  %v5849_v26 = vld [vmem:[%s8021_s9 + $0x30] sm:$0xe] }
  0x41   : > { %6999 = vmatpush3.bf16.msra.mxu1 %v7653_v40  ;;  %6976 = vmatprep.subr.bf16.mxu0 %v7656_v42  ;;  %v1299_v40 = vrot.slane %v1281_v35, 2  ;;  %v1284_v35 = vunpack.c.l.bf16 %v5848_v23  ;;  %v1285_v16 = vunpack.c.l.bf16 %v5849_v26 }
  0x42   : > { %7000 = vmatprep.subr.bf16.mxu1 %v7657_v43  ;;  %v1103_v46 = vsel %vm412_vm0, %v1101_v20, %v1102_v17  ;;  %v1106_v20 = vsel %vm412_vm0, %v1104_v56, %v1105_v57  ;;  %v7684_v57 = vld [vmem:[%s9764_s3 + $0x1b0] sm:$0xff]  }
  0x43   : > { %v1301_v50 = vsel %vm716_vm1, %v1299_v40, %v1300_v41  ;;  %v1130_v55 = vpack.c.bf16 %v1103_v46, %v1100_v45  ;;  %v1117_v46 = vrot.slane %v1079_v34, 1  ;;  %v1308_v47 = vrot.slane %v1284_v35, 2  ;;  %v7690_v35 = vld [vmem:[%s9764_s3 + $0x198] sm:$0xff]  }
  0x44   : > { %6977 = vmatpush3.bf16.msra.mxu0 %v7656_v42  ;;  %v7669_v42 = vld [vmem:[%s9764_s3 + $0x168] sm:$0xff]  }
  0x45   : > { %7001 = vmatpush3.bf16.msra.mxu1 %v7657_v43  ;;  %6978 = vmatprep.subr.bf16.mxu0 %v7658_v49  ;;  %v7671_v43 = vld [vmem:[%s8021_s9 + $0x38] ss:$8 sps:$4 sm:$0xff]   ;;  %v1310_v63 = vsel %vm716_vm1, %v1308_v47, %v1309_v48 }
  0x46   : > { %7002 = vmatprep.subr.bf16.mxu1 %v7659_v51 }
  0x48   : > { %6979 = vmatpush3.bf16.msra.mxu0 %v7658_v49  ;;  %v1298_v49 = vsel %vm716_vm1, %v1296_v21, %v1297_v39  ;;  %v5850_v21 = vld [vmem:[%s8021_s9 + $0x38] sm:$0xe]  ;;  %v1304_v39 = vsel %vm716_vm1, %v1302_v12, %v1303_v5  ;;  %v1648_v5 = vunpack.c.l.bf16 %v8281_v58 }
  0x49   : > { %7003 = vmatpush3.bf16.msra.mxu1 %v7659_v51  ;;  %6980 = vmatprep.subr.bf16.mxu0 %v7660_v33  ;;  %v5811_v51 = vld [vmem:[%s8021_s9 + $0x24] sm:$0x1] }
  0x4a   : > { %7004 = vmatprep.subr.bf16.mxu1 %v7661_v52  ;;  %v1073_v61 = vunpack.c.l.bf16 %v5811_v51  ;;  %v5912_v51 = vld [vmem:[%s8021_s9 + $0x10] ss:$8 sps:$4 sm:$0xff]   ;;  %v1681_v18 = vrot.slane %v1648_v5, 1 }
  0x4b   : > { %v1647_v56 = vunpack.c.h.bf16 %v5912_v51 }
  0x4c   : > { %6981 = vmatpush3.bf16.msra.mxu0 %v7660_v33  ;;  %v1328_v33 = vpack.c.bf16 %v1301_v50, %v1298_v49  ;;  %v1311_v49 = vrot.slane %v1285_v16, 2  ;;  %v8344_v16 = vld [vmem:[%s8021_s9 + $0x2c] sm:$0x1] }
  0x4d   : > { %7005 = vmatpush3.bf16.msra.mxu1 %v7661_v52  ;;  %7014 = vmatprep.subr.bf16.mxu0 %v7664_v4  ;;  %v7675_v52 = vld [vmem:[%s9764_s3 + $0x158] sm:$0xff]  }
  0x4e   : > { %7038 = vmatprep.subr.bf16.mxu1 %v7665_v7 }
  0x4f   : > { %6983 = vmatmul.mubr.bf16.vlgmr.msra.gmra.mxu0 %v750_v6  ;;  %v5815_v6 = vld [vmem:[%s8021_s9 + $0x34] sm:$0x1] }
  0x50   : > { %7007 = vmatmul.mubr.bf16.vlgmr.msra.gmra.mxu1 %v7663_v13  ;;  %7015 = vmatpush3.bf16.msra.mxu0 %v7664_v4  ;;  %v1108_v4 = vrot.slane %v1073_v61, 1  ;;  %v5816_v13 = vld [vmem:[%s8021_s9 + $0x38] ss:$8 sps:$4 sm:$0xff]   ;;  %v1077_v22 = vunpack.c.l.bf16 %v5815_v6  ;;  %v1680_v6 = vrot.slane %v1647_v56, 1 }
  0x51   : > { %7039 = vmatpush3.bf16.msra.mxu1 %v7665_v7  ;;  %7016 = vmatprep.subr.bf16.mxu0 %v7666_v1  ;;  %v1306_v7 = vrot.slane %v1073_v61, 2  ;;  %v1078_v28 = vunpack.c.l.bf16 %v5816_v13  ;;  %v1080_v41 = vunpack.c.h.bf16 %v5816_v13 }
  0x52   : > { %7040 = vmatprep.subr.bf16.mxu1 %v7667_v30  ;;  %6986 = vmatprep.mubr.bf16.mxu0 %v751_v14  ;;  %v7678_v14 = vld [vmem:[%s9764_s3 + $0x108] sm:$0xff]   ;;  %v1114_v38 = vrot.slane %v1077_v22, 1  ;;  %v1109_v17 = vsel %vm412_vm0, %v1107_v3, %v1108_v4  ;;  %v1312_v50 = vrot.slane %v1077_v22, 2  ;;  %v1646_v4 = vunpack.c.l.bf16 %v8278_v29 }
  0x53   : > { %7010 = vmatprep.mubr.bf16.mxu1 %v7670_v37  ;;  %v1113_v37 = vrot.slane %v1076_v8, 1  ;;  %v1307_v40 = vsel %vm716_vm1, %v1305_v0, %v1306_v7  ;;  %v1116_v45 = vrot.slane %v1078_v28, 1  ;;  %v1119_v61 = vrot.slane %v1080_v41, 1  ;;  %v7687_v22 = vld [vmem:[%s9764_s3 + $0x1e8] sm:$0xff]  }
  0x54   : > { %7017 = vmatpush3.bf16.msra.mxu0 %v7666_v1  ;;  %v7679_v1 = vld [vmem:[%s9764_s3 + $0x148] sm:$0xff]   ;;  %v1678_v15 = vrot.slane %v1646_v4, 1  ;;  %v1682_v28 = vsel %vm412_vm0, %v1680_v6, %v1681_v18  ;;  %v1876_v6 = vrot.slane %v1646_v4, 2 }
  0x55   : > { %7041 = vmatpush3.bf16.msra.mxu1 %v7667_v30  ;;  %7018 = vmatprep.subr.bf16.mxu0 %v7668_v36  ;;  %v7680_v30 = vld [vmem:[%s9764_s3 + $0x100] sm:$0xff]   ;;  %v1115_v59 = vsel %vm412_vm0, %v1113_v37, %v1114_v38  ;;  %v1118_v13 = vsel %vm412_vm0, %v1116_v45, %v1117_v46  ;;  %v8367_v45 = vld [vmem:[%s8021_s9 + $0x3c] sm:$0x1]  ;;  %v7695_v46 = vld [vmem:[%s9764_s3 + $0x1c8] sm:$0xff]  }
  0x56   : > { %7042 = vmatprep.subr.bf16.mxu1 %v7669_v42  ;;  %v5916_v37 = vld [vmem:[%s8021_s9 + $0x20] ss:$8 sps:$4 sm:$0xff]   ;;  %v8341_v38 = vld [vmem:[%s8021_s9 + $0x24] sm:$0x1] }
  0x57   : > { %6987 = vmatmul.mubr.bf16.gmra.mxu0 %v752_v44  ;;  %v7682_v44 = vld [vmem:[%s9764_s3 + $0x1b8] sm:$0xff]   ;;  %v1650_v41 = vunpack.c.l.bf16 %v8341_v38  ;;  %v5958_v38 = vld [vmem:[%s8021_s9 + $0x40] sm:$0xe] }
  0x58   : > { %7019 = vmatpush3.bf16.msra.mxu0 %v7668_v36  ;;  %7011 = vmatmul.mubr.bf16.gmra.mxu1 %v7671_v43  ;;  %v7681_v36 = vld [vmem:[%s9764_s3 + $0x140] sm:$0xff]  }
  0x59   : > { %7043 = vmatpush3.bf16.msra.mxu1 %v7669_v42  ;;  %7020 = vmatprep.subr.bf16.mxu0 %v7672_v53  ;;  %v1081_v42 = vunpack.c.l.bf16 %v5819_v27  ;;  %v5851_v43 = vld [vmem:[%s8021_s9 + $0x40] sm:$0xe] }
  0x5a   : > { %7044 = vmatprep.subr.bf16.mxu1 %v7673_v54  ;;  %7030 = vmatprep.mubr.bf16.mxu0 %v1130_v55  ;;  %v1286_v55 = vunpack.c.l.bf16 %v5850_v21  ;;  %v1287_v24 = vunpack.c.l.bf16 %v5851_v43  ;;  %v1649_v21 = vunpack.c.l.bf16 %v5916_v37  ;;  %v5920_v43 = vld [vmem:[%s8021_s9 + $0x30] ss:$8 sps:$4 sm:$0xff]  }
  0x5b   : > { %7054 = vmatprep.mubr.bf16.mxu1 %v1328_v33  ;;  %v1112_v33 = vsel %vm412_vm0, %v1110_v31, %v1111_v32  ;;  %v1318_v3 = vrot.slane %v1081_v42, 2  ;;  %v7689_v31 = vld [vmem:[%s9764_s3 + $0x1e0] sm:$0xff]   ;;  %v7698_v32 = vld [vmem:[%s8021_s9 + $0x10] ss:$8 sps:$4 sm:$0xff]  }
  0x5c   : > { %7021 = vmatpush3.bf16.msra.mxu0 %v7672_v53  ;;  %v1131_v53 = vpack.c.bf16 %v1109_v17, %v1106_v20  ;;  %v1314_v7 = vrot.slane %v1286_v55, 2  ;;  %v1132_v11 = vpack.c.bf16 %v1115_v59, %v1112_v33  ;;  %v7692_v20 = vld [vmem:[%s9764_s3 + $0x190] sm:$0xff]   ;;  %v1683_v47 = vrot.slane %v1649_v21, 1  ;;  %v7697_v55 = vld [vmem:[%s9764_s3 + $0x1c0] sm:$0xff]  }
  0x5d   : > { %7045 = vmatpush3.bf16.msra.mxu1 %v7673_v54  ;;  %7022 = vmatprep.subr.bf16.mxu0 %v7674_v62  ;;  %v1329_v54 = vpack.c.bf16 %v1307_v40, %v1304_v39  ;;  %v7693_v17 = vld [vmem:[%s9764_s3 + $0x1d0] sm:$0xff]   ;;  %v1651_v39 = vunpack.c.h.bf16 %v5916_v37  ;;  %v7694_v40 = vld [vmem:[%s9764_s3 + $0x188] sm:$0xff]   ;;  %v8386_v59 = vld [vmem:[%s8021_s9 + $0x44] sm:$0x1] }
  0x5e   : > { %7046 = vmatprep.subr.bf16.mxu1 %v7675_v52  ;;  %v5924_v33 = vld [vmem:[%s8021_s9 + $0x40] ss:$8 sps:$4 sm:$0xff]  }
  0x5f   : > { %v1686_v48 = vrot.slane %v1651_v39, 1  ;;  %v7708_v21 = vld [vmem:[%s9764_s3 + $0x220] sm:$0xff]  }
  0x60   : > { %7023 = vmatpush3.bf16.msra.mxu0 %v7674_v62  ;;  %v1120_v62 = vrot.slane %v1081_v42, 1  ;;  %v1652_v42 = vunpack.c.l.bf16 %v8344_v16  ;;  %v7709_v39 = vld [vmem:[%s9764_s3 + $0x260] sm:$0xff]  }
  0x61   : > { %7047 = vmatpush3.bf16.msra.mxu1 %v7675_v52  ;;  %7024 = vmatprep.subr.bf16.mxu0 %v7676_v60  ;;  %v1645_v52 = vunpack.c.l.bf16 %v5912_v51  ;;  %v7717_v16 = vld [vmem:[%s9764_s3 + $0x240] sm:$0xff]  }
  0x62   : > { %7048 = vmatprep.subr.bf16.mxu1 %v7677_v9  ;;  %v1687_v51 = vrot.slane %v1652_v42, 1 }
  0x63   : > { %v1677_v0 = vrot.slane %v1645_v52, 1 }
  0x64   : > { %7025 = vmatpush3.bf16.msra.mxu0 %v7676_v60  ;;  %v1313_v60 = vsel %vm716_vm1, %v1311_v49, %v1312_v50  ;;  %v7696_v49 = vld [vmem:[%s9764_s3 + $0x180] sm:$0xff]   ;;  %v1684_v50 = vrot.slane %v1650_v41, 1 }
  0x65   : > { %7049 = vmatpush3.bf16.msra.mxu1 %v7677_v9  ;;  %7026 = vmatprep.subr.bf16.mxu0 %v7678_v14  ;;  %v1317_v9 = vrot.slane %v1287_v24, 2  ;;  %v1330_v12 = vpack.c.bf16 %v1313_v60, %v1310_v63  ;;  %v1679_v27 = vsel %vm412_vm0, %v1677_v0, %v1678_v15  ;;  %v1688_v63 = vsel %vm412_vm0, %v1686_v48, %v1687_v51  ;;  %v7701_v0 = vld [vmem:[%s9764_s3 + $0x278] sm:$0xff]   ;;  %v7702_v15 = vld [vmem:[%s9764_s3 + $0x230] sm:$0xff]  }
  0x66   : > { %7050 = vmatprep.subr.bf16.mxu1 %v7679_v1  ;;  %v1709_v34 = vpack.c.bf16 %v1682_v28, %v1679_v27  ;;  %v1657_v60 = vunpack.c.l.bf16 %v5924_v33  ;;  %v7712_v48 = vld [vmem:[%s9764_s3 + $0x210] sm:$0xff]  }
  0x67   : > { %v1319_v8 = vsel %vm716_vm1, %v1317_v9, %v1318_v3  ;;  %v1659_v3 = vunpack.c.h.bf16 %v5924_v33  ;;  %v5953_v9 = vld [vmem:[%s8021_s9 + $0x18] sm:$0xe]  ;;  %v7713_v51 = vld [vmem:[%s9764_s3 + $0x250] sm:$0xff]  }
  0x68   : > { %7027 = vmatpush3.bf16.msra.mxu0 %v7678_v14  ;;  %v1121_v14 = vsel %vm412_vm0, %v1119_v61, %v1120_v62  ;;  %v8389_v61 = vld [vmem:[%s8021_s9 + $0x4c] sm:$0x1]  ;;  %v1685_v62 = vsel %vm412_vm0, %v1683_v47, %v1684_v50  ;;  %v7711_v47 = vld [vmem:[%s9764_s3 + $0x258] sm:$0xff]   ;;  %v5955_v50 = vld [vmem:[%s8021_s9 + $0x28] sm:$0xe] }
  0x69   : > { %7051 = vmatpush3.bf16.msra.mxu1 %v7679_v1  ;;  %7028 = vmatprep.subr.bf16.mxu0 %v7680_v30  ;;  %v1316_v1 = vsel %vm716_vm1, %v1314_v7, %v1315_v2  ;;  %v1133_v23 = vpack.c.bf16 %v1121_v14, %v1118_v13  ;;  %v5952_v7 = vld [vmem:[%s8021_s9 + $0x10] sm:$0xe]  ;;  %v7699_v13 = vld [vmem:[%s8021_s9 + $0x20] ss:$8 sps:$4 sm:$0xff]   ;;  %v1710_v14 = vpack.c.bf16 %v1688_v63, %v1685_v62  ;;  %v5957_v33 = vld [vmem:[%s8021_s9 + $0x38] sm:$0xe] }
  0x6a   : > { %7052 = vmatprep.subr.bf16.mxu1 %v7681_v36  ;;  %v1331_v26 = vpack.c.bf16 %v1319_v8, %v1316_v1  ;;  %v1859_v18 = vunpack.c.l.bf16 %v5952_v7  ;;  %v1879_v1 = vrot.slane %v1648_v5, 2  ;;  %v7703_v8 = vld [vmem:[%s9764_s3 + $0x270] sm:$0xff]   ;;  %v7714_v62 = vld [vmem:[%s9764_s3 + $0x208] sm:$0xff]  }
  0x6b   : > { %v7704_v5 = vld [vmem:[%s8021_s9 + $0x30] ss:$8 sps:$4 sm:$0xff]   ;;  %v7715_v63 = vld [vmem:[%s9764_s3 + $0x248] sm:$0xff]  }
  0x6c   : > { %7029 = vmatpush3.bf16.msra.mxu0 %v7680_v30  ;;  %v7688_v30 = vld [vmem:[%s9764_s3 + $0x1a0] sm:$0xff]   ;;  %v1875_v28 = vrot.slane %v1859_v18, 2 }
  0x6d   : > { %7053 = vmatpush3.bf16.msra.mxu1 %v7681_v36  ;;  %7062 = vmatprep.subr.bf16.mxu0 %v7682_v44  ;;  %v7691_v36 = vld [vmem:[%s9764_s3 + $0x1d8] sm:$0xff]  }
  0x6e   : > { %7086 = vmatprep.subr.bf16.mxu1 %v7683_v25  ;;  %v1877_v37 = vsel %vm716_vm1, %v1875_v28, %v1876_v6  ;;  %v2210_v6 = vld [vmem:[%s8360_s6 + $0xc] sm:$0x1] }
  0x6f   : > { %7031 = vmatmul.mubr.bf16.vlgmr.msra.gmra.mxu0 %v1131_v53  ;;  %v1653_v53 = vunpack.c.l.bf16 %v5920_v43 }
  0x70   : > { %7055 = vmatmul.mubr.bf16.vlgmr.msra.gmra.mxu1 %v1329_v54  ;;  %7063 = vmatpush3.bf16.msra.mxu0 %v7682_v44  ;;  %v8364_v44 = vld [vmem:[%s8021_s9 + $0x34] sm:$0x1]  ;;  %v1655_v54 = vunpack.c.h.bf16 %v5920_v43  ;;  %v7718_v43 = vld [vmem:[%s8360_s6] ss:$8 sps:$4 sm:$0xff]  }
  0x71   : > { %7087 = vmatpush3.bf16.msra.mxu1 %v7683_v25  ;;  %7064 = vmatprep.subr.bf16.mxu0 %v7684_v57  ;;  %v1654_v24 = vunpack.c.l.bf16 %v8364_v44  ;;  %v1656_v25 = vunpack.c.l.bf16 %v8367_v45  ;;  %v1689_v2 = vrot.slane %v1653_v53, 1  ;;  %v5956_v53 = vld [vmem:[%s8021_s9 + $0x30] sm:$0xe]  ;;  %v2208_v44 = vld [vmem:[%s8360_s6 + $0x4] sm:$0x1]  ;;  %v7720_v45 = vld [vmem:[%s9764_s3 + $0x2b8] sm:$0xff]  }
  0x72   : > { %7088 = vmatprep.subr.bf16.mxu1 %v7685_v10  ;;  %7034 = vmatprep.mubr.bf16.mxu0 %v1132_v11  ;;  %v1692_v52 = vrot.slane %v1655_v54, 1  ;;  %v1658_v11 = vunpack.c.l.bf16 %v8386_v59  ;;  %v7722_v59 = vld [vmem:[%s9764_s3 + $0x2b0] sm:$0xff]  }
  0x73   : > { %7058 = vmatprep.mubr.bf16.mxu1 %v1330_v12  ;;  %v1690_v56 = vrot.slane %v1654_v24, 1  ;;  %v1660_v12 = vunpack.c.l.bf16 %v8389_v61 }
  0x74   : > { %7065 = vmatpush3.bf16.msra.mxu0 %v7684_v57  ;;  %v1693_v57 = vrot.slane %v1656_v25, 1 }
  0x75   : > { %7089 = vmatpush3.bf16.msra.mxu1 %v7685_v10  ;;  %7066 = vmatprep.subr.bf16.mxu0 %v7686_v19  ;;  %v7700_v10 = vld [vmem:[%s9764_s3 + $0x238] sm:$0xff]   ;;  %v1691_v29 = vsel %vm412_vm0, %v1689_v2, %v1690_v56  ;;  %v1699_v58 = vrot.slane %v1660_v12, 1  ;;  %v1882_v2 = vrot.slane %v1650_v41, 2  ;;  %v1885_v56 = vrot.slane %v1652_v42, 2  ;;  %v5959_v41 = vld [vmem:[%s8021_s9 + $0x48] sm:$0xe] }
  0x76   : > { %7090 = vmatprep.subr.bf16.mxu1 %v7687_v22  ;;  %v1694_v4 = vsel %vm412_vm0, %v1692_v52, %v1693_v57  ;;  %v7716_v52 = vld [vmem:[%s9764_s3 + $0x200] sm:$0xff]   ;;  %v1863_v57 = vunpack.c.l.bf16 %v5956_v53  ;;  %v1891_v42 = vrot.slane %v1656_v25, 2  ;;  %v1866_v18 = vunpack.c.l.bf16 %v5959_v41  ;;  %v7727_v53 = vld [vmem:[%s8360_s6 + $0x30] ss:$8 sps:$4 sm:$0xff]  }
  0x77   : > { %7035 = vmatmul.mubr.bf16.gmra.mxu0 %v1133_v23  ;;  %v1698_v23 = vrot.slane %v1659_v3, 1  ;;  %v1711_v27 = vpack.c.bf16 %v1694_v4, %v1691_v29  ;;  %v1888_v3 = vrot.slane %v1654_v24, 2  ;;  %v1894_v25 = vrot.slane %v1658_v11, 2  ;;  %v2430_v29 = vld [vmem:[%s8360_s6 + $0x8] sm:$0xe] }
  0x78   : > { %7067 = vmatpush3.bf16.msra.mxu0 %v7686_v19  ;;  %7059 = vmatmul.mubr.bf16.gmra.mxu1 %v1331_v26  ;;  %v1860_v19 = vunpack.c.l.bf16 %v5953_v9  ;;  %v1696_v26 = vrot.slane %v1658_v11, 1  ;;  %v1887_v24 = vrot.slane %v1863_v57, 2  ;;  %v7719_v4 = vld [vmem:[%s8360_s6 + $0x10] ss:$8 sps:$4 sm:$0xff]   ;;  %v2212_v57 = vld [vmem:[%s8360_s6 + $0x14] sm:$0x1] }
  0x79   : > { %7091 = vmatpush3.bf16.msra.mxu1 %v7687_v22  ;;  %7068 = vmatprep.subr.bf16.mxu0 %v7688_v30  ;;  %v1695_v22 = vrot.slane %v1657_v60, 1  ;;  %v1864_v60 = vunpack.c.l.bf16 %v5957_v33  ;;  %v7728_v33 = vld [vmem:[%s9764_s3 + $0x2a0] sm:$0xff]  }
  0x7a   : > { %7092 = vmatprep.subr.bf16.mxu1 %v7689_v31  ;;  %7078 = vmatprep.mubr.bf16.mxu0 %v7698_v32  ;;  %v1889_v11 = vsel %vm716_vm1, %v1887_v24, %v1888_v3  ;;  %v7731_v3 = vld [vmem:[%s9764_s3 + $0x2d8] sm:$0xff]   ;;  %v2215_v41 = vld [vmem:[%s8360_s6 + $0x20] ss:$8 sps:$4 sm:$0xff]   ;;  %v2228_v24 = vunpack.c.l.bf16 %v2212_v57 }
  0x7b   : > { %7102 = vmatprep.mubr.bf16.mxu1 %v1709_v34  ;;  %v1697_v32 = vsel %vm412_vm0, %v1695_v22, %v1696_v26  ;;  %v1700_v34 = vsel %vm412_vm0, %v1698_v23, %v1699_v58  ;;  %v7721_v22 = vld [vmem:[%s9764_s3 + $0x2f8] sm:$0xff]   ;;  %v1897_v23 = vrot.slane %v1660_v12, 2  ;;  %v2226_v58 = vunpack.c.l.bf16 %v2210_v6 }
  0x7c   : > { %7069 = vmatpush3.bf16.msra.mxu0 %v7688_v30  ;;  %v1878_v30 = vrot.slane %v1860_v19, 2  ;;  %v2429_v19 = vld [vmem:[%s8360_s6] sm:$0xe]  ;;  %v2438_v12 = vunpack.c.l.bf16 %v2430_v29 }
  0x7d   : > { %7093 = vmatpush3.bf16.msra.mxu1 %v7689_v31  ;;  %7070 = vmatprep.subr.bf16.mxu0 %v7690_v35  ;;  %v7706_v31 = vld [vmem:[%s9764_s3 + $0x228] sm:$0xff]   ;;  %v2437_v28 = vunpack.c.l.bf16 %v2429_v19 }
  0x7e   : > { %7094 = vmatprep.subr.bf16.mxu1 %v7691_v36 }
  0x80   : > { %7071 = vmatpush3.bf16.msra.mxu0 %v7690_v35  ;;  %v7707_v35 = vld [vmem:[%s9764_s3 + $0x268] sm:$0xff]  }
  0x81   : > { %7095 = vmatpush3.bf16.msra.mxu1 %v7691_v36  ;;  %7072 = vmatprep.subr.bf16.mxu0 %v7692_v20  ;;  %v7705_v36 = vld [vmem:[%s8021_s9 + $0x40] ss:$8 sps:$4 sm:$0xff]  }
  0x82   : > { %7096 = vmatprep.subr.bf16.mxu1 %v7693_v17 }
  0x84   : > { %7073 = vmatpush3.bf16.msra.mxu0 %v7692_v20  ;;  %v1880_v20 = vsel %vm716_vm1, %v1878_v30, %v1879_v1  ;;  %v7723_v30 = vld [vmem:[%s9764_s3 + $0x2f0] sm:$0xff]  }
  0x85   : > { %7097 = vmatpush3.bf16.msra.mxu1 %v7693_v17  ;;  %7074 = vmatprep.subr.bf16.mxu0 %v7694_v40  ;;  %v1712_v17 = vpack.c.bf16 %v1700_v34, %v1697_v32  ;;  %v7726_v32 = vld [vmem:[%s8360_s6 + $0x20] ss:$8 sps:$4 sm:$0xff]  }
  0x86   : > { %7098 = vmatprep.subr.bf16.mxu1 %v7695_v46 }
  0x88   : > { %7075 = vmatpush3.bf16.msra.mxu0 %v7694_v40  ;;  %v1907_v40 = vpack.c.bf16 %v1880_v20, %v1877_v37  ;;  %v2259_v20 = vrot.slane %v2226_v58, 1 }
  0x89   : > { %7099 = vmatpush3.bf16.msra.mxu1 %v7695_v46  ;;  %7076 = vmatprep.subr.bf16.mxu0 %v7696_v49  ;;  %v7710_v46 = vld [vmem:[%s9764_s3 + $0x218] sm:$0xff]  }
  0x8a   : > { %7100 = vmatprep.subr.bf16.mxu1 %v7697_v55 }
  0x8c   : > { %7077 = vmatpush3.bf16.msra.mxu0 %v7696_v49  ;;  %v5954_v49 = vld [vmem:[%s8021_s9 + $0x20] sm:$0xe]  ;;  %s323_s9 = sadd.s32 2, %s7900_s18  ;;  %s9818_s18 = smov (!%p336_p9, %s7900_s18), 7 }
  0x8d   : > { %7101 = vmatpush3.bf16.msra.mxu1 %v7697_v55  ;;  %7110 = vmatprep.subr.bf16.mxu0 %v7700_v10  ;;  %v1861_v54 = vunpack.c.l.bf16 %v5954_v49  ;;  %v1862_v55 = vunpack.c.l.bf16 %v5955_v50  ;;  %p8697_p8 = scmp.lt.s32.totalorder %s323_s9, 9  ;;  %s5705_s14 = sshll.u32 %s9818_s18, 3 }
  0x8e   : > { %7134 = vmatprep.subr.bf16.mxu1 %v7701_v0 }
  0x8f   : > { %7079 = vmatmul.mubr.bf16.vlgmr.msra.gmra.mxu0 %v7699_v13  ;;  %v1881_v7 = vrot.slane %v1861_v54, 2  ;;  %v1884_v9 = vrot.slane %v1862_v55, 2  ;;  %s9816_s9 = smov (!%p8697_p8, %s323_s9), 9 }
  0x90   : > { %7103 = vmatmul.mubr.bf16.vlgmr.msra.gmra.mxu1 %v1710_v14  ;;  %7111 = vmatpush3.bf16.msra.mxu0 %v7700_v10  ;;  %v2207_v10 = vld [vmem:[%s8360_s6] ss:$8 sps:$4 sm:$0xff]   ;;  %s7585_s10 = smul.u32 20, %s9816_s9 }
  0x91   : > { %7135 = vmatpush3.bf16.msra.mxu1 %v7701_v0  ;;  %7112 = vmatprep.subr.bf16.mxu0 %v7702_v15  ;;  %v1890_v0 = vrot.slane %v1864_v60, 2  ;;  %v1883_v13 = vsel %vm716_vm1, %v1881_v7, %v1882_v2  ;;  %v1886_v14 = vsel %vm716_vm1, %v1884_v9, %v1885_v56  ;;  %v2223_v1 = vunpack.c.l.bf16 %v2207_v10  ;;  %v2211_v2 = vld [vmem:[%s8360_s6 + $0x10] ss:$8 sps:$4 sm:$0xff]   ;;  %v2214_v60 = vld [vmem:[%s8360_s6 + $0x1c] sm:$0x1] }
  0x92   : > { %7136 = vmatprep.subr.bf16.mxu1 %v7703_v8  ;;  %7082 = vmatprep.mubr.bf16.mxu0 %v7704_v5  ;;  %v2225_v26 = vunpack.c.h.bf16 %v2207_v10  ;;  %v1908_v5 = vpack.c.bf16 %v1886_v14, %v1883_v13  ;;  %v2431_v7 = vld [vmem:[%s8360_s6 + $0x10] sm:$0xe]  ;;  %v2432_v9 = vld [vmem:[%s8360_s6 + $0x18] sm:$0xe]  ;;  %v2230_v6 = vunpack.c.l.bf16 %v2214_v60  ;;  %v8550_v13 = vld [vmem:[%s8360_s6 + $0x34] sm:$0x1]  ;;  %s8750_s17 = sadd.s32 %s7585_s10, %s8000_s11 }
  0x93   : > { %7106 = vmatprep.mubr.bf16.mxu1 %v1711_v27  ;;  %v1892_v27 = vsel %vm716_vm1, %v1890_v0, %v1891_v42  ;;  %v2255_v34 = vrot.slane %v2223_v1, 1  ;;  %v8541_v42 = vld [vmem:[%s8360_s6 + $0x2c] sm:$0x1]  ;;  %v7732_v10 = vld [vmem:[%s9764_s3 + $0x290] sm:$0xff]   ;;  %v2229_v0 = vunpack.c.h.bf16 %v2211_v2  ;;  %v2440_v19 = vunpack.c.l.bf16 %v2432_v9  ;;  %v2433_v1 = vld [vmem:[%s8360_s6 + $0x20] sm:$0xe] }
  0x94   : > { %7113 = vmatpush3.bf16.msra.mxu0 %v7702_v15  ;;  %v1865_v15 = vunpack.c.l.bf16 %v5958_v38  ;;  %v2258_v37 = vrot.slane %v2225_v26, 1  ;;  %v2227_v38 = vunpack.c.l.bf16 %v2211_v2  ;;  %v7733_v14 = vld [vmem:[%s9764_s3 + $0x2d0] sm:$0xff]   ;;  %v2234_v29 = vunpack.c.l.bf16 %v8541_v42  ;;  %v7734_v26 = vld [vmem:[%s9764_s3 + $0x288] sm:$0xff]   ;;  %v7739_v2 = vld [vmem:[%s9764_s3 + $0x378] sm:$0xff]   ;;  %s5704_s11 = sshll.u32 %s8750_s17, 2  ;;  %s340_s17 = sadd.s32 %s5706_s15, %s5705_s14 }
  0x95   : > { %7137 = vmatpush3.bf16.msra.mxu1 %v7703_v8  ;;  %7114 = vmatprep.subr.bf16.mxu0 %v7706_v31  ;;  %v2224_v8 = vunpack.c.l.bf16 %v2208_v44  ;;  %v8547_v44 = vld [vmem:[%s8360_s6 + $0x30] ss:$8 sps:$4 sm:$0xff]   ;;  %s8778_s10 = scalar_lea.vmem %s9763_s2, %s5704_s11  ;;  %s5707_s18 = sshll.u32 %s340_s17, 2 }
  0x96   : > { %7138 = vmatprep.subr.bf16.mxu1 %v7707_v35  ;;  %v1893_v61 = vrot.slane %v1865_v15, 2  ;;  %v2261_v15 = vrot.slane %v2227_v38, 1  ;;  %s342_s26 = scalar_lea.vmem %s9766_s5, %s5707_s18 }
  0x97   : > { %7083 = vmatmul.mubr.bf16.gmra.mxu0 %v7705_v36  ;;  %v1909_v36 = vpack.c.bf16 %v1892_v27, %v1889_v11  ;;  %v2460_v11 = vrot.slane %v2228_v24, 2  ;;  %v7735_v27 = vld [vmem:[%s9764_s3 + $0x2c8] sm:$0xff]  }
  0x98   : > { %7115 = vmatpush3.bf16.msra.mxu0 %v7706_v31  ;;  %7107 = vmatmul.mubr.bf16.gmra.mxu1 %v1712_v17  ;;  %v1896_v31 = vrot.slane %v1866_v18, 2  ;;  %v2453_v17 = vrot.slane %v2437_v28, 2  ;;  %v2439_v18 = vunpack.c.l.bf16 %v2431_v7  ;;  %v8591_v7 = vld [vmem:[%s8360_s6 + $0x14] sm:$0x1] }
  0x99   : > { %7139 = vmatpush3.bf16.msra.mxu1 %v7707_v35  ;;  %7116 = vmatprep.subr.bf16.mxu0 %v7708_v21  ;;  %v2256_v35 = vrot.slane %v2224_v8, 1 }
  0x9a   : > { %7140 = vmatprep.subr.bf16.mxu1 %v7709_v39  ;;  %7126 = vmatprep.mubr.bf16.mxu0 %v1907_v40  ;;  %v1898_v40 = vsel %vm716_vm1, %v1896_v31, %v1897_v23  ;;  %v2434_v23 = vld [vmem:[%s8360_s6 + $0x28] sm:$0xe]  ;;  %v2459_v28 = vrot.slane %v2439_v18, 2  ;;  %v2441_v31 = vunpack.c.l.bf16 %v2433_v1 }
  0x9b   : > { %7150 = vmatprep.mubr.bf16.mxu1 %v7718_v43  ;;  %v2456_v43 = vrot.slane %v2438_v12, 2  ;;  %v2257_v50 = vsel %vm412_vm0, %v2255_v34, %v2256_v35  ;;  %v2222_v34 = vld [vmem:[%s8360_s6 + $0x3c] sm:$0x1]  ;;  %v2442_v35 = vunpack.c.l.bf16 %v2434_v23 }
  0x9c   : > { %7117 = vmatpush3.bf16.msra.mxu0 %v7708_v21  ;;  %v2454_v21 = vrot.slane %v2224_v8, 2  ;;  %v2233_v8 = vunpack.c.h.bf16 %v2215_v41 }
  0x9d   : > { %7141 = vmatpush3.bf16.msra.mxu1 %v7709_v39  ;;  %7118 = vmatprep.subr.bf16.mxu0 %v7710_v46  ;;  %v1895_v39 = vsel %vm716_vm1, %v1893_v61, %v1894_v25  ;;  %v2463_v61 = vrot.slane %v2230_v6, 2 }
  0x9e   : > { %7142 = vmatprep.subr.bf16.mxu1 %v7711_v47  ;;  %v1910_v49 = vpack.c.bf16 %v1898_v40, %v1895_v39  ;;  %v2455_v54 = vsel %vm716_vm1, %v2453_v17, %v2454_v21  ;;  %v7737_v39 = vld [vmem:[%s9764_s3 + $0x2c0] sm:$0xff]  }
  0xa0   : > { %7119 = vmatpush3.bf16.msra.mxu0 %v7710_v46  ;;  %v2457_v46 = vrot.slane %v2226_v58, 2  ;;  %v2262_v58 = vrot.slane %v2228_v24, 1 }
  0xa1   : > { %7143 = vmatpush3.bf16.msra.mxu1 %v7711_v47  ;;  %7120 = vmatprep.subr.bf16.mxu0 %v7712_v48  ;;  %v7724_v47 = vld [vmem:[%s9764_s3 + $0x2a8] sm:$0xff]  }
  0xa2   : > { %7144 = vmatprep.subr.bf16.mxu1 %v7713_v51  ;;  %v2458_v55 = vsel %vm716_vm1, %v2456_v43, %v2457_v46  ;;  %v2263_v40 = vsel %vm412_vm0, %v2261_v15, %v2262_v58  ;;  %v2435_v46 = vld [vmem:[%s8360_s6 + $0x30] sm:$0xe]  ;;  %v2805_v15 = vunpack.c.l.bf16 %v8591_v7 }
  0xa3   : > { %v2485_v56 = vpack.c.bf16 %v2458_v55, %v2455_v54  ;;  %v2238_v54 = vunpack.c.l.bf16 %v2222_v34  ;;  %v2468_v55 = vrot.slane %v2442_v35, 2  ;;  %v2443_v60 = vunpack.c.l.bf16 %v2435_v46  ;;  %v7746_v35 = vld [vmem:[%s9764_s3 + $0x318] sm:$0xff]  }
  0xa4   : > { %7121 = vmatpush3.bf16.msra.mxu0 %v7712_v48  ;;  %v7725_v48 = vld [vmem:[%s9764_s3 + $0x2e8] sm:$0xff]   ;;  %v2838_v58 = vrot.slane %v2805_v15, 1 }
  0xa5   : > { %7145 = vmatpush3.bf16.msra.mxu1 %v7713_v51  ;;  %7122 = vmatprep.subr.bf16.mxu0 %v7714_v62  ;;  %v2260_v51 = vsel %vm412_vm0, %v2258_v37, %v2259_v20  ;;  %v2270_v37 = vrot.slane %v2233_v8, 1  ;;  %v2271_v20 = vrot.slane %v2234_v29, 1  ;;  %v2475_v24 = vrot.slane %v2238_v54, 2 }
  0xa6   : > { %7146 = vmatprep.subr.bf16.mxu1 %v7715_v63  ;;  %v2471_v18 = vrot.slane %v2443_v60, 2  ;;  %v7752_v60 = vld [vmem:[%s9764_s3 + $0x300] sm:$0xff]  }
  0xa7   : > { %v2272_v38 = vsel %vm412_vm0, %v2270_v37, %v2271_v20  ;;  %v7748_v37 = vld [vmem:[%s9764_s3 + $0x310] sm:$0xff]   ;;  %v6100_v20 = vld [vmem:[%s8360_s6 + $0x18] ss:$8 sps:$4 sm:$0xff]  }
  0xa8   : > { %7123 = vmatpush3.bf16.msra.mxu0 %v7714_v62  ;;  %v7729_v62 = vld [vmem:[%s9764_s3 + $0x2e0] sm:$0xff]   ;;  %v2806_v46 = vunpack.c.l.bf16 %v6100_v20 }
  0xa9   : > { %7147 = vmatpush3.bf16.msra.mxu1 %v7715_v63  ;;  %7124 = vmatprep.subr.bf16.mxu0 %v7716_v52  ;;  %v2287_v63 = vpack.c.bf16 %v2260_v51, %v2257_v50  ;;  %v2465_v50 = vrot.slane %v2441_v31, 2  ;;  %v7744_v31 = vld [vmem:[%s9764_s3 + $0x320] sm:$0xff]  }
  0xaa   : > { %7148 = vmatprep.subr.bf16.mxu1 %v7717_v16 }
  0xac   : > { %7125 = vmatpush3.bf16.msra.mxu0 %v7716_v52  ;;  %v7730_v52 = vld [vmem:[%s9764_s3 + $0x298] sm:$0xff]  }
  0xad   : > { %7149 = vmatpush3.bf16.msra.mxu1 %v7717_v16  ;;  %7158 = vmatprep.subr.bf16.mxu0 %v7720_v45  ;;  %v2216_v16 = vld [vmem:[%s8360_s6 + $0x24] sm:$0x1] }
  0xae   : > { %7182 = vmatprep.subr.bf16.mxu1 %v7721_v22  ;;  %v2232_v25 = vunpack.c.l.bf16 %v2216_v16  ;;  %v2277_v16 = vrot.slane %v2238_v54, 1 }
  0xaf   : > { %7127 = vmatmul.mubr.bf16.vlgmr.msra.gmra.mxu0 %v1908_v5  ;;  %v2264_v5 = vrot.slane %v2229_v0, 1  ;;  %v7740_v0 = vld [vmem:[%s9764_s3 + $0x330] sm:$0xff]  }
  0xb0   : > { %7151 = vmatmul.mubr.bf16.vlgmr.msra.gmra.mxu1 %v7719_v4  ;;  %7159 = vmatpush3.bf16.msra.mxu0 %v7720_v45  ;;  %v2231_v45 = vunpack.c.l.bf16 %v2215_v41  ;;  %v2235_v4 = vunpack.c.l.bf16 %v8547_v44  ;;  %v2466_v51 = vrot.slane %v2232_v25, 2 }
  0xb1   : > { %7183 = vmatpush3.bf16.msra.mxu1 %v7721_v22  ;;  %7160 = vmatprep.subr.bf16.mxu0 %v7722_v59  ;;  %v2236_v22 = vunpack.c.l.bf16 %v8550_v13 }
  0xb2   : > { %7184 = vmatprep.subr.bf16.mxu1 %v7723_v30  ;;  %7130 = vmatprep.mubr.bf16.mxu0 %v1909_v36  ;;  %v2267_v12 = vrot.slane %v2231_v45, 1  ;;  %v7736_v36 = vld [vmem:[%s9764_s3 + $0x280] sm:$0xff]   ;;  %v2273_v17 = vrot.slane %v2235_v4, 1  ;;  %v2467_v42 = vsel %vm716_vm1, %v2465_v50, %v2466_v51  ;;  %v7741_v45 = vld [vmem:[%s9764_s3 + $0x370] sm:$0xff]   ;;  %v7750_v51 = vld [vmem:[%s9764_s3 + $0x308] sm:$0xff]  }
  0xb3   : > { %7154 = vmatprep.mubr.bf16.mxu1 %v7726_v32  ;;  %v2268_v32 = vrot.slane %v2232_v25, 1  ;;  %v2274_v21 = vrot.slane %v2236_v22, 1  ;;  %v8654_v50 = vld [vmem:[%s8360_s6 + $0x34] sm:$0x1] }
  0xb4   : > { %7161 = vmatpush3.bf16.msra.mxu0 %v7722_v59  ;;  %v2265_v59 = vrot.slane %v2230_v6, 1 }
  0xb5   : > { %7185 = vmatpush3.bf16.msra.mxu1 %v7723_v30  ;;  %7162 = vmatprep.subr.bf16.mxu0 %v7724_v47  ;;  %v2462_v30 = vrot.slane %v2440_v19, 2  ;;  %v2269_v9 = vsel %vm412_vm0, %v2267_v12, %v2268_v32  ;;  %v2275_v1 = vsel %vm412_vm0, %v2273_v17, %v2274_v21  ;;  %v7745_v12 = vld [vmem:[%s9764_s3 + $0x360] sm:$0xff]   ;;  %v7754_v32 = vld [vmem:[%s8360_s6 + $0x8] ss:$8 sps:$4 sm:$0xff]   ;;  %v8642_v21 = vld [vmem:[%s8360_s6 + $0x1c] sm:$0x1] }
  0xb6   : > { %7186 = vmatprep.subr.bf16.mxu1 %v7725_v48  ;;  %v2266_v43 = vsel %vm412_vm0, %v2264_v5, %v2265_v59  ;;  %v2289_v25 = vpack.c.bf16 %v2272_v38, %v2269_v9  ;;  %v7743_v5 = vld [vmem:[%s9764_s3 + $0x368] sm:$0xff]   ;;  %v7749_v17 = vld [vmem:[%s9764_s3 + $0x350] sm:$0xff]   ;;  %v6108_v9 = vld [vmem:[%s8360_s6 + $0x38] ss:$8 sps:$4 sm:$0xff]  }
  0xb7   : > { %7131 = vmatmul.mubr.bf16.gmra.mxu0 %v1910_v49  ;;  %v2464_v49 = vsel %vm716_vm1, %v2462_v30, %v2463_v61  ;;  %v8676_v38 = vld [vmem:[%s8360_s6 + $0x3c] sm:$0x1] }
  0xb8   : > { %7163 = vmatpush3.bf16.msra.mxu0 %v7724_v47  ;;  %7155 = vmatmul.mubr.bf16.gmra.mxu1 %v7727_v53  ;;  %v2436_v47 = vld [vmem:[%s8360_s6 + $0x38] sm:$0xe]  ;;  %v2237_v53 = vunpack.c.h.bf16 %v8547_v44  ;;  %v2472_v44 = vrot.slane %v2236_v22, 2 }
  0xb9   : > { %7187 = vmatpush3.bf16.msra.mxu1 %v7725_v48  ;;  %7164 = vmatprep.subr.bf16.mxu0 %v7728_v33  ;;  %v2461_v48 = vsel %vm716_vm1, %v2459_v28, %v2460_v11 }
  0xba   : > { %7188 = vmatprep.subr.bf16.mxu1 %v7729_v62  ;;  %7174 = vmatprep.mubr.bf16.mxu0 %v2287_v63  ;;  %v6096_v63 = vld [vmem:[%s8360_s6 + $0x8] ss:$8 sps:$4 sm:$0xff]   ;;  %v2486_v57 = vpack.c.bf16 %v2464_v49, %v2461_v48  ;;  %v2276_v41 = vrot.slane %v2237_v53, 1  ;;  %v2473_v59 = vsel %vm716_vm1, %v2471_v18, %v2472_v44  ;;  %v2808_v48 = vunpack.c.h.bf16 %v6100_v20  ;;  %v7756_v18 = vld [vmem:[%s9764_s3 + $0x3b8] sm:$0xff]  }
  0xbb   : > { %7198 = vmatprep.mubr.bf16.mxu1 %v2485_v56  ;;  %v2288_v56 = vpack.c.bf16 %v2266_v43, %v2263_v40  ;;  %v2802_v6 = vunpack.c.l.bf16 %v6096_v63  ;;  %v6104_v40 = vld [vmem:[%s8360_s6 + $0x28] ss:$8 sps:$4 sm:$0xff]   ;;  %v8649_v43 = vld [vmem:[%s8360_s6 + $0x2c] sm:$0x1] }
  0xbc   : > { %7165 = vmatpush3.bf16.msra.mxu0 %v7728_v33  ;;  %v2469_v33 = vrot.slane %v2234_v29, 2  ;;  %v2278_v8 = vsel %vm412_vm0, %v2276_v41, %v2277_v16  ;;  %v7742_v29 = vld [vmem:[%s9764_s3 + $0x328] sm:$0xff]   ;;  %v2810_v54 = vunpack.c.l.bf16 %v6104_v40  ;;  %v8679_v41 = vld [vmem:[%s8360_s6 + $0x44] sm:$0x1] }
  0xbd   : > { %7189 = vmatpush3.bf16.msra.mxu1 %v7729_v62  ;;  %7166 = vmatprep.subr.bf16.mxu0 %v7730_v52  ;;  %v7738_v62 = vld [vmem:[%s9764_s3 + $0x338] sm:$0xff]   ;;  %v2834_v22 = vrot.slane %v2802_v6, 1  ;;  %v7751_v53 = vld [vmem:[%s9764_s3 + $0x348] sm:$0xff]  }
  0xbe   : > { %7190 = vmatprep.subr.bf16.mxu1 %v7731_v3  ;;  %v2846_v16 = vrot.slane %v2810_v54, 1  ;;  %v6136_v6 = vld [vmem:[%s8360_s6 + $0x8] sm:$0xe] }
  0xc0   : > { %7167 = vmatpush3.bf16.msra.mxu0 %v7730_v52  ;;  %v8588_v52 = vld [vmem:[%s8360_s6 + $0xc] sm:$0x1] }
  0xc1   : > { %7191 = vmatpush3.bf16.msra.mxu1 %v7731_v3  ;;  %7168 = vmatprep.subr.bf16.mxu0 %v7732_v10  ;;  %v2444_v3 = vunpack.c.l.bf16 %v2436_v47  ;;  %v2803_v13 = vunpack.c.l.bf16 %v8588_v52  ;;  %v2807_v47 = vunpack.c.l.bf16 %v8642_v21  ;;  %v7762_v52 = vld [vmem:[%s9764_s3 + $0x3a8] sm:$0xff]   ;;  %v6142_v21 = vld [vmem:[%s8360_s6 + $0x38] sm:$0xe] }
  0xc2   : > { %7192 = vmatprep.subr.bf16.mxu1 %v7733_v14 }
  0xc3   : > { %v2474_v19 = vrot.slane %v2444_v3, 2  ;;  %v2835_v23 = vrot.slane %v2803_v13, 1  ;;  %v7753_v3 = vld [vmem:[%s9764_s3 + $0x340] sm:$0xff]  }
  0xc4   : > { %7169 = vmatpush3.bf16.msra.mxu0 %v7732_v10  ;;  %v2470_v10 = vsel %vm716_vm1, %v2468_v55, %v2469_v33  ;;  %v2811_v55 = vunpack.c.l.bf16 %v8649_v43  ;;  %v2812_v33 = vunpack.c.h.bf16 %v6104_v40  ;;  %v6143_v43 = vld [vmem:[%s8360_s6 + $0x40] sm:$0xe] }
  0xc5   : > { %7193 = vmatpush3.bf16.msra.mxu1 %v7733_v14  ;;  %7170 = vmatprep.subr.bf16.mxu0 %v7734_v26  ;;  %v2804_v14 = vunpack.c.h.bf16 %v6096_v63  ;;  %v2487_v4 = vpack.c.bf16 %v2470_v10, %v2467_v42  ;;  %v2476_v11 = vsel %vm716_vm1, %v2474_v19, %v2475_v24  ;;  %v2836_v30 = vsel %vm412_vm0, %v2834_v22, %v2835_v23 }
  0xc6   : > { %7194 = vmatprep.subr.bf16.mxu1 %v7735_v27  ;;  %v2488_v28 = vpack.c.bf16 %v2476_v11, %v2473_v59  ;;  %v2840_v63 = vrot.slane %v2806_v46, 1  ;;  %v2847_v42 = vrot.slane %v2811_v55, 1  ;;  %v2849_v10 = vrot.slane %v2812_v33, 1 }
  0xc7   : > { %v2814_v19 = vunpack.c.l.bf16 %v6108_v9 }
  0xc8   : > { %7171 = vmatpush3.bf16.msra.mxu0 %v7734_v26  ;;  %v2837_v26 = vrot.slane %v2804_v14, 1  ;;  %v6137_v14 = vld [vmem:[%s8360_s6 + $0x10] sm:$0xe] }
  0xc9   : > { %7195 = vmatpush3.bf16.msra.mxu1 %v7735_v27  ;;  %7172 = vmatprep.subr.bf16.mxu0 %v7736_v36  ;;  %v2290_v27 = vpack.c.bf16 %v2278_v8, %v2275_v1  ;;  %v2817_v1 = vunpack.c.l.bf16 %v8679_v41  ;;  %v7757_v8 = vld [vmem:[%s9764_s3 + $0x3f8] sm:$0xff]   ;;  %v3017_v22 = vunpack.c.l.bf16 %v6137_v14  ;;  %v2852_v59 = vrot.slane %v2814_v19, 1 }
  0xca   : > { %7196 = vmatprep.subr.bf16.mxu1 %v7737_v39  ;;  %v2839_v61 = vsel %vm412_vm0, %v2837_v26, %v2838_v58  ;;  %v2848_v26 = vsel %vm412_vm0, %v2846_v16, %v2847_v42  ;;  %v7774_v16 = vld [vmem:[%s8360_s6 + $0x10] ss:$8 sps:$4 sm:$0xff]  }
  0xcb   : > { %v2866_v34 = vpack.c.bf16 %v2839_v61, %v2836_v30  ;;  %v7759_v30 = vld [vmem:[%s9764_s3 + $0x3f0] sm:$0xff]  }
  0xcc   : > { %7173 = vmatpush3.bf16.msra.mxu0 %v7736_v36  ;;  %v7747_v36 = vld [vmem:[%s9764_s3 + $0x358] sm:$0xff]   ;;  %v7760_v61 = vld [vmem:[%s8360_s6 + $0x28] ss:$8 sps:$4 sm:$0xff]  }
  0xcd   : > { %7197 = vmatpush3.bf16.msra.mxu1 %v7737_v39  ;;  %7206 = vmatprep.subr.bf16.mxu0 %v7738_v62  ;;  %v8645_v39 = vld [vmem:[%s8360_s6 + $0x24] sm:$0x1] }
  0xce   : > { %7230 = vmatprep.subr.bf16.mxu1 %v7739_v2  ;;  %v2809_v49 = vunpack.c.l.bf16 %v8645_v39  ;;  %v7772_v39 = vld [vmem:[%s9764_s3 + $0x380] sm:$0xff]  }
  0xcf   : > { %7175 = vmatmul.mubr.bf16.vlgmr.msra.gmra.mxu0 %v2288_v56  ;;  %v2843_v56 = vrot.slane %v2808_v48, 1 }
  0xd0   : > { %7199 = vmatmul.mubr.bf16.vlgmr.msra.gmra.mxu1 %v2486_v57  ;;  %7207 = vmatpush3.bf16.msra.mxu0 %v7738_v62  ;;  %v2813_v62 = vunpack.c.l.bf16 %v8654_v50  ;;  %v2844_v57 = vrot.slane %v2809_v49, 1  ;;  %v6204_v50 = vld [vmem:[%s8360_s6 + $0x10] ss:$8 sps:$4 sm:$0xff]  }
  0xd1   : > { %7231 = vmatpush3.bf16.msra.mxu1 %v7739_v2  ;;  %7208 = vmatprep.subr.bf16.mxu0 %v7740_v0  ;;  %v2841_v2 = vrot.slane %v2807_v47, 1 }
  0xd2   : > { %7232 = vmatprep.subr.bf16.mxu1 %v7741_v45  ;;  %7178 = vmatprep.mubr.bf16.mxu0 %v2289_v25  ;;  %v2850_v44 = vrot.slane %v2813_v62, 1  ;;  %v2816_v25 = vunpack.c.h.bf16 %v6108_v9 }
  0xd3   : > { %7202 = vmatprep.mubr.bf16.mxu1 %v2487_v4  ;;  %v2842_v24 = vsel %vm412_vm0, %v2840_v63, %v2841_v2  ;;  %v3016_v4 = vunpack.c.l.bf16 %v6136_v6 }
  0xd4   : > { %7209 = vmatpush3.bf16.msra.mxu0 %v7740_v0  ;;  %v2845_v0 = vsel %vm412_vm0, %v2843_v56, %v2844_v57  ;;  %v2851_v58 = vsel %vm412_vm0, %v2849_v10, %v2850_v44  ;;  %v7764_v57 = vld [vmem:[%s9764_s3 + $0x3a0] sm:$0xff]   ;;  %v7766_v44 = vld [vmem:[%s9764_s3 + $0x398] sm:$0xff]  }
  0xd5   : > { %7233 = vmatpush3.bf16.msra.mxu1 %v7741_v45  ;;  %7210 = vmatprep.subr.bf16.mxu0 %v7742_v29  ;;  %v2815_v45 = vunpack.c.l.bf16 %v8676_v38  ;;  %v2867_v23 = vpack.c.bf16 %v2845_v0, %v2842_v24  ;;  %v7767_v0 = vld [vmem:[%s9764_s3 + $0x3d8] sm:$0xff]   ;;  %v7779_v38 = vld [vmem:[%s9764_s3 + $0x470] sm:$0xff]  }
  0xd6   : > { %7234 = vmatprep.subr.bf16.mxu1 %v7743_v5 }
  0xd7   : > { %7179 = vmatmul.mubr.bf16.gmra.mxu0 %v2290_v27  ;;  %v2853_v11 = vrot.slane %v2815_v45, 1  ;;  %v2855_v27 = vrot.slane %v2816_v25, 1  ;;  %v7768_v25 = vld [vmem:[%s9764_s3 + $0x390] sm:$0xff]  }
  0xd8   : > { %7211 = vmatpush3.bf16.msra.mxu0 %v7742_v29  ;;  %7203 = vmatmul.mubr.bf16.gmra.mxu1 %v2488_v28  ;;  %v7755_v29 = vld [vmem:[%s8360_s6 + $0x18] ss:$8 sps:$4 sm:$0xff]   ;;  %v2856_v28 = vrot.slane %v2817_v1, 1 }
  0xd9   : > { %7235 = vmatpush3.bf16.msra.mxu1 %v7743_v5  ;;  %7212 = vmatprep.subr.bf16.mxu0 %v7744_v31  ;;  %v7758_v5 = vld [vmem:[%s9764_s3 + $0x3b0] sm:$0xff]  }
  0xda   : > { %7236 = vmatprep.subr.bf16.mxu1 %v7745_v12  ;;  %7222 = vmatprep.mubr.bf16.mxu0 %v7754_v32  ;;  %v2868_v32 = vpack.c.bf16 %v2851_v58, %v2848_v26  ;;  %v2857_v40 = vsel %vm412_vm0, %v2855_v27, %v2856_v28 }
  0xdb   : > { %7246 = vmatprep.mubr.bf16.mxu1 %v2866_v34  ;;  %v3032_v34 = vrot.slane %v3016_v4, 2  ;;  %v6139_v4 = vld [vmem:[%s8360_s6 + $0x20] sm:$0xe] }
  0xdc   : > { %7213 = vmatpush3.bf16.msra.mxu0 %v7744_v31  ;;  %v3033_v31 = vrot.slane %v2803_v13, 2  ;;  %v2854_v13 = vsel %vm412_vm0, %v2852_v59, %v2853_v11  ;;  %v7769_v59 = vld [vmem:[%s9764_s3 + $0x3d0] sm:$0xff]   ;;  %v3019_v28 = vunpack.c.l.bf16 %v6139_v4 }
  0xdd   : > { %7237 = vmatpush3.bf16.msra.mxu1 %v7745_v12  ;;  %7214 = vmatprep.subr.bf16.mxu0 %v7746_v35  ;;  %v2869_v63 = vpack.c.bf16 %v2857_v40, %v2854_v13 }
  0xde   : > { %7238 = vmatprep.subr.bf16.mxu1 %v7747_v36 }
  0xe0   : > { %7215 = vmatpush3.bf16.msra.mxu0 %v7746_v35  ;;  %v3035_v35 = vrot.slane %v3017_v22, 2 }
  0xe1   : > { %7239 = vmatpush3.bf16.msra.mxu1 %v7747_v36  ;;  %7216 = vmatprep.subr.bf16.mxu0 %v7748_v37  ;;  %v3036_v36 = vrot.slane %v2805_v15, 2  ;;  %v7763_v15 = vld [vmem:[%s9764_s3 + $0x3e8] sm:$0xff]  }
  0xe2   : > { %7240 = vmatprep.subr.bf16.mxu1 %v7749_v17 }
  0xe3   : > { %v3037_v54 = vsel %vm716_vm1, %v3035_v35, %v3036_v36  ;;  %v3045_v35 = vrot.slane %v2811_v55, 2  ;;  %v7771_v36 = vld [vmem:[%s9764_s3 + $0x3c8] sm:$0xff]  }
  0xe4   : > { %7217 = vmatpush3.bf16.msra.mxu0 %v7748_v37 }
  0xe5   : > { %7241 = vmatpush3.bf16.msra.mxu1 %v7749_v17  ;;  %7218 = vmatprep.subr.bf16.mxu0 %v7750_v51 }
  0xe6   : > { %7242 = vmatprep.subr.bf16.mxu1 %v7751_v53 }
  0xe8   : > { %7219 = vmatpush3.bf16.msra.mxu0 %v7750_v51  ;;  %v7761_v51 = vld [vmem:[%s8360_s6 + $0x38] ss:$8 sps:$4 sm:$0xff]  }
  0xe9   : > { %7243 = vmatpush3.bf16.msra.mxu1 %v7751_v53  ;;  %7220 = vmatprep.subr.bf16.mxu0 %v7752_v60  ;;  %v3034_v53 = vsel %vm716_vm1, %v3032_v34, %v3033_v31  ;;  %v3042_v34 = vrot.slane %v2809_v49, 2 }
  0xea   : > { %7244 = vmatprep.subr.bf16.mxu1 %v7753_v3  ;;  %v3064_v9 = vpack.c.bf16 %v3037_v54, %v3034_v53  ;;  %v6244_v53 = vld [vmem:[%s8360_s6 + $0x10] sm:$0xe]  ;;  %v3381_v54 = vunpack.c.l.bf16 %v6204_v50 }
  0xec   : > { %7221 = vmatpush3.bf16.msra.mxu0 %v7752_v60  ;;  %v3413_v4 = vrot.slane %v3381_v54, 1 }
  0xed   : > { %7245 = vmatpush3.bf16.msra.mxu1 %v7753_v3  ;;  %7254 = vmatprep.subr.bf16.mxu0 %v7756_v18  ;;  %v7765_v3 = vld [vmem:[%s9764_s3 + $0x3e0] sm:$0xff]  }
  0xee   : > { %7278 = vmatprep.subr.bf16.mxu1 %v7757_v8 }
  0xef   : > { %v6936_v12 = vpop.f32.mrf.mxu0  ;;  %7223 = vmatmul.mubr.bf16.vlgmr.msra.gmra.mxu0 %v7755_v29 }
  0xf0   : > { %v6960_v37 = vpop.f32.mrf.mxu1  ;;  %7247 = vmatmul.mubr.bf16.vlgmr.msra.gmra.mxu1 %v2867_v23  ;;  %7255 = vmatpush3.bf16.msra.mxu0 %v7756_v18  ;;  %v6138_v18 = vld [vmem:[%s8360_s6 + $0x18] sm:$0xe]  ;;  %v6140_v23 = vld [vmem:[%s8360_s6 + $0x28] sm:$0xe] }
  0xf1   : > { %v8728_v20 = vadd.f32 %v6960_v37, %v6936_v12  ;;  %7279 = vmatpush3.bf16.msra.mxu1 %v7757_v8  ;;  %v548_v17 = vpop.f32.mrf.mxu0  ;;  %7256 = vmatprep.subr.bf16.mxu0 %v7758_v5  ;;  %v3018_v27 = vunpack.c.l.bf16 %v6138_v18  ;;  %v7770_v12 = vld [vmem:[%s9764_s3 + $0x388] sm:$0xff]   ;;  %v3054_v18 = vrot.slane %v2817_v1, 2 }
  0xf2   : > { %v661_v7 = vpop.f32.mrf.mxu1  ;;  %7280 = vmatprep.subr.bf16.mxu1 %v7759_v30  ;;  %7226 = vmatprep.mubr.bf16.mxu0 %v7760_v61  ;;  %v3020_v61 = vunpack.c.l.bf16 %v6140_v23  ;;  %v7780_v1 = vld [vmem:[%s9764_s3 + $0x428] sm:$0xff]  }
  0xf3   : > { %v8739_v46 = vadd.f32 %v661_v7, %v548_v17  ;;  %v6937_v48 = vpop.f32.mrf.mxu0  ;;  %7250 = vmatprep.mubr.bf16.mxu1 %v2868_v32  ;;  %v3039_v32 = vrot.slane %v2807_v47, 2  ;;  %v3038_v37 = vrot.slane %v3018_v27, 2  ;;  %v3041_v17 = vrot.slane %v3019_v28, 2  ;;  %v7773_v47 = vld [vmem:[%s9764_s3 + $0x3c0] sm:$0xff]   ;;  %v7776_v7 = vld [vmem:[%s9764_s3 + $0x438] sm:$0xff]  }
  0xf4   : > { %v6961_v33 = vpop.f32.mrf.mxu1  ;;  %7257 = vmatpush3.bf16.msra.mxu0 %v7758_v5  ;;  %v6141_v5 = vld [vmem:[%s8360_s6 + $0x30] sm:$0xe]  ;;  %v3044_v49 = vrot.slane %v3020_v61, 2  ;;  %v8848_v61 = vld [vmem:[%s8360_s6 + $0x2c] sm:$0x1] }
  0xf5   : > { %v8744_v2 = vadd.f32 %v6961_v33, %v6937_v48  ;;  %7281 = vmatpush3.bf16.msra.mxu1 %v7759_v30  ;;  %v551_v56 = vpop.f32.mrf.mxu0  ;;  %7258 = vmatprep.subr.bf16.mxu0 %v7762_v52  ;;  %v3021_v31 = vunpack.c.l.bf16 %v6141_v5  ;;  %v3040_v13 = vsel %vm716_vm1, %v3038_v37, %v3039_v32  ;;  %v3043_v40 = vsel %vm716_vm1, %v3041_v17, %v3042_v34  ;;  %v6207_v48 = vld [vmem:[%s8360_s6 + $0x1c] sm:$0x1]  ;;  %v7781_v37 = vld [vmem:[%s9764_s3 + $0x468] sm:$0xff]  }
  0xf6   : > { %v664_v60 = vpop.f32.mrf.mxu1  ;;  %7282 = vmatprep.subr.bf16.mxu1 %v7763_v15 }
  0xf7   : > { %v8756_v42 = vadd.f32 %v664_v60, %v551_v56  ;;  %7227 = vmatmul.mubr.bf16.gmra.mxu0 %v7761_v51  ;;  %v6940_v10 = vpop.f32.mrf.mxu0  ;;  %v3047_v55 = vrot.slane %v3021_v31, 2  ;;  %v3023_v51 = vunpack.c.l.bf16 %v6143_v43  ;;  %v3065_v56 = vpack.c.bf16 %v3043_v40, %v3040_v13  ;;  %v7783_v43 = vld [vmem:[%s8360_s6 + $0x40] ss:$8 sps:$4 sm:$0xff]  }
  0xf8   : > { %7259 = vmatpush3.bf16.msra.mxu0 %v7762_v52  ;;  %7251 = vmatmul.mubr.bf16.gmra.mxu1 %v2869_v63  ;;  %v6964_v24 = vpop.f32.mrf.mxu1  ;;  %v3048_v52 = vrot.slane %v2813_v62, 2  ;;  %v6205_v62 = vld [vmem:[%s8360_s6 + $0x14] sm:$0x1]  ;;  %v6245_v63 = vld [vmem:[%s8360_s6 + $0x18] sm:$0xe]  ;;  %v3051_v60 = vrot.slane %v2815_v45, 2  ;;  %v3388_v13 = vunpack.c.l.bf16 %v8848_v61 }
  0xf9   : > { %7283 = vmatpush3.bf16.msra.mxu1 %v7763_v15  ;;  %7260 = vmatprep.subr.bf16.mxu0 %v7764_v57  ;;  %v8765_v6 = vadd.f32 %v6964_v24, %v6940_v10  ;;  %v564_v14 = vpop.f32.mrf.mxu0  ;;  %v3022_v15 = vunpack.c.l.bf16 %v6142_v21  ;;  %v3382_v33 = vunpack.c.l.bf16 %v6205_v62  ;;  %v3046_v10 = vsel %vm716_vm1, %v3044_v49, %v3045_v35  ;;  %v6246_v40 = vld [vmem:[%s8360_s6 + $0x20] sm:$0xe] }
  0xfa   : > { %7284 = vmatprep.subr.bf16.mxu1 %v7765_v3  ;;  %v677_v19 = vpop.f32.mrf.mxu1  ;;  %7270 = vmatprep.mubr.bf16.mxu0 %v3064_v9  ;;  %v3384_v9 = vunpack.c.l.bf16 %v6207_v48  ;;  %v3053_v45 = vrot.slane %v3023_v51, 2 }
  0xfb   : > { %v8771_v8 = vadd.f32 %v677_v19, %v564_v14  ;;  %v6941_v29 = vpop.f32.mrf.mxu0  ;;  %7294 = vmatprep.mubr.bf16.mxu1 %v7774_v16  ;;  %v7775_v16 = vld [vmem:[%s8360_s6 + $0x20] ss:$8 sps:$4 sm:$0xff]   ;;  %v3050_v24 = vrot.slane %v3022_v15, 2  ;;  %v7778_v14 = vld [vmem:[%s9764_s3 + $0x430] sm:$0xff]   ;;  %v3596_v19 = vunpack.c.l.bf16 %v6245_v63  ;;  %v3612_v28 = vrot.slane %v3382_v33, 2 }
  0xfc   : > { %7261 = vmatpush3.bf16.msra.mxu0 %v7764_v57  ;;  %v6965_v22 = vpop.f32.mrf.mxu1  ;;  %v7777_v57 = vld [vmem:[%s9764_s3 + $0x478] sm:$0xff]   ;;  %v3417_v5 = vrot.slane %v3384_v9, 1  ;;  %v3055_v32 = vsel %vm716_vm1, %v3053_v45, %v3054_v18  ;;  %v3615_v35 = vrot.slane %v3384_v9, 2 }
  0xfd   : > { %7285 = vmatpush3.bf16.msra.mxu1 %v7765_v3  ;;  %7262 = vmatprep.subr.bf16.mxu0 %v7766_v44  ;;  %v8780_v26 = vadd.f32 %v6965_v22, %v6941_v29  ;;  %v567_v58 = vpop.f32.mrf.mxu0  ;;  %v3383_v3 = vunpack.c.h.bf16 %v6204_v50  ;;  %v7782_v29 = vld [vmem:[%s8360_s6 + $0x30] ss:$8 sps:$4 sm:$0xff]   ;;  %v3414_v22 = vrot.slane %v3382_v33, 1  ;;  %v3052_v41 = vsel %vm716_vm1, %v3050_v24, %v3051_v60  ;;  %v7784_v33 = vld [vmem:[%s9764_s3 + $0x420] sm:$0xff]  }
  0xfe   : > { %7286 = vmatprep.subr.bf16.mxu1 %v7767_v0  ;;  %v680_v11 = vpop.f32.mrf.mxu1  ;;  %v3614_v34 = vrot.slane %v3596_v19, 2  ;;  %v3067_v50 = vpack.c.bf16 %v3055_v32, %v3052_v41  ;;  %v7786_v45 = vld [vmem:[%s9764_s3 + $0x418] sm:$0xff]  }
  0xff   : > { %v8786_v30 = vadd.f32 %v680_v11, %v567_v58  ;;  %v3416_v58 = vrot.slane %v3383_v3, 1  ;;  %v3415_v17 = vsel %vm412_vm0, %v3413_v4, %v3414_v22  ;;  %v7785_v3 = vld [vmem:[%s9764_s3 + $0x460] sm:$0xff]   ;;  %v7787_v18 = vld [vmem:[%s9764_s3 + $0x458] sm:$0xff]   ;;  %v8902_v4 = vld [vmem:[%s8360_s6 + $0x34] sm:$0x1] }
 0x100   : > { %7263 = vmatpush3.bf16.msra.mxu0 %v7766_v44  ;;  %v3049_v44 = vsel %vm716_vm1, %v3047_v55, %v3048_v52  ;;  %v3616_v51 = vsel %vm716_vm1, %v3614_v34, %v3615_v35 }
 0x101   : > { %7287 = vmatpush3.bf16.msra.mxu1 %v7767_v0  ;;  %7264 = vmatprep.subr.bf16.mxu0 %v7768_v25  ;;  %v3595_v0 = vunpack.c.l.bf16 %v6244_v53  ;;  %v3066_v23 = vpack.c.bf16 %v3049_v44, %v3046_v10  ;;  %v6247_v53 = vld [vmem:[%s8360_s6 + $0x28] sm:$0xe] }
 0x102   : > { %7288 = vmatprep.subr.bf16.mxu1 %v7769_v59  ;;  %v3598_v19 = vunpack.c.l.bf16 %v6247_v53 }
 0x103   : > { %v3611_v27 = vrot.slane %v3595_v0, 2  ;;  %v8887_v0 = vrot.slane %v3388_v13, 1 }
 0x104   : > { %7265 = vmatpush3.bf16.msra.mxu0 %v7768_v25  ;;  %v8837_v25 = vld [vmem:[%s8360_s6 + $0x20] ss:$8 sps:$4 sm:$0xff]   ;;  %v3620_v32 = vrot.slane %v3598_v19, 2 }
 0x105   : > { %7289 = vmatpush3.bf16.msra.mxu1 %v7769_v59  ;;  %7266 = vmatprep.subr.bf16.mxu0 %v7770_v12  ;;  %v8841_v59 = vld [vmem:[%s8360_s6 + $0x24] sm:$0x1]  ;;  %v3387_v62 = vunpack.c.h.bf16 %v8837_v25  ;;  %v3613_v48 = vsel %vm716_vm1, %v3611_v27, %v3612_v28  ;;  %v6216_v27 = vld [vmem:[%s8360_s6 + $0x40] ss:$8 sps:$4 sm:$0xff]  }
 0x106   : > { %7290 = vmatprep.subr.bf16.mxu1 %v7771_v36  ;;  %v3386_v49 = vunpack.c.l.bf16 %v8841_v59  ;;  %v3643_v44 = vpack.c.bf16 %v3616_v51, %v3613_v48  ;;  %v3621_v59 = vrot.slane %v3388_v13, 2  ;;  %v8913_v28 = vld [vmem:[%s8360_s6 + $0x44] sm:$0x1] }
 0x107   : > { %v8885_v24 = vrot.slane %v3387_v62, 1  ;;  %v7790_v62 = vld [vmem:[%s9764_s3 + $0x408] sm:$0xff]  }
 0x108   : > { %7267 = vmatpush3.bf16.msra.mxu0 %v7770_v12  ;;  %v8883_v9 = vrot.slane %v3386_v49, 1 }
 0x109   : > { %7291 = vmatpush3.bf16.msra.mxu1 %v7771_v36  ;;  %7268 = vmatprep.subr.bf16.mxu0 %v7772_v39 }
 0x10a   : > { %7292 = vmatprep.subr.bf16.mxu1 %v7773_v47 }
 0x10c   : > { %7269 = vmatpush3.bf16.msra.mxu0 %v7772_v39 }
 0x10d   : > { %7293 = vmatpush3.bf16.msra.mxu1 %v7773_v47  ;;  %7302 = vmatprep.subr.bf16.mxu0 %v7776_v7  ;;  %v3418_v47 = vsel %vm412_vm0, %v3416_v58, %v3417_v5 }
 0x10e   : > { %7326 = vmatprep.subr.bf16.mxu1 %v7777_v57  ;;  %v3445_v63 = vpack.c.bf16 %v3418_v47, %v3415_v17  ;;  %v3394_v47 = vunpack.c.l.bf16 %v8913_v28 }
 0x10f   : > { %v6984_v11 = vpop.f32.mrf.mxu0  ;;  %7271 = vmatmul.mubr.bf16.vlgmr.msra.gmra.mxu0 %v3065_v56 }
 0x110   : > { %v885_v31 = vadd.f32 %v6984_v11, %v8728_v20  ;;  %v7008_v12 = vpop.f32.mrf.mxu1  ;;  %7295 = vmatmul.mubr.bf16.vlgmr.msra.gmra.mxu1 %v7775_v16  ;;  %7303 = vmatpush3.bf16.msra.mxu0 %v7776_v7  ;;  %v3385_v20 = vunpack.c.l.bf16 %v8837_v25  ;;  %v3597_v16 = vunpack.c.l.bf16 %v6246_v40  ;;  %v8898_v25 = vrot.slane %v3386_v49, 2  ;;  %v6215_v11 = vld [vmem:[%s8360_s6 + $0x3c] sm:$0x1]  ;;  %v6248_v49 = vld [vmem:[%s8360_s6 + $0x30] sm:$0xe] }
 0x111   : > { %7327 = vmatpush3.bf16.msra.mxu1 %v7777_v57  ;;  %v852_v36 = vpop.f32.mrf.mxu0  ;;  %7304 = vmatprep.subr.bf16.mxu0 %v7778_v14  ;;  %v3392_v17 = vunpack.c.l.bf16 %v6215_v11  ;;  %v3599_v53 = vunpack.c.l.bf16 %v6248_v49 }
 0x112   : > { %v8857_v52 = vadd.f32 %v7008_v12, %v885_v31  ;;  %v883_v21 = vadd.f32 %v852_v36, %v8739_v46  ;;  %v1011_v39 = vpop.f32.mrf.mxu1  ;;  %7328 = vmatprep.subr.bf16.mxu1 %v7779_v38  ;;  %7274 = vmatprep.mubr.bf16.mxu0 %v3066_v23  ;;  %v8875_v56 = vrot.slane %v3385_v20, 1  ;;  %v3617_v5 = vrot.slane %v3597_v16, 2  ;;  %v7789_v12 = vld [vmem:[%s9764_s3 + $0x450] sm:$0xff]   ;;  %v7793_v16 = vld [vmem:[%s9764_s3 + $0x440] sm:$0xff]  }
 0x113   : > { %v6985_v55 = vpop.f32.mrf.mxu0  ;;  %7298 = vmatprep.mubr.bf16.mxu1 %v7782_v29  ;;  %v6212_v29 = vld [vmem:[%s8360_s6 + $0x30] ss:$8 sps:$4 sm:$0xff]   ;;  %v3390_v36 = vunpack.c.l.bf16 %v8902_v4  ;;  %v3429_v51 = vrot.slane %v3392_v17, 1  ;;  %v3627_v4 = vrot.slane %v3392_v17, 2 }
 0x114   : > { %v8866_v7 = vadd.f32 %v1011_v39, %v883_v21  ;;  %v886_v46 = vadd.f32 %v6985_v55, %v8744_v2  ;;  %v7009_v15 = vpop.f32.mrf.mxu1  ;;  %7305 = vmatpush3.bf16.msra.mxu0 %v7778_v14  ;;  %v3389_v34 = vunpack.c.l.bf16 %v6212_v29  ;;  %v6249_v55 = vld [vmem:[%s8360_s6 + $0x38] sm:$0xe]  ;;  %v3619_v19 = vsel %vm716_vm1, %v3617_v5, %v8898_v25  ;;  %v7797_v17 = vld [vmem:[%s9764_s3 + $0x4f0] sm:$0xff]  }
 0x115   : > { %7329 = vmatpush3.bf16.msra.mxu1 %v7779_v38  ;;  %v855_v54 = vpop.f32.mrf.mxu0  ;;  %7306 = vmatprep.subr.bf16.mxu0 %v7780_v1 }
 0x116   : > { %v8877_v57 = vadd.f32 %v7009_v15, %v886_v46  ;;  %v884_v2 = vadd.f32 %v855_v54, %v8756_v42  ;;  %v1014_v60 = vpop.f32.mrf.mxu1  ;;  %7330 = vmatprep.subr.bf16.mxu1 %v7781_v37  ;;  %v3425_v13 = vrot.slane %v3389_v34, 1  ;;  %v7791_v46 = vld [vmem:[%s9764_s3 + $0x448] sm:$0xff]   ;;  %v3426_v15 = vrot.slane %v3390_v36, 1 }
 0x117   : > { %v6988_v10 = vpop.f32.mrf.mxu0  ;;  %7275 = vmatmul.mubr.bf16.gmra.mxu0 %v3067_v50 }
 0x118   : > { %v8889_v14 = vadd.f32 %v1014_v60, %v884_v2  ;;  %v889_v42 = vadd.f32 %v6988_v10, %v8765_v6  ;;  %7307 = vmatpush3.bf16.msra.mxu0 %v7780_v1  ;;  %v7012_v38 = vpop.f32.mrf.mxu1  ;;  %7299 = vmatmul.mubr.bf16.gmra.mxu1 %v7783_v43  ;;  %v7788_v1 = vld [vmem:[%s9764_s3 + $0x410] sm:$0xff]   ;;  %v3393_v43 = vunpack.c.l.bf16 %v6216_v27  ;;  %v7792_v2 = vld [vmem:[%s9764_s3 + $0x400] sm:$0xff]   ;;  %v3427_v11 = vsel %vm412_vm0, %v3425_v13, %v3426_v15 }
 0x119   : > { %7331 = vmatpush3.bf16.msra.mxu1 %v7781_v37  ;;  %v868_v6 = vpop.f32.mrf.mxu0  ;;  %7308 = vmatprep.subr.bf16.mxu0 %v7784_v33  ;;  %v3391_v37 = vunpack.c.h.bf16 %v6212_v29  ;;  %v6250_v60 = vld [vmem:[%s8360_s6 + $0x40] sm:$0xe]  ;;  %v3622_v29 = vsel %vm716_vm1, %v3620_v32, %v3621_v59  ;;  %v8965_v59 = vld [vmem:[%s8778_s10 + $0xc] sm:$0x1] }
 0x11a   : > { %v887_v22 = vadd.f32 %v868_v6, %v8771_v8  ;;  %v8905_v23 = vadd.f32 %v7012_v38, %v889_v42  ;;  %v1027_v58 = vpop.f32.mrf.mxu1  ;;  %7332 = vmatprep.subr.bf16.mxu1 %v7785_v3  ;;  %7318 = vmatprep.mubr.bf16.mxu0 %v3445_v63  ;;  %v3431_v54 = vrot.slane %v3393_v43, 1  ;;  %v3600_v63 = vunpack.c.l.bf16 %v6249_v55 }
 0x11b   : > { %v6989_v41 = vpop.f32.mrf.mxu0  ;;  %7342 = vmatprep.mubr.bf16.mxu1 %v3643_v44  ;;  %v3428_v48 = vrot.slane %v3391_v37, 1  ;;  %v3421_v42 = vsel %vm412_vm0, %v8875_v56, %v8883_v9  ;;  %v3424_v38 = vsel %vm412_vm0, %v8885_v24, %v8887_v0  ;;  %v3601_v56 = vunpack.c.l.bf16 %v6250_v60  ;;  %v7795_v24 = vld [vmem:[%s9764_s3 + $0x4f8] sm:$0xff]   ;;  %v8962_v0 = vld [vmem:[%s8778_s10 + $0x4] sm:$0x1]  ;;  %v7796_v37 = vld [vmem:[%s9764_s3 + $0x4b0] sm:$0xff]  }
 0x11c   : > { %v890_v8 = vadd.f32 %v6989_v41, %v8780_v26  ;;  %v8916_v61 = vadd.f32 %v1027_v58, %v887_v22  ;;  %7309 = vmatpush3.bf16.msra.mxu0 %v7784_v33  ;;  %v7013_v31 = vpop.f32.mrf.mxu1  ;;  %v6219_v26 = vld [vmem:[%s8360_s6 + $0x4c] sm:$0x1]  ;;  %v3432_v33 = vrot.slane %v3394_v47, 1  ;;  %v3626_v6 = vrot.slane %v3600_v63, 2  ;;  %v7794_v22 = vld [vmem:[%s9764_s3 + $0x4b8] sm:$0xff]  }
 0x11d   : > { %7333 = vmatpush3.bf16.msra.mxu1 %v7785_v3  ;;  %v871_v35 = vpop.f32.mrf.mxu0  ;;  %7310 = vmatprep.subr.bf16.mxu0 %v7786_v45  ;;  %v3396_v40 = vunpack.c.l.bf16 %v6219_v26  ;;  %v6251_v3 = vld [vmem:[%s8360_s6 + $0x48] sm:$0xe]  ;;  %v3446_v25 = vpack.c.bf16 %v3424_v38, %v3421_v42  ;;  %v3644_v5 = vpack.c.bf16 %v3622_v29, %v3619_v19  ;;  %v3430_v41 = vsel %vm412_vm0, %v3428_v48, %v3429_v51 }
 0x11e   : > { %v888_v20 = vadd.f32 %v871_v35, %v8786_v30  ;;  %v8924_v21 = vadd.f32 %v7013_v31, %v890_v8  ;;  %v1030_v39 = vpop.f32.mrf.mxu1  ;;  %7334 = vmatprep.subr.bf16.mxu1 %v7787_v18  ;;  %v3395_v30 = vunpack.c.h.bf16 %v6216_v27  ;;  %v3602_v9 = vunpack.c.l.bf16 %v6251_v3  ;;  %v3943_v58 = vld [vmem:[%s8778_s10] ss:$8 sps:$4 sm:$0xff]  }
 0x11f   : > { %v3435_v44 = vrot.slane %v3396_v40, 1  ;;  %v3633_v27 = vrot.slane %v3396_v40, 2  ;;  %v3629_v8 = vrot.slane %v3601_v56, 2  ;;  %v3628_v32 = vsel %vm716_vm1, %v3626_v6, %v3627_v4  ;;  %v7798_v51 = vld [vmem:[%s9764_s3 + $0x4a8] sm:$0xff]  }
 0x120   : > { %v8929_v50 = vadd.f32 %v1030_v39, %v888_v20  ;;  %7311 = vmatpush3.bf16.msra.mxu0 %v7786_v45  ;;  %v3434_v10 = vrot.slane %v3395_v30, 1  ;;  %v3623_v45 = vrot.slane %v3599_v53, 2  ;;  %v3632_v31 = vrot.slane %v3602_v9, 2 }
 0x121   : > { %7335 = vmatpush3.bf16.msra.mxu1 %v7787_v18  ;;  %7312 = vmatprep.subr.bf16.mxu0 %v7788_v1  ;;  %v3624_v18 = vrot.slane %v3390_v36, 2  ;;  %v3960_v34 = vunpack.c.l.bf16 %v8962_v0  ;;  %v3961_v35 = vunpack.c.h.bf16 %v3943_v58  ;;  %v3962_v36 = vunpack.c.l.bf16 %v8965_v59  ;;  %v7818_v0 = vld [vmem:[%s9764_s3 + $0x528] sm:$0xff]  }
 0x122   : > { %7336 = vmatprep.subr.bf16.mxu1 %v7789_v12  ;;  %v3447_v26 = vpack.c.bf16 %v3430_v41, %v3427_v11  ;;  %v3433_v20 = vsel %vm412_vm0, %v3431_v54, %v3432_v33  ;;  %v3436_v39 = vsel %vm412_vm0, %v3434_v10, %v3435_v44  ;;  %v3634_v55 = vsel %vm716_vm1, %v3632_v31, %v3633_v27  ;;  %v7799_v33 = vld [vmem:[%s9764_s3 + $0x4e8] sm:$0xff]   ;;  %v3947_v41 = vld [vmem:[%s8778_s10 + $0x10] ss:$8 sps:$4 sm:$0xff]  }
 0x123   : > { %v3625_v28 = vsel %vm716_vm1, %v3623_v45, %v3624_v18  ;;  %v3992_v40 = vrot.slane %v3960_v34, 1  ;;  %v3995_v15 = vrot.slane %v3962_v36, 1  ;;  %v7801_v45 = vld [vmem:[%s9764_s3 + $0x4e0] sm:$0xff]  }
 0x124   : > { %7313 = vmatpush3.bf16.msra.mxu0 %v7788_v1  ;;  %v3630_v1 = vrot.slane %v3394_v47, 2  ;;  %v3645_v47 = vpack.c.bf16 %v3628_v32, %v3625_v28  ;;  %v7810_v18 = vld [vmem:[%s8778_s10] ss:$8 sps:$4 sm:$0xff]  }
 0x125   : > { %7337 = vmatpush3.bf16.msra.mxu1 %v7789_v12  ;;  %7314 = vmatprep.subr.bf16.mxu0 %v7790_v62  ;;  %v3959_v12 = vunpack.c.l.bf16 %v3943_v58 }
 0x126   : > { %7338 = vmatprep.subr.bf16.mxu1 %v7791_v46  ;;  %v3631_v49 = vsel %vm716_vm1, %v3629_v8, %v3630_v1  ;;  %v9026_v1 = vld [vmem:[%s8778_s10 + $0x14] sm:$0x1]  ;;  %v9032_v8 = vld [vmem:[%s8778_s10 + $0x1c] sm:$0x1] }
 0x127   : > { %v3646_v60 = vpack.c.bf16 %v3634_v55, %v3631_v49  ;;  %v9050_v49 = vld [vmem:[%s8778_s10 + $0x2c] sm:$0x1] }
 0x128   : > { %7315 = vmatpush3.bf16.msra.mxu0 %v7790_v62  ;;  %v3991_v62 = vrot.slane %v3959_v12, 1  ;;  %v7804_v12 = vld [vmem:[%s9764_s3 + $0x490] sm:$0xff]   ;;  %v7806_v55 = vld [vmem:[%s9764_s3 + $0x488] sm:$0xff]  }
 0x129   : > { %7339 = vmatpush3.bf16.msra.mxu1 %v7791_v46  ;;  %7316 = vmatprep.subr.bf16.mxu0 %v7792_v2  ;;  %v3994_v46 = vrot.slane %v3961_v35, 1 }
 0x12a   : > { %7340 = vmatprep.subr.bf16.mxu1 %v7793_v16  ;;  %v3993_v44 = vsel %vm412_vm0, %v3991_v62, %v3992_v40  ;;  %v7807_v62 = vld [vmem:[%s9764_s3 + $0x4c8] sm:$0xff]  }
 0x12b   : > { %v3996_v42 = vsel %vm412_vm0, %v3994_v46, %v3995_v15  ;;  %v3970_v46 = vunpack.c.l.bf16 %v9050_v49  ;;  %v7808_v15 = vld [vmem:[%s9764_s3 + $0x480] sm:$0xff]  }
 0x12c   : > { %7317 = vmatpush3.bf16.msra.mxu0 %v7792_v2  ;;  %v3448_v2 = vpack.c.bf16 %v3436_v39, %v3433_v20  ;;  %v4023_v4 = vpack.c.bf16 %v3996_v42, %v3993_v44  ;;  %v3963_v20 = vunpack.c.l.bf16 %v3947_v41  ;;  %v3964_v39 = vunpack.c.l.bf16 %v9026_v1  ;;  %v4165_v42 = vld [vmem:[%s8778_s10] sm:$0xe] }
 0x12d   : > { %7341 = vmatpush3.bf16.msra.mxu1 %v7793_v16  ;;  %7350 = vmatprep.subr.bf16.mxu0 %v7794_v22  ;;  %v4007_v44 = vrot.slane %v3970_v46, 1  ;;  %v7828_v1 = vld [vmem:[%s9764_s3 + $0x500] sm:$0xff]  }
 0x12e   : > { %7374 = vmatprep.subr.bf16.mxu1 %v7795_v24 }
 0x12f   : > { %v7032_v43 = vpop.f32.mrf.mxu0  ;;  %7319 = vmatmul.mubr.bf16.vlgmr.msra.gmra.mxu0 %v3446_v25 }
 0x130   : > { %v1266_v13 = vadd.f32 %v7032_v43, %v8857_v52  ;;  %v7056_v30 = vpop.f32.mrf.mxu1  ;;  %7343 = vmatmul.mubr.bf16.vlgmr.msra.gmra.mxu1 %v3644_v5  ;;  %7351 = vmatpush3.bf16.msra.mxu0 %v7794_v22  ;;  %v3965_v43 = vunpack.c.h.bf16 %v3947_v41  ;;  %v7814_v41 = vld [vmem:[%s9764_s3 + $0x530] sm:$0xff]  }
 0x131   : > { %7375 = vmatpush3.bf16.msra.mxu1 %v7795_v24  ;;  %v1233_v48 = vpop.f32.mrf.mxu0  ;;  %7352 = vmatprep.subr.bf16.mxu0 %v7796_v37 }
 0x132   : > { %v8991_v53 = vadd.f32 %v7056_v30, %v1266_v13  ;;  %v1264_v52 = vadd.f32 %v1233_v48, %v8866_v7  ;;  %v1431_v54 = vpop.f32.mrf.mxu1  ;;  %7376 = vmatprep.subr.bf16.mxu1 %v7797_v17  ;;  %7322 = vmatprep.mubr.bf16.mxu0 %v3447_v26  ;;  %v7800_v7 = vld [vmem:[%s9764_s3 + $0x4a0] sm:$0xff]   ;;  %v3997_v48 = vrot.slane %v3963_v20, 1 }
 0x133   : > { %v7033_v63 = vpop.f32.mrf.mxu0  ;;  %7346 = vmatprep.mubr.bf16.mxu1 %v3645_v47  ;;  %v9045_v26 = vld [vmem:[%s8778_s10 + $0x24] sm:$0x1]  ;;  %v3966_v47 = vunpack.c.l.bf16 %v9032_v8 }
 0x134   : > { %v8997_v3 = vadd.f32 %v1431_v54, %v1264_v52  ;;  %v1267_v16 = vadd.f32 %v7033_v63, %v8877_v57  ;;  %v7057_v10 = vpop.f32.mrf.mxu1  ;;  %7353 = vmatpush3.bf16.msra.mxu0 %v7796_v37  ;;  %v3968_v30 = vunpack.c.l.bf16 %v9045_v26  ;;  %v4000_v52 = vrot.slane %v3965_v43, 1  ;;  %v3955_v63 = vld [vmem:[%s8778_s10 + $0x30] ss:$8 sps:$4 sm:$0xff]   ;;  %v6391_v26 = vld [vmem:[%s8778_s10 + $0x14] sm:$0x1] }
 0x135   : > { %7377 = vmatpush3.bf16.msra.mxu1 %v7797_v17  ;;  %v1236_v38 = vpop.f32.mrf.mxu0  ;;  %7354 = vmatprep.subr.bf16.mxu0 %v7798_v51  ;;  %v3951_v17 = vld [vmem:[%s8778_s10 + $0x20] ss:$8 sps:$4 sm:$0xff]   ;;  %v4001_v54 = vrot.slane %v3966_v47, 1 }
 0x136   : > { %v9009_v19 = vadd.f32 %v7057_v10, %v1267_v16  ;;  %v1265_v57 = vadd.f32 %v1236_v38, %v8889_v14  ;;  %v1434_v29 = vpop.f32.mrf.mxu1  ;;  %7378 = vmatprep.subr.bf16.mxu1 %v7799_v33  ;;  %v7802_v14 = vld [vmem:[%s9764_s3 + $0x498] sm:$0xff]   ;;  %v3967_v13 = vunpack.c.l.bf16 %v3951_v17  ;;  %v3969_v40 = vunpack.c.h.bf16 %v3951_v17 }
 0x137   : > { %v7036_v6 = vpop.f32.mrf.mxu0  ;;  %7323 = vmatmul.mubr.bf16.gmra.mxu0 %v3448_v2  ;;  %v9074_v2 = vld [vmem:[%s8778_s10 + $0x34] sm:$0x1]  ;;  %v4004_v10 = vrot.slane %v3968_v30, 1  ;;  %v4193_v17 = vrot.slane %v3962_v36, 2  ;;  %v4202_v8 = vrot.slane %v3968_v30, 2 }
 0x138   : > { %v9012_v22 = vadd.f32 %v1434_v29, %v1265_v57  ;;  %v1270_v56 = vadd.f32 %v7036_v6, %v8905_v23  ;;  %7355 = vmatpush3.bf16.msra.mxu0 %v7798_v51  ;;  %v7060_v9 = vpop.f32.mrf.mxu1  ;;  %7347 = vmatmul.mubr.bf16.gmra.mxu1 %v3646_v60  ;;  %v7803_v23 = vld [vmem:[%s9764_s3 + $0x4d8] sm:$0xff]   ;;  %v3998_v51 = vrot.slane %v3964_v39, 1  ;;  %v4003_v16 = vrot.slane %v3967_v13, 1  ;;  %v6428_v30 = vld [vmem:[%s8778_s10 + $0x8] sm:$0xe] }
 0x139   : > { %7379 = vmatpush3.bf16.msra.mxu1 %v7799_v33  ;;  %v1249_v58 = vpop.f32.mrf.mxu0  ;;  %7356 = vmatprep.subr.bf16.mxu0 %v7800_v7  ;;  %v7809_v33 = vld [vmem:[%s9764_s3 + $0x4c0] sm:$0xff]   ;;  %v9077_v60 = vld [vmem:[%s8778_s10 + $0x3c] sm:$0x1]  ;;  %v3971_v29 = vunpack.c.l.bf16 %v3955_v63  ;;  %v3972_v6 = vunpack.c.l.bf16 %v9074_v2  ;;  %v4752_v2 = vunpack.c.l.bf16 %v6428_v30 }
 0x13a   : > { %v1268_v24 = vadd.f32 %v1249_v58, %v8916_v61  ;;  %v9019_v25 = vadd.f32 %v7060_v9, %v1270_v56  ;;  %v1447_v5 = vpop.f32.mrf.mxu1  ;;  %7380 = vmatprep.subr.bf16.mxu1 %v7801_v45  ;;  %7366 = vmatprep.mubr.bf16.mxu0 %v7810_v18  ;;  %v3999_v38 = vsel %vm412_vm0, %v3997_v48, %v3998_v51  ;;  %v4166_v18 = vld [vmem:[%s8778_s10 + $0x8] sm:$0xe]  ;;  %v7812_v57 = vld [vmem:[%s9764_s3 + $0x538] sm:$0xff]   ;;  %v3974_v56 = vunpack.c.l.bf16 %v9077_v60 }
 0x13b   : > { %v7037_v11 = vpop.f32.mrf.mxu0  ;;  %7390 = vmatprep.mubr.bf16.mxu1 %v4023_v4  ;;  %v3973_v4 = vunpack.c.h.bf16 %v3955_v63  ;;  %v7813_v9 = vld [vmem:[%s9764_s3 + $0x578] sm:$0xff]   ;;  %v7819_v51 = vld [vmem:[%s9764_s3 + $0x568] sm:$0xff]  }
 0x13c   : > { %v1271_v27 = vadd.f32 %v7037_v11, %v8924_v21  ;;  %v9029_v28 = vadd.f32 %v1447_v5, %v1268_v24  ;;  %7357 = vmatpush3.bf16.msra.mxu0 %v7800_v7  ;;  %v7061_v61 = vpop.f32.mrf.mxu1  ;;  %v7805_v21 = vld [vmem:[%s9764_s3 + $0x4d0] sm:$0xff]   ;;  %v4006_v7 = vrot.slane %v3969_v40, 1  ;;  %v4174_v24 = vunpack.c.l.bf16 %v4166_v18  ;;  %v7831_v60 = vld [vmem:[%s8778_s10 + $0x18] ss:$8 sps:$4 sm:$0xff]  }
 0x13d   : > { %7381 = vmatpush3.bf16.msra.mxu1 %v7801_v45  ;;  %v1252_v31 = vpop.f32.mrf.mxu0  ;;  %7358 = vmatprep.subr.bf16.mxu0 %v7802_v14  ;;  %v4002_v45 = vsel %vm412_vm0, %v4000_v52, %v4001_v54  ;;  %v7811_v58 = vld [vmem:[%s8778_s10 + $0x10] ss:$8 sps:$4 sm:$0xff]  }
 0x13e   : > { %v1269_v32 = vadd.f32 %v1252_v31, %v8929_v50  ;;  %v9038_v35 = vadd.f32 %v7061_v61, %v1271_v27  ;;  %v1450_v37 = vpop.f32.mrf.mxu1  ;;  %7382 = vmatprep.subr.bf16.mxu1 %v7803_v23  ;;  %v4024_v5 = vpack.c.bf16 %v4002_v45, %v3999_v38  ;;  %v4008_v11 = vsel %vm412_vm0, %v4006_v7, %v4007_v44  ;;  %v7815_v27 = vld [vmem:[%s9764_s3 + $0x570] sm:$0xff]  }
 0x13f   : > { %v4009_v61 = vrot.slane %v3971_v29, 1  ;;  %v4010_v31 = vrot.slane %v3972_v6, 1  ;;  %v7817_v54 = vld [vmem:[%s8778_s10 + $0x30] ss:$8 sps:$4 sm:$0xff]  }
 0x140   : > { %v9052_v50 = vadd.f32 %v1450_v37, %v1269_v32  ;;  %7359 = vmatpush3.bf16.msra.mxu0 %v7802_v14  ;;  %v4173_v14 = vunpack.c.l.bf16 %v4165_v42  ;;  %v4013_v32 = vrot.slane %v3974_v56, 1  ;;  %v7816_v37 = vld [vmem:[%s8778_s10 + $0x20] ss:$8 sps:$4 sm:$0xff]  }
 0x141   : > { %7383 = vmatpush3.bf16.msra.mxu1 %v7803_v23  ;;  %7360 = vmatprep.subr.bf16.mxu0 %v7804_v12  ;;  %v4005_v23 = vsel %vm412_vm0, %v4003_v16, %v4004_v10  ;;  %v4011_v59 = vsel %vm412_vm0, %v4009_v61, %v4010_v31  ;;  %v7820_v42 = vld [vmem:[%s9764_s3 + $0x520] sm:$0xff]   ;;  %v4168_v61 = vld [vmem:[%s8778_s10 + $0x18] sm:$0xe] }
 0x142   : > { %7384 = vmatprep.subr.bf16.mxu1 %v7805_v21  ;;  %v4025_v43 = vpack.c.bf16 %v4008_v11, %v4005_v23 }
 0x144   : > { %7361 = vmatpush3.bf16.msra.mxu0 %v7804_v12  ;;  %v4012_v12 = vrot.slane %v3973_v4, 1  ;;  %v7830_v4 = vld [vmem:[%s8778_s10 + $0x8] ss:$8 sps:$4 sm:$0xff]  }
 0x145   : > { %7385 = vmatpush3.bf16.msra.mxu1 %v7805_v21  ;;  %7362 = vmatprep.subr.bf16.mxu0 %v7806_v55  ;;  %v4190_v21 = vrot.slane %v3960_v34, 2 }
 0x146   : > { %7386 = vmatprep.subr.bf16.mxu1 %v7807_v62  ;;  %v4014_v34 = vsel %vm412_vm0, %v4012_v12, %v4013_v32 }
 0x147   : > { %v4026_v7 = vpack.c.bf16 %v4014_v34, %v4011_v59  ;;  %v7827_v59 = vld [vmem:[%s9764_s3 + $0x548] sm:$0xff]  }
 0x148   : > { %7363 = vmatpush3.bf16.msra.mxu0 %v7806_v55  ;;  %v4189_v55 = vrot.slane %v4173_v14, 2 }
 0x149   : > { %7387 = vmatpush3.bf16.msra.mxu1 %v7807_v62  ;;  %7364 = vmatprep.subr.bf16.mxu0 %v7808_v15  ;;  %v4192_v62 = vrot.slane %v4174_v24, 2 }
 0x14a   : > { %7388 = vmatprep.subr.bf16.mxu1 %v7809_v33 }
 0x14b   : > { %v4194_v63 = vsel %vm716_vm1, %v4192_v62, %v4193_v17  ;;  %v4169_v62 = vld [vmem:[%s8778_s10 + $0x20] sm:$0xe] }
 0x14c   : > { %7365 = vmatpush3.bf16.msra.mxu0 %v7808_v15 }
 0x14d   : > { %7389 = vmatpush3.bf16.msra.mxu1 %v7809_v33  ;;  %7398 = vmatprep.subr.bf16.mxu0 %v7812_v57  ;;  %v4191_v33 = vsel %vm716_vm1, %v4189_v55, %v4190_v21  ;;  %v4176_v55 = vunpack.c.l.bf16 %v4168_v61 }
 0x14e   : > { %7422 = vmatprep.subr.bf16.mxu1 %v7813_v9 }
 0x14f   : > { %v7080_v20 = vpop.f32.mrf.mxu0  ;;  %7367 = vmatmul.mubr.bf16.vlgmr.msra.gmra.mxu0 %v7811_v58  ;;  %v4198_v34 = vrot.slane %v4176_v55, 2 }
 0x150   : > { %v1623_v13 = vadd.f32 %v7080_v20, %v8991_v53  ;;  %v7104_v40 = vpop.f32.mrf.mxu1  ;;  %7391 = vmatmul.mubr.bf16.vlgmr.msra.gmra.mxu1 %v4024_v5  ;;  %7399 = vmatpush3.bf16.msra.mxu0 %v7812_v57  ;;  %v4221_v57 = vpack.c.bf16 %v4194_v63, %v4191_v33  ;;  %v7823_v5 = vld [vmem:[%s9764_s3 + $0x558] sm:$0xff]   ;;  %v7829_v63 = vld [vmem:[%s9764_s3 + $0x540] sm:$0xff]  }
 0x151   : > { %7423 = vmatpush3.bf16.msra.mxu1 %v7813_v9  ;;  %v1590_v15 = vpop.f32.mrf.mxu0  ;;  %7400 = vmatprep.subr.bf16.mxu0 %v7814_v41 }
 0x152   : > { %v9119_v36 = vadd.f32 %v7104_v40, %v1623_v13  ;;  %v1621_v48 = vadd.f32 %v1590_v15, %v8997_v3  ;;  %v1812_v53 = vpop.f32.mrf.mxu1  ;;  %7424 = vmatprep.subr.bf16.mxu1 %v7815_v27  ;;  %7370 = vmatprep.mubr.bf16.mxu0 %v7816_v37  ;;  %v4170_v13 = vld [vmem:[%s8778_s10 + $0x28] sm:$0xe] }
 0x153   : > { %v7081_v52 = vpop.f32.mrf.mxu0  ;;  %7394 = vmatprep.mubr.bf16.mxu1 %v4025_v43 }
 0x154   : > { %v9128_v16 = vadd.f32 %v1812_v53, %v1621_v48  ;;  %v1624_v10 = vadd.f32 %v7081_v52, %v9009_v19  ;;  %v7105_v3 = vpop.f32.mrf.mxu1  ;;  %7401 = vmatpush3.bf16.msra.mxu0 %v7814_v41  ;;  %v7821_v19 = vld [vmem:[%s9764_s3 + $0x560] sm:$0xff]   ;;  %v4167_v41 = vld [vmem:[%s8778_s10 + $0x10] sm:$0xe]  ;;  %v4199_v48 = vrot.slane %v3966_v47, 2  ;;  %v4177_v53 = vunpack.c.l.bf16 %v4169_v62 }
 0x155   : > { %7425 = vmatpush3.bf16.msra.mxu1 %v7815_v27  ;;  %v1593_v44 = vpop.f32.mrf.mxu0  ;;  %7402 = vmatprep.subr.bf16.mxu0 %v7818_v0  ;;  %v4175_v21 = vunpack.c.l.bf16 %v4167_v41  ;;  %v4171_v52 = vld [vmem:[%s8778_s10 + $0x30] sm:$0xe]  ;;  %v4205_v47 = vrot.slane %v3970_v46, 2  ;;  %v7832_v46 = vld [vmem:[%s9764_s3 + $0x5b8] sm:$0xff]  }
 0x156   : > { %v9134_v38 = vadd.f32 %v7105_v3, %v1624_v10  ;;  %v1622_v45 = vadd.f32 %v1593_v44, %v9012_v22  ;;  %v1815_v18 = vpop.f32.mrf.mxu1  ;;  %7426 = vmatprep.subr.bf16.mxu1 %v7819_v51  ;;  %v7822_v22 = vld [vmem:[%s9764_s3 + $0x518] sm:$0xff]   ;;  %v4179_v33 = vunpack.c.l.bf16 %v4171_v52  ;;  %v4200_v10 = vsel %vm716_vm1, %v4198_v34, %v4199_v48  ;;  %v7835_v41 = vld [vmem:[%s9764_s3 + $0x5f0] sm:$0xff]  }
 0x157   : > { %v7084_v29 = vpop.f32.mrf.mxu0  ;;  %7371 = vmatmul.mubr.bf16.gmra.mxu0 %v7817_v54  ;;  %v4195_v15 = vrot.slane %v4175_v21, 2  ;;  %v4172_v54 = vld [vmem:[%s8778_s10 + $0x38] sm:$0xe]  ;;  %v4201_v3 = vrot.slane %v4177_v53, 2 }
 0x158   : > { %v9141_v9 = vadd.f32 %v1815_v18, %v1622_v45  ;;  %v1627_v58 = vadd.f32 %v7084_v29, %v9019_v25  ;;  %7403 = vmatpush3.bf16.msra.mxu0 %v7818_v0  ;;  %v7108_v14 = vpop.f32.mrf.mxu1  ;;  %7395 = vmatmul.mubr.bf16.gmra.mxu1 %v4026_v7  ;;  %v4196_v0 = vrot.slane %v3964_v39, 2  ;;  %v4180_v44 = vunpack.c.l.bf16 %v4172_v54  ;;  %v6389_v45 = vld [vmem:[%s8778_s10 + $0xc] sm:$0x1]  ;;  %v6429_v29 = vld [vmem:[%s8778_s10 + $0x10] sm:$0xe] }
 0x159   : > { %7427 = vmatpush3.bf16.msra.mxu1 %v7819_v51  ;;  %v1606_v24 = vpop.f32.mrf.mxu0  ;;  %7404 = vmatprep.subr.bf16.mxu0 %v7820_v42  ;;  %v4178_v51 = vunpack.c.l.bf16 %v4170_v13  ;;  %v4207_v18 = vrot.slane %v4179_v33, 2 }
 0x15a   : > { %v1625_v23 = vadd.f32 %v1606_v24, %v9029_v28  ;;  %v9151_v11 = vadd.f32 %v7108_v14, %v1627_v58  ;;  %v1828_v25 = vpop.f32.mrf.mxu1  ;;  %7428 = vmatprep.subr.bf16.mxu1 %v7821_v19  ;;  %7414 = vmatprep.mubr.bf16.mxu0 %v4221_v57  ;;  %v7824_v28 = vld [vmem:[%s9764_s3 + $0x510] sm:$0xff]   ;;  %v4197_v39 = vsel %vm716_vm1, %v4195_v15, %v4196_v0  ;;  %v4211_v57 = vrot.slane %v3974_v56, 2 }
 0x15b   : > { %v7085_v27 = vpop.f32.mrf.mxu0  ;;  %7438 = vmatprep.mubr.bf16.mxu1 %v7830_v4  ;;  %v4204_v7 = vrot.slane %v4178_v51, 2  ;;  %v4222_v49 = vpack.c.bf16 %v4200_v10, %v4197_v39  ;;  %v7833_v4 = vld [vmem:[%s9764_s3 + $0x5f8] sm:$0xff]   ;;  %v4203_v58 = vsel %vm716_vm1, %v4201_v3, %v4202_v8  ;;  %v7834_v56 = vld [vmem:[%s9764_s3 + $0x5b0] sm:$0xff]   ;;  %v7840_v3 = vld [vmem:[%s9764_s3 + $0x5a0] sm:$0xff]  }
 0x15c   : > { %v1628_v31 = vadd.f32 %v7085_v27, %v9038_v35  ;;  %v9156_v12 = vadd.f32 %v1828_v25, %v1625_v23  ;;  %7405 = vmatpush3.bf16.msra.mxu0 %v7820_v42  ;;  %v7109_v32 = vpop.f32.mrf.mxu1  ;;  %v7825_v35 = vld [vmem:[%s9764_s3 + $0x550] sm:$0xff]   ;;  %v4541_v25 = vunpack.c.l.bf16 %v6391_v26  ;;  %v6392_v26 = vld [vmem:[%s8778_s10 + $0x18] ss:$8 sps:$4 sm:$0xff]  }
 0x15d   : > { %7429 = vmatpush3.bf16.msra.mxu1 %v7821_v19  ;;  %v1609_v37 = vpop.f32.mrf.mxu0  ;;  %7406 = vmatprep.subr.bf16.mxu0 %v7822_v22  ;;  %v6388_v42 = vld [vmem:[%s8778_s10 + $0x8] ss:$8 sps:$4 sm:$0xff]   ;;  %v4208_v19 = vrot.slane %v3972_v6, 2  ;;  %v4206_v14 = vsel %vm716_vm1, %v4204_v7, %v4205_v47  ;;  %v4753_v6 = vunpack.c.l.bf16 %v6429_v29  ;;  %v7839_v47 = vld [vmem:[%s8778_s10 + $0x38] ss:$8 sps:$4 sm:$0xff]  }
 0x15e   : > { %v1626_v17 = vadd.f32 %v1609_v37, %v9052_v50  ;;  %v9162_v20 = vadd.f32 %v7109_v32, %v1628_v31  ;;  %v1831_v43 = vpop.f32.mrf.mxu1  ;;  %7430 = vmatprep.subr.bf16.mxu1 %v7823_v5  ;;  %v7826_v50 = vld [vmem:[%s9764_s3 + $0x508] sm:$0xff]   ;;  %v4538_v24 = vunpack.c.l.bf16 %v6388_v42  ;;  %v4540_v23 = vunpack.c.h.bf16 %v6388_v42  ;;  %v7841_v42 = vld [vmem:[%s9764_s3 + $0x5e0] sm:$0xff]   ;;  %v6430_v29 = vld [vmem:[%s8778_s10 + $0x18] sm:$0xe] }
 0x15f   : > { %v4223_v27 = vpack.c.bf16 %v4206_v14, %v4203_v58  ;;  %v4209_v61 = vsel %vm716_vm1, %v4207_v18, %v4208_v19  ;;  %v4772_v15 = vrot.slane %v4541_v25, 2  ;;  %v7842_v58 = vld [vmem:[%s9764_s3 + $0x598] sm:$0xff]   ;;  %v4542_v14 = vunpack.c.l.bf16 %v6392_v26 }
 0x160   : > { %v9169_v40 = vadd.f32 %v1831_v43, %v1626_v17  ;;  %7407 = vmatpush3.bf16.msra.mxu0 %v7822_v22  ;;  %v4210_v22 = vrot.slane %v4180_v44, 2  ;;  %v4570_v32 = vrot.slane %v4538_v24, 1  ;;  %v4573_v17 = vrot.slane %v4540_v23, 1 }
 0x161   : > { %7431 = vmatpush3.bf16.msra.mxu1 %v7823_v5  ;;  %7408 = vmatprep.subr.bf16.mxu0 %v7824_v28  ;;  %v4539_v5 = vunpack.c.l.bf16 %v6389_v45  ;;  %v4574_v43 = vrot.slane %v4541_v25, 1 }
 0x162   : > { %7432 = vmatprep.subr.bf16.mxu1 %v7825_v35  ;;  %v4212_v31 = vsel %vm716_vm1, %v4210_v22, %v4211_v57  ;;  %v6395_v57 = vld [vmem:[%s8778_s10 + $0x24] sm:$0x1]  ;;  %v6431_v22 = vld [vmem:[%s8778_s10 + $0x20] sm:$0xe] }
 0x163   : > { %v4571_v21 = vrot.slane %v4539_v5, 1  ;;  %v4769_v13 = vrot.slane %v4539_v5, 2  ;;  %v4224_v52 = vpack.c.bf16 %v4212_v31, %v4209_v61  ;;  %v4755_v61 = vunpack.c.l.bf16 %v6431_v22 }
 0x164   : > { %7409 = vmatpush3.bf16.msra.mxu0 %v7824_v28  ;;  %v7838_v28 = vld [vmem:[%s8778_s10 + $0x28] ss:$8 sps:$4 sm:$0xff]  }
 0x165   : > { %7433 = vmatpush3.bf16.msra.mxu1 %v7825_v35  ;;  %7410 = vmatprep.subr.bf16.mxu0 %v7826_v50  ;;  %v4768_v35 = vrot.slane %v4752_v2, 2  ;;  %v4572_v54 = vsel %vm412_vm0, %v4570_v32, %v4571_v21  ;;  %v4544_v2 = vunpack.c.h.bf16 %v6392_v26  ;;  %v7844_v32 = vld [vmem:[%s9764_s3 + $0x590] sm:$0xff]   ;;  %v6397_v21 = vld [vmem:[%s8778_s10 + $0x2c] sm:$0x1] }
 0x166   : > { %7434 = vmatprep.subr.bf16.mxu1 %v7827_v59 }
 0x167   : > { %v4770_v33 = vsel %vm716_vm1, %v4768_v35, %v4769_v13  ;;  %v7845_v35 = vld [vmem:[%s9764_s3 + $0x5d0] sm:$0xff]  }
 0x168   : > { %7411 = vmatpush3.bf16.msra.mxu0 %v7826_v50  ;;  %v4771_v50 = vrot.slane %v4753_v6, 2  ;;  %v4545_v6 = vunpack.c.l.bf16 %v6395_v57  ;;  %v6399_v13 = vld [vmem:[%s8778_s10 + $0x34] sm:$0x1] }
 0x169   : > { %7435 = vmatpush3.bf16.msra.mxu1 %v7827_v59  ;;  %7412 = vmatprep.subr.bf16.mxu0 %v7828_v1  ;;  %v7836_v59 = vld [vmem:[%s9764_s3 + $0x5a8] sm:$0xff]  }
 0x16a   : > { %7436 = vmatprep.subr.bf16.mxu1 %v7829_v63 }
 0x16c   : > { %7413 = vmatpush3.bf16.msra.mxu0 %v7828_v1  ;;  %v4575_v1 = vsel %vm412_vm0, %v4573_v17, %v4574_v43 }
 0x16d   : > { %7437 = vmatpush3.bf16.msra.mxu1 %v7829_v63  ;;  %7446 = vmatprep.subr.bf16.mxu0 %v7832_v46  ;;  %v4773_v63 = vsel %vm716_vm1, %v4771_v50, %v4772_v15  ;;  %v4602_v45 = vpack.c.bf16 %v4575_v1, %v4572_v54  ;;  %v4580_v50 = vrot.slane %v4545_v6, 1  ;;  %v4549_v1 = vunpack.c.l.bf16 %v6399_v13 }
 0x16e   : > { %7470 = vmatprep.subr.bf16.mxu1 %v7833_v4 }
 0x16f   : > { %v7128_v37 = vpop.f32.mrf.mxu0  ;;  %7415 = vmatmul.mubr.bf16.vlgmr.msra.gmra.mxu0 %v4222_v49  ;;  %v4800_v49 = vpack.c.bf16 %v4773_v63, %v4770_v33  ;;  %v6401_v33 = vld [vmem:[%s8778_s10 + $0x3c] sm:$0x1]  ;;  %v4586_v57 = vrot.slane %v4549_v1, 1 }
 0x170   : > { %v2043_v55 = vadd.f32 %v7128_v37, %v9119_v36  ;;  %v7152_v62 = vpop.f32.mrf.mxu1  ;;  %7439 = vmatmul.mubr.bf16.vlgmr.msra.gmra.mxu1 %v7831_v60  ;;  %7447 = vmatpush3.bf16.msra.mxu0 %v7832_v46  ;;  %v7837_v36 = vld [vmem:[%s9764_s3 + $0x5e8] sm:$0xff]   ;;  %v6393_v46 = vld [vmem:[%s8778_s10 + $0x1c] sm:$0x1]  ;;  %v4576_v37 = vrot.slane %v4542_v14, 1 }
 0x171   : > { %7471 = vmatpush3.bf16.msra.mxu1 %v7833_v4  ;;  %v2010_v0 = vpop.f32.mrf.mxu0  ;;  %7448 = vmatprep.subr.bf16.mxu0 %v7834_v56  ;;  %v4543_v25 = vunpack.c.l.bf16 %v6393_v46  ;;  %v6435_v46 = vld [vmem:[%s8778_s10 + $0x40] sm:$0xe] }
 0x172   : > { %v9226_v34 = vadd.f32 %v7152_v62, %v2043_v55  ;;  %v2041_v48 = vadd.f32 %v2010_v0, %v9128_v16  ;;  %v2168_v53 = vpop.f32.mrf.mxu1  ;;  %7472 = vmatprep.subr.bf16.mxu1 %v7835_v41  ;;  %7418 = vmatprep.mubr.bf16.mxu0 %v4223_v27  ;;  %v4579_v62 = vrot.slane %v4544_v2, 1 }
 0x173   : > { %v7129_v51 = vpop.f32.mrf.mxu0  ;;  %7442 = vmatprep.mubr.bf16.mxu1 %v7838_v28  ;;  %v6396_v28 = vld [vmem:[%s8778_s10 + $0x28] ss:$8 sps:$4 sm:$0xff]   ;;  %v4577_v55 = vrot.slane %v4543_v25, 1  ;;  %v4775_v0 = vrot.slane %v4543_v25, 2  ;;  %v4759_v25 = vunpack.c.l.bf16 %v6435_v46 }
 0x174   : > { %v9234_v39 = vadd.f32 %v2168_v53, %v2041_v48  ;;  %v2044_v8 = vadd.f32 %v7129_v51, %v9134_v38  ;;  %v7153_v16 = vpop.f32.mrf.mxu1  ;;  %7449 = vmatpush3.bf16.msra.mxu0 %v7834_v56  ;;  %v4754_v56 = vunpack.c.l.bf16 %v6430_v29  ;;  %v6432_v48 = vld [vmem:[%s8778_s10 + $0x28] sm:$0xe]  ;;  %v4777_v53 = vrot.slane %v4755_v61, 2 }
 0x175   : > { %7473 = vmatpush3.bf16.msra.mxu1 %v7835_v41  ;;  %v2013_v10 = vpop.f32.mrf.mxu0  ;;  %7450 = vmatprep.subr.bf16.mxu0 %v7836_v59  ;;  %v4547_v51 = vunpack.c.l.bf16 %v6397_v21  ;;  %v4548_v54 = vunpack.c.h.bf16 %v6396_v28  ;;  %v4756_v63 = vunpack.c.l.bf16 %v6432_v48  ;;  %v9328_v21 = vld [vmem:[%s8778_s10 + $0x1c] sm:$0x1] }
 0x176   : > { %v9243_v7 = vadd.f32 %v7153_v16, %v2044_v8  ;;  %v2042_v38 = vadd.f32 %v2013_v10, %v9141_v9  ;;  %v2171_v44 = vpop.f32.mrf.mxu1  ;;  %7474 = vmatprep.subr.bf16.mxu1 %v7837_v36  ;;  %v4774_v15 = vrot.slane %v4754_v56, 2  ;;  %v6433_v8 = vld [vmem:[%s8778_s10 + $0x30] sm:$0xe]  ;;  %v7847_v16 = vld [vmem:[%s9764_s3 + $0x5c8] sm:$0xff]   ;;  %v9294_v10 = vsel %vm412_vm0, %v4576_v37, %v4577_v55 }
 0x177   : > { %v7132_v30 = vpop.f32.mrf.mxu0  ;;  %7419 = vmatmul.mubr.bf16.gmra.mxu0 %v4224_v52  ;;  %v7846_v52 = vld [vmem:[%s9764_s3 + $0x588] sm:$0xff]   ;;  %v4583_v26 = vrot.slane %v4547_v51, 1 }
 0x178   : > { %v9251_v18 = vadd.f32 %v2171_v44, %v2042_v38  ;;  %v2047_v19 = vadd.f32 %v7132_v30, %v9151_v11  ;;  %7451 = vmatpush3.bf16.msra.mxu0 %v7836_v59  ;;  %v7156_v9 = vpop.f32.mrf.mxu1  ;;  %7443 = vmatmul.mubr.bf16.gmra.mxu1 %v7839_v47  ;;  %v7843_v11 = vld [vmem:[%s9764_s3 + $0x5d8] sm:$0xff]   ;;  %v4778_v59 = vrot.slane %v4545_v6, 2  ;;  %v9300_v38 = vsel %vm716_vm1, %v4774_v15, %v4775_v0  ;;  %v6403_v44 = vld [vmem:[%s8778_s10 + $0x44] sm:$0x1] }
 0x179   : > { %7475 = vmatpush3.bf16.msra.mxu1 %v7837_v36  ;;  %v2026_v4 = vpop.f32.mrf.mxu0  ;;  %7452 = vmatprep.subr.bf16.mxu0 %v7840_v3  ;;  %v4546_v36 = vunpack.c.l.bf16 %v6396_v28  ;;  %v6400_v47 = vld [vmem:[%s8778_s10 + $0x38] ss:$8 sps:$4 sm:$0xff]   ;;  %v4757_v30 = vunpack.c.l.bf16 %v6433_v8  ;;  %v4553_v22 = vunpack.c.l.bf16 %v6403_v44  ;;  %v9325_v28 = vld [vmem:[%s8778_s10 + $0x14] sm:$0x1] }
 0x17a   : > { %v2045_v24 = vadd.f32 %v2026_v4, %v9156_v12  ;;  %v9261_v5 = vadd.f32 %v7156_v9, %v2047_v19  ;;  %v2184_v23 = vpop.f32.mrf.mxu1  ;;  %7476 = vmatprep.subr.bf16.mxu1 %v7841_v42  ;;  %7462 = vmatprep.mubr.bf16.mxu0 %v4602_v45  ;;  %v7848_v19 = vld [vmem:[%s9764_s3 + $0x580] sm:$0xff]   ;;  %v4585_v9 = vrot.slane %v4548_v54, 1  ;;  %v4550_v29 = vunpack.c.l.bf16 %v6400_v47  ;;  %v7850_v6 = vld [vmem:[%s9764_s3 + $0x638] sm:$0xff]  }
 0x17b   : > { %v7133_v60 = vpop.f32.mrf.mxu0  ;;  %7486 = vmatprep.mubr.bf16.mxu1 %v4800_v49  ;;  %v4582_v45 = vrot.slane %v4546_v36, 1  ;;  %v6434_v49 = vld [vmem:[%s8778_s10 + $0x38] sm:$0xe]  ;;  %v4551_v4 = vunpack.c.l.bf16 %v6401_v33  ;;  %v4552_v14 = vunpack.c.h.bf16 %v6400_v47  ;;  %v4783_v56 = vrot.slane %v4757_v30, 2  ;;  %v7854_v30 = vld [vmem:[%s9764_s3 + $0x628] sm:$0xff]  }
 0x17c   : > { %v2048_v41 = vadd.f32 %v7133_v60, %v9162_v20  ;;  %v9267_v12 = vadd.f32 %v2184_v23, %v2045_v24  ;;  %7453 = vmatpush3.bf16.msra.mxu0 %v7840_v3  ;;  %v7157_v27 = vpop.f32.mrf.mxu1  ;;  %v9297_v3 = vsel %vm412_vm0, %v4579_v62, %v4580_v50  ;;  %v4780_v24 = vrot.slane %v4756_v63, 2 }
 0x17d   : > { %7477 = vmatpush3.bf16.msra.mxu1 %v7841_v42  ;;  %v2029_v31 = vpop.f32.mrf.mxu0  ;;  %7454 = vmatprep.subr.bf16.mxu0 %v7842_v58  ;;  %v9304_v42 = vsel %vm716_vm1, %v4777_v53, %v4778_v59  ;;  %v4781_v23 = vrot.slane %v4547_v51, 2  ;;  %v4603_v2 = vpack.c.bf16 %v9297_v3, %v9294_v10  ;;  %v4584_v61 = vsel %vm412_vm0, %v4582_v45, %v4583_v26  ;;  %v7852_v51 = vld [vmem:[%s9764_s3 + $0x630] sm:$0xff]  }
 0x17e   : > { %v2046_v17 = vadd.f32 %v2029_v31, %v9169_v40  ;;  %v9275_v20 = vadd.f32 %v7157_v27, %v2048_v41  ;;  %v2187_v43 = vpop.f32.mrf.mxu1  ;;  %7478 = vmatprep.subr.bf16.mxu1 %v7843_v11  ;;  %v4801_v60 = vpack.c.bf16 %v9304_v42, %v9300_v38  ;;  %v4784_v41 = vrot.slane %v4549_v1, 2  ;;  %v6496_v27 = vld [vmem:[%s8778_s10 + $0x10] ss:$8 sps:$4 sm:$0xff]  }
 0x17f   : > { %v4587_v31 = vsel %vm412_vm0, %v4585_v9, %v4586_v57  ;;  %v4589_v37 = vrot.slane %v4551_v4, 1  ;;  %v4782_v55 = vsel %vm716_vm1, %v4780_v24, %v4781_v23  ;;  %v4787_v62 = vrot.slane %v4551_v4, 2  ;;  %v7856_v23 = vld [vmem:[%s9764_s3 + $0x620] sm:$0xff]  }
 0x180   : > { %v9282_v40 = vadd.f32 %v2187_v43, %v2046_v17  ;;  %7455 = vmatpush3.bf16.msra.mxu0 %v7842_v58  ;;  %v7849_v58 = vld [vmem:[%s9764_s3 + $0x5c0] sm:$0xff]   ;;  %v7851_v17 = vld [vmem:[%s9764_s3 + $0x678] sm:$0xff]   ;;  %v4591_v43 = vrot.slane %v4552_v14, 1  ;;  %v4789_v50 = vrot.slane %v4759_v25, 2  ;;  %v4790_v15 = vrot.slane %v4553_v22, 2 }
 0x181   : > { %7479 = vmatpush3.bf16.msra.mxu1 %v7843_v11  ;;  %7456 = vmatprep.subr.bf16.mxu0 %v7844_v32  ;;  %v4758_v11 = vunpack.c.l.bf16 %v6434_v49  ;;  %v5117_v0 = vunpack.c.l.bf16 %v6496_v27  ;;  %v4785_v59 = vsel %vm716_vm1, %v4783_v56, %v4784_v41  ;;  %v5118_v48 = vunpack.c.l.bf16 %v9325_v28 }
 0x182   : > { %7480 = vmatprep.subr.bf16.mxu1 %v7845_v35  ;;  %v5119_v53 = vunpack.c.h.bf16 %v6496_v27  ;;  %v5120_v36 = vunpack.c.l.bf16 %v9328_v21  ;;  %v4604_v54 = vpack.c.bf16 %v4587_v31, %v4584_v61  ;;  %v4802_v47 = vpack.c.bf16 %v4785_v59, %v4782_v55 }
 0x183   : > { %v4786_v13 = vrot.slane %v4758_v11, 2  ;;  %v4791_v63 = vsel %vm716_vm1, %v4789_v50, %v4790_v15  ;;  %v5149_v10 = vrot.slane %v5117_v0, 1  ;;  %v5150_v44 = vrot.slane %v5118_v48, 1  ;;  %v6500_v50 = vld [vmem:[%s8778_s10 + $0x20] ss:$8 sps:$4 sm:$0xff]  }
 0x184   : > { %7457 = vmatpush3.bf16.msra.mxu0 %v7844_v32  ;;  %v4588_v32 = vrot.slane %v4550_v29, 1  ;;  %v5152_v42 = vrot.slane %v5119_v53, 1  ;;  %v5153_v45 = vrot.slane %v5120_v36, 1  ;;  %v9396_v15 = vld [vmem:[%s8778_s10 + $0x24] sm:$0x1]  ;;  %v7861_v53 = vld [vmem:[%s9764_s3 + $0x650] sm:$0xff]  }
 0x185   : > { %7481 = vmatpush3.bf16.msra.mxu1 %v7845_v35  ;;  %7458 = vmatprep.subr.bf16.mxu0 %v7846_v52  ;;  %v4592_v35 = vrot.slane %v4553_v22, 1  ;;  %v4788_v33 = vsel %vm716_vm1, %v4786_v13, %v4787_v62  ;;  %v7860_v13 = vld [vmem:[%s9764_s3 + $0x610] sm:$0xff]  }
 0x186   : > { %7482 = vmatprep.subr.bf16.mxu1 %v7847_v16  ;;  %v4590_v1 = vsel %vm412_vm0, %v4588_v32, %v4589_v37  ;;  %v4803_v29 = vpack.c.bf16 %v4791_v63, %v4788_v33  ;;  %v5154_v22 = vsel %vm412_vm0, %v5152_v42, %v5153_v45  ;;  %v5123_v33 = vunpack.c.h.bf16 %v6500_v50  ;;  %v6508_v45 = vld [vmem:[%s8778_s10 + $0x40] ss:$8 sps:$4 sm:$0xff]  }
 0x187   : > { %v4593_v8 = vsel %vm412_vm0, %v4591_v43, %v4592_v35 }
 0x188   : > { %7459 = vmatpush3.bf16.msra.mxu0 %v7846_v52  ;;  %v7853_v52 = vld [vmem:[%s9764_s3 + $0x670] sm:$0xff]   ;;  %v4605_v57 = vpack.c.bf16 %v4593_v8, %v4590_v1  ;;  %v9412_v1 = vld [vmem:[%s8778_s10 + $0x3c] sm:$0x1] }
 0x189   : > { %7483 = vmatpush3.bf16.msra.mxu1 %v7847_v16  ;;  %7460 = vmatprep.subr.bf16.mxu0 %v7848_v19  ;;  %v5128_v42 = vunpack.c.l.bf16 %v9412_v1 }
 0x18a   : > { %7484 = vmatprep.subr.bf16.mxu1 %v7849_v58 }
 0x18b   : > { %v5363_v28 = vrot.slane %v5128_v42, 2 }
 0x18c   : > { %7461 = vmatpush3.bf16.msra.mxu0 %v7848_v19  ;;  %v7855_v19 = vld [vmem:[%s9764_s3 + $0x668] sm:$0xff]  }
 0x18d   : > { %7485 = vmatpush3.bf16.msra.mxu1 %v7849_v58  ;;  %7494 = vmatprep.subr.bf16.mxu0 %v7850_v6 }
 0x18e   : > { %7518 = vmatprep.subr.bf16.mxu1 %v7851_v17 }
 0x18f   : > { %v7176_v16 = vpop.f32.mrf.mxu0  ;;  %7463 = vmatmul.mubr.bf16.vlgmr.msra.gmra.mxu0 %v4603_v2 }
 0x190   : > { %v2423_v3 = vadd.f32 %v7176_v16, %v9226_v34  ;;  %v7200_v38 = vpop.f32.mrf.mxu1  ;;  %7487 = vmatmul.mubr.bf16.vlgmr.msra.gmra.mxu1 %v4801_v60  ;;  %7495 = vmatpush3.bf16.msra.mxu0 %v7850_v6  ;;  %v7866_v60 = vld [vmem:[%s8778_s10 + $0x10] ss:$8 sps:$4 sm:$0xff]   ;;  %v5122_v16 = vunpack.c.l.bf16 %v9396_v15 }
 0x191   : > { %7519 = vmatpush3.bf16.msra.mxu1 %v7851_v17  ;;  %v2390_v26 = vpop.f32.mrf.mxu0  ;;  %7496 = vmatprep.subr.bf16.mxu0 %v7852_v51 }
 0x192   : > { %v9355_v49 = vadd.f32 %v7200_v38, %v2423_v3  ;;  %v2421_v34 = vadd.f32 %v2390_v26, %v9234_v39  ;;  %v2588_v46 = vpop.f32.mrf.mxu1  ;;  %7520 = vmatprep.subr.bf16.mxu1 %v7853_v52  ;;  %7466 = vmatprep.mubr.bf16.mxu0 %v4604_v54  ;;  %v5151_v39 = vsel %vm412_vm0, %v5149_v10, %v5150_v44  ;;  %v9409_v54 = vld [vmem:[%s8778_s10 + $0x34] sm:$0x1]  ;;  %v7863_v3 = vld [vmem:[%s9764_s3 + $0x648] sm:$0xff]   ;;  %v9428_v26 = vld [vmem:[%s8778_s10 + $0x44] sm:$0x1] }
 0x193   : > { %v7177_v9 = vpop.f32.mrf.mxu0  ;;  %7490 = vmatprep.mubr.bf16.mxu1 %v4802_v47  ;;  %v5181_v56 = vpack.c.bf16 %v5154_v22, %v5151_v39  ;;  %v7862_v47 = vld [vmem:[%s9764_s3 + $0x608] sm:$0xff]   ;;  %v5126_v38 = vunpack.c.l.bf16 %v9409_v54 }
 0x194   : > { %v9361_v4 = vadd.f32 %v2588_v46, %v2421_v34  ;;  %v2424_v58 = vadd.f32 %v7177_v9, %v9243_v7  ;;  %v7201_v14 = vpop.f32.mrf.mxu1  ;;  %7497 = vmatpush3.bf16.msra.mxu0 %v7852_v51  ;;  %v7857_v7 = vld [vmem:[%s9764_s3 + $0x660] sm:$0xff]   ;;  %v9405_v51 = vld [vmem:[%s8778_s10 + $0x2c] sm:$0x1]  ;;  %v5156_v34 = vrot.slane %v5122_v16, 1  ;;  %v5158_v9 = vrot.slane %v5123_v33, 1 }
 0x195   : > { %7521 = vmatpush3.bf16.msra.mxu1 %v7853_v52  ;;  %v2393_v24 = vpop.f32.mrf.mxu0  ;;  %7498 = vmatprep.subr.bf16.mxu0 %v7854_v30  ;;  %v6504_v52 = vld [vmem:[%s8778_s10 + $0x30] ss:$8 sps:$4 sm:$0xff]   ;;  %v5124_v63 = vunpack.c.l.bf16 %v9405_v51  ;;  %v9433_v46 = vld [vmem:[%s8778_s10 + $0x4c] sm:$0x1]  ;;  %v5162_v39 = vrot.slane %v5126_v38, 1  ;;  %v5351_v33 = vrot.slane %v5120_v36, 2 }
 0x196   : > { %v9369_v11 = vadd.f32 %v7201_v14, %v2424_v58  ;;  %v2422_v25 = vadd.f32 %v2393_v24, %v9251_v18  ;;  %v2591_v2 = vpop.f32.mrf.mxu1  ;;  %7522 = vmatprep.subr.bf16.mxu1 %v7855_v19  ;;  %v7858_v18 = vld [vmem:[%s9764_s3 + $0x618] sm:$0xff]   ;;  %v5125_v10 = vunpack.c.l.bf16 %v6504_v52  ;;  %v5127_v44 = vunpack.c.h.bf16 %v6504_v52  ;;  %v7865_v14 = vld [vmem:[%s9764_s3 + $0x640] sm:$0xff]  }
 0x197   : > { %v7180_v6 = vpop.f32.mrf.mxu0  ;;  %7467 = vmatmul.mubr.bf16.gmra.mxu0 %v4605_v57  ;;  %v5159_v57 = vrot.slane %v5124_v63, 1  ;;  %v5129_v58 = vunpack.c.l.bf16 %v6508_v45  ;;  %v5165_v24 = vrot.slane %v5128_v42, 1  ;;  %v7870_v52 = vld [vmem:[%s8778_s10 + $0x30] ss:$8 sps:$4 sm:$0xff]  }
 0x198   : > { %v9376_v41 = vadd.f32 %v2591_v2, %v2422_v25  ;;  %v2427_v27 = vadd.f32 %v7180_v6, %v9261_v5  ;;  %7499 = vmatpush3.bf16.msra.mxu0 %v7854_v30  ;;  %v7204_v61 = vpop.f32.mrf.mxu1  ;;  %7491 = vmatmul.mubr.bf16.gmra.mxu1 %v4803_v29  ;;  %v7859_v5 = vld [vmem:[%s9764_s3 + $0x658] sm:$0xff]   ;;  %v5161_v29 = vrot.slane %v5125_v10, 1  ;;  %v5164_v22 = vrot.slane %v5127_v44, 1 }
 0x199   : > { %7523 = vmatpush3.bf16.msra.mxu1 %v7855_v19  ;;  %v2406_v31 = vpop.f32.mrf.mxu0  ;;  %7500 = vmatprep.subr.bf16.mxu0 %v7856_v23  ;;  %v7864_v19 = vld [vmem:[%s9764_s3 + $0x600] sm:$0xff]   ;;  %v5131_v25 = vunpack.c.h.bf16 %v6508_v45  ;;  %v5132_v2 = vunpack.c.l.bf16 %v9433_v46 }
 0x19a   : > { %v2425_v32 = vadd.f32 %v2406_v31, %v9267_v12  ;;  %v9383_v37 = vadd.f32 %v7204_v61, %v2427_v27  ;;  %v2604_v17 = vpop.f32.mrf.mxu1  ;;  %7524 = vmatprep.subr.bf16.mxu1 %v7857_v7  ;;  %7510 = vmatprep.mubr.bf16.mxu0 %v7866_v60  ;;  %v6537_v60 = vld [vmem:[%s8778_s10 + $0x18] sm:$0xe]  ;;  %v6540_v61 = vld [vmem:[%s8778_s10 + $0x30] sm:$0xe] }
 0x19b   : > { %v7181_v43 = vpop.f32.mrf.mxu0  ;;  %7534 = vmatprep.mubr.bf16.mxu1 %v5181_v56  ;;  %v5160_v56 = vsel %vm412_vm0, %v5158_v9, %v5159_v57  ;;  %v7868_v27 = vld [vmem:[%s9764_s3 + $0x6b8] sm:$0xff]  }
 0x19c   : > { %v2428_v35 = vadd.f32 %v7181_v43, %v9275_v20  ;;  %v9389_v55 = vadd.f32 %v2604_v17, %v2425_v32  ;;  %7501 = vmatpush3.bf16.msra.mxu0 %v7856_v23  ;;  %v7205_v12 = vpop.f32.mrf.mxu1  ;;  %v5130_v23 = vunpack.c.l.bf16 %v9428_v26  ;;  %v6541_v31 = vld [vmem:[%s8778_s10 + $0x38] sm:$0xe]  ;;  %v5166_v32 = vsel %vm412_vm0, %v5164_v22, %v5165_v24  ;;  %v7867_v43 = vld [vmem:[%s8778_s10 + $0x20] ss:$8 sps:$4 sm:$0xff]  }
 0x19d   : > { %7525 = vmatpush3.bf16.msra.mxu1 %v7857_v7  ;;  %v2409_v62 = vpop.f32.mrf.mxu0  ;;  %7502 = vmatprep.subr.bf16.mxu0 %v7858_v18  ;;  %v6536_v7 = vld [vmem:[%s8778_s10 + $0x10] sm:$0xe]  ;;  %v5167_v17 = vrot.slane %v5129_v58, 1  ;;  %v7871_v58 = vld [vmem:[%s8778_s10 + $0x40] ss:$8 sps:$4 sm:$0xff]  }
 0x19e   : > { %v2426_v0 = vadd.f32 %v2409_v62, %v9282_v40  ;;  %v9399_v20 = vadd.f32 %v7205_v12, %v2428_v35  ;;  %v2607_v59 = vpop.f32.mrf.mxu1  ;;  %7526 = vmatprep.subr.bf16.mxu1 %v7859_v5  ;;  %v5121_v40 = vunpack.c.l.bf16 %v6500_v50  ;;  %v5170_v35 = vrot.slane %v5131_v25, 1 }
 0x19f   : > { %v5171_v12 = vrot.slane %v5132_v2, 1  ;;  %v5331_v62 = vunpack.c.l.bf16 %v6536_v7 }
 0x1a0   : > { %v9414_v8 = vadd.f32 %v2607_v59, %v2426_v0  ;;  %7503 = vmatpush3.bf16.msra.mxu0 %v7858_v18  ;;  %v5155_v30 = vrot.slane %v5121_v40, 1  ;;  %v5163_v18 = vsel %vm412_vm0, %v5161_v29, %v5162_v39  ;;  %v5335_v0 = vunpack.c.l.bf16 %v6540_v61 }
 0x1a1   : > { %7527 = vmatpush3.bf16.msra.mxu1 %v7859_v5  ;;  %7504 = vmatprep.subr.bf16.mxu0 %v7860_v13  ;;  %v5168_v5 = vrot.slane %v5130_v23, 1  ;;  %v5336_v59 = vunpack.c.l.bf16 %v6541_v31  ;;  %v5183_v54 = vpack.c.bf16 %v5166_v32, %v5163_v18  ;;  %v5347_v44 = vrot.slane %v5331_v62, 2 }
 0x1a2   : > { %7528 = vmatprep.subr.bf16.mxu1 %v7861_v53  ;;  %v5157_v6 = vsel %vm412_vm0, %v5155_v30, %v5156_v34  ;;  %v5360_v30 = vrot.slane %v5126_v38, 2  ;;  %v5359_v9 = vrot.slane %v5335_v0, 2 }
 0x1a3   : > { %v5182_v50 = vpack.c.bf16 %v5160_v56, %v5157_v6  ;;  %v5169_v40 = vsel %vm412_vm0, %v5167_v17, %v5168_v5  ;;  %v5362_v57 = vrot.slane %v5336_v59, 2  ;;  %v6538_v59 = vld [vmem:[%s8778_s10 + $0x20] sm:$0xe] }
 0x1a4   : > { %7505 = vmatpush3.bf16.msra.mxu0 %v7860_v13  ;;  %v5332_v13 = vunpack.c.l.bf16 %v6537_v60  ;;  %v5361_v25 = vsel %vm716_vm1, %v5359_v9, %v5360_v30  ;;  %v7873_v60 = vld [vmem:[%s9764_s3 + $0x6a0] sm:$0xff]   ;;  %v5357_v9 = vrot.slane %v5124_v63, 2 }
 0x1a5   : > { %7529 = vmatpush3.bf16.msra.mxu1 %v7861_v53  ;;  %7506 = vmatprep.subr.bf16.mxu0 %v7862_v47  ;;  %v7869_v53 = vld [vmem:[%s9764_s3 + $0x6b0] sm:$0xff]  }
 0x1a6   : > { %7530 = vmatprep.subr.bf16.mxu1 %v7863_v3  ;;  %v5350_v45 = vrot.slane %v5332_v13, 2 }
 0x1a8   : > { %7507 = vmatpush3.bf16.msra.mxu0 %v7862_v47  ;;  %v5348_v47 = vrot.slane %v5118_v48, 2  ;;  %v7872_v48 = vld [vmem:[%s9764_s3 + $0x6a8] sm:$0xff]   ;;  %v5352_v42 = vsel %vm716_vm1, %v5350_v45, %v5351_v33 }
 0x1a9   : > { %7531 = vmatpush3.bf16.msra.mxu1 %v7863_v3  ;;  %7508 = vmatprep.subr.bf16.mxu0 %v7864_v19  ;;  %v5172_v3 = vsel %vm412_vm0, %v5170_v35, %v5171_v12 }
 0x1aa   : > { %7532 = vmatprep.subr.bf16.mxu1 %v7865_v14  ;;  %v5349_v1 = vsel %vm716_vm1, %v5347_v44, %v5348_v47  ;;  %v6543_v47 = vld [vmem:[%s8778_s10 + $0x48] sm:$0xe] }
 0x1ab   : > { %v7876_v44 = vld [vmem:[%s9764_s3 + $0x688] sm:$0xff]   ;;  %v5338_v30 = vunpack.c.l.bf16 %v6543_v47 }
 0x1ac   : > { %7509 = vmatpush3.bf16.msra.mxu0 %v7864_v19 }
 0x1ad   : > { %7533 = vmatpush3.bf16.msra.mxu1 %v7865_v14  ;;  %7542 = vmatprep.subr.bf16.mxu0 %v7868_v27  ;;  %v5184_v14 = vpack.c.bf16 %v5172_v3, %v5169_v40 }
 0x1ae   : > { %7566 = vmatprep.subr.bf16.mxu1 %v7868_v27 }
 0x1af   : > { %v7224_v10 = vpop.f32.mrf.mxu0  ;;  %7511 = vmatmul.mubr.bf16.vlgmr.msra.gmra.mxu0 %v7867_v43 }
 0x1b0   : > { %v2780_v34 = vadd.f32 %v7224_v10, %v9355_v49  ;;  %v7248_v19 = vpop.f32.mrf.mxu1  ;;  %7535 = vmatmul.mubr.bf16.vlgmr.msra.gmra.mxu1 %v5182_v50  ;;  %7543 = vmatpush3.bf16.msra.mxu0 %v7868_v27  ;;  %v5333_v10 = vunpack.c.l.bf16 %v6538_v59 }
 0x1b1   : > { %7574 = vmatpush3.bf16.msra.mxu1 %v7868_v27  ;;  %v2747_v21 = vpop.f32.mrf.mxu0  ;;  %7544 = vmatprep.subr.bf16.mxu0 %v7869_v53 }
 0x1b2   : > { %v9479_v36 = vadd.f32 %v7248_v19, %v2780_v34  ;;  %v2778_v49 = vadd.f32 %v2747_v21, %v9361_v4  ;;  %v2969_v38 = vpop.f32.mrf.mxu1  ;;  %7567 = vmatprep.subr.bf16.mxu1 %v7869_v53  ;;  %7514 = vmatprep.mubr.bf16.mxu0 %v7870_v52  ;;  %v5364_v4 = vsel %vm716_vm1, %v5362_v57, %v5363_v28  ;;  %v5354_v34 = vrot.slane %v5122_v16, 2  ;;  %v7877_v21 = vld [vmem:[%s9764_s3 + $0x680] sm:$0xff]  }
 0x1b3   : > { %v7225_v29 = vpop.f32.mrf.mxu0  ;;  %7538 = vmatprep.mubr.bf16.mxu1 %v5183_v54  ;;  %v5381_v31 = vpack.c.bf16 %v5364_v4, %v5361_v25  ;;  %v5366_v57 = vrot.slane %v5130_v23, 2  ;;  %v5369_v28 = vrot.slane %v5132_v2, 2 }
 0x1b4   : > { %v9485_v39 = vadd.f32 %v2969_v38, %v2778_v49  ;;  %v2781_v22 = vadd.f32 %v7225_v29, %v9369_v11  ;;  %v7249_v24 = vpop.f32.mrf.mxu1  ;;  %7545 = vmatpush3.bf16.msra.mxu0 %v7869_v53  ;;  %v5379_v11 = vpack.c.bf16 %v5352_v42, %v5349_v1  ;;  %v5368_v49 = vrot.slane %v5338_v30, 2 }
 0x1b5   : > { %7575 = vmatpush3.bf16.msra.mxu1 %v7869_v53  ;;  %v2750_v7 = vpop.f32.mrf.mxu0  ;;  %7546 = vmatprep.subr.bf16.mxu0 %v7872_v48  ;;  %v6539_v53 = vld [vmem:[%s8778_s10 + $0x28] sm:$0xe] }
 0x1b6   : > { %v9493_v6 = vadd.f32 %v7249_v24, %v2781_v22  ;;  %v2779_v56 = vadd.f32 %v2750_v7, %v9376_v41  ;;  %v2972_v27 = vpop.f32.mrf.mxu1  ;;  %7568 = vmatprep.subr.bf16.mxu1 %v7872_v48  ;;  %v7874_v41 = vld [vmem:[%s9764_s3 + $0x698] sm:$0xff]   ;;  %v5334_v3 = vunpack.c.l.bf16 %v6539_v53  ;;  %v5370_v63 = vsel %vm716_vm1, %v5368_v49, %v5369_v28 }
 0x1b7   : > { %v7228_v61 = vpop.f32.mrf.mxu0  ;;  %7515 = vmatmul.mubr.bf16.gmra.mxu0 %v7871_v58 }
 0x1b8   : > { %v9496_v18 = vadd.f32 %v2972_v27, %v2779_v56  ;;  %v2784_v32 = vadd.f32 %v7228_v61, %v9383_v37  ;;  %7547 = vmatpush3.bf16.msra.mxu0 %v7872_v48  ;;  %v7252_v17 = vpop.f32.mrf.mxu1  ;;  %7539 = vmatmul.mubr.bf16.gmra.mxu1 %v5184_v14  ;;  %v5356_v19 = vrot.slane %v5334_v3, 2 }
 0x1b9   : > { %7576 = vmatpush3.bf16.msra.mxu1 %v7872_v48  ;;  %v2763_v5 = vpop.f32.mrf.mxu0  ;;  %7548 = vmatprep.subr.bf16.mxu0 %v7873_v60 }
 0x1ba   : > { %v2782_v43 = vadd.f32 %v2763_v5, %v9389_v55  ;;  %v9503_v35 = vadd.f32 %v7252_v17, %v2784_v32  ;;  %v2985_v12 = vpop.f32.mrf.mxu1  ;;  %7569 = vmatprep.subr.bf16.mxu1 %v7873_v60  ;;  %7558 = vmatprep.mubr.bf16.mxu0 %v5379_v11  ;;  %v7875_v55 = vld [vmem:[%s9764_s3 + $0x690] sm:$0xff]   ;;  %v5358_v51 = vsel %vm716_vm1, %v5356_v19, %v5357_v9 }
 0x1bb   : > { %v7229_v37 = vpop.f32.mrf.mxu0  ;;  %7562 = vmatprep.mubr.bf16.mxu1 %v5381_v31 }
 0x1bc   : > { %v2785_v62 = vadd.f32 %v7229_v37, %v9399_v20  ;;  %v9506_v13 = vadd.f32 %v2985_v12, %v2782_v43  ;;  %7549 = vmatpush3.bf16.msra.mxu0 %v7873_v60  ;;  %v7253_v50 = vpop.f32.mrf.mxu1  ;;  %v6542_v20 = vld [vmem:[%s8778_s10 + $0x40] sm:$0xe] }
 0x1bd   : > { %7577 = vmatpush3.bf16.msra.mxu1 %v7873_v60  ;;  %v2766_v0 = vpop.f32.mrf.mxu0  ;;  %7550 = vmatprep.subr.bf16.mxu0 %v7874_v41  ;;  %v5337_v45 = vunpack.c.l.bf16 %v6542_v20 }
 0x1be   : > { %v2783_v52 = vadd.f32 %v2766_v0, %v9414_v8  ;;  %v9514_v54 = vadd.f32 %v7253_v50, %v2785_v62  ;;  %v2988_v40 = vpop.f32.mrf.mxu1  ;;  %7570 = vmatprep.subr.bf16.mxu1 %v7874_v41  ;;  %v5353_v8 = vrot.slane %v5333_v10, 2 }
 0x1bf   : > { %v5365_v48 = vrot.slane %v5337_v45, 2 }
 0x1c0   : > { %v9518_v33 = vadd.f32 %v2988_v40, %v2783_v52  ;;  %7551 = vmatpush3.bf16.msra.mxu0 %v7874_v41  ;;  %v5355_v15 = vsel %vm716_vm1, %v5353_v8, %v5354_v34 }
 0x1c1   : > { %7578 = vmatpush3.bf16.msra.mxu1 %v7874_v41  ;;  %7552 = vmatprep.subr.bf16.mxu0 %v7875_v55  ;;  %v5367_v16 = vsel %vm716_vm1, %v5365_v48, %v5366_v57  ;;  %v5380_v26 = vpack.c.bf16 %v5358_v51, %v5355_v15 }
 0x1c2   : > { %7571 = vmatprep.subr.bf16.mxu1 %v7875_v55  ;;  %v5382_v46 = vpack.c.bf16 %v5370_v63, %v5367_v16 }
 0x1c4   : > { %7553 = vmatpush3.bf16.msra.mxu0 %v7875_v55 }
 0x1c5   : > { %7579 = vmatpush3.bf16.msra.mxu1 %v7875_v55  ;;  %7554 = vmatprep.subr.bf16.mxu0 %v7876_v44 }
 0x1c6   : > { %7572 = vmatprep.subr.bf16.mxu1 %v7876_v44 }
 0x1c8   : > { %7555 = vmatpush3.bf16.msra.mxu0 %v7876_v44 }
 0x1c9   : > { %7580 = vmatpush3.bf16.msra.mxu1 %v7876_v44  ;;  %7556 = vmatprep.subr.bf16.mxu0 %v7877_v21 }
 0x1ca   : > { %7573 = vmatprep.subr.bf16.mxu1 %v7877_v21 }
 0x1cc   : > { %7557 = vmatpush3.bf16.msra.mxu0 %v7877_v21 }
 0x1cd   : > { %7581 = vmatpush3.bf16.msra.mxu1 %v7877_v21 }
 0x1cf   : > { %v7272_v23 = vpop.f32.mrf.mxu0  ;;  %7559 = vmatmul.mubr.bf16.vlgmr.msra.gmra.mxu0 %v5380_v26 }
 0x1d0   : > { %v3200_v2 = vadd.f32 %v7272_v23, %v9479_v36  ;;  %v7296_v38 = vpop.f32.mrf.mxu1  ;;  %7563 = vmatmul.mubr.bf16.vlgmr.msra.gmra.mxu1 %v5382_v46 }
 0x1d1   : > { %v3167_v29 = vpop.f32.mrf.mxu0 }
 0x1d2   : > { %v3359_v58 = vadd.f32 %v7296_v38, %v3200_v2  ;;  %v3198_v14 = vadd.f32 %v3167_v29, %v9485_v39  ;;  %v3326_v1 = vpop.f32.mrf.mxu1 }
 0x1d3   : > { %v7273_v42 = vpop.f32.mrf.mxu0 }
 0x1d4   : > { %v3357_v22 = vadd.f32 %v3326_v1, %v3198_v14  ;;  %v3201_v24 = vadd.f32 %v7273_v42, %v9493_v6  ;;  %v7297_v25 = vpop.f32.mrf.mxu1 }
 0x1d5   : > { %v3170_v4 = vpop.f32.mrf.mxu0 }
 0x1d6   : > { %v9541_v7 = vadd.f32 %v7297_v25, %v3201_v24  ;;  %v3199_v60 = vadd.f32 %v3170_v4, %v9496_v18  ;;  %v3329_v56 = vpop.f32.mrf.mxu1 }
 0x1d7   : > { %v7276_v27 = vpop.f32.mrf.mxu0 }
 0x1d8   : > { %v9544_v36 = vadd.f32 %v3329_v56, %v3199_v60  ;;  %v3204_v11 = vadd.f32 %v7276_v27, %v9503_v35  ;;  %v7300_v61 = vpop.f32.mrf.mxu1 }
 0x1d9   : > { %v3183_v31 = vpop.f32.mrf.mxu0 }
 0x1da   : > { %v3202_v39 = vadd.f32 %v3183_v31, %v9506_v13  ;;  %v9548_v32 = vadd.f32 %v7300_v61, %v3204_v11  ;;  %v3342_v17 = vpop.f32.mrf.mxu1 }
 0x1db   : > { %v7277_v6 = vpop.f32.mrf.mxu0 }
 0x1dc   : > { %v3205_v5 = vadd.f32 %v7277_v6, %v9514_v54  ;;  %v9551_v41 = vadd.f32 %v3342_v17, %v3202_v39  ;;  %v7301_v43 = vpop.f32.mrf.mxu1 }
 0x1dd   : > { %v3186_v18 = vpop.f32.mrf.mxu0 }
 0x1de   : > { %v3203_v12 = vadd.f32 %v3186_v18, %v9518_v33  ;;  %v9554_v37 = vadd.f32 %v7301_v43, %v3205_v5  ;;  %v3345_v62 = vpop.f32.mrf.mxu1 }
 0x1e0   : > { %v9556_v35 = vadd.f32 %v3345_v62, %v3203_v12 }
 0x1ef   : > { %v7320_v50 = vpop.f32.mrf.mxu0 }
 0x1f0   : > { %v3581_v0 = vadd.f32 %v7320_v50, %v3359_v58  ;;  %v7344_v13 = vpop.f32.mrf.mxu1 }
 0x1f1   : > { %v3548_v55 = vpop.f32.mrf.mxu0 }
 0x1f2   : > { %v9558_v59 = vadd.f32 %v7344_v13, %v3581_v0  ;;  %v3579_v53 = vadd.f32 %v3548_v55, %v3357_v22  ;;  %v3746_v52 = vpop.f32.mrf.mxu1 }
 0x1f3   : > { %v9562_v40 = vpop.f32.mrf.mxu0 }
 0x1f4   : > { %v9560_v54 = vadd.f32 %v3746_v52, %v3579_v53  ;;  %v9566_v33 = vpop.f32.mrf.mxu1 }
 0x1f5   : > { %v9564_v20 = vpop.f32.mrf.mxu0 }
 0x1f6   : > { %v9568_v3 = vpop.f32.mrf.mxu1 }
 0x1f7   : > { %v7324_v47 = vpop.f32.mrf.mxu0 }
 0x1f8   : > { %v7348_v45 = vpop.f32.mrf.mxu1 }
 0x1f9   : > { %v3564_v10 = vpop.f32.mrf.mxu0 }
 0x1fa   : > { %v3762_v8 = vpop.f32.mrf.mxu1 }
 0x1fb   : > { %v7325_v44 = vpop.f32.mrf.mxu0 }
 0x1fc   : > { %v9572_v19 = vpop.f32.mrf.mxu1 }
 0x1fd   : > { %v9570_v30 = vpop.f32.mrf.mxu0 }
 0x1fe   : > { %v9576_v57 = vpop.f32.mrf.mxu1 }
 0x20f   : > { %v7368_v34 = vpop.f32.mrf.mxu0 }
 0x210   : > { %v9580_v21 = vpop.f32.mrf.mxu1 }
 0x211   : > { %v9574_v9 = vpop.f32.mrf.mxu0 }
 0x212   : > { %v9584_v49 = vpop.f32.mrf.mxu1 }
 0x213   : > { %v9578_v28 = vpop.f32.mrf.mxu0 }
 0x214   : > { %v9586_v51 = vpop.f32.mrf.mxu1 }
 0x215   : > { %v9582_v48 = vpop.f32.mrf.mxu0 }
 0x216   : > { %v9588_v63 = vpop.f32.mrf.mxu1 }
 0x217   : > { %v7372_v15 = vpop.f32.mrf.mxu0 }
 0x218   : > { %v7396_v26 = vpop.f32.mrf.mxu1 }
 0x219   : > { %v3920_v16 = vpop.f32.mrf.mxu0 }
 0x21a   : > { %v9590_v23 = vpop.f32.mrf.mxu1 }
 0x21b   : > { %v7373_v46 = vpop.f32.mrf.mxu0 }
 0x21c   : > { %v9596_v29 = vpop.f32.mrf.mxu1 }
 0x21d   : > { %v9592_v2 = vpop.f32.mrf.mxu0 }
 0x21e   : > { %v9600_v14 = vpop.f32.mrf.mxu1 }
 0x22f   : > { %v9594_v38 = vpop.f32.mrf.mxu0 }
 0x230   : > { %v9602_v1 = vpop.f32.mrf.mxu1 }
 0x231   : > { %v9598_v58 = vpop.f32.mrf.mxu0 }
 0x232   : > { %v9606_v22 = vpop.f32.mrf.mxu1 }
 0x233   : > { %v9604_v42 = vpop.f32.mrf.mxu0 }
 0x234   : > { %v9610_v25 = vpop.f32.mrf.mxu1 }
 0x235   : > { %v9608_v24 = vpop.f32.mrf.mxu0 }
 0x236   : > { %v9612_v60 = vpop.f32.mrf.mxu1 }
 0x237   : > { %v7420_v4 = vpop.f32.mrf.mxu0  ;;  %9769 = vst [vmem:[#allocation2_spill] sm:$0xff] %v9612_v60 }
 0x238   : > { %v9614_v27 = vpop.f32.mrf.mxu1 }
 0x239   : > { %v4340_v56 = vpop.f32.mrf.mxu0 }
 0x23a   : > { %v9618_v61 = vpop.f32.mrf.mxu1 }
 0x23b   : > { %v9616_v11 = vpop.f32.mrf.mxu0 }
 0x23c   : > { %v9622_v39 = vpop.f32.mrf.mxu1 }
 0x23d   : > { %v9620_v31 = vpop.f32.mrf.mxu0 }
 0x23e   : > { %v9626_v6 = vpop.f32.mrf.mxu1 }
 0x23f   : > { %9770 = vst [vmem:[#allocation3_spill] sm:$0xff] %v9626_v6 }
 0x24f   : > { %v9624_v17 = vpop.f32.mrf.mxu0 }
 0x250   : > { %v9630_v43 = vpop.f32.mrf.mxu1 }
 0x251   : > { %v9628_v5 = vpop.f32.mrf.mxu0  ;;  %9771 = vst [vmem:[#allocation4_spill] sm:$0xff] %v9630_v43 }
 0x252   : > { %v9634_v12 = vpop.f32.mrf.mxu1 }
 0x253   : > { %v9632_v18 = vpop.f32.mrf.mxu0  ;;  %9773 = vst [vmem:[#allocation6_spill] sm:$0xff] %v9634_v12 }
 0x254   : > { %9772 = vst [vmem:[#allocation5_spill] sm:$0xff] %v9632_v18  ;;  %v9638_v50 = vpop.f32.mrf.mxu1 }
 0x255   : > { %v9636_v62 = vpop.f32.mrf.mxu0  ;;  %9775 = vst [vmem:[#allocation8_spill] sm:$0xff] %v9638_v50  ;;  %v3585_v50 = vadd.f32 %v7324_v47, %v9548_v32  ;;  %v3584_v47 = vadd.f32 %v9570_v30, %v9556_v35 }
 0x256   : > { %9774 = vst [vmem:[#allocation7_spill] sm:$0xff] %v9636_v62  ;;  %v9640_v13 = vpop.f32.mrf.mxu1 }
 0x257   : > { %v7468_v0 = vpop.f32.mrf.mxu0  ;;  %9776 = vst [vmem:[#allocation9_spill] sm:$0xff] %v9640_v13  ;;  %v3583_v13 = vadd.f32 %v3564_v10, %v9551_v41  ;;  %v3782_v35 = vadd.f32 %v9576_v57, %v3584_v47 }
 0x258   : > { %v9642_v55 = vpop.f32.mrf.mxu1 }
 0x259   : > { %9777 = vst [vmem:[#allocation10_spill] sm:$0xff] %v9642_v55  ;;  %v9644_v53 = vpop.f32.mrf.mxu0  ;;  %v3781_v32 = vadd.f32 %v3762_v8, %v3583_v13 }
 0x25a   : > { %v9646_v52 = vpop.f32.mrf.mxu1 }
 0x25b   : > { %9778 = vst [vmem:[#allocation11_spill] sm:$0xff] %v9646_v52  ;;  %v9648_v6 = vpop.f32.mrf.mxu0  ;;  %v3582_v52 = vadd.f32 %v9562_v40, %v9541_v7  ;;  %v3935_v7 = vadd.f32 %v9574_v9, %v9560_v54  ;;  %v3939_v40 = vadd.f32 %v3920_v16, %v3781_v32 }
 0x25c   : > { %9779 = vst [vmem:[#allocation12_spill] sm:$0xff] %v9648_v6  ;;  %v9650_v43 = vpop.f32.mrf.mxu1  ;;  %v3783_v6 = vadd.f32 %v7348_v45, %v3585_v50 }
 0x25d   : > { %9780 = vst [vmem:[#allocation13_spill] sm:$0xff] %v9650_v43  ;;  %v9652_v18 = vpop.f32.mrf.mxu0  ;;  %v3586_v43 = vadd.f32 %v7325_v44, %v9554_v37  ;;  %v9792_v32 = vld [vmem:[#allocation7_spill] sm:$0xff] }
 0x25e   : > { %9781 = vst [vmem:[#allocation14_spill] sm:$0xff] %v9652_v18  ;;  %v9656_v62 = vpop.f32.mrf.mxu1  ;;  %v3580_v18 = vadd.f32 %v9564_v20, %v9544_v36  ;;  %v3941_v41 = vadd.f32 %v7372_v15, %v3783_v6 }
 0x25f   : > { %9783 = vst [vmem:[#allocation16_spill] sm:$0xff] %v9656_v62  ;;  %v3784_v37 = vadd.f32 %v9572_v19, %v3586_v43  ;;  %v4161_v19 = vadd.f32 %v9590_v23, %v3939_v40 }
 0x260   : > { %v3778_v36 = vadd.f32 %v9568_v3, %v3580_v18  ;;  %v4163_v45 = vadd.f32 %v7396_v26, %v3941_v41  ;;  %v3940_v3 = vadd.f32 %v9592_v2, %v3782_v35  ;;  %v9789_v50 = vld [vmem:[#allocation10_spill] sm:$0xff]  ;;  %v9796_v35 = vld [vmem:[#allocation8_spill] sm:$0xff] }
 0x261   : > { %v3942_v30 = vadd.f32 %v7373_v46, %v3784_v37  ;;  %v4359_v16 = vadd.f32 %v4340_v56, %v4161_v19 }
 0x262   : > { %v3936_v54 = vadd.f32 %v9582_v48, %v3778_v36  ;;  %v4361_v9 = vadd.f32 %v7420_v4, %v4163_v45  ;;  %v4162_v2 = vadd.f32 %v9600_v14, %v3940_v3  ;;  %v9794_v37 = vld [vmem:[#allocation11_spill] sm:$0xff]  ;;  %v9798_v3 = vld [vmem:[#allocation9_spill] sm:$0xff] }
 0x263   : > { %v4164_v57 = vadd.f32 %v9596_v29, %v3942_v30 }
 0x265   : > { %v9795_v36 = vld [vmem:[#allocation14_spill] sm:$0xff] }
 0x26f   : > { %v9654_v12 = vpop.f32.mrf.mxu0 }
 0x270   : > { %9782 = vst [vmem:[#allocation15_spill] sm:$0xff] %v9654_v12  ;;  %v9659_v60 = vpop.f32.mrf.mxu1  ;;  %v3937_v12 = vadd.f32 %v7368_v34, %v9558_v59 }
 0x271   : > { %9784 = vst [vmem:[#allocation17_spill] sm:$0xff] %v9659_v60  ;;  %v9662_v55 = vpop.f32.mrf.mxu0  ;;  %v3780_v60 = vadd.f32 %v9566_v33, %v3582_v52  ;;  %v4157_v33 = vadd.f32 %v9584_v49, %v3935_v7  ;;  %v4158_v49 = vadd.f32 %v9588_v63, %v3936_v54  ;;  %v4518_v63 = vadd.f32 %v9618_v61, %v4359_v16  ;;  %v9791_v52 = vld [vmem:[#allocation6_spill] sm:$0xff] }
 0x272   : > { %v9670_v62 = vpop.f32.mrf.mxu1  ;;  %v4159_v59 = vadd.f32 %v9580_v21, %v3937_v12 }
 0x273   : > { %v9674_v10 = vpop.f32.mrf.mxu0  ;;  %v3938_v20 = vadd.f32 %v9578_v28, %v3780_v60  ;;  %v4355_v21 = vadd.f32 %v9598_v58, %v4157_v33  ;;  %v4356_v29 = vadd.f32 %v9608_v24, %v4158_v49  ;;  %v4740_v6 = vadd.f32 %v9644_v53, %v4518_v63  ;;  %v9786_v24 = vld [vmem:[#allocation4_spill] sm:$0xff]  ;;  %v9797_v33 = vld [vmem:[#allocation13_spill] sm:$0xff]  ;;  %v6568_v63 = vld [vmem:[%s9765_s4] ss:$0 sm:$0xff] }
 0x274   : > { %v9683_v44 = vpop.f32.mrf.mxu1  ;;  %v4357_v34 = vadd.f32 %v9594_v38, %v4159_v59  ;;  %v4520_v38 = vadd.f32 %v9614_v27, %v4361_v9 }
 0x275   : > { %v5065_v8 = vpop.f32.mrf.mxu0  ;;  %v4160_v28 = vadd.f32 %v9586_v51, %v3938_v20  ;;  %v4362_v51 = vadd.f32 %v9616_v11, %v4164_v57  ;;  %v4514_v58 = vadd.f32 %v9606_v22, %v4355_v21  ;;  %v9785_v22 = vld [vmem:[#allocation2_spill] sm:$0xff]  ;;  %v4938_v40 = vadd.f32 %v9794_v37, %v4740_v6 }
 0x276   : > { %v9693_v15 = vpop.f32.mrf.mxu1  ;;  %v4516_v48 = vadd.f32 %v9602_v1, %v4357_v34  ;;  %v4360_v1 = vadd.f32 %v9620_v31, %v4162_v2  ;;  %v4742_v60 = vadd.f32 %v7468_v0, %v4520_v38  ;;  %v4515_v43 = vadd.f32 %v9785_v22, %v4356_v29  ;;  %v9788_v31 = vld [vmem:[#allocation3_spill] sm:$0xff]  ;;  %v9790_v0 = vld [vmem:[#allocation12_spill] sm:$0xff] }
 0x277   : > { %v7516_v26 = vpop.f32.mrf.mxu0  ;;  %v4358_v46 = vadd.f32 %v9604_v42, %v4160_v28  ;;  %v4736_v14 = vadd.f32 %v9628_v5, %v4514_v58  ;;  %v4521_v11 = vadd.f32 %v9622_v39, %v4362_v51  ;;  %v9793_v47 = vld [vmem:[#allocation15_spill] sm:$0xff] }
 0x278   : > { %v7540_v23 = vpop.f32.mrf.mxu1  ;;  %v4738_v4 = vadd.f32 %v9624_v17, %v4516_v48  ;;  %v9787_v17 = vld [vmem:[#allocation5_spill] sm:$0xff]  ;;  %v4519_v12 = vadd.f32 %v9788_v31, %v4360_v1  ;;  %v4737_v53 = vadd.f32 %v9792_v32, %v4515_v43 }
 0x279   : > { %v5078_v42 = vpop.f32.mrf.mxu0  ;;  %v4517_v56 = vadd.f32 %v9610_v25, %v4358_v46  ;;  %v4940_v25 = vadd.f32 %v9789_v50, %v4742_v60  ;;  %v4743_v5 = vadd.f32 %v9790_v0, %v4521_v11  ;;  %v4934_v39 = vadd.f32 %v9791_v52, %v4736_v14  ;;  %v9799_v28 = vld [vmem:[#allocation17_spill] sm:$0xff] }
 0x27a   : > { %v5300_v27 = vpop.f32.mrf.mxu1  ;;  %v4936_v18 = vadd.f32 %v9786_v24, %v4738_v4  ;;  %v4741_v59 = vadd.f32 %v9795_v36, %v4519_v12  ;;  %v5097_v34 = vadd.f32 %v5078_v42, %v4938_v40  ;;  %v4935_v9 = vadd.f32 %v9798_v3, %v4737_v53 }
 0x27b   : > { %v4739_v61 = vadd.f32 %v9787_v17, %v4517_v56  ;;  %v7517_v13 = vpop.f32.mrf.mxu0  ;;  %v5099_v20 = vadd.f32 %v7516_v26, %v4940_v25  ;;  %v5093_v30 = vadd.f32 %v9662_v55, %v4934_v39  ;;  %v4941_v54 = vadd.f32 %v9797_v33, %v4743_v5  ;;  %v9800_v26 = vld [vmem:[#allocation16_spill] sm:$0xff] }
 0x27c   : > { %v5095_v41 = vadd.f32 %v9793_v47, %v4936_v18  ;;  %v7541_v7 = vpop.f32.mrf.mxu1  ;;  %v4939_v49 = vadd.f32 %v9800_v26, %v4741_v59  ;;  %v5094_v38 = vadd.f32 %v5065_v8, %v4935_v9  ;;  %v5319_v29 = vadd.f32 %v5300_v27, %v5097_v34 }
 0x27d   : > { %v4937_v45 = vadd.f32 %v9796_v35, %v4739_v61  ;;  %v5081_v19 = vpop.f32.mrf.mxu0  ;;  %v5321_v48 = vadd.f32 %v7540_v23, %v5099_v20  ;;  %v5100_v55 = vadd.f32 %v7517_v13, %v4941_v54  ;;  %v5315_v2 = vadd.f32 %v9670_v62, %v5093_v30 }
 0x27e   : > { %v5317_v21 = vadd.f32 %v9799_v28, %v5095_v41  ;;  %v5303_v16 = vpop.f32.mrf.mxu1  ;;  %v5098_v4 = vadd.f32 %v5081_v19, %v4939_v49  ;;  %v5316_v8 = vadd.f32 %v9693_v15, %v5094_v38 }
 0x27f   : > { %v5096_v57 = vadd.f32 %v9674_v10, %v4937_v45  ;;  %v5322_v56 = vadd.f32 %v7541_v7, %v5100_v55 }
 0x280   : > { %v5320_v22 = vadd.f32 %v5303_v16, %v5098_v4 }
 0x281   : > { %v5318_v60 = vadd.f32 %v9683_v44, %v5096_v57 }
 0x28f   : > { %v7560_v46 = vpop.f32.mrf.mxu0 }
 0x290   : > { %v5515_v51 = vadd.f32 %v7560_v46, %v5317_v21  ;;  %v7564_v58 = vpop.f32.mrf.mxu1 }
 0x291   : > { %v5519_v10 = vadd.f32 %v7564_v58, %v5321_v48  ;;  %v5482_v1 = vpop.f32.mrf.mxu0 }
 0x292   : > { %v5513_v23 = vadd.f32 %v5482_v1, %v5315_v2  ;;  %v5498_v42 = vpop.f32.mrf.mxu1  ;;  %v5530_v11 = vadd.f32 %v6568_v63, %v5515_v51 }
 0x293   : > { %v5517_v14 = vadd.f32 %v5498_v42, %v5319_v29  ;;  %v7561_v62 = vpop.f32.mrf.mxu0  ;;  %v5534_v43 = vadd.f32 %v6568_v63, %v5519_v10 }
 0x294   : > { %v5516_v6 = vadd.f32 %v7561_v62, %v5318_v60  ;;  %v7565_v27 = vpop.f32.mrf.mxu1  ;;  %v5528_v17 = vadd.f32 %v6568_v63, %v5513_v23  ;;  %v5538_v0 = vmax.f32 %v5530_v11, 0.0 }
 0x295   : > { %v5520_v24 = vadd.f32 %v7565_v27, %v5322_v56  ;;  %v5485_v18 = vpop.f32.mrf.mxu0  ;;  %v5532_v12 = vadd.f32 %v6568_v63, %v5517_v14  ;;  %v5542_v52 = vmax.f32 %v5534_v43, 0.0 }
 0x296   : > { %v5531_v61 = vadd.f32 %v6568_v63, %v5516_v6  ;;  %v5514_v31 = vadd.f32 %v5485_v18, %v5316_v8  ;;  %v5501_v44 = vpop.f32.mrf.mxu1  ;;  %v5536_v32 = vmax.f32 %v5528_v17, 0.0 }
 0x297   : > { %v5535_v50 = vadd.f32 %v6568_v63, %v5520_v24  ;;  %v5518_v25 = vadd.f32 %v5501_v44, %v5320_v22  ;;  %v5540_v41 = vmax.f32 %v5532_v12, 0.0 }
 0x298   : > { %v5539_v5 = vmax.f32 %v5531_v61, 0.0  ;;  %v5529_v13 = vadd.f32 %v6568_v63, %v5514_v31 }
 0x299   : > { %v5543_v15 = vmax.f32 %v5535_v50, 0.0  ;;  %v5533_v39 = vadd.f32 %v6568_v63, %v5518_v25 }
 0x29a   : > { %v6579_v53 = vpack.c.bf16 %v5539_v5, %v5538_v0  ;;  %v5537_v47 = vmax.f32 %v5529_v13, 0.0 }
 0x29b   : > { %v6589_v7 = vpack.c.bf16 %v5543_v15, %v5542_v52  ;;  %v5541_v37 = vmax.f32 %v5533_v39, 0.0 }
 0x29c   : > { %6591 = vst [vmem:[%s342_s26 + $0x8] sm:$0xff] %v6579_v53   ;;  %v6574_v40 = vpack.c.bf16 %v5537_v47, %v5536_v32 }
 0x29d   : > { %6593 = vst [vmem:[%s342_s26 + $0x18] sm:$0xff] %v6589_v7   ;;  %v6584_v36 = vpack.c.bf16 %v5541_v37, %v5540_v41 }
 0x29e   : > { %6575 = vst [vmem:[%s342_s26] sm:$0xff] %v6574_v40  }
 0x29f   : > { %6592 = vst [vmem:[%s342_s26 + $0x10] sm:$0xff] %v6584_v36  }
 0x2a0 PF: > { %s15_s22 = sadd.s32 1, %s7916_s22   ;;  %s9801_s18 = smov %s7908_s20 }
 0x2a1   : > { %p12_p10 = scmp.ge.s32.totalorder %s15_s22, 18   ;;  %s9802_s19 = smov %s7912_s21 }
 0x2a2   : > { %s9803_s20 = smov %s9806_s23  ;;  %s9804_s21 = smov %s9810_s24 }
 0x2a3   :  { %14 = sbr.rel (!%p12_p10) target bundleno = 3 (0x3), region = 108 }

// kernel: basic_block_forward.3
= control target key start
LH: loop header
LB: loop body
LE: loop exit
PB: predicated region body
PF: predicated region fallthrough
CT: control target
= control target key end

     0   :  { %s8081_s21 = smov 0   ;;  %s8083_s22 = smov 0   ;;  %s9911_s0 = inlined_call_operand.vmem [shape: bf16[2,10,10,10,128], index: 0, kind: input, shape index: {}, may-alias: {0,1,2}]   ;;  %s9912_s1 = inlined_call_operand.vmem [shape: bf16[2,10,10,10,128], index: 1, kind: input, shape index: {}, may-alias: {0,1,2}]   ;;  %s9913_s2 = inlined_call_operand.vmem [shape: bf16[2,10,10,10,128], index: 2, kind: input, shape index: {}, may-alias: {0,1,2}]   ;;  %s9914_s3 = inlined_call_operand.vmem [shape: bf16[27,128,128], index: 3, kind: input, shape index: {}]   ;;  %s9915_s4 = inlined_call_operand.vmem [shape: f32[1,128], index: 4, kind: input, shape index: {}]   ;;  %s9916_s5 = inlined_call_operand.vmem [shape: bf16[2,8,8,8,128], index: 5, kind: input, shape index: {}]   ;;  %s9917_s6 = inlined_call_operand.vmem [shape: bf16[2,8,8,8,128], index: 6, kind: output, shape index: {}]  }
   0x1   :  { %s8085_s23 = smov 0   ;;  %s8087_s24 = smov 0  }
   0x2   :  { %s8089_s25 = smov 0  }
   0x3 LB: > { %s25_s26 = sadd.s32 1, %s8036_s23  ;;  %s28_s27 = sadd.s32 1, %s8040_s24  ;;  %s8044_s25 = sphi %s8089_s25, %s16_s25   ;;  %s8040_s24 = sphi %s8087_s24, %s9953_s24   ;;  %s8036_s23 = sphi %s8085_s23, %s9952_s23   ;;  %s8032_s22 = sphi %s8083_s22, %s9951_s22   ;;  %s8028_s21 = sphi %s8081_s21, %s9950_s21  }
   0x4   : > { %p26_p0 = scmp.ge.s32.totalorder %s25_s26, 8  ;;  %p5807_p1 = scmp.ge.s32.totalorder %s8044_s25, 1 }
   0x5   : > { %p288_p2 = scmp.lt.s32.totalorder %s8044_s25, 17 }
   0x6   : > { %s9955_s26 = smov (%p26_p0, %s25_s26), 0  ;;  %s9957_s27 = smov (!%p26_p0, %s28_s27), %s8040_s24 }
   0x7   : > { %p289_p3 = pnand %p5807_p1, %p288_p2  ;;  %p30_p4 = scmp.ge.s32.totalorder %s9957_s27, 2 }
   0x9   : > { %s9959_s27 = smov (%p30_p4, %s9957_s27), 0  ;;  %292 = sbr.rel (%p289_p3) target bundleno = 674 (0x2a2), region = 44 }
   0xe   : > { %v7754_v0 = vld [vmem:[%s9914_s3 + $0x78] sm:$0xff]   ;;  %p355_p5 = scmp.lt.s32.totalorder %s8032_s22, 1  ;;  %p357_p6 = scmp.lt.s32.totalorder %s8028_s21, 9  ;;  %v7756_v2 = vld [vmem:[%s9914_s3 + $0x70] sm:$0xff]   ;;  %v7758_v4 = vld [vmem:[%s9914_s3 + $0x68] sm:$0xff]   ;;  %vm473_vm0 = vcmask 1046528  }
   0xf   : > { %v7755_v1 = vld [vmem:[%s9914_s3 + $0x38] sm:$0xff]   ;;  %7046 = vmatprep.subr.bf16.mxu0 %v7754_v0  ;;  %v7757_v3 = vld [vmem:[%s9914_s3 + $0x30] sm:$0xff]   ;;  %v7759_v5 = vld [vmem:[%s9914_s3 + $0x28] sm:$0xff]   ;;  %vm777_vm1 = vcmask 1045504   ;;  %s364_s28 = sadd.s32 1, %s8028_s21  ;;  %p388_p9 = scmp.lt.s32.totalorder %s8028_s21, 7 }
  0x10   : > { %s9961_s22 = smov (!%p355_p5, %s8032_s22), 1  ;;  %7070 = vmatprep.subr.bf16.mxu1 %v7755_v1  ;;  %7047 = vmatpush3.bf16.msra.mxu0 %v7754_v0  ;;  %v7760_v6 = vld [vmem:[%s9914_s3 + $0x60] sm:$0xff]   ;;  %v7762_v8 = vld [vmem:[%s9914_s3 + $0x58] sm:$0xff]   ;;  %v7764_v10 = vld [vmem:[%s9914_s3 + $0x50] sm:$0xff]   ;;  %p8431_p7 = scmp.lt.s32.totalorder %s364_s28, 9 }
  0x11   : > { %s358_s12 = scalar_select %p357_p6, %s8028_s21, 9  ;;  %7071 = vmatpush3.bf16.msra.mxu1 %v7755_v1  ;;  %7048 = vmatprep.subr.bf16.mxu0 %v7756_v2  ;;  %v7761_v7 = vld [vmem:[%s9914_s3 + $0x20] sm:$0xff]   ;;  %v7763_v9 = vld [vmem:[%s9914_s3 + $0x18] sm:$0xff]   ;;  %v7765_v11 = vld [vmem:[%s9914_s3 + $0x10] sm:$0xff]  }
  0x12   : > { %s8133_s15 = smul.u32 200, %s9961_s22  ;;  %7072 = vmatprep.subr.bf16.mxu1 %v7757_v3  ;;  %v7766_v30 = vld [vmem:[%s9914_s3 + $0x48] sm:$0xff]   ;;  %v7768_v42 = vld [vmem:[%s9914_s3 + $0x40] sm:$0xff]   ;;  %v7772_v46 = vld [vmem:[%s9914_s3 + $0xb8] sm:$0xff]   ;;  %s9963_s28 = smov (!%p8431_p7, %s364_s28), 9 }
  0x13   : > { %s7710_s18 = smul.u32 20, %s358_s12  ;;  %v7767_v34 = vld [vmem:[%s9914_s3 + $0x8] sm:$0xff]   ;;  %v7769_v43 = vld [vmem:[%s9914_s3] sm:$0xff]   ;;  %v7773_v47 = vld [vmem:[%s9914_s3 + $0xf8] sm:$0xff]  }
  0x14   : > { %7049 = vmatpush3.bf16.msra.mxu0 %v7756_v2  ;;  %v7774_v49 = vld [vmem:[%s9914_s3 + $0xb0] sm:$0xff]  }
  0x15   : > { %s361_s19 = sadd.s32 %s8133_s15, %s7710_s18  ;;  %7073 = vmatpush3.bf16.msra.mxu1 %v7757_v3  ;;  %7050 = vmatprep.subr.bf16.mxu0 %v7758_v4  ;;  %v7775_v2 = vld [vmem:[%s9914_s3 + $0xf0] sm:$0xff]   ;;  %s7712_s18 = smul.u32 20, %s9963_s28 }
  0x16   : > { %7074 = vmatprep.subr.bf16.mxu1 %v7759_v5  ;;  %s5808_s7 = sshll.u32 %s361_s19, 2  ;;  %s375_s19 = sadd.s32 2, %s8028_s21 }
  0x17   : > { %s8154_s14 = scalar_lea.vmem %s9911_s0, %s5808_s7  ;;  %s371_s8 = sadd.s32 %s7712_s18, %s8133_s15 }
  0x18   : > { %7051 = vmatpush3.bf16.msra.mxu0 %v7758_v4  ;;  %v405_v12 = vld [vmem:[%s8154_s14] sm:$0xf]  ;;  %v406_v13 = vld [vmem:[%s8154_s14 + $0x8] sm:$0xf]  ;;  %v8165_v16 = vld [vmem:[%s8154_s14 + $0x4] sm:$0x1] }
  0x19   : > { %7075 = vmatpush3.bf16.msra.mxu1 %v7759_v5  ;;  %7052 = vmatprep.subr.bf16.mxu0 %v7760_v6  ;;  %v413_v14 = vunpack.c.l.bf16 %v405_v12  ;;  %v414_v15 = vunpack.c.l.bf16 %v406_v13  ;;  %v8168_v17 = vld [vmem:[%s8154_s14 + $0xc] sm:$0x1]  ;;  %v5817_v18 = vcombine.low %v405_v12, %v406_v13  ;;  %v8171_v19 = vld [vmem:[%s8154_s14 + $0x10] sm:$0xf]  ;;  %v449_v20 = vunpack.c.l.bf16 %v8165_v16  ;;  %v8176_v22 = vld [vmem:[%s8154_s14 + $0x18] sm:$0xf] }
  0x1a   : > { %7076 = vmatprep.subr.bf16.mxu1 %v7761_v7  ;;  %v450_v21 = vunpack.c.l.bf16 %v8168_v17  ;;  %v415_v23 = vunpack.c.l.bf16 %v8171_v19  ;;  %v8180_v24 = vld [vmem:[%s8154_s14 + $0x14] sm:$0x1]  ;;  %v8183_v25 = vld [vmem:[%s8154_s14 + $0x1c] sm:$0x1]  ;;  %v416_v28 = vunpack.c.l.bf16 %v8176_v22  ;;  %v409_v50 = vld [vmem:[%s8154_s14 + $0x20] sm:$0xf]  ;;  %v5818_v53 = vcombine.low %v8171_v19, %v8176_v22 }
  0x1b   : > { %v474_v26 = vrot.slane %v413_v14, 1  ;;  %v477_v27 = vrot.slane %v414_v15, 1  ;;  %7086 = vmatprep.mubr.bf16.mxu1 %v5817_v18  ;;  %v451_v29 = vunpack.c.l.bf16 %v8180_v24  ;;  %v475_v31 = vrot.slane %v449_v20, 1  ;;  %v410_v51 = vld [vmem:[%s8154_s14 + $0x28] sm:$0xf]  ;;  %v7780_v17 = vld [vmem:[%s9914_s3 + $0x98] sm:$0xff]  }
  0x1c   : > { %7053 = vmatpush3.bf16.msra.mxu0 %v7760_v6  ;;  %v478_v32 = vrot.slane %v450_v21, 1  ;;  %v452_v33 = vunpack.c.l.bf16 %v8183_v25  ;;  %v480_v35 = vrot.slane %v415_v23, 1  ;;  %v483_v39 = vrot.slane %v416_v28, 1  ;;  %v8224_v52 = vld [vmem:[%s8154_s14 + $0x24] sm:$0x1]  ;;  %v7777_v14 = vld [vmem:[%s9914_s3 + $0xe8] sm:$0xff]  }
  0x1d   : > { %7077 = vmatpush3.bf16.msra.mxu1 %v7761_v7  ;;  %7054 = vmatprep.subr.bf16.mxu0 %v7762_v8  ;;  %v481_v36 = vrot.slane %v451_v29, 1  ;;  %v476_v37 = vsel %vm473_vm0, %v474_v26, %v475_v31  ;;  %v417_v54 = vunpack.c.l.bf16 %v409_v50  ;;  %v418_v55 = vunpack.c.l.bf16 %v410_v51  ;;  %v8229_v56 = vld [vmem:[%s8154_s14 + $0x2c] sm:$0x1]  ;;  %v411_v58 = vld [vmem:[%s8154_s14 + $0x30] sm:$0xf]  ;;  %s5809_s9 = sshll.u32 %s371_s8, 2 }
  0x1e   : > { %7078 = vmatprep.subr.bf16.mxu1 %v7763_v9  ;;  %v479_v38 = vsel %vm473_vm0, %v477_v27, %v478_v32  ;;  %v484_v40 = vrot.slane %v452_v33, 1  ;;  %v453_v57 = vunpack.c.l.bf16 %v8224_v52  ;;  %v412_v59 = vld [vmem:[%s8154_s14 + $0x38] sm:$0xf]  ;;  %v454_v60 = vunpack.c.l.bf16 %v8229_v56  ;;  %v8236_v0 = vld [vmem:[%s8154_s14 + $0x34] sm:$0x1]  ;;  %v7778_v32 = vld [vmem:[%s9914_s3 + $0xa0] sm:$0xff]   ;;  %s8493_s20 = scalar_lea.vmem %s9912_s1, %s5809_s9 }
  0x1f   : > { %v506_v41 = vpack.c.bf16 %v479_v38, %v476_v37  ;;  %v482_v44 = vsel %vm473_vm0, %v480_v35, %v481_v36  ;;  %v5819_v61 = vcombine.low %v409_v50, %v410_v51  ;;  %v419_v62 = vunpack.c.l.bf16 %v411_v58  ;;  %v8239_v1 = vld [vmem:[%s8154_s14 + $0x3c] sm:$0x1]  ;;  %v753_v28 = vld [vmem:[%s8154_s14] sm:$0xe]  ;;  %v7790_v38 = vld [vmem:[%s8154_s14 + $0x8] ss:$8 sps:$4 sm:$0xff]  }
  0x20   : > { %7055 = vmatpush3.bf16.msra.mxu0 %v7762_v8  ;;  %v485_v45 = vsel %vm473_vm0, %v483_v39, %v484_v40  ;;  %v420_v63 = vunpack.c.l.bf16 %v412_v59  ;;  %v486_v3 = vrot.slane %v417_v54, 1  ;;  %v487_v4 = vrot.slane %v453_v57, 1  ;;  %v7779_v37 = vld [vmem:[%s9914_s3 + $0xe0] sm:$0xff]   ;;  %v7781_v40 = vld [vmem:[%s9914_s3 + $0xd8] sm:$0xff]   ;;  %v7787_v51 = vld [vmem:[%s9914_s3 + $0xc8] sm:$0xff]   ;;  %p8830_p8 = scmp.lt.s32.totalorder %s375_s19, 9 }
  0x21   : > { %7079 = vmatpush3.bf16.msra.mxu1 %v7763_v9  ;;  %7056 = vmatprep.subr.bf16.mxu0 %v7764_v10  ;;  %v507_v48 = vpack.c.bf16 %v485_v45, %v482_v44  ;;  %v489_v5 = vrot.slane %v418_v55, 1  ;;  %v455_v6 = vunpack.c.l.bf16 %v8236_v0  ;;  %v490_v7 = vrot.slane %v454_v60, 1  ;;  %v755_v44 = vld [vmem:[%s8154_s14 + $0x10] sm:$0xe]  ;;  %v756_v45 = vld [vmem:[%s8154_s14 + $0x18] sm:$0xe] }
  0x22   : > { %7080 = vmatprep.subr.bf16.mxu1 %v7765_v11  ;;  %7062 = vmatprep.mubr.bf16.mxu0 %v506_v41  ;;  %v456_v8 = vunpack.c.l.bf16 %v8239_v1  ;;  %v492_v9 = vrot.slane %v419_v62, 1  ;;  %v488_v12 = vsel %vm473_vm0, %v486_v3, %v487_v4  ;;  %v5820_v27 = vcombine.low %v411_v58, %v412_v59  ;;  %v759_v25 = vld [vmem:[%s8154_s14 + $0x30] sm:$0xe]  ;;  %v760_v59 = vld [vmem:[%s8154_s14 + $0x38] sm:$0xe]  ;;  %v7789_v52 = vld [vmem:[%s9914_s3 + $0xc0] sm:$0xff]  }
  0x23   : > { %v493_v13 = vrot.slane %v455_v6, 1  ;;  %v491_v15 = vsel %vm473_vm0, %v489_v5, %v490_v7  ;;  %v779_v31 = vrot.slane %v449_v20, 2  ;;  %v782_v36 = vrot.slane %v450_v21, 2  ;;  %v7792_v4 = vld [vmem:[%s9914_s3 + $0x138] sm:$0xff]   ;;  %v7794_v1 = vld [vmem:[%s9914_s3 + $0x130] sm:$0xff]   ;;  %s9965_s19 = smov (!%p8830_p8, %s375_s19), 9 }
  0x24   : > { %7057 = vmatpush3.bf16.msra.mxu0 %v7764_v10  ;;  %v495_v10 = vrot.slane %v420_v63, 1  ;;  %v496_v18 = vrot.slane %v456_v8, 1  ;;  %v508_v19 = vpack.c.bf16 %v491_v15, %v488_v12  ;;  %v788_v50 = vrot.slane %v452_v33, 2  ;;  %v7788_v33 = vld [vmem:[%s9914_s3 + $0x80] sm:$0xff]   ;;  %v7793_v7 = vld [vmem:[%s9914_s3 + $0x178] sm:$0xff]   ;;  %s7713_s16 = smul.u32 20, %s9965_s19 }
  0x25   : > { %7081 = vmatpush3.bf16.msra.mxu1 %v7765_v11  ;;  %7058 = vmatprep.subr.bf16.mxu0 %v7766_v30  ;;  %v7776_v11 = vld [vmem:[%s9914_s3 + $0xa8] sm:$0xff]   ;;  %v494_v22 = vsel %vm473_vm0, %v492_v9, %v493_v13  ;;  %v764_v54 = vunpack.c.l.bf16 %v756_v45  ;;  %v794_v58 = vrot.slane %v454_v60, 2  ;;  %v767_v56 = vunpack.c.l.bf16 %v759_v25  ;;  %v7791_v13 = vld [vmem:[%s8154_s14 + $0x18] ss:$8 sps:$4 sm:$0xff]   ;;  %s9967_s21 = smov (!%p388_p9, %s8028_s21), 7 }
  0x26   : > { %7082 = vmatprep.subr.bf16.mxu1 %v7767_v34  ;;  %v497_v23 = vsel %vm473_vm0, %v495_v10, %v496_v18  ;;  %v797_v5 = vrot.slane %v455_v6, 2  ;;  %v5913_v15 = vld [vmem:[%s8154_s14 + $0x8] ss:$8 sps:$4 sm:$0xff]   ;;  %v5914_v18 = vld [vmem:[%s8154_s14 + $0xc] sm:$0x1]  ;;  %s8883_s30 = sadd.s32 %s7713_s16, %s8133_s15  ;;  %s5811_s12 = sshll.u32 %s9967_s21, 3 }
  0x27   : > { %v509_v26 = vpack.c.bf16 %v497_v23, %v494_v22  ;;  %v787_v62 = vrot.slane %v764_v54, 2  ;;  %v796_v12 = vrot.slane %v767_v56, 2  ;;  %v1128_v22 = vunpack.c.l.bf16 %v5914_v18  ;;  %v7801_v54 = vld [vmem:[%s9914_s3 + $0x160] sm:$0xff]   ;;  %s5810_s15 = sshll.u32 %s8883_s30, 2 }
  0x28   : > { %7059 = vmatpush3.bf16.msra.mxu0 %v7766_v30  ;;  %v754_v30 = vld [vmem:[%s8154_s14 + $0x8] sm:$0xe]  ;;  %v1129_v23 = vunpack.c.h.bf16 %v5913_v15  ;;  %v5956_v25 = vld [vmem:[%s8154_s14 + $0x20] sm:$0xe]  ;;  %s8911_s17 = scalar_lea.vmem %s9913_s2, %s5810_s15 }
  0x29   : > { %7083 = vmatpush3.bf16.msra.mxu1 %v7767_v34  ;;  %7060 = vmatprep.subr.bf16.mxu0 %v7768_v42  ;;  %v761_v34 = vunpack.c.l.bf16 %v753_v28  ;;  %v762_v35 = vunpack.c.l.bf16 %v754_v30  ;;  %v789_v3 = vsel %vm777_vm1, %v787_v62, %v788_v50  ;;  %v5954_v28 = vld [vmem:[%s8154_s14 + $0x10] sm:$0xe]  ;;  %v7802_v62 = vld [vmem:[%s9914_s3 + $0x118] sm:$0xff]  }
  0x2a   : > { %7084 = vmatprep.subr.bf16.mxu1 %v7769_v43  ;;  %v7795_v30 = vld [vmem:[%s9914_s3 + $0x170] sm:$0xff]  }
  0x2b   : > { %v778_v16 = vrot.slane %v761_v34, 2  ;;  %v781_v20 = vrot.slane %v762_v35, 2  ;;  %v1342_v35 = vunpack.c.l.bf16 %v5954_v28 }
  0x2c   : > { %7061 = vmatpush3.bf16.msra.mxu0 %v7768_v42  ;;  %v7784_v42 = vld [vmem:[%s9914_s3 + $0x90] sm:$0xff]  }
  0x2d   : > { %7085 = vmatpush3.bf16.msra.mxu1 %v7769_v43  ;;  %7094 = vmatprep.subr.bf16.mxu0 %v7772_v46  ;;  %v780_v21 = vsel %vm777_vm1, %v778_v16, %v779_v31  ;;  %v783_v39 = vsel %vm777_vm1, %v781_v20, %v782_v36  ;;  %v7785_v43 = vld [vmem:[%s9914_s3 + $0xd0] sm:$0xff]   ;;  %v798_v31 = vsel %vm777_vm1, %v796_v12, %v797_v5  ;;  %v7796_v36 = vld [vmem:[%s9914_s3 + $0x128] sm:$0xff]   ;;  %v1160_v16 = vrot.slane %v1128_v22, 1 }
  0x2e   : > { %7118 = vmatprep.subr.bf16.mxu1 %v7773_v47  ;;  %v810_v41 = vpack.c.bf16 %v783_v39, %v780_v21  ;;  %v1162_v20 = vrot.slane %v1129_v23, 1  ;;  %v1358_v39 = vrot.slane %v1128_v22, 2  ;;  %v5957_v23 = vld [vmem:[%s8154_s14 + $0x28] sm:$0xe] }
  0x2f   : > { %7063 = vmatmul.mubr.bf16.vlgmr.msra.gmra.mxu0 %v507_v48  ;;  %v785_v48 = vrot.slane %v451_v29, 2  ;;  %v791_v29 = vrot.slane %v453_v57, 2  ;;  %v768_v57 = vunpack.c.l.bf16 %v760_v59 }
  0x30   : > { %7087 = vmatmul.mubr.bf16.vlgmr.msra.gmra.mxu1 %v5818_v53  ;;  %7095 = vmatpush3.bf16.msra.mxu0 %v7772_v46  ;;  %v757_v46 = vld [vmem:[%s8154_s14 + $0x20] sm:$0xe]  ;;  %v763_v53 = vunpack.c.l.bf16 %v755_v44 }
  0x31   : > { %7119 = vmatpush3.bf16.msra.mxu1 %v7773_v47  ;;  %7096 = vmatprep.subr.bf16.mxu0 %v7774_v49  ;;  %v758_v47 = vld [vmem:[%s8154_s14 + $0x28] sm:$0xe]  ;;  %v765_v55 = vunpack.c.l.bf16 %v757_v46  ;;  %v799_v0 = vrot.slane %v768_v57, 2 }
  0x32   : > { %7120 = vmatprep.subr.bf16.mxu1 %v7775_v2  ;;  %7090 = vmatprep.mubr.bf16.mxu1 %v5819_v61  ;;  %v766_v24 = vunpack.c.l.bf16 %v758_v47  ;;  %v784_v61 = vrot.slane %v763_v53, 2  ;;  %v5917_v47 = vld [vmem:[%s8154_s14 + $0x18] ss:$8 sps:$4 sm:$0xff]  }
  0x33   : > { %7066 = vmatprep.mubr.bf16.mxu0 %v508_v19  ;;  %v790_v63 = vrot.slane %v765_v55, 2  ;;  %v5916_v19 = vld [vmem:[%s8154_s14 + $0x14] sm:$0x1]  ;;  %v7800_v53 = vld [vmem:[%s9914_s3 + $0x120] sm:$0xff]   ;;  %v1133_v59 = vunpack.c.h.bf16 %v5917_v47 }
  0x34   : > { %7097 = vmatpush3.bf16.msra.mxu0 %v7774_v49  ;;  %v7786_v49 = vld [vmem:[%s9914_s3 + $0x88] sm:$0xff]   ;;  %v786_v60 = vsel %vm777_vm1, %v784_v61, %v785_v48  ;;  %v5918_v48 = vld [vmem:[%s8154_s14 + $0x1c] sm:$0x1] }
  0x35   : > { %7121 = vmatpush3.bf16.msra.mxu1 %v7775_v2  ;;  %7098 = vmatprep.subr.bf16.mxu0 %v7776_v11  ;;  %v793_v2 = vrot.slane %v766_v24, 2  ;;  %v792_v9 = vsel %vm777_vm1, %v790_v63, %v791_v29  ;;  %v811_v6 = vpack.c.bf16 %v789_v3, %v786_v60  ;;  %v1131_v24 = vunpack.c.l.bf16 %v5917_v47  ;;  %v7804_v60 = vld [vmem:[%s9914_s3 + $0x110] sm:$0xff]  }
  0x36   : > { %7122 = vmatprep.subr.bf16.mxu1 %v7777_v14  ;;  %v1132_v29 = vunpack.c.l.bf16 %v5918_v48  ;;  %v1168_v3 = vrot.slane %v1133_v59, 1 }
  0x37   : > { %7067 = vmatmul.mubr.bf16.gmra.mxu0 %v509_v26  ;;  %v795_v10 = vsel %vm777_vm1, %v793_v2, %v794_v58  ;;  %v1130_v26 = vunpack.c.l.bf16 %v5916_v19  ;;  %v5955_v58 = vld [vmem:[%s8154_s14 + $0x18] sm:$0xe]  ;;  %v1344_v2 = vunpack.c.l.bf16 %v5956_v25  ;;  %v1165_v56 = vrot.slane %v1131_v24, 1  ;;  %v5926_v19 = vld [vmem:[%s8154_s14 + $0x3c] sm:$0x1] }
  0x38   : > { %7099 = vmatpush3.bf16.msra.mxu0 %v7776_v11  ;;  %7091 = vmatmul.mubr.bf16.gmra.mxu1 %v5820_v27  ;;  %v800_v11 = vrot.slane %v456_v8, 2  ;;  %v1127_v8 = vunpack.c.l.bf16 %v5913_v15  ;;  %v5953_v27 = vld [vmem:[%s8154_s14 + $0x8] sm:$0xe]  ;;  %v1343_v63 = vunpack.c.l.bf16 %v5955_v58  ;;  %v1166_v57 = vrot.slane %v1132_v29, 1  ;;  %v8414_v58 = vld [vmem:[%s8154_s14 + $0x1c] sm:$0x1] }
  0x39   : > { %7123 = vmatpush3.bf16.msra.mxu1 %v7777_v14  ;;  %7100 = vmatprep.subr.bf16.mxu0 %v7778_v32  ;;  %v812_v14 = vpack.c.bf16 %v795_v10, %v792_v9  ;;  %v1341_v34 = vunpack.c.l.bf16 %v5953_v27  ;;  %v1364_v5 = vrot.slane %v1132_v29, 2  ;;  %v7805_v9 = vld [vmem:[%s9914_s3 + $0x150] sm:$0xff]   ;;  %v5928_v27 = vld [vmem:[%s8154_s14 + $0x44] sm:$0x1]  ;;  %v7811_v25 = vld [vmem:[%s9914_s3 + $0x1f8] sm:$0xff]  }
  0x3a   : > { %7124 = vmatprep.subr.bf16.mxu1 %v7779_v37  ;;  %7134 = vmatprep.mubr.bf16.mxu1 %v7790_v38  ;;  %v1159_v38 = vrot.slane %v1127_v8, 1  ;;  %v5921_v10 = vld [vmem:[%s8154_s14 + $0x28] ss:$8 sps:$4 sm:$0xff]   ;;  %v1363_v12 = vrot.slane %v1343_v63, 2  ;;  %v8411_v29 = vld [vmem:[%s8154_s14 + $0x14] sm:$0x1] }
  0x3b   : > { %7110 = vmatprep.mubr.bf16.mxu0 %v810_v41  ;;  %v1357_v21 = vrot.slane %v1341_v34, 2  ;;  %v1361_v41 = vrot.slane %v1130_v26, 2  ;;  %v1135_v15 = vunpack.c.l.bf16 %v5921_v10  ;;  %v1137_v8 = vunpack.c.h.bf16 %v5921_v10  ;;  %v7813_v10 = vld [vmem:[%s9914_s3 + $0x1f0] sm:$0xff]  }
  0x3c   : > { %7101 = vmatpush3.bf16.msra.mxu0 %v7778_v32  ;;  %v801_v32 = vsel %vm777_vm1, %v799_v0, %v800_v11  ;;  %v1161_v45 = vsel %vm473_vm0, %v1159_v38, %v1160_v16  ;;  %v5922_v11 = vld [vmem:[%s8154_s14 + $0x2c] sm:$0x1]  ;;  %v1366_v0 = vrot.slane %v1344_v2, 2  ;;  %v1140_v34 = vunpack.c.l.bf16 %v5926_v19 }
  0x3d   : > { %7125 = vmatpush3.bf16.msra.mxu1 %v7779_v37  ;;  %7102 = vmatprep.subr.bf16.mxu0 %v7780_v17  ;;  %v7798_v37 = vld [vmem:[%s8154_s14 + $0x28] ss:$8 sps:$4 sm:$0xff]   ;;  %v813_v44 = vpack.c.bf16 %v801_v32, %v798_v31  ;;  %v1136_v18 = vunpack.c.l.bf16 %v5922_v11  ;;  %v1171_v31 = vrot.slane %v1135_v15, 1 }
  0x3e   : > { %7126 = vmatprep.subr.bf16.mxu1 %v7781_v40  ;;  %v1376_v2 = vrot.slane %v1140_v34, 2  ;;  %v7814_v19 = vld [vmem:[%s9914_s3 + $0x1a8] sm:$0xff]  }
  0x3f   : > { %v1172_v32 = vrot.slane %v1136_v18, 1  ;;  %v1370_v48 = vrot.slane %v1136_v18, 2 }
  0x40   : > { %7103 = vmatpush3.bf16.msra.mxu0 %v7780_v17  ;;  %v1163_v17 = vrot.slane %v1130_v26, 1  ;;  %v5958_v26 = vld [vmem:[%s8154_s14 + $0x30] sm:$0xe] }
  0x41   : > { %7127 = vmatpush3.bf16.msra.mxu1 %v7781_v40  ;;  %7104 = vmatprep.subr.bf16.mxu0 %v7784_v42  ;;  %v1360_v40 = vrot.slane %v1342_v35, 2  ;;  %v1345_v35 = vunpack.c.l.bf16 %v5957_v23  ;;  %v1346_v16 = vunpack.c.l.bf16 %v5958_v26 }
  0x42   : > { %7128 = vmatprep.subr.bf16.mxu1 %v7785_v43  ;;  %v1164_v46 = vsel %vm473_vm0, %v1162_v20, %v1163_v17  ;;  %v1167_v20 = vsel %vm473_vm0, %v1165_v56, %v1166_v57  ;;  %v7812_v57 = vld [vmem:[%s9914_s3 + $0x1b0] sm:$0xff]  }
  0x43   : > { %v1362_v50 = vsel %vm777_vm1, %v1360_v40, %v1361_v41  ;;  %v1191_v55 = vpack.c.bf16 %v1164_v46, %v1161_v45  ;;  %v1178_v46 = vrot.slane %v1140_v34, 1  ;;  %v1369_v47 = vrot.slane %v1345_v35, 2  ;;  %v7818_v35 = vld [vmem:[%s9914_s3 + $0x198] sm:$0xff]  }
  0x44   : > { %7105 = vmatpush3.bf16.msra.mxu0 %v7784_v42  ;;  %v7797_v42 = vld [vmem:[%s9914_s3 + $0x168] sm:$0xff]  }
  0x45   : > { %7129 = vmatpush3.bf16.msra.mxu1 %v7785_v43  ;;  %7106 = vmatprep.subr.bf16.mxu0 %v7786_v49  ;;  %v7799_v43 = vld [vmem:[%s8154_s14 + $0x38] ss:$8 sps:$4 sm:$0xff]   ;;  %v1371_v63 = vsel %vm777_vm1, %v1369_v47, %v1370_v48 }
  0x46   : > { %7130 = vmatprep.subr.bf16.mxu1 %v7787_v51 }
  0x48   : > { %7107 = vmatpush3.bf16.msra.mxu0 %v7786_v49  ;;  %v1359_v49 = vsel %vm777_vm1, %v1357_v21, %v1358_v39  ;;  %v5959_v21 = vld [vmem:[%s8154_s14 + $0x38] sm:$0xe]  ;;  %v1365_v39 = vsel %vm777_vm1, %v1363_v12, %v1364_v5  ;;  %v1709_v5 = vunpack.c.l.bf16 %v8414_v58 }
  0x49   : > { %7131 = vmatpush3.bf16.msra.mxu1 %v7787_v51  ;;  %7108 = vmatprep.subr.bf16.mxu0 %v7788_v33  ;;  %v5920_v51 = vld [vmem:[%s8154_s14 + $0x24] sm:$0x1] }
  0x4a   : > { %7132 = vmatprep.subr.bf16.mxu1 %v7789_v52  ;;  %v1134_v61 = vunpack.c.l.bf16 %v5920_v51  ;;  %v6021_v51 = vld [vmem:[%s8154_s14 + $0x10] ss:$8 sps:$4 sm:$0xff]   ;;  %v1742_v18 = vrot.slane %v1709_v5, 1 }
  0x4b   : > { %v1708_v56 = vunpack.c.h.bf16 %v6021_v51 }
  0x4c   : > { %7109 = vmatpush3.bf16.msra.mxu0 %v7788_v33  ;;  %v1389_v33 = vpack.c.bf16 %v1362_v50, %v1359_v49  ;;  %v1372_v49 = vrot.slane %v1346_v16, 2  ;;  %v8477_v16 = vld [vmem:[%s8154_s14 + $0x2c] sm:$0x1] }
  0x4d   : > { %7133 = vmatpush3.bf16.msra.mxu1 %v7789_v52  ;;  %7142 = vmatprep.subr.bf16.mxu0 %v7792_v4  ;;  %v7803_v52 = vld [vmem:[%s9914_s3 + $0x158] sm:$0xff]  }
  0x4e   : > { %7166 = vmatprep.subr.bf16.mxu1 %v7793_v7 }
  0x4f   : > { %7111 = vmatmul.mubr.bf16.vlgmr.msra.gmra.mxu0 %v811_v6  ;;  %v5924_v6 = vld [vmem:[%s8154_s14 + $0x34] sm:$0x1] }
  0x50   : > { %7135 = vmatmul.mubr.bf16.vlgmr.msra.gmra.mxu1 %v7791_v13  ;;  %7143 = vmatpush3.bf16.msra.mxu0 %v7792_v4  ;;  %v1169_v4 = vrot.slane %v1134_v61, 1  ;;  %v5925_v13 = vld [vmem:[%s8154_s14 + $0x38] ss:$8 sps:$4 sm:$0xff]   ;;  %v1138_v22 = vunpack.c.l.bf16 %v5924_v6  ;;  %v1741_v6 = vrot.slane %v1708_v56, 1 }
  0x51   : > { %7167 = vmatpush3.bf16.msra.mxu1 %v7793_v7  ;;  %7144 = vmatprep.subr.bf16.mxu0 %v7794_v1  ;;  %v1367_v7 = vrot.slane %v1134_v61, 2  ;;  %v1139_v28 = vunpack.c.l.bf16 %v5925_v13  ;;  %v1141_v41 = vunpack.c.h.bf16 %v5925_v13 }
  0x52   : > { %7168 = vmatprep.subr.bf16.mxu1 %v7795_v30  ;;  %7114 = vmatprep.mubr.bf16.mxu0 %v812_v14  ;;  %v7806_v14 = vld [vmem:[%s9914_s3 + $0x108] sm:$0xff]   ;;  %v1175_v38 = vrot.slane %v1138_v22, 1  ;;  %v1170_v17 = vsel %vm473_vm0, %v1168_v3, %v1169_v4  ;;  %v1373_v50 = vrot.slane %v1138_v22, 2  ;;  %v1707_v4 = vunpack.c.l.bf16 %v8411_v29 }
  0x53   : > { %7138 = vmatprep.mubr.bf16.mxu1 %v7798_v37  ;;  %v1174_v37 = vrot.slane %v1137_v8, 1  ;;  %v1368_v40 = vsel %vm777_vm1, %v1366_v0, %v1367_v7  ;;  %v1177_v45 = vrot.slane %v1139_v28, 1  ;;  %v1180_v61 = vrot.slane %v1141_v41, 1  ;;  %v7815_v22 = vld [vmem:[%s9914_s3 + $0x1e8] sm:$0xff]  }
  0x54   : > { %7145 = vmatpush3.bf16.msra.mxu0 %v7794_v1  ;;  %v7807_v1 = vld [vmem:[%s9914_s3 + $0x148] sm:$0xff]   ;;  %v1739_v15 = vrot.slane %v1707_v4, 1  ;;  %v1743_v28 = vsel %vm473_vm0, %v1741_v6, %v1742_v18  ;;  %v1937_v6 = vrot.slane %v1707_v4, 2 }
  0x55   : > { %7169 = vmatpush3.bf16.msra.mxu1 %v7795_v30  ;;  %7146 = vmatprep.subr.bf16.mxu0 %v7796_v36  ;;  %v7808_v30 = vld [vmem:[%s9914_s3 + $0x100] sm:$0xff]   ;;  %v1176_v59 = vsel %vm473_vm0, %v1174_v37, %v1175_v38  ;;  %v1179_v13 = vsel %vm473_vm0, %v1177_v45, %v1178_v46  ;;  %v8500_v45 = vld [vmem:[%s8154_s14 + $0x3c] sm:$0x1]  ;;  %v7823_v46 = vld [vmem:[%s9914_s3 + $0x1c8] sm:$0xff]  }
  0x56   : > { %7170 = vmatprep.subr.bf16.mxu1 %v7797_v42  ;;  %v6025_v37 = vld [vmem:[%s8154_s14 + $0x20] ss:$8 sps:$4 sm:$0xff]   ;;  %v8474_v38 = vld [vmem:[%s8154_s14 + $0x24] sm:$0x1] }
  0x57   : > { %7115 = vmatmul.mubr.bf16.gmra.mxu0 %v813_v44  ;;  %v7810_v44 = vld [vmem:[%s9914_s3 + $0x1b8] sm:$0xff]   ;;  %v1711_v41 = vunpack.c.l.bf16 %v8474_v38  ;;  %v6067_v38 = vld [vmem:[%s8154_s14 + $0x40] sm:$0xe] }
  0x58   : > { %7147 = vmatpush3.bf16.msra.mxu0 %v7796_v36  ;;  %7139 = vmatmul.mubr.bf16.gmra.mxu1 %v7799_v43  ;;  %v7809_v36 = vld [vmem:[%s9914_s3 + $0x140] sm:$0xff]  }
  0x59   : > { %7171 = vmatpush3.bf16.msra.mxu1 %v7797_v42  ;;  %7148 = vmatprep.subr.bf16.mxu0 %v7800_v53  ;;  %v1142_v42 = vunpack.c.l.bf16 %v5928_v27  ;;  %v5960_v43 = vld [vmem:[%s8154_s14 + $0x40] sm:$0xe] }
  0x5a   : > { %7172 = vmatprep.subr.bf16.mxu1 %v7801_v54  ;;  %7158 = vmatprep.mubr.bf16.mxu0 %v1191_v55  ;;  %v1347_v55 = vunpack.c.l.bf16 %v5959_v21  ;;  %v1348_v24 = vunpack.c.l.bf16 %v5960_v43  ;;  %v1710_v21 = vunpack.c.l.bf16 %v6025_v37  ;;  %v6029_v43 = vld [vmem:[%s8154_s14 + $0x30] ss:$8 sps:$4 sm:$0xff]  }
  0x5b   : > { %7182 = vmatprep.mubr.bf16.mxu1 %v1389_v33  ;;  %v1173_v33 = vsel %vm473_vm0, %v1171_v31, %v1172_v32  ;;  %v1379_v3 = vrot.slane %v1142_v42, 2  ;;  %v7817_v31 = vld [vmem:[%s9914_s3 + $0x1e0] sm:$0xff]   ;;  %v7826_v32 = vld [vmem:[%s8154_s14 + $0x10] ss:$8 sps:$4 sm:$0xff]  }
  0x5c   : > { %7149 = vmatpush3.bf16.msra.mxu0 %v7800_v53  ;;  %v1192_v53 = vpack.c.bf16 %v1170_v17, %v1167_v20  ;;  %v1375_v7 = vrot.slane %v1347_v55, 2  ;;  %v1193_v11 = vpack.c.bf16 %v1176_v59, %v1173_v33  ;;  %v7820_v20 = vld [vmem:[%s9914_s3 + $0x190] sm:$0xff]   ;;  %v1744_v47 = vrot.slane %v1710_v21, 1  ;;  %v7825_v55 = vld [vmem:[%s9914_s3 + $0x1c0] sm:$0xff]  }
  0x5d   : > { %7173 = vmatpush3.bf16.msra.mxu1 %v7801_v54  ;;  %7150 = vmatprep.subr.bf16.mxu0 %v7802_v62  ;;  %v1390_v54 = vpack.c.bf16 %v1368_v40, %v1365_v39  ;;  %v7821_v17 = vld [vmem:[%s9914_s3 + $0x1d0] sm:$0xff]   ;;  %v1712_v39 = vunpack.c.h.bf16 %v6025_v37  ;;  %v7822_v40 = vld [vmem:[%s9914_s3 + $0x188] sm:$0xff]   ;;  %v8519_v59 = vld [vmem:[%s8154_s14 + $0x44] sm:$0x1] }
  0x5e   : > { %7174 = vmatprep.subr.bf16.mxu1 %v7803_v52  ;;  %v6033_v33 = vld [vmem:[%s8154_s14 + $0x40] ss:$8 sps:$4 sm:$0xff]  }
  0x5f   : > { %v1747_v48 = vrot.slane %v1712_v39, 1  ;;  %v7836_v21 = vld [vmem:[%s9914_s3 + $0x220] sm:$0xff]  }
  0x60   : > { %7151 = vmatpush3.bf16.msra.mxu0 %v7802_v62  ;;  %v1181_v62 = vrot.slane %v1142_v42, 1  ;;  %v1713_v42 = vunpack.c.l.bf16 %v8477_v16  ;;  %v7837_v39 = vld [vmem:[%s9914_s3 + $0x260] sm:$0xff]  }
  0x61   : > { %7175 = vmatpush3.bf16.msra.mxu1 %v7803_v52  ;;  %7152 = vmatprep.subr.bf16.mxu0 %v7804_v60  ;;  %v1706_v52 = vunpack.c.l.bf16 %v6021_v51  ;;  %v7845_v16 = vld [vmem:[%s9914_s3 + $0x240] sm:$0xff]  }
  0x62   : > { %7176 = vmatprep.subr.bf16.mxu1 %v7805_v9  ;;  %v1748_v51 = vrot.slane %v1713_v42, 1 }
  0x63   : > { %v1738_v0 = vrot.slane %v1706_v52, 1 }
  0x64   : > { %7153 = vmatpush3.bf16.msra.mxu0 %v7804_v60  ;;  %v1374_v60 = vsel %vm777_vm1, %v1372_v49, %v1373_v50  ;;  %v7824_v49 = vld [vmem:[%s9914_s3 + $0x180] sm:$0xff]   ;;  %v1745_v50 = vrot.slane %v1711_v41, 1 }
  0x65   : > { %7177 = vmatpush3.bf16.msra.mxu1 %v7805_v9  ;;  %7154 = vmatprep.subr.bf16.mxu0 %v7806_v14  ;;  %v1378_v9 = vrot.slane %v1348_v24, 2  ;;  %v1391_v12 = vpack.c.bf16 %v1374_v60, %v1371_v63  ;;  %v1740_v27 = vsel %vm473_vm0, %v1738_v0, %v1739_v15  ;;  %v1749_v63 = vsel %vm473_vm0, %v1747_v48, %v1748_v51  ;;  %v7829_v0 = vld [vmem:[%s9914_s3 + $0x278] sm:$0xff]   ;;  %v7830_v15 = vld [vmem:[%s9914_s3 + $0x230] sm:$0xff]  }
  0x66   : > { %7178 = vmatprep.subr.bf16.mxu1 %v7807_v1  ;;  %v1770_v34 = vpack.c.bf16 %v1743_v28, %v1740_v27  ;;  %v1718_v60 = vunpack.c.l.bf16 %v6033_v33  ;;  %v7840_v48 = vld [vmem:[%s9914_s3 + $0x210] sm:$0xff]  }
  0x67   : > { %v1380_v8 = vsel %vm777_vm1, %v1378_v9, %v1379_v3  ;;  %v1720_v3 = vunpack.c.h.bf16 %v6033_v33  ;;  %v6062_v9 = vld [vmem:[%s8154_s14 + $0x18] sm:$0xe]  ;;  %v7841_v51 = vld [vmem:[%s9914_s3 + $0x250] sm:$0xff]  }
  0x68   : > { %7155 = vmatpush3.bf16.msra.mxu0 %v7806_v14  ;;  %v1182_v14 = vsel %vm473_vm0, %v1180_v61, %v1181_v62  ;;  %v8522_v61 = vld [vmem:[%s8154_s14 + $0x4c] sm:$0x1]  ;;  %v1746_v62 = vsel %vm473_vm0, %v1744_v47, %v1745_v50  ;;  %v7839_v47 = vld [vmem:[%s9914_s3 + $0x258] sm:$0xff]   ;;  %v6064_v50 = vld [vmem:[%s8154_s14 + $0x28] sm:$0xe] }
  0x69   : > { %7179 = vmatpush3.bf16.msra.mxu1 %v7807_v1  ;;  %7156 = vmatprep.subr.bf16.mxu0 %v7808_v30  ;;  %v1377_v1 = vsel %vm777_vm1, %v1375_v7, %v1376_v2  ;;  %v1194_v23 = vpack.c.bf16 %v1182_v14, %v1179_v13  ;;  %v6061_v7 = vld [vmem:[%s8154_s14 + $0x10] sm:$0xe]  ;;  %v7827_v13 = vld [vmem:[%s8154_s14 + $0x20] ss:$8 sps:$4 sm:$0xff]   ;;  %v1771_v14 = vpack.c.bf16 %v1749_v63, %v1746_v62  ;;  %v6066_v33 = vld [vmem:[%s8154_s14 + $0x38] sm:$0xe] }
  0x6a   : > { %7180 = vmatprep.subr.bf16.mxu1 %v7809_v36  ;;  %v1392_v26 = vpack.c.bf16 %v1380_v8, %v1377_v1  ;;  %v1920_v18 = vunpack.c.l.bf16 %v6061_v7  ;;  %v1940_v1 = vrot.slane %v1709_v5, 2  ;;  %v7831_v8 = vld [vmem:[%s9914_s3 + $0x270] sm:$0xff]   ;;  %v7842_v62 = vld [vmem:[%s9914_s3 + $0x208] sm:$0xff]  }
  0x6b   : > { %v7832_v5 = vld [vmem:[%s8154_s14 + $0x30] ss:$8 sps:$4 sm:$0xff]   ;;  %v7843_v63 = vld [vmem:[%s9914_s3 + $0x248] sm:$0xff]  }
  0x6c   : > { %7157 = vmatpush3.bf16.msra.mxu0 %v7808_v30  ;;  %v7816_v30 = vld [vmem:[%s9914_s3 + $0x1a0] sm:$0xff]   ;;  %v1936_v28 = vrot.slane %v1920_v18, 2 }
  0x6d   : > { %7181 = vmatpush3.bf16.msra.mxu1 %v7809_v36  ;;  %7190 = vmatprep.subr.bf16.mxu0 %v7810_v44  ;;  %v7819_v36 = vld [vmem:[%s9914_s3 + $0x1d8] sm:$0xff]  }
  0x6e   : > { %7214 = vmatprep.subr.bf16.mxu1 %v7811_v25  ;;  %v1938_v37 = vsel %vm777_vm1, %v1936_v28, %v1937_v6  ;;  %v2271_v6 = vld [vmem:[%s8493_s20 + $0xc] sm:$0x1] }
  0x6f   : > { %7159 = vmatmul.mubr.bf16.vlgmr.msra.gmra.mxu0 %v1192_v53  ;;  %v1714_v53 = vunpack.c.l.bf16 %v6029_v43 }
  0x70   : > { %7183 = vmatmul.mubr.bf16.vlgmr.msra.gmra.mxu1 %v1390_v54  ;;  %7191 = vmatpush3.bf16.msra.mxu0 %v7810_v44  ;;  %v8497_v44 = vld [vmem:[%s8154_s14 + $0x34] sm:$0x1]  ;;  %v1716_v54 = vunpack.c.h.bf16 %v6029_v43  ;;  %v7846_v43 = vld [vmem:[%s8493_s20] ss:$8 sps:$4 sm:$0xff]  }
  0x71   : > { %7215 = vmatpush3.bf16.msra.mxu1 %v7811_v25  ;;  %7192 = vmatprep.subr.bf16.mxu0 %v7812_v57  ;;  %v1715_v24 = vunpack.c.l.bf16 %v8497_v44  ;;  %v1717_v25 = vunpack.c.l.bf16 %v8500_v45  ;;  %v1750_v2 = vrot.slane %v1714_v53, 1  ;;  %v6065_v53 = vld [vmem:[%s8154_s14 + $0x30] sm:$0xe]  ;;  %v2269_v44 = vld [vmem:[%s8493_s20 + $0x4] sm:$0x1]  ;;  %v7848_v45 = vld [vmem:[%s9914_s3 + $0x2b8] sm:$0xff]  }
  0x72   : > { %7216 = vmatprep.subr.bf16.mxu1 %v7813_v10  ;;  %7162 = vmatprep.mubr.bf16.mxu0 %v1193_v11  ;;  %v1753_v52 = vrot.slane %v1716_v54, 1  ;;  %v1719_v11 = vunpack.c.l.bf16 %v8519_v59  ;;  %v7850_v59 = vld [vmem:[%s9914_s3 + $0x2b0] sm:$0xff]  }
  0x73   : > { %7186 = vmatprep.mubr.bf16.mxu1 %v1391_v12  ;;  %v1751_v56 = vrot.slane %v1715_v24, 1  ;;  %v1721_v12 = vunpack.c.l.bf16 %v8522_v61 }
  0x74   : > { %7193 = vmatpush3.bf16.msra.mxu0 %v7812_v57  ;;  %v1754_v57 = vrot.slane %v1717_v25, 1 }
  0x75   : > { %7217 = vmatpush3.bf16.msra.mxu1 %v7813_v10  ;;  %7194 = vmatprep.subr.bf16.mxu0 %v7814_v19  ;;  %v7828_v10 = vld [vmem:[%s9914_s3 + $0x238] sm:$0xff]   ;;  %v1752_v29 = vsel %vm473_vm0, %v1750_v2, %v1751_v56  ;;  %v1760_v58 = vrot.slane %v1721_v12, 1  ;;  %v1943_v2 = vrot.slane %v1711_v41, 2  ;;  %v1946_v56 = vrot.slane %v1713_v42, 2  ;;  %v6068_v41 = vld [vmem:[%s8154_s14 + $0x48] sm:$0xe] }
  0x76   : > { %7218 = vmatprep.subr.bf16.mxu1 %v7815_v22  ;;  %v1755_v4 = vsel %vm473_vm0, %v1753_v52, %v1754_v57  ;;  %v7844_v52 = vld [vmem:[%s9914_s3 + $0x200] sm:$0xff]   ;;  %v1924_v57 = vunpack.c.l.bf16 %v6065_v53  ;;  %v1952_v42 = vrot.slane %v1717_v25, 2  ;;  %v1927_v18 = vunpack.c.l.bf16 %v6068_v41  ;;  %v7855_v53 = vld [vmem:[%s8493_s20 + $0x30] ss:$8 sps:$4 sm:$0xff]  }
  0x77   : > { %7163 = vmatmul.mubr.bf16.gmra.mxu0 %v1194_v23  ;;  %v1759_v23 = vrot.slane %v1720_v3, 1  ;;  %v1772_v27 = vpack.c.bf16 %v1755_v4, %v1752_v29  ;;  %v1949_v3 = vrot.slane %v1715_v24, 2  ;;  %v1955_v25 = vrot.slane %v1719_v11, 2  ;;  %v2491_v29 = vld [vmem:[%s8493_s20 + $0x8] sm:$0xe] }
  0x78   : > { %7195 = vmatpush3.bf16.msra.mxu0 %v7814_v19  ;;  %7187 = vmatmul.mubr.bf16.gmra.mxu1 %v1392_v26  ;;  %v1921_v19 = vunpack.c.l.bf16 %v6062_v9  ;;  %v1757_v26 = vrot.slane %v1719_v11, 1  ;;  %v1948_v24 = vrot.slane %v1924_v57, 2  ;;  %v7847_v4 = vld [vmem:[%s8493_s20 + $0x10] ss:$8 sps:$4 sm:$0xff]   ;;  %v2273_v57 = vld [vmem:[%s8493_s20 + $0x14] sm:$0x1] }
  0x79   : > { %7219 = vmatpush3.bf16.msra.mxu1 %v7815_v22  ;;  %7196 = vmatprep.subr.bf16.mxu0 %v7816_v30  ;;  %v1756_v22 = vrot.slane %v1718_v60, 1  ;;  %v1925_v60 = vunpack.c.l.bf16 %v6066_v33  ;;  %v7856_v33 = vld [vmem:[%s9914_s3 + $0x2a0] sm:$0xff]  }
  0x7a   : > { %7220 = vmatprep.subr.bf16.mxu1 %v7817_v31  ;;  %7206 = vmatprep.mubr.bf16.mxu0 %v7826_v32  ;;  %v1950_v11 = vsel %vm777_vm1, %v1948_v24, %v1949_v3  ;;  %v7859_v3 = vld [vmem:[%s9914_s3 + $0x2d8] sm:$0xff]   ;;  %v2276_v41 = vld [vmem:[%s8493_s20 + $0x20] ss:$8 sps:$4 sm:$0xff]   ;;  %v2289_v24 = vunpack.c.l.bf16 %v2273_v57 }
  0x7b   : > { %7230 = vmatprep.mubr.bf16.mxu1 %v1770_v34  ;;  %v1758_v32 = vsel %vm473_vm0, %v1756_v22, %v1757_v26  ;;  %v1761_v34 = vsel %vm473_vm0, %v1759_v23, %v1760_v58  ;;  %v7849_v22 = vld [vmem:[%s9914_s3 + $0x2f8] sm:$0xff]   ;;  %v1958_v23 = vrot.slane %v1721_v12, 2  ;;  %v2287_v58 = vunpack.c.l.bf16 %v2271_v6 }
  0x7c   : > { %7197 = vmatpush3.bf16.msra.mxu0 %v7816_v30  ;;  %v1939_v30 = vrot.slane %v1921_v19, 2  ;;  %v2490_v19 = vld [vmem:[%s8493_s20] sm:$0xe]  ;;  %v2499_v12 = vunpack.c.l.bf16 %v2491_v29 }
  0x7d   : > { %7221 = vmatpush3.bf16.msra.mxu1 %v7817_v31  ;;  %7198 = vmatprep.subr.bf16.mxu0 %v7818_v35  ;;  %v7834_v31 = vld [vmem:[%s9914_s3 + $0x228] sm:$0xff]   ;;  %v2498_v28 = vunpack.c.l.bf16 %v2490_v19 }
  0x7e   : > { %7222 = vmatprep.subr.bf16.mxu1 %v7819_v36 }
  0x80   : > { %7199 = vmatpush3.bf16.msra.mxu0 %v7818_v35  ;;  %v7835_v35 = vld [vmem:[%s9914_s3 + $0x268] sm:$0xff]  }
  0x81   : > { %7223 = vmatpush3.bf16.msra.mxu1 %v7819_v36  ;;  %7200 = vmatprep.subr.bf16.mxu0 %v7820_v20  ;;  %v7833_v36 = vld [vmem:[%s8154_s14 + $0x40] ss:$8 sps:$4 sm:$0xff]  }
  0x82   : > { %7224 = vmatprep.subr.bf16.mxu1 %v7821_v17 }
  0x84   : > { %7201 = vmatpush3.bf16.msra.mxu0 %v7820_v20  ;;  %v1941_v20 = vsel %vm777_vm1, %v1939_v30, %v1940_v1  ;;  %v7851_v30 = vld [vmem:[%s9914_s3 + $0x2f0] sm:$0xff]  }
  0x85   : > { %7225 = vmatpush3.bf16.msra.mxu1 %v7821_v17  ;;  %7202 = vmatprep.subr.bf16.mxu0 %v7822_v40  ;;  %v1773_v17 = vpack.c.bf16 %v1761_v34, %v1758_v32  ;;  %v7854_v32 = vld [vmem:[%s8493_s20 + $0x20] ss:$8 sps:$4 sm:$0xff]  }
  0x86   : > { %7226 = vmatprep.subr.bf16.mxu1 %v7823_v46 }
  0x88   : > { %7203 = vmatpush3.bf16.msra.mxu0 %v7822_v40  ;;  %v1968_v40 = vpack.c.bf16 %v1941_v20, %v1938_v37  ;;  %v2320_v20 = vrot.slane %v2287_v58, 1 }
  0x89   : > { %7227 = vmatpush3.bf16.msra.mxu1 %v7823_v46  ;;  %7204 = vmatprep.subr.bf16.mxu0 %v7824_v49  ;;  %v7838_v46 = vld [vmem:[%s9914_s3 + $0x218] sm:$0xff]  }
  0x8a   : > { %7228 = vmatprep.subr.bf16.mxu1 %v7825_v55 }
  0x8c   : > { %7205 = vmatpush3.bf16.msra.mxu0 %v7824_v49  ;;  %v6063_v49 = vld [vmem:[%s8154_s14 + $0x20] sm:$0xe] }
  0x8d   : > { %7229 = vmatpush3.bf16.msra.mxu1 %v7825_v55  ;;  %7238 = vmatprep.subr.bf16.mxu0 %v7828_v10  ;;  %v1922_v54 = vunpack.c.l.bf16 %v6063_v49  ;;  %v1923_v55 = vunpack.c.l.bf16 %v6064_v50 }
  0x8e   : > { %7262 = vmatprep.subr.bf16.mxu1 %v7829_v0 }
  0x8f   : > { %7207 = vmatmul.mubr.bf16.vlgmr.msra.gmra.mxu0 %v7827_v13  ;;  %v1942_v7 = vrot.slane %v1922_v54, 2  ;;  %v1945_v9 = vrot.slane %v1923_v55, 2 }
  0x90   : > { %7231 = vmatmul.mubr.bf16.vlgmr.msra.gmra.mxu1 %v1771_v14  ;;  %7239 = vmatpush3.bf16.msra.mxu0 %v7828_v10  ;;  %v2268_v10 = vld [vmem:[%s8493_s20] ss:$8 sps:$4 sm:$0xff]  }
  0x91   : > { %7263 = vmatpush3.bf16.msra.mxu1 %v7829_v0  ;;  %7240 = vmatprep.subr.bf16.mxu0 %v7830_v15  ;;  %v1951_v0 = vrot.slane %v1925_v60, 2  ;;  %v1944_v13 = vsel %vm777_vm1, %v1942_v7, %v1943_v2  ;;  %v1947_v14 = vsel %vm777_vm1, %v1945_v9, %v1946_v56  ;;  %v2284_v1 = vunpack.c.l.bf16 %v2268_v10  ;;  %v2272_v2 = vld [vmem:[%s8493_s20 + $0x10] ss:$8 sps:$4 sm:$0xff]   ;;  %v2275_v60 = vld [vmem:[%s8493_s20 + $0x1c] sm:$0x1] }
  0x92   : > { %7264 = vmatprep.subr.bf16.mxu1 %v7831_v8  ;;  %7210 = vmatprep.mubr.bf16.mxu0 %v7832_v5  ;;  %v2286_v26 = vunpack.c.h.bf16 %v2268_v10  ;;  %v1969_v5 = vpack.c.bf16 %v1947_v14, %v1944_v13  ;;  %v2492_v7 = vld [vmem:[%s8493_s20 + $0x10] sm:$0xe]  ;;  %v2493_v9 = vld [vmem:[%s8493_s20 + $0x18] sm:$0xe]  ;;  %v2291_v6 = vunpack.c.l.bf16 %v2275_v60  ;;  %v8683_v13 = vld [vmem:[%s8493_s20 + $0x34] sm:$0x1] }
  0x93   : > { %7234 = vmatprep.mubr.bf16.mxu1 %v1772_v27  ;;  %v1953_v27 = vsel %vm777_vm1, %v1951_v0, %v1952_v42  ;;  %v2316_v34 = vrot.slane %v2284_v1, 1  ;;  %v8674_v42 = vld [vmem:[%s8493_s20 + $0x2c] sm:$0x1]  ;;  %v7860_v10 = vld [vmem:[%s9914_s3 + $0x290] sm:$0xff]   ;;  %v2290_v0 = vunpack.c.h.bf16 %v2272_v2  ;;  %v2501_v19 = vunpack.c.l.bf16 %v2493_v9  ;;  %v2494_v1 = vld [vmem:[%s8493_s20 + $0x20] sm:$0xe] }
  0x94   : > { %7241 = vmatpush3.bf16.msra.mxu0 %v7830_v15  ;;  %v1926_v15 = vunpack.c.l.bf16 %v6067_v38  ;;  %v2319_v37 = vrot.slane %v2286_v26, 1  ;;  %v2288_v38 = vunpack.c.l.bf16 %v2272_v2  ;;  %v7861_v14 = vld [vmem:[%s9914_s3 + $0x2d0] sm:$0xff]   ;;  %v2295_v29 = vunpack.c.l.bf16 %v8674_v42  ;;  %v7862_v26 = vld [vmem:[%s9914_s3 + $0x288] sm:$0xff]   ;;  %v7867_v2 = vld [vmem:[%s9914_s3 + $0x378] sm:$0xff]  }
  0x95   : > { %7265 = vmatpush3.bf16.msra.mxu1 %v7831_v8  ;;  %7242 = vmatprep.subr.bf16.mxu0 %v7834_v31  ;;  %v2285_v8 = vunpack.c.l.bf16 %v2269_v44  ;;  %v8680_v44 = vld [vmem:[%s8493_s20 + $0x30] ss:$8 sps:$4 sm:$0xff]  }
  0x96   : > { %7266 = vmatprep.subr.bf16.mxu1 %v7835_v35  ;;  %v1954_v61 = vrot.slane %v1926_v15, 2  ;;  %v2322_v15 = vrot.slane %v2288_v38, 1 }
  0x97   : > { %7211 = vmatmul.mubr.bf16.gmra.mxu0 %v7833_v36  ;;  %v1970_v36 = vpack.c.bf16 %v1953_v27, %v1950_v11  ;;  %v2521_v11 = vrot.slane %v2289_v24, 2  ;;  %v7863_v27 = vld [vmem:[%s9914_s3 + $0x2c8] sm:$0xff]  }
  0x98   : > { %7243 = vmatpush3.bf16.msra.mxu0 %v7834_v31  ;;  %7235 = vmatmul.mubr.bf16.gmra.mxu1 %v1773_v17  ;;  %v1957_v31 = vrot.slane %v1927_v18, 2  ;;  %v2514_v17 = vrot.slane %v2498_v28, 2  ;;  %v2500_v18 = vunpack.c.l.bf16 %v2492_v7  ;;  %v8724_v7 = vld [vmem:[%s8493_s20 + $0x14] sm:$0x1] }
  0x99   : > { %7267 = vmatpush3.bf16.msra.mxu1 %v7835_v35  ;;  %7244 = vmatprep.subr.bf16.mxu0 %v7836_v21  ;;  %v2317_v35 = vrot.slane %v2285_v8, 1 }
  0x9a   : > { %7268 = vmatprep.subr.bf16.mxu1 %v7837_v39  ;;  %7254 = vmatprep.mubr.bf16.mxu0 %v1968_v40  ;;  %v1959_v40 = vsel %vm777_vm1, %v1957_v31, %v1958_v23  ;;  %v2495_v23 = vld [vmem:[%s8493_s20 + $0x28] sm:$0xe]  ;;  %v2520_v28 = vrot.slane %v2500_v18, 2  ;;  %v2502_v31 = vunpack.c.l.bf16 %v2494_v1 }
  0x9b   : > { %7278 = vmatprep.mubr.bf16.mxu1 %v7846_v43  ;;  %v2517_v43 = vrot.slane %v2499_v12, 2  ;;  %v2318_v50 = vsel %vm473_vm0, %v2316_v34, %v2317_v35  ;;  %v2283_v34 = vld [vmem:[%s8493_s20 + $0x3c] sm:$0x1]  ;;  %v2503_v35 = vunpack.c.l.bf16 %v2495_v23 }
  0x9c   : > { %7245 = vmatpush3.bf16.msra.mxu0 %v7836_v21  ;;  %v2515_v21 = vrot.slane %v2285_v8, 2  ;;  %v2294_v8 = vunpack.c.h.bf16 %v2276_v41 }
  0x9d   : > { %7269 = vmatpush3.bf16.msra.mxu1 %v7837_v39  ;;  %7246 = vmatprep.subr.bf16.mxu0 %v7838_v46  ;;  %v1956_v39 = vsel %vm777_vm1, %v1954_v61, %v1955_v25  ;;  %v2524_v61 = vrot.slane %v2291_v6, 2 }
  0x9e   : > { %7270 = vmatprep.subr.bf16.mxu1 %v7839_v47  ;;  %v1971_v49 = vpack.c.bf16 %v1959_v40, %v1956_v39  ;;  %v2516_v54 = vsel %vm777_vm1, %v2514_v17, %v2515_v21  ;;  %v7865_v39 = vld [vmem:[%s9914_s3 + $0x2c0] sm:$0xff]  }
  0xa0   : > { %7247 = vmatpush3.bf16.msra.mxu0 %v7838_v46  ;;  %v2518_v46 = vrot.slane %v2287_v58, 2  ;;  %v2323_v58 = vrot.slane %v2289_v24, 1 }
  0xa1   : > { %7271 = vmatpush3.bf16.msra.mxu1 %v7839_v47  ;;  %7248 = vmatprep.subr.bf16.mxu0 %v7840_v48  ;;  %v7852_v47 = vld [vmem:[%s9914_s3 + $0x2a8] sm:$0xff]  }
  0xa2   : > { %7272 = vmatprep.subr.bf16.mxu1 %v7841_v51  ;;  %v2519_v55 = vsel %vm777_vm1, %v2517_v43, %v2518_v46  ;;  %v2324_v40 = vsel %vm473_vm0, %v2322_v15, %v2323_v58  ;;  %v2496_v46 = vld [vmem:[%s8493_s20 + $0x30] sm:$0xe]  ;;  %v2866_v15 = vunpack.c.l.bf16 %v8724_v7 }
  0xa3   : > { %v2546_v56 = vpack.c.bf16 %v2519_v55, %v2516_v54  ;;  %v2299_v54 = vunpack.c.l.bf16 %v2283_v34  ;;  %v2529_v55 = vrot.slane %v2503_v35, 2  ;;  %v2504_v60 = vunpack.c.l.bf16 %v2496_v46  ;;  %v7874_v35 = vld [vmem:[%s9914_s3 + $0x318] sm:$0xff]  }
  0xa4   : > { %7249 = vmatpush3.bf16.msra.mxu0 %v7840_v48  ;;  %v7853_v48 = vld [vmem:[%s9914_s3 + $0x2e8] sm:$0xff]   ;;  %v2899_v58 = vrot.slane %v2866_v15, 1 }
  0xa5   : > { %7273 = vmatpush3.bf16.msra.mxu1 %v7841_v51  ;;  %7250 = vmatprep.subr.bf16.mxu0 %v7842_v62  ;;  %v2321_v51 = vsel %vm473_vm0, %v2319_v37, %v2320_v20  ;;  %v2331_v37 = vrot.slane %v2294_v8, 1  ;;  %v2332_v20 = vrot.slane %v2295_v29, 1  ;;  %v2536_v24 = vrot.slane %v2299_v54, 2 }
  0xa6   : > { %7274 = vmatprep.subr.bf16.mxu1 %v7843_v63  ;;  %v2532_v18 = vrot.slane %v2504_v60, 2  ;;  %v7880_v60 = vld [vmem:[%s9914_s3 + $0x300] sm:$0xff]  }
  0xa7   : > { %v2333_v38 = vsel %vm473_vm0, %v2331_v37, %v2332_v20  ;;  %v7876_v37 = vld [vmem:[%s9914_s3 + $0x310] sm:$0xff]   ;;  %v6209_v20 = vld [vmem:[%s8493_s20 + $0x18] ss:$8 sps:$4 sm:$0xff]  }
  0xa8   : > { %7251 = vmatpush3.bf16.msra.mxu0 %v7842_v62  ;;  %v7857_v62 = vld [vmem:[%s9914_s3 + $0x2e0] sm:$0xff]   ;;  %v2867_v46 = vunpack.c.l.bf16 %v6209_v20 }
  0xa9   : > { %7275 = vmatpush3.bf16.msra.mxu1 %v7843_v63  ;;  %7252 = vmatprep.subr.bf16.mxu0 %v7844_v52  ;;  %v2348_v63 = vpack.c.bf16 %v2321_v51, %v2318_v50  ;;  %v2526_v50 = vrot.slane %v2502_v31, 2  ;;  %v7872_v31 = vld [vmem:[%s9914_s3 + $0x320] sm:$0xff]  }
  0xaa   : > { %7276 = vmatprep.subr.bf16.mxu1 %v7845_v16 }
  0xac   : > { %7253 = vmatpush3.bf16.msra.mxu0 %v7844_v52  ;;  %v7858_v52 = vld [vmem:[%s9914_s3 + $0x298] sm:$0xff]  }
  0xad   : > { %7277 = vmatpush3.bf16.msra.mxu1 %v7845_v16  ;;  %7286 = vmatprep.subr.bf16.mxu0 %v7848_v45  ;;  %v2277_v16 = vld [vmem:[%s8493_s20 + $0x24] sm:$0x1] }
  0xae   : > { %7310 = vmatprep.subr.bf16.mxu1 %v7849_v22  ;;  %v2293_v25 = vunpack.c.l.bf16 %v2277_v16  ;;  %v2338_v16 = vrot.slane %v2299_v54, 1 }
  0xaf   : > { %7255 = vmatmul.mubr.bf16.vlgmr.msra.gmra.mxu0 %v1969_v5  ;;  %v2325_v5 = vrot.slane %v2290_v0, 1  ;;  %v7868_v0 = vld [vmem:[%s9914_s3 + $0x330] sm:$0xff]  }
  0xb0   : > { %7279 = vmatmul.mubr.bf16.vlgmr.msra.gmra.mxu1 %v7847_v4  ;;  %7287 = vmatpush3.bf16.msra.mxu0 %v7848_v45  ;;  %v2292_v45 = vunpack.c.l.bf16 %v2276_v41  ;;  %v2296_v4 = vunpack.c.l.bf16 %v8680_v44  ;;  %v2527_v51 = vrot.slane %v2293_v25, 2 }
  0xb1   : > { %7311 = vmatpush3.bf16.msra.mxu1 %v7849_v22  ;;  %7288 = vmatprep.subr.bf16.mxu0 %v7850_v59  ;;  %v2297_v22 = vunpack.c.l.bf16 %v8683_v13 }
  0xb2   : > { %7312 = vmatprep.subr.bf16.mxu1 %v7851_v30  ;;  %7258 = vmatprep.mubr.bf16.mxu0 %v1970_v36  ;;  %v2328_v12 = vrot.slane %v2292_v45, 1  ;;  %v7864_v36 = vld [vmem:[%s9914_s3 + $0x280] sm:$0xff]   ;;  %v2334_v17 = vrot.slane %v2296_v4, 1  ;;  %v2528_v42 = vsel %vm777_vm1, %v2526_v50, %v2527_v51  ;;  %v7869_v45 = vld [vmem:[%s9914_s3 + $0x370] sm:$0xff]   ;;  %v7878_v51 = vld [vmem:[%s9914_s3 + $0x308] sm:$0xff]  }
  0xb3   : > { %7282 = vmatprep.mubr.bf16.mxu1 %v7854_v32  ;;  %v2329_v32 = vrot.slane %v2293_v25, 1  ;;  %v2335_v21 = vrot.slane %v2297_v22, 1  ;;  %v8787_v50 = vld [vmem:[%s8493_s20 + $0x34] sm:$0x1] }
  0xb4   : > { %7289 = vmatpush3.bf16.msra.mxu0 %v7850_v59  ;;  %v2326_v59 = vrot.slane %v2291_v6, 1 }
  0xb5   : > { %7313 = vmatpush3.bf16.msra.mxu1 %v7851_v30  ;;  %7290 = vmatprep.subr.bf16.mxu0 %v7852_v47  ;;  %v2523_v30 = vrot.slane %v2501_v19, 2  ;;  %v2330_v9 = vsel %vm473_vm0, %v2328_v12, %v2329_v32  ;;  %v2336_v1 = vsel %vm473_vm0, %v2334_v17, %v2335_v21  ;;  %v7873_v12 = vld [vmem:[%s9914_s3 + $0x360] sm:$0xff]   ;;  %v7882_v32 = vld [vmem:[%s8493_s20 + $0x8] ss:$8 sps:$4 sm:$0xff]   ;;  %v8775_v21 = vld [vmem:[%s8493_s20 + $0x1c] sm:$0x1] }
  0xb6   : > { %7314 = vmatprep.subr.bf16.mxu1 %v7853_v48  ;;  %v2327_v43 = vsel %vm473_vm0, %v2325_v5, %v2326_v59  ;;  %v2350_v25 = vpack.c.bf16 %v2333_v38, %v2330_v9  ;;  %v7871_v5 = vld [vmem:[%s9914_s3 + $0x368] sm:$0xff]   ;;  %v7877_v17 = vld [vmem:[%s9914_s3 + $0x350] sm:$0xff]   ;;  %v6217_v9 = vld [vmem:[%s8493_s20 + $0x38] ss:$8 sps:$4 sm:$0xff]  }
  0xb7   : > { %7259 = vmatmul.mubr.bf16.gmra.mxu0 %v1971_v49  ;;  %v2525_v49 = vsel %vm777_vm1, %v2523_v30, %v2524_v61  ;;  %v8809_v38 = vld [vmem:[%s8493_s20 + $0x3c] sm:$0x1] }
  0xb8   : > { %7291 = vmatpush3.bf16.msra.mxu0 %v7852_v47  ;;  %7283 = vmatmul.mubr.bf16.gmra.mxu1 %v7855_v53  ;;  %v2497_v47 = vld [vmem:[%s8493_s20 + $0x38] sm:$0xe]  ;;  %v2298_v53 = vunpack.c.h.bf16 %v8680_v44  ;;  %v2533_v44 = vrot.slane %v2297_v22, 2 }
  0xb9   : > { %7315 = vmatpush3.bf16.msra.mxu1 %v7853_v48  ;;  %7292 = vmatprep.subr.bf16.mxu0 %v7856_v33  ;;  %v2522_v48 = vsel %vm777_vm1, %v2520_v28, %v2521_v11 }
  0xba   : > { %7316 = vmatprep.subr.bf16.mxu1 %v7857_v62  ;;  %7302 = vmatprep.mubr.bf16.mxu0 %v2348_v63  ;;  %v6205_v63 = vld [vmem:[%s8493_s20 + $0x8] ss:$8 sps:$4 sm:$0xff]   ;;  %v2547_v57 = vpack.c.bf16 %v2525_v49, %v2522_v48  ;;  %v2337_v41 = vrot.slane %v2298_v53, 1  ;;  %v2534_v59 = vsel %vm777_vm1, %v2532_v18, %v2533_v44  ;;  %v2869_v48 = vunpack.c.h.bf16 %v6209_v20  ;;  %v7884_v18 = vld [vmem:[%s9914_s3 + $0x3b8] sm:$0xff]  }
  0xbb   : > { %7326 = vmatprep.mubr.bf16.mxu1 %v2546_v56  ;;  %v2349_v56 = vpack.c.bf16 %v2327_v43, %v2324_v40  ;;  %v2863_v6 = vunpack.c.l.bf16 %v6205_v63  ;;  %v6213_v40 = vld [vmem:[%s8493_s20 + $0x28] ss:$8 sps:$4 sm:$0xff]   ;;  %v8782_v43 = vld [vmem:[%s8493_s20 + $0x2c] sm:$0x1] }
  0xbc   : > { %7293 = vmatpush3.bf16.msra.mxu0 %v7856_v33  ;;  %v2530_v33 = vrot.slane %v2295_v29, 2  ;;  %v2339_v8 = vsel %vm473_vm0, %v2337_v41, %v2338_v16  ;;  %v7870_v29 = vld [vmem:[%s9914_s3 + $0x328] sm:$0xff]   ;;  %v2871_v54 = vunpack.c.l.bf16 %v6213_v40  ;;  %v8812_v41 = vld [vmem:[%s8493_s20 + $0x44] sm:$0x1] }
  0xbd   : > { %7317 = vmatpush3.bf16.msra.mxu1 %v7857_v62  ;;  %7294 = vmatprep.subr.bf16.mxu0 %v7858_v52  ;;  %v7866_v62 = vld [vmem:[%s9914_s3 + $0x338] sm:$0xff]   ;;  %v2895_v22 = vrot.slane %v2863_v6, 1  ;;  %v7879_v53 = vld [vmem:[%s9914_s3 + $0x348] sm:$0xff]  }
  0xbe   : > { %7318 = vmatprep.subr.bf16.mxu1 %v7859_v3  ;;  %v2907_v16 = vrot.slane %v2871_v54, 1  ;;  %v6245_v6 = vld [vmem:[%s8493_s20 + $0x8] sm:$0xe] }
  0xc0   : > { %7295 = vmatpush3.bf16.msra.mxu0 %v7858_v52  ;;  %v8721_v52 = vld [vmem:[%s8493_s20 + $0xc] sm:$0x1] }
  0xc1   : > { %7319 = vmatpush3.bf16.msra.mxu1 %v7859_v3  ;;  %7296 = vmatprep.subr.bf16.mxu0 %v7860_v10  ;;  %v2505_v3 = vunpack.c.l.bf16 %v2497_v47  ;;  %v2864_v13 = vunpack.c.l.bf16 %v8721_v52  ;;  %v2868_v47 = vunpack.c.l.bf16 %v8775_v21  ;;  %v7890_v52 = vld [vmem:[%s9914_s3 + $0x3a8] sm:$0xff]   ;;  %v6251_v21 = vld [vmem:[%s8493_s20 + $0x38] sm:$0xe] }
  0xc2   : > { %7320 = vmatprep.subr.bf16.mxu1 %v7861_v14 }
  0xc3   : > { %v2535_v19 = vrot.slane %v2505_v3, 2  ;;  %v2896_v23 = vrot.slane %v2864_v13, 1  ;;  %v7881_v3 = vld [vmem:[%s9914_s3 + $0x340] sm:$0xff]  }
  0xc4   : > { %7297 = vmatpush3.bf16.msra.mxu0 %v7860_v10  ;;  %v2531_v10 = vsel %vm777_vm1, %v2529_v55, %v2530_v33  ;;  %v2872_v55 = vunpack.c.l.bf16 %v8782_v43  ;;  %v2873_v33 = vunpack.c.h.bf16 %v6213_v40  ;;  %v6252_v43 = vld [vmem:[%s8493_s20 + $0x40] sm:$0xe] }
  0xc5   : > { %7321 = vmatpush3.bf16.msra.mxu1 %v7861_v14  ;;  %7298 = vmatprep.subr.bf16.mxu0 %v7862_v26  ;;  %v2865_v14 = vunpack.c.h.bf16 %v6205_v63  ;;  %v2548_v4 = vpack.c.bf16 %v2531_v10, %v2528_v42  ;;  %v2537_v11 = vsel %vm777_vm1, %v2535_v19, %v2536_v24  ;;  %v2897_v30 = vsel %vm473_vm0, %v2895_v22, %v2896_v23 }
  0xc6   : > { %7322 = vmatprep.subr.bf16.mxu1 %v7863_v27  ;;  %v2549_v28 = vpack.c.bf16 %v2537_v11, %v2534_v59  ;;  %v2901_v63 = vrot.slane %v2867_v46, 1  ;;  %v2908_v42 = vrot.slane %v2872_v55, 1  ;;  %v2910_v10 = vrot.slane %v2873_v33, 1 }
  0xc7   : > { %v2875_v19 = vunpack.c.l.bf16 %v6217_v9 }
  0xc8   : > { %7299 = vmatpush3.bf16.msra.mxu0 %v7862_v26  ;;  %v2898_v26 = vrot.slane %v2865_v14, 1  ;;  %v6246_v14 = vld [vmem:[%s8493_s20 + $0x10] sm:$0xe] }
  0xc9   : > { %7323 = vmatpush3.bf16.msra.mxu1 %v7863_v27  ;;  %7300 = vmatprep.subr.bf16.mxu0 %v7864_v36  ;;  %v2351_v27 = vpack.c.bf16 %v2339_v8, %v2336_v1  ;;  %v2878_v1 = vunpack.c.l.bf16 %v8812_v41  ;;  %v7885_v8 = vld [vmem:[%s9914_s3 + $0x3f8] sm:$0xff]   ;;  %v3078_v22 = vunpack.c.l.bf16 %v6246_v14  ;;  %v2913_v59 = vrot.slane %v2875_v19, 1 }
  0xca   : > { %7324 = vmatprep.subr.bf16.mxu1 %v7865_v39  ;;  %v2900_v61 = vsel %vm473_vm0, %v2898_v26, %v2899_v58  ;;  %v2909_v26 = vsel %vm473_vm0, %v2907_v16, %v2908_v42  ;;  %v7902_v16 = vld [vmem:[%s8493_s20 + $0x10] ss:$8 sps:$4 sm:$0xff]  }
  0xcb   : > { %v2927_v34 = vpack.c.bf16 %v2900_v61, %v2897_v30  ;;  %v7887_v30 = vld [vmem:[%s9914_s3 + $0x3f0] sm:$0xff]  }
  0xcc   : > { %7301 = vmatpush3.bf16.msra.mxu0 %v7864_v36  ;;  %v7875_v36 = vld [vmem:[%s9914_s3 + $0x358] sm:$0xff]   ;;  %v7888_v61 = vld [vmem:[%s8493_s20 + $0x28] ss:$8 sps:$4 sm:$0xff]  }
  0xcd   : > { %7325 = vmatpush3.bf16.msra.mxu1 %v7865_v39  ;;  %7334 = vmatprep.subr.bf16.mxu0 %v7866_v62  ;;  %v8778_v39 = vld [vmem:[%s8493_s20 + $0x24] sm:$0x1] }
  0xce   : > { %7358 = vmatprep.subr.bf16.mxu1 %v7867_v2  ;;  %v2870_v49 = vunpack.c.l.bf16 %v8778_v39  ;;  %v7900_v39 = vld [vmem:[%s9914_s3 + $0x380] sm:$0xff]  }
  0xcf   : > { %7303 = vmatmul.mubr.bf16.vlgmr.msra.gmra.mxu0 %v2349_v56  ;;  %v2904_v56 = vrot.slane %v2869_v48, 1 }
  0xd0   : > { %7327 = vmatmul.mubr.bf16.vlgmr.msra.gmra.mxu1 %v2547_v57  ;;  %7335 = vmatpush3.bf16.msra.mxu0 %v7866_v62  ;;  %v2874_v62 = vunpack.c.l.bf16 %v8787_v50  ;;  %v2905_v57 = vrot.slane %v2870_v49, 1  ;;  %v6313_v50 = vld [vmem:[%s8493_s20 + $0x10] ss:$8 sps:$4 sm:$0xff]  }
  0xd1   : > { %7359 = vmatpush3.bf16.msra.mxu1 %v7867_v2  ;;  %7336 = vmatprep.subr.bf16.mxu0 %v7868_v0  ;;  %v2902_v2 = vrot.slane %v2868_v47, 1 }
  0xd2   : > { %7360 = vmatprep.subr.bf16.mxu1 %v7869_v45  ;;  %7306 = vmatprep.mubr.bf16.mxu0 %v2350_v25  ;;  %v2911_v44 = vrot.slane %v2874_v62, 1  ;;  %v2877_v25 = vunpack.c.h.bf16 %v6217_v9 }
  0xd3   : > { %7330 = vmatprep.mubr.bf16.mxu1 %v2548_v4  ;;  %v2903_v24 = vsel %vm473_vm0, %v2901_v63, %v2902_v2  ;;  %v3077_v4 = vunpack.c.l.bf16 %v6245_v6 }
  0xd4   : > { %7337 = vmatpush3.bf16.msra.mxu0 %v7868_v0  ;;  %v2906_v0 = vsel %vm473_vm0, %v2904_v56, %v2905_v57  ;;  %v2912_v58 = vsel %vm473_vm0, %v2910_v10, %v2911_v44  ;;  %v7892_v57 = vld [vmem:[%s9914_s3 + $0x3a0] sm:$0xff]   ;;  %v7894_v44 = vld [vmem:[%s9914_s3 + $0x398] sm:$0xff]  }
  0xd5   : > { %7361 = vmatpush3.bf16.msra.mxu1 %v7869_v45  ;;  %7338 = vmatprep.subr.bf16.mxu0 %v7870_v29  ;;  %v2876_v45 = vunpack.c.l.bf16 %v8809_v38  ;;  %v2928_v23 = vpack.c.bf16 %v2906_v0, %v2903_v24  ;;  %v7895_v0 = vld [vmem:[%s9914_s3 + $0x3d8] sm:$0xff]   ;;  %v7907_v38 = vld [vmem:[%s9914_s3 + $0x470] sm:$0xff]  }
  0xd6   : > { %7362 = vmatprep.subr.bf16.mxu1 %v7871_v5 }
  0xd7   : > { %7307 = vmatmul.mubr.bf16.gmra.mxu0 %v2351_v27  ;;  %v2914_v11 = vrot.slane %v2876_v45, 1  ;;  %v2916_v27 = vrot.slane %v2877_v25, 1  ;;  %v7896_v25 = vld [vmem:[%s9914_s3 + $0x390] sm:$0xff]  }
  0xd8   : > { %7339 = vmatpush3.bf16.msra.mxu0 %v7870_v29  ;;  %7331 = vmatmul.mubr.bf16.gmra.mxu1 %v2549_v28  ;;  %v7883_v29 = vld [vmem:[%s8493_s20 + $0x18] ss:$8 sps:$4 sm:$0xff]   ;;  %v2917_v28 = vrot.slane %v2878_v1, 1 }
  0xd9   : > { %7363 = vmatpush3.bf16.msra.mxu1 %v7871_v5  ;;  %7340 = vmatprep.subr.bf16.mxu0 %v7872_v31  ;;  %v7886_v5 = vld [vmem:[%s9914_s3 + $0x3b0] sm:$0xff]  }
  0xda   : > { %7364 = vmatprep.subr.bf16.mxu1 %v7873_v12  ;;  %7350 = vmatprep.mubr.bf16.mxu0 %v7882_v32  ;;  %v2929_v32 = vpack.c.bf16 %v2912_v58, %v2909_v26  ;;  %v2918_v40 = vsel %vm473_vm0, %v2916_v27, %v2917_v28 }
  0xdb   : > { %7374 = vmatprep.mubr.bf16.mxu1 %v2927_v34  ;;  %v3093_v34 = vrot.slane %v3077_v4, 2  ;;  %v6248_v4 = vld [vmem:[%s8493_s20 + $0x20] sm:$0xe] }
  0xdc   : > { %7341 = vmatpush3.bf16.msra.mxu0 %v7872_v31  ;;  %v3094_v31 = vrot.slane %v2864_v13, 2  ;;  %v2915_v13 = vsel %vm473_vm0, %v2913_v59, %v2914_v11  ;;  %v7897_v59 = vld [vmem:[%s9914_s3 + $0x3d0] sm:$0xff]   ;;  %v3080_v28 = vunpack.c.l.bf16 %v6248_v4 }
  0xdd   : > { %7365 = vmatpush3.bf16.msra.mxu1 %v7873_v12  ;;  %7342 = vmatprep.subr.bf16.mxu0 %v7874_v35  ;;  %v2930_v63 = vpack.c.bf16 %v2918_v40, %v2915_v13 }
  0xde   : > { %7366 = vmatprep.subr.bf16.mxu1 %v7875_v36 }
  0xe0   : > { %7343 = vmatpush3.bf16.msra.mxu0 %v7874_v35  ;;  %v3096_v35 = vrot.slane %v3078_v22, 2 }
  0xe1   : > { %7367 = vmatpush3.bf16.msra.mxu1 %v7875_v36  ;;  %7344 = vmatprep.subr.bf16.mxu0 %v7876_v37  ;;  %v3097_v36 = vrot.slane %v2866_v15, 2  ;;  %v7891_v15 = vld [vmem:[%s9914_s3 + $0x3e8] sm:$0xff]  }
  0xe2   : > { %7368 = vmatprep.subr.bf16.mxu1 %v7877_v17 }
  0xe3   : > { %v3098_v54 = vsel %vm777_vm1, %v3096_v35, %v3097_v36  ;;  %v3106_v35 = vrot.slane %v2872_v55, 2  ;;  %v7899_v36 = vld [vmem:[%s9914_s3 + $0x3c8] sm:$0xff]  }
  0xe4   : > { %7345 = vmatpush3.bf16.msra.mxu0 %v7876_v37 }
  0xe5   : > { %7369 = vmatpush3.bf16.msra.mxu1 %v7877_v17  ;;  %7346 = vmatprep.subr.bf16.mxu0 %v7878_v51 }
  0xe6   : > { %7370 = vmatprep.subr.bf16.mxu1 %v7879_v53 }
  0xe8   : > { %7347 = vmatpush3.bf16.msra.mxu0 %v7878_v51  ;;  %v7889_v51 = vld [vmem:[%s8493_s20 + $0x38] ss:$8 sps:$4 sm:$0xff]  }
  0xe9   : > { %7371 = vmatpush3.bf16.msra.mxu1 %v7879_v53  ;;  %7348 = vmatprep.subr.bf16.mxu0 %v7880_v60  ;;  %v3095_v53 = vsel %vm777_vm1, %v3093_v34, %v3094_v31  ;;  %v3103_v34 = vrot.slane %v2870_v49, 2 }
  0xea   : > { %7372 = vmatprep.subr.bf16.mxu1 %v7881_v3  ;;  %v3125_v9 = vpack.c.bf16 %v3098_v54, %v3095_v53  ;;  %v6353_v53 = vld [vmem:[%s8493_s20 + $0x10] sm:$0xe]  ;;  %v3442_v54 = vunpack.c.l.bf16 %v6313_v50 }
  0xec   : > { %7349 = vmatpush3.bf16.msra.mxu0 %v7880_v60  ;;  %v3474_v4 = vrot.slane %v3442_v54, 1 }
  0xed   : > { %7373 = vmatpush3.bf16.msra.mxu1 %v7881_v3  ;;  %7382 = vmatprep.subr.bf16.mxu0 %v7884_v18  ;;  %v7893_v3 = vld [vmem:[%s9914_s3 + $0x3e0] sm:$0xff]  }
  0xee   : > { %7406 = vmatprep.subr.bf16.mxu1 %v7885_v8 }
  0xef   : > { %v7064_v12 = vpop.f32.mrf.mxu0  ;;  %7351 = vmatmul.mubr.bf16.vlgmr.msra.gmra.mxu0 %v7883_v29 }
  0xf0   : > { %v7088_v37 = vpop.f32.mrf.mxu1  ;;  %7375 = vmatmul.mubr.bf16.vlgmr.msra.gmra.mxu1 %v2928_v23  ;;  %7383 = vmatpush3.bf16.msra.mxu0 %v7884_v18  ;;  %v6247_v18 = vld [vmem:[%s8493_s20 + $0x18] sm:$0xe]  ;;  %v6249_v23 = vld [vmem:[%s8493_s20 + $0x28] sm:$0xe] }
  0xf1   : > { %v8861_v20 = vadd.f32 %v7088_v37, %v7064_v12  ;;  %7407 = vmatpush3.bf16.msra.mxu1 %v7885_v8  ;;  %v609_v17 = vpop.f32.mrf.mxu0  ;;  %7384 = vmatprep.subr.bf16.mxu0 %v7886_v5  ;;  %v3079_v27 = vunpack.c.l.bf16 %v6247_v18  ;;  %v7898_v12 = vld [vmem:[%s9914_s3 + $0x388] sm:$0xff]   ;;  %v3115_v18 = vrot.slane %v2878_v1, 2 }
  0xf2   : > { %v722_v7 = vpop.f32.mrf.mxu1  ;;  %7408 = vmatprep.subr.bf16.mxu1 %v7887_v30  ;;  %7354 = vmatprep.mubr.bf16.mxu0 %v7888_v61  ;;  %v3081_v61 = vunpack.c.l.bf16 %v6249_v23  ;;  %v7908_v1 = vld [vmem:[%s9914_s3 + $0x428] sm:$0xff]  }
  0xf3   : > { %v8872_v46 = vadd.f32 %v722_v7, %v609_v17  ;;  %v7065_v48 = vpop.f32.mrf.mxu0  ;;  %7378 = vmatprep.mubr.bf16.mxu1 %v2929_v32  ;;  %v3100_v32 = vrot.slane %v2868_v47, 2  ;;  %v3099_v37 = vrot.slane %v3079_v27, 2  ;;  %v3102_v17 = vrot.slane %v3080_v28, 2  ;;  %v7901_v47 = vld [vmem:[%s9914_s3 + $0x3c0] sm:$0xff]   ;;  %v7904_v7 = vld [vmem:[%s9914_s3 + $0x438] sm:$0xff]  }
  0xf4   : > { %v7089_v33 = vpop.f32.mrf.mxu1  ;;  %7385 = vmatpush3.bf16.msra.mxu0 %v7886_v5  ;;  %v6250_v5 = vld [vmem:[%s8493_s20 + $0x30] sm:$0xe]  ;;  %v3105_v49 = vrot.slane %v3081_v61, 2  ;;  %v8981_v61 = vld [vmem:[%s8493_s20 + $0x2c] sm:$0x1] }
  0xf5   : > { %v8877_v2 = vadd.f32 %v7089_v33, %v7065_v48  ;;  %7409 = vmatpush3.bf16.msra.mxu1 %v7887_v30  ;;  %v612_v56 = vpop.f32.mrf.mxu0  ;;  %7386 = vmatprep.subr.bf16.mxu0 %v7890_v52  ;;  %v3082_v31 = vunpack.c.l.bf16 %v6250_v5  ;;  %v3101_v13 = vsel %vm777_vm1, %v3099_v37, %v3100_v32  ;;  %v3104_v40 = vsel %vm777_vm1, %v3102_v17, %v3103_v34  ;;  %v6316_v48 = vld [vmem:[%s8493_s20 + $0x1c] sm:$0x1]  ;;  %v7909_v37 = vld [vmem:[%s9914_s3 + $0x468] sm:$0xff]  }
  0xf6   : > { %v725_v60 = vpop.f32.mrf.mxu1  ;;  %7410 = vmatprep.subr.bf16.mxu1 %v7891_v15 }
  0xf7   : > { %v8889_v42 = vadd.f32 %v725_v60, %v612_v56  ;;  %7355 = vmatmul.mubr.bf16.gmra.mxu0 %v7889_v51  ;;  %v7068_v10 = vpop.f32.mrf.mxu0  ;;  %v3108_v55 = vrot.slane %v3082_v31, 2  ;;  %v3084_v51 = vunpack.c.l.bf16 %v6252_v43  ;;  %v3126_v56 = vpack.c.bf16 %v3104_v40, %v3101_v13  ;;  %v7911_v43 = vld [vmem:[%s8493_s20 + $0x40] ss:$8 sps:$4 sm:$0xff]  }
  0xf8   : > { %7387 = vmatpush3.bf16.msra.mxu0 %v7890_v52  ;;  %7379 = vmatmul.mubr.bf16.gmra.mxu1 %v2930_v63  ;;  %v7092_v24 = vpop.f32.mrf.mxu1  ;;  %v3109_v52 = vrot.slane %v2874_v62, 2  ;;  %v6314_v62 = vld [vmem:[%s8493_s20 + $0x14] sm:$0x1]  ;;  %v6354_v63 = vld [vmem:[%s8493_s20 + $0x18] sm:$0xe]  ;;  %v3112_v60 = vrot.slane %v2876_v45, 2  ;;  %v3449_v13 = vunpack.c.l.bf16 %v8981_v61 }
  0xf9   : > { %7411 = vmatpush3.bf16.msra.mxu1 %v7891_v15  ;;  %7388 = vmatprep.subr.bf16.mxu0 %v7892_v57  ;;  %v8898_v6 = vadd.f32 %v7092_v24, %v7068_v10  ;;  %v625_v14 = vpop.f32.mrf.mxu0  ;;  %v3083_v15 = vunpack.c.l.bf16 %v6251_v21  ;;  %v3443_v33 = vunpack.c.l.bf16 %v6314_v62  ;;  %v3107_v10 = vsel %vm777_vm1, %v3105_v49, %v3106_v35  ;;  %v6355_v40 = vld [vmem:[%s8493_s20 + $0x20] sm:$0xe] }
  0xfa   : > { %7412 = vmatprep.subr.bf16.mxu1 %v7893_v3  ;;  %v738_v19 = vpop.f32.mrf.mxu1  ;;  %7398 = vmatprep.mubr.bf16.mxu0 %v3125_v9  ;;  %v3445_v9 = vunpack.c.l.bf16 %v6316_v48  ;;  %v3114_v45 = vrot.slane %v3084_v51, 2 }
  0xfb   : > { %v8904_v8 = vadd.f32 %v738_v19, %v625_v14  ;;  %v7069_v29 = vpop.f32.mrf.mxu0  ;;  %7422 = vmatprep.mubr.bf16.mxu1 %v7902_v16  ;;  %v7903_v16 = vld [vmem:[%s8493_s20 + $0x20] ss:$8 sps:$4 sm:$0xff]   ;;  %v3111_v24 = vrot.slane %v3083_v15, 2  ;;  %v7906_v14 = vld [vmem:[%s9914_s3 + $0x430] sm:$0xff]   ;;  %v3657_v19 = vunpack.c.l.bf16 %v6354_v63  ;;  %v3673_v28 = vrot.slane %v3443_v33, 2 }
  0xfc   : > { %7389 = vmatpush3.bf16.msra.mxu0 %v7892_v57  ;;  %v7093_v22 = vpop.f32.mrf.mxu1  ;;  %v7905_v57 = vld [vmem:[%s9914_s3 + $0x478] sm:$0xff]   ;;  %v3478_v5 = vrot.slane %v3445_v9, 1  ;;  %v3116_v32 = vsel %vm777_vm1, %v3114_v45, %v3115_v18  ;;  %v3676_v35 = vrot.slane %v3445_v9, 2 }
  0xfd   : > { %7413 = vmatpush3.bf16.msra.mxu1 %v7893_v3  ;;  %7390 = vmatprep.subr.bf16.mxu0 %v7894_v44  ;;  %v8913_v26 = vadd.f32 %v7093_v22, %v7069_v29  ;;  %v628_v58 = vpop.f32.mrf.mxu0  ;;  %v3444_v3 = vunpack.c.h.bf16 %v6313_v50  ;;  %v7910_v29 = vld [vmem:[%s8493_s20 + $0x30] ss:$8 sps:$4 sm:$0xff]   ;;  %v3475_v22 = vrot.slane %v3443_v33, 1  ;;  %v3113_v41 = vsel %vm777_vm1, %v3111_v24, %v3112_v60  ;;  %v7912_v33 = vld [vmem:[%s9914_s3 + $0x420] sm:$0xff]  }
  0xfe   : > { %7414 = vmatprep.subr.bf16.mxu1 %v7895_v0  ;;  %v741_v11 = vpop.f32.mrf.mxu1  ;;  %v3675_v34 = vrot.slane %v3657_v19, 2  ;;  %v3128_v50 = vpack.c.bf16 %v3116_v32, %v3113_v41  ;;  %v7914_v45 = vld [vmem:[%s9914_s3 + $0x418] sm:$0xff]  }
  0xff   : > { %v8919_v30 = vadd.f32 %v741_v11, %v628_v58  ;;  %v3477_v58 = vrot.slane %v3444_v3, 1  ;;  %v3476_v17 = vsel %vm473_vm0, %v3474_v4, %v3475_v22  ;;  %v7913_v3 = vld [vmem:[%s9914_s3 + $0x460] sm:$0xff]   ;;  %v7915_v18 = vld [vmem:[%s9914_s3 + $0x458] sm:$0xff]   ;;  %v9035_v4 = vld [vmem:[%s8493_s20 + $0x34] sm:$0x1] }
 0x100   : > { %7391 = vmatpush3.bf16.msra.mxu0 %v7894_v44  ;;  %v3110_v44 = vsel %vm777_vm1, %v3108_v55, %v3109_v52  ;;  %v3677_v51 = vsel %vm777_vm1, %v3675_v34, %v3676_v35 }
 0x101   : > { %7415 = vmatpush3.bf16.msra.mxu1 %v7895_v0  ;;  %7392 = vmatprep.subr.bf16.mxu0 %v7896_v25  ;;  %v3656_v0 = vunpack.c.l.bf16 %v6353_v53  ;;  %v3127_v23 = vpack.c.bf16 %v3110_v44, %v3107_v10  ;;  %v6356_v53 = vld [vmem:[%s8493_s20 + $0x28] sm:$0xe] }
 0x102   : > { %7416 = vmatprep.subr.bf16.mxu1 %v7897_v59  ;;  %v3659_v19 = vunpack.c.l.bf16 %v6356_v53 }
 0x103   : > { %v3672_v27 = vrot.slane %v3656_v0, 2  ;;  %v9020_v0 = vrot.slane %v3449_v13, 1 }
 0x104   : > { %7393 = vmatpush3.bf16.msra.mxu0 %v7896_v25  ;;  %v8970_v25 = vld [vmem:[%s8493_s20 + $0x20] ss:$8 sps:$4 sm:$0xff]   ;;  %v3681_v32 = vrot.slane %v3659_v19, 2 }
 0x105   : > { %7417 = vmatpush3.bf16.msra.mxu1 %v7897_v59  ;;  %7394 = vmatprep.subr.bf16.mxu0 %v7898_v12  ;;  %v8974_v59 = vld [vmem:[%s8493_s20 + $0x24] sm:$0x1]  ;;  %v3448_v62 = vunpack.c.h.bf16 %v8970_v25  ;;  %v3674_v48 = vsel %vm777_vm1, %v3672_v27, %v3673_v28  ;;  %v6325_v27 = vld [vmem:[%s8493_s20 + $0x40] ss:$8 sps:$4 sm:$0xff]  }
 0x106   : > { %7418 = vmatprep.subr.bf16.mxu1 %v7899_v36  ;;  %v3447_v49 = vunpack.c.l.bf16 %v8974_v59  ;;  %v3704_v44 = vpack.c.bf16 %v3677_v51, %v3674_v48  ;;  %v3682_v59 = vrot.slane %v3449_v13, 2  ;;  %v9046_v28 = vld [vmem:[%s8493_s20 + $0x44] sm:$0x1] }
 0x107   : > { %v9018_v24 = vrot.slane %v3448_v62, 1  ;;  %v7918_v62 = vld [vmem:[%s9914_s3 + $0x408] sm:$0xff]  }
 0x108   : > { %7395 = vmatpush3.bf16.msra.mxu0 %v7898_v12  ;;  %v9016_v9 = vrot.slane %v3447_v49, 1 }
 0x109   : > { %7419 = vmatpush3.bf16.msra.mxu1 %v7899_v36  ;;  %7396 = vmatprep.subr.bf16.mxu0 %v7900_v39 }
 0x10a   : > { %7420 = vmatprep.subr.bf16.mxu1 %v7901_v47 }
 0x10c   : > { %7397 = vmatpush3.bf16.msra.mxu0 %v7900_v39 }
 0x10d   : > { %7421 = vmatpush3.bf16.msra.mxu1 %v7901_v47  ;;  %7430 = vmatprep.subr.bf16.mxu0 %v7904_v7  ;;  %v3479_v47 = vsel %vm473_vm0, %v3477_v58, %v3478_v5 }
 0x10e   : > { %7454 = vmatprep.subr.bf16.mxu1 %v7905_v57  ;;  %v3506_v63 = vpack.c.bf16 %v3479_v47, %v3476_v17  ;;  %v3455_v47 = vunpack.c.l.bf16 %v9046_v28 }
 0x10f   : > { %v7112_v11 = vpop.f32.mrf.mxu0  ;;  %7399 = vmatmul.mubr.bf16.vlgmr.msra.gmra.mxu0 %v3126_v56 }
 0x110   : > { %v946_v31 = vadd.f32 %v7112_v11, %v8861_v20  ;;  %v7136_v12 = vpop.f32.mrf.mxu1  ;;  %7423 = vmatmul.mubr.bf16.vlgmr.msra.gmra.mxu1 %v7903_v16  ;;  %7431 = vmatpush3.bf16.msra.mxu0 %v7904_v7  ;;  %v3446_v20 = vunpack.c.l.bf16 %v8970_v25  ;;  %v3658_v16 = vunpack.c.l.bf16 %v6355_v40  ;;  %v9031_v25 = vrot.slane %v3447_v49, 2  ;;  %v6324_v11 = vld [vmem:[%s8493_s20 + $0x3c] sm:$0x1]  ;;  %v6357_v49 = vld [vmem:[%s8493_s20 + $0x30] sm:$0xe] }
 0x111   : > { %7455 = vmatpush3.bf16.msra.mxu1 %v7905_v57  ;;  %v913_v36 = vpop.f32.mrf.mxu0  ;;  %7432 = vmatprep.subr.bf16.mxu0 %v7906_v14  ;;  %v3453_v17 = vunpack.c.l.bf16 %v6324_v11  ;;  %v3660_v53 = vunpack.c.l.bf16 %v6357_v49 }
 0x112   : > { %v8990_v52 = vadd.f32 %v7136_v12, %v946_v31  ;;  %v944_v21 = vadd.f32 %v913_v36, %v8872_v46  ;;  %v1072_v39 = vpop.f32.mrf.mxu1  ;;  %7456 = vmatprep.subr.bf16.mxu1 %v7907_v38  ;;  %7402 = vmatprep.mubr.bf16.mxu0 %v3127_v23  ;;  %v9008_v56 = vrot.slane %v3446_v20, 1  ;;  %v3678_v5 = vrot.slane %v3658_v16, 2  ;;  %v7917_v12 = vld [vmem:[%s9914_s3 + $0x450] sm:$0xff]   ;;  %v7921_v16 = vld [vmem:[%s9914_s3 + $0x440] sm:$0xff]  }
 0x113   : > { %v7113_v55 = vpop.f32.mrf.mxu0  ;;  %7426 = vmatprep.mubr.bf16.mxu1 %v7910_v29  ;;  %v6321_v29 = vld [vmem:[%s8493_s20 + $0x30] ss:$8 sps:$4 sm:$0xff]   ;;  %v3451_v36 = vunpack.c.l.bf16 %v9035_v4  ;;  %v3490_v51 = vrot.slane %v3453_v17, 1  ;;  %v3688_v4 = vrot.slane %v3453_v17, 2 }
 0x114   : > { %v8999_v7 = vadd.f32 %v1072_v39, %v944_v21  ;;  %v947_v46 = vadd.f32 %v7113_v55, %v8877_v2  ;;  %v7137_v15 = vpop.f32.mrf.mxu1  ;;  %7433 = vmatpush3.bf16.msra.mxu0 %v7906_v14  ;;  %v3450_v34 = vunpack.c.l.bf16 %v6321_v29  ;;  %v6358_v55 = vld [vmem:[%s8493_s20 + $0x38] sm:$0xe]  ;;  %v3680_v19 = vsel %vm777_vm1, %v3678_v5, %v9031_v25  ;;  %v7925_v17 = vld [vmem:[%s9914_s3 + $0x4f0] sm:$0xff]  }
 0x115   : > { %7457 = vmatpush3.bf16.msra.mxu1 %v7907_v38  ;;  %v916_v54 = vpop.f32.mrf.mxu0  ;;  %7434 = vmatprep.subr.bf16.mxu0 %v7908_v1 }
 0x116   : > { %v9010_v57 = vadd.f32 %v7137_v15, %v947_v46  ;;  %v945_v2 = vadd.f32 %v916_v54, %v8889_v42  ;;  %v1075_v60 = vpop.f32.mrf.mxu1  ;;  %7458 = vmatprep.subr.bf16.mxu1 %v7909_v37  ;;  %v3486_v13 = vrot.slane %v3450_v34, 1  ;;  %v7919_v46 = vld [vmem:[%s9914_s3 + $0x448] sm:$0xff]   ;;  %v3487_v15 = vrot.slane %v3451_v36, 1 }
 0x117   : > { %v7116_v10 = vpop.f32.mrf.mxu0  ;;  %7403 = vmatmul.mubr.bf16.gmra.mxu0 %v3128_v50 }
 0x118   : > { %v9022_v14 = vadd.f32 %v1075_v60, %v945_v2  ;;  %v950_v42 = vadd.f32 %v7116_v10, %v8898_v6  ;;  %7435 = vmatpush3.bf16.msra.mxu0 %v7908_v1  ;;  %v7140_v38 = vpop.f32.mrf.mxu1  ;;  %7427 = vmatmul.mubr.bf16.gmra.mxu1 %v7911_v43  ;;  %v7916_v1 = vld [vmem:[%s9914_s3 + $0x410] sm:$0xff]   ;;  %v3454_v43 = vunpack.c.l.bf16 %v6325_v27  ;;  %v7920_v2 = vld [vmem:[%s9914_s3 + $0x400] sm:$0xff]   ;;  %v3488_v11 = vsel %vm473_vm0, %v3486_v13, %v3487_v15 }
 0x119   : > { %7459 = vmatpush3.bf16.msra.mxu1 %v7909_v37  ;;  %v929_v6 = vpop.f32.mrf.mxu0  ;;  %7436 = vmatprep.subr.bf16.mxu0 %v7912_v33  ;;  %v3452_v37 = vunpack.c.h.bf16 %v6321_v29  ;;  %v6359_v60 = vld [vmem:[%s8493_s20 + $0x40] sm:$0xe]  ;;  %v3683_v29 = vsel %vm777_vm1, %v3681_v32, %v3682_v59  ;;  %v9098_v59 = vld [vmem:[%s8911_s17 + $0xc] sm:$0x1] }
 0x11a   : > { %v948_v22 = vadd.f32 %v929_v6, %v8904_v8  ;;  %v9038_v23 = vadd.f32 %v7140_v38, %v950_v42  ;;  %v1088_v58 = vpop.f32.mrf.mxu1  ;;  %7460 = vmatprep.subr.bf16.mxu1 %v7913_v3  ;;  %7446 = vmatprep.mubr.bf16.mxu0 %v3506_v63  ;;  %v3492_v54 = vrot.slane %v3454_v43, 1  ;;  %v3661_v63 = vunpack.c.l.bf16 %v6358_v55 }
 0x11b   : > { %v7117_v41 = vpop.f32.mrf.mxu0  ;;  %7470 = vmatprep.mubr.bf16.mxu1 %v3704_v44  ;;  %v3489_v48 = vrot.slane %v3452_v37, 1  ;;  %v3482_v42 = vsel %vm473_vm0, %v9008_v56, %v9016_v9  ;;  %v3485_v38 = vsel %vm473_vm0, %v9018_v24, %v9020_v0  ;;  %v3662_v56 = vunpack.c.l.bf16 %v6359_v60  ;;  %v7923_v24 = vld [vmem:[%s9914_s3 + $0x4f8] sm:$0xff]   ;;  %v9095_v0 = vld [vmem:[%s8911_s17 + $0x4] sm:$0x1]  ;;  %v7924_v37 = vld [vmem:[%s9914_s3 + $0x4b0] sm:$0xff]  }
 0x11c   : > { %v951_v8 = vadd.f32 %v7117_v41, %v8913_v26  ;;  %v9049_v61 = vadd.f32 %v1088_v58, %v948_v22  ;;  %7437 = vmatpush3.bf16.msra.mxu0 %v7912_v33  ;;  %v7141_v31 = vpop.f32.mrf.mxu1  ;;  %v6328_v26 = vld [vmem:[%s8493_s20 + $0x4c] sm:$0x1]  ;;  %v3493_v33 = vrot.slane %v3455_v47, 1  ;;  %v3687_v6 = vrot.slane %v3661_v63, 2  ;;  %v7922_v22 = vld [vmem:[%s9914_s3 + $0x4b8] sm:$0xff]  }
 0x11d   : > { %7461 = vmatpush3.bf16.msra.mxu1 %v7913_v3  ;;  %v932_v35 = vpop.f32.mrf.mxu0  ;;  %7438 = vmatprep.subr.bf16.mxu0 %v7914_v45  ;;  %v3457_v40 = vunpack.c.l.bf16 %v6328_v26  ;;  %v6360_v3 = vld [vmem:[%s8493_s20 + $0x48] sm:$0xe]  ;;  %v3507_v25 = vpack.c.bf16 %v3485_v38, %v3482_v42  ;;  %v3705_v5 = vpack.c.bf16 %v3683_v29, %v3680_v19  ;;  %v3491_v41 = vsel %vm473_vm0, %v3489_v48, %v3490_v51  ;;  %s5812_s20 = sshll.u32 %s9961_s22, 6 }
 0x11e   : > { %v949_v20 = vadd.f32 %v932_v35, %v8919_v30  ;;  %v9057_v21 = vadd.f32 %v7141_v31, %v951_v8  ;;  %v1091_v39 = vpop.f32.mrf.mxu1  ;;  %7462 = vmatprep.subr.bf16.mxu1 %v7915_v18  ;;  %v3456_v30 = vunpack.c.h.bf16 %v6325_v27  ;;  %v3663_v9 = vunpack.c.l.bf16 %v6360_v3  ;;  %v4004_v58 = vld [vmem:[%s8911_s17] ss:$8 sps:$4 sm:$0xff]   ;;  %s9851_s21 = sadd.s32 %s5812_s20, %s5811_s12 }
 0x11f   : > { %v3496_v44 = vrot.slane %v3457_v40, 1  ;;  %v3694_v27 = vrot.slane %v3457_v40, 2  ;;  %v3690_v8 = vrot.slane %v3662_v56, 2  ;;  %v3689_v32 = vsel %vm777_vm1, %v3687_v6, %v3688_v4  ;;  %v7926_v51 = vld [vmem:[%s9914_s3 + $0x4a8] sm:$0xff]   ;;  %s5813_s22 = sshll.u32 %s9851_s21, 2 }
 0x120   : > { %v9062_v50 = vadd.f32 %v1091_v39, %v949_v20  ;;  %7439 = vmatpush3.bf16.msra.mxu0 %v7914_v45  ;;  %v3495_v10 = vrot.slane %v3456_v30, 1  ;;  %v3684_v45 = vrot.slane %v3660_v53, 2  ;;  %v3693_v31 = vrot.slane %v3663_v9, 2  ;;  %s394_s16 = scalar_lea.vmem %s9916_s5, %s5813_s22  ;;  %s403_s7 = scalar_lea.vmem %s9917_s6, %s5813_s22 }
 0x121   : > { %7463 = vmatpush3.bf16.msra.mxu1 %v7915_v18  ;;  %7440 = vmatprep.subr.bf16.mxu0 %v7916_v1  ;;  %v3685_v18 = vrot.slane %v3451_v36, 2  ;;  %v4021_v34 = vunpack.c.l.bf16 %v9095_v0  ;;  %v4022_v35 = vunpack.c.h.bf16 %v4004_v58  ;;  %v4023_v36 = vunpack.c.l.bf16 %v9098_v59  ;;  %v7946_v0 = vld [vmem:[%s9914_s3 + $0x528] sm:$0xff]  }
 0x122   : > { %7464 = vmatprep.subr.bf16.mxu1 %v7917_v12  ;;  %v3508_v26 = vpack.c.bf16 %v3491_v41, %v3488_v11  ;;  %v3494_v20 = vsel %vm473_vm0, %v3492_v54, %v3493_v33  ;;  %v3497_v39 = vsel %vm473_vm0, %v3495_v10, %v3496_v44  ;;  %v3695_v55 = vsel %vm777_vm1, %v3693_v31, %v3694_v27  ;;  %v7927_v33 = vld [vmem:[%s9914_s3 + $0x4e8] sm:$0xff]   ;;  %v4008_v41 = vld [vmem:[%s8911_s17 + $0x10] ss:$8 sps:$4 sm:$0xff]  }
 0x123   : > { %v3686_v28 = vsel %vm777_vm1, %v3684_v45, %v3685_v18  ;;  %v4053_v40 = vrot.slane %v4021_v34, 1  ;;  %v4056_v15 = vrot.slane %v4023_v36, 1  ;;  %v7929_v45 = vld [vmem:[%s9914_s3 + $0x4e0] sm:$0xff]  }
 0x124   : > { %7441 = vmatpush3.bf16.msra.mxu0 %v7916_v1  ;;  %v3691_v1 = vrot.slane %v3455_v47, 2  ;;  %v3706_v47 = vpack.c.bf16 %v3689_v32, %v3686_v28  ;;  %v7938_v18 = vld [vmem:[%s8911_s17] ss:$8 sps:$4 sm:$0xff]  }
 0x125   : > { %7465 = vmatpush3.bf16.msra.mxu1 %v7917_v12  ;;  %7442 = vmatprep.subr.bf16.mxu0 %v7918_v62  ;;  %v4020_v12 = vunpack.c.l.bf16 %v4004_v58 }
 0x126   : > { %7466 = vmatprep.subr.bf16.mxu1 %v7919_v46  ;;  %v3692_v49 = vsel %vm777_vm1, %v3690_v8, %v3691_v1  ;;  %v9159_v1 = vld [vmem:[%s8911_s17 + $0x14] sm:$0x1]  ;;  %v9165_v8 = vld [vmem:[%s8911_s17 + $0x1c] sm:$0x1] }
 0x127   : > { %v3707_v60 = vpack.c.bf16 %v3695_v55, %v3692_v49  ;;  %v9183_v49 = vld [vmem:[%s8911_s17 + $0x2c] sm:$0x1] }
 0x128   : > { %7443 = vmatpush3.bf16.msra.mxu0 %v7918_v62  ;;  %v4052_v62 = vrot.slane %v4020_v12, 1  ;;  %v7932_v12 = vld [vmem:[%s9914_s3 + $0x490] sm:$0xff]   ;;  %v7934_v55 = vld [vmem:[%s9914_s3 + $0x488] sm:$0xff]  }
 0x129   : > { %7467 = vmatpush3.bf16.msra.mxu1 %v7919_v46  ;;  %7444 = vmatprep.subr.bf16.mxu0 %v7920_v2  ;;  %v4055_v46 = vrot.slane %v4022_v35, 1 }
 0x12a   : > { %7468 = vmatprep.subr.bf16.mxu1 %v7921_v16  ;;  %v4054_v44 = vsel %vm473_vm0, %v4052_v62, %v4053_v40  ;;  %v7935_v62 = vld [vmem:[%s9914_s3 + $0x4c8] sm:$0xff]  }
 0x12b   : > { %v4057_v42 = vsel %vm473_vm0, %v4055_v46, %v4056_v15  ;;  %v4031_v46 = vunpack.c.l.bf16 %v9183_v49  ;;  %v7936_v15 = vld [vmem:[%s9914_s3 + $0x480] sm:$0xff]  }
 0x12c   : > { %7445 = vmatpush3.bf16.msra.mxu0 %v7920_v2  ;;  %v3509_v2 = vpack.c.bf16 %v3497_v39, %v3494_v20  ;;  %v4084_v4 = vpack.c.bf16 %v4057_v42, %v4054_v44  ;;  %v4024_v20 = vunpack.c.l.bf16 %v4008_v41  ;;  %v4025_v39 = vunpack.c.l.bf16 %v9159_v1  ;;  %v4226_v42 = vld [vmem:[%s8911_s17] sm:$0xe] }
 0x12d   : > { %7469 = vmatpush3.bf16.msra.mxu1 %v7921_v16  ;;  %7478 = vmatprep.subr.bf16.mxu0 %v7922_v22  ;;  %v4068_v44 = vrot.slane %v4031_v46, 1  ;;  %v7956_v1 = vld [vmem:[%s9914_s3 + $0x500] sm:$0xff]  }
 0x12e   : > { %7502 = vmatprep.subr.bf16.mxu1 %v7923_v24 }
 0x12f   : > { %v7160_v43 = vpop.f32.mrf.mxu0  ;;  %7447 = vmatmul.mubr.bf16.vlgmr.msra.gmra.mxu0 %v3507_v25 }
 0x130   : > { %v1327_v13 = vadd.f32 %v7160_v43, %v8990_v52  ;;  %v7184_v30 = vpop.f32.mrf.mxu1  ;;  %7471 = vmatmul.mubr.bf16.vlgmr.msra.gmra.mxu1 %v3705_v5  ;;  %7479 = vmatpush3.bf16.msra.mxu0 %v7922_v22  ;;  %v4026_v43 = vunpack.c.h.bf16 %v4008_v41  ;;  %v7942_v41 = vld [vmem:[%s9914_s3 + $0x530] sm:$0xff]  }
 0x131   : > { %7503 = vmatpush3.bf16.msra.mxu1 %v7923_v24  ;;  %v1294_v48 = vpop.f32.mrf.mxu0  ;;  %7480 = vmatprep.subr.bf16.mxu0 %v7924_v37 }
 0x132   : > { %v9124_v53 = vadd.f32 %v7184_v30, %v1327_v13  ;;  %v1325_v52 = vadd.f32 %v1294_v48, %v8999_v7  ;;  %v1492_v54 = vpop.f32.mrf.mxu1  ;;  %7504 = vmatprep.subr.bf16.mxu1 %v7925_v17  ;;  %7450 = vmatprep.mubr.bf16.mxu0 %v3508_v26  ;;  %v7928_v7 = vld [vmem:[%s9914_s3 + $0x4a0] sm:$0xff]   ;;  %v4058_v48 = vrot.slane %v4024_v20, 1 }
 0x133   : > { %v7161_v63 = vpop.f32.mrf.mxu0  ;;  %7474 = vmatprep.mubr.bf16.mxu1 %v3706_v47  ;;  %v9178_v26 = vld [vmem:[%s8911_s17 + $0x24] sm:$0x1]  ;;  %v4027_v47 = vunpack.c.l.bf16 %v9165_v8 }
 0x134   : > { %v9130_v3 = vadd.f32 %v1492_v54, %v1325_v52  ;;  %v1328_v16 = vadd.f32 %v7161_v63, %v9010_v57  ;;  %v7185_v10 = vpop.f32.mrf.mxu1  ;;  %7481 = vmatpush3.bf16.msra.mxu0 %v7924_v37  ;;  %v4029_v30 = vunpack.c.l.bf16 %v9178_v26  ;;  %v4061_v52 = vrot.slane %v4026_v43, 1  ;;  %v4016_v63 = vld [vmem:[%s8911_s17 + $0x30] ss:$8 sps:$4 sm:$0xff]   ;;  %v6500_v26 = vld [vmem:[%s8911_s17 + $0x14] sm:$0x1] }
 0x135   : > { %7505 = vmatpush3.bf16.msra.mxu1 %v7925_v17  ;;  %v1297_v38 = vpop.f32.mrf.mxu0  ;;  %7482 = vmatprep.subr.bf16.mxu0 %v7926_v51  ;;  %v4012_v17 = vld [vmem:[%s8911_s17 + $0x20] ss:$8 sps:$4 sm:$0xff]   ;;  %v4062_v54 = vrot.slane %v4027_v47, 1 }
 0x136   : > { %v9142_v19 = vadd.f32 %v7185_v10, %v1328_v16  ;;  %v1326_v57 = vadd.f32 %v1297_v38, %v9022_v14  ;;  %v1495_v29 = vpop.f32.mrf.mxu1  ;;  %7506 = vmatprep.subr.bf16.mxu1 %v7927_v33  ;;  %v7930_v14 = vld [vmem:[%s9914_s3 + $0x498] sm:$0xff]   ;;  %v4028_v13 = vunpack.c.l.bf16 %v4012_v17  ;;  %v4030_v40 = vunpack.c.h.bf16 %v4012_v17 }
 0x137   : > { %v7164_v6 = vpop.f32.mrf.mxu0  ;;  %7451 = vmatmul.mubr.bf16.gmra.mxu0 %v3509_v2  ;;  %v9207_v2 = vld [vmem:[%s8911_s17 + $0x34] sm:$0x1]  ;;  %v4065_v10 = vrot.slane %v4029_v30, 1  ;;  %v4254_v17 = vrot.slane %v4023_v36, 2  ;;  %v4263_v8 = vrot.slane %v4029_v30, 2 }
 0x138   : > { %v9145_v22 = vadd.f32 %v1495_v29, %v1326_v57  ;;  %v1331_v56 = vadd.f32 %v7164_v6, %v9038_v23  ;;  %7483 = vmatpush3.bf16.msra.mxu0 %v7926_v51  ;;  %v7188_v9 = vpop.f32.mrf.mxu1  ;;  %7475 = vmatmul.mubr.bf16.gmra.mxu1 %v3707_v60  ;;  %v7931_v23 = vld [vmem:[%s9914_s3 + $0x4d8] sm:$0xff]   ;;  %v4059_v51 = vrot.slane %v4025_v39, 1  ;;  %v4064_v16 = vrot.slane %v4028_v13, 1  ;;  %v6537_v30 = vld [vmem:[%s8911_s17 + $0x8] sm:$0xe] }
 0x139   : > { %7507 = vmatpush3.bf16.msra.mxu1 %v7927_v33  ;;  %v1310_v58 = vpop.f32.mrf.mxu0  ;;  %7484 = vmatprep.subr.bf16.mxu0 %v7928_v7  ;;  %v7937_v33 = vld [vmem:[%s9914_s3 + $0x4c0] sm:$0xff]   ;;  %v9210_v60 = vld [vmem:[%s8911_s17 + $0x3c] sm:$0x1]  ;;  %v4032_v29 = vunpack.c.l.bf16 %v4016_v63  ;;  %v4033_v6 = vunpack.c.l.bf16 %v9207_v2  ;;  %v4813_v2 = vunpack.c.l.bf16 %v6537_v30 }
 0x13a   : > { %v1329_v24 = vadd.f32 %v1310_v58, %v9049_v61  ;;  %v9152_v25 = vadd.f32 %v7188_v9, %v1331_v56  ;;  %v1508_v5 = vpop.f32.mrf.mxu1  ;;  %7508 = vmatprep.subr.bf16.mxu1 %v7929_v45  ;;  %7494 = vmatprep.mubr.bf16.mxu0 %v7938_v18  ;;  %v4060_v38 = vsel %vm473_vm0, %v4058_v48, %v4059_v51  ;;  %v4227_v18 = vld [vmem:[%s8911_s17 + $0x8] sm:$0xe]  ;;  %v7940_v57 = vld [vmem:[%s9914_s3 + $0x538] sm:$0xff]   ;;  %v4035_v56 = vunpack.c.l.bf16 %v9210_v60 }
 0x13b   : > { %v7165_v11 = vpop.f32.mrf.mxu0  ;;  %7518 = vmatprep.mubr.bf16.mxu1 %v4084_v4  ;;  %v4034_v4 = vunpack.c.h.bf16 %v4016_v63  ;;  %v7941_v9 = vld [vmem:[%s9914_s3 + $0x578] sm:$0xff]   ;;  %v7947_v51 = vld [vmem:[%s9914_s3 + $0x568] sm:$0xff]  }
 0x13c   : > { %v1332_v27 = vadd.f32 %v7165_v11, %v9057_v21  ;;  %v9162_v28 = vadd.f32 %v1508_v5, %v1329_v24  ;;  %7485 = vmatpush3.bf16.msra.mxu0 %v7928_v7  ;;  %v7189_v61 = vpop.f32.mrf.mxu1  ;;  %v7933_v21 = vld [vmem:[%s9914_s3 + $0x4d0] sm:$0xff]   ;;  %v4067_v7 = vrot.slane %v4030_v40, 1  ;;  %v4235_v24 = vunpack.c.l.bf16 %v4227_v18  ;;  %v7959_v60 = vld [vmem:[%s8911_s17 + $0x18] ss:$8 sps:$4 sm:$0xff]  }
 0x13d   : > { %7509 = vmatpush3.bf16.msra.mxu1 %v7929_v45  ;;  %v1313_v31 = vpop.f32.mrf.mxu0  ;;  %7486 = vmatprep.subr.bf16.mxu0 %v7930_v14  ;;  %v4063_v45 = vsel %vm473_vm0, %v4061_v52, %v4062_v54  ;;  %v7939_v58 = vld [vmem:[%s8911_s17 + $0x10] ss:$8 sps:$4 sm:$0xff]  }
 0x13e   : > { %v1330_v32 = vadd.f32 %v1313_v31, %v9062_v50  ;;  %v9171_v35 = vadd.f32 %v7189_v61, %v1332_v27  ;;  %v1511_v37 = vpop.f32.mrf.mxu1  ;;  %7510 = vmatprep.subr.bf16.mxu1 %v7931_v23  ;;  %v4085_v5 = vpack.c.bf16 %v4063_v45, %v4060_v38  ;;  %v4069_v11 = vsel %vm473_vm0, %v4067_v7, %v4068_v44  ;;  %v7943_v27 = vld [vmem:[%s9914_s3 + $0x570] sm:$0xff]  }
 0x13f   : > { %v4070_v61 = vrot.slane %v4032_v29, 1  ;;  %v4071_v31 = vrot.slane %v4033_v6, 1  ;;  %v7945_v54 = vld [vmem:[%s8911_s17 + $0x30] ss:$8 sps:$4 sm:$0xff]  }
 0x140   : > { %v9185_v50 = vadd.f32 %v1511_v37, %v1330_v32  ;;  %7487 = vmatpush3.bf16.msra.mxu0 %v7930_v14  ;;  %v4234_v14 = vunpack.c.l.bf16 %v4226_v42  ;;  %v4074_v32 = vrot.slane %v4035_v56, 1  ;;  %v7944_v37 = vld [vmem:[%s8911_s17 + $0x20] ss:$8 sps:$4 sm:$0xff]  }
 0x141   : > { %7511 = vmatpush3.bf16.msra.mxu1 %v7931_v23  ;;  %7488 = vmatprep.subr.bf16.mxu0 %v7932_v12  ;;  %v4066_v23 = vsel %vm473_vm0, %v4064_v16, %v4065_v10  ;;  %v4072_v59 = vsel %vm473_vm0, %v4070_v61, %v4071_v31  ;;  %v7948_v42 = vld [vmem:[%s9914_s3 + $0x520] sm:$0xff]   ;;  %v4229_v61 = vld [vmem:[%s8911_s17 + $0x18] sm:$0xe] }
 0x142   : > { %7512 = vmatprep.subr.bf16.mxu1 %v7933_v21  ;;  %v4086_v43 = vpack.c.bf16 %v4069_v11, %v4066_v23 }
 0x144   : > { %7489 = vmatpush3.bf16.msra.mxu0 %v7932_v12  ;;  %v4073_v12 = vrot.slane %v4034_v4, 1  ;;  %v7958_v4 = vld [vmem:[%s8911_s17 + $0x8] ss:$8 sps:$4 sm:$0xff]  }
 0x145   : > { %7513 = vmatpush3.bf16.msra.mxu1 %v7933_v21  ;;  %7490 = vmatprep.subr.bf16.mxu0 %v7934_v55  ;;  %v4251_v21 = vrot.slane %v4021_v34, 2 }
 0x146   : > { %7514 = vmatprep.subr.bf16.mxu1 %v7935_v62  ;;  %v4075_v34 = vsel %vm473_vm0, %v4073_v12, %v4074_v32 }
 0x147   : > { %v4087_v7 = vpack.c.bf16 %v4075_v34, %v4072_v59  ;;  %v7955_v59 = vld [vmem:[%s9914_s3 + $0x548] sm:$0xff]  }
 0x148   : > { %7491 = vmatpush3.bf16.msra.mxu0 %v7934_v55  ;;  %v4250_v55 = vrot.slane %v4234_v14, 2 }
 0x149   : > { %7515 = vmatpush3.bf16.msra.mxu1 %v7935_v62  ;;  %7492 = vmatprep.subr.bf16.mxu0 %v7936_v15  ;;  %v4253_v62 = vrot.slane %v4235_v24, 2 }
 0x14a   : > { %7516 = vmatprep.subr.bf16.mxu1 %v7937_v33 }
 0x14b   : > { %v4255_v63 = vsel %vm777_vm1, %v4253_v62, %v4254_v17  ;;  %v4230_v62 = vld [vmem:[%s8911_s17 + $0x20] sm:$0xe] }
 0x14c   : > { %7493 = vmatpush3.bf16.msra.mxu0 %v7936_v15 }
 0x14d   : > { %7517 = vmatpush3.bf16.msra.mxu1 %v7937_v33  ;;  %7526 = vmatprep.subr.bf16.mxu0 %v7940_v57  ;;  %v4252_v33 = vsel %vm777_vm1, %v4250_v55, %v4251_v21  ;;  %v4237_v55 = vunpack.c.l.bf16 %v4229_v61 }
 0x14e   : > { %7550 = vmatprep.subr.bf16.mxu1 %v7941_v9 }
 0x14f   : > { %v7208_v20 = vpop.f32.mrf.mxu0  ;;  %7495 = vmatmul.mubr.bf16.vlgmr.msra.gmra.mxu0 %v7939_v58  ;;  %v4259_v34 = vrot.slane %v4237_v55, 2 }
 0x150   : > { %v1684_v13 = vadd.f32 %v7208_v20, %v9124_v53  ;;  %v7232_v40 = vpop.f32.mrf.mxu1  ;;  %7519 = vmatmul.mubr.bf16.vlgmr.msra.gmra.mxu1 %v4085_v5  ;;  %7527 = vmatpush3.bf16.msra.mxu0 %v7940_v57  ;;  %v4282_v57 = vpack.c.bf16 %v4255_v63, %v4252_v33  ;;  %v7951_v5 = vld [vmem:[%s9914_s3 + $0x558] sm:$0xff]   ;;  %v7957_v63 = vld [vmem:[%s9914_s3 + $0x540] sm:$0xff]  }
 0x151   : > { %7551 = vmatpush3.bf16.msra.mxu1 %v7941_v9  ;;  %v1651_v15 = vpop.f32.mrf.mxu0  ;;  %7528 = vmatprep.subr.bf16.mxu0 %v7942_v41 }
 0x152   : > { %v9252_v36 = vadd.f32 %v7232_v40, %v1684_v13  ;;  %v1682_v48 = vadd.f32 %v1651_v15, %v9130_v3  ;;  %v1873_v53 = vpop.f32.mrf.mxu1  ;;  %7552 = vmatprep.subr.bf16.mxu1 %v7943_v27  ;;  %7498 = vmatprep.mubr.bf16.mxu0 %v7944_v37  ;;  %v4231_v13 = vld [vmem:[%s8911_s17 + $0x28] sm:$0xe] }
 0x153   : > { %v7209_v52 = vpop.f32.mrf.mxu0  ;;  %7522 = vmatprep.mubr.bf16.mxu1 %v4086_v43 }
 0x154   : > { %v9261_v16 = vadd.f32 %v1873_v53, %v1682_v48  ;;  %v1685_v10 = vadd.f32 %v7209_v52, %v9142_v19  ;;  %v7233_v3 = vpop.f32.mrf.mxu1  ;;  %7529 = vmatpush3.bf16.msra.mxu0 %v7942_v41  ;;  %v7949_v19 = vld [vmem:[%s9914_s3 + $0x560] sm:$0xff]   ;;  %v4228_v41 = vld [vmem:[%s8911_s17 + $0x10] sm:$0xe]  ;;  %v4260_v48 = vrot.slane %v4027_v47, 2  ;;  %v4238_v53 = vunpack.c.l.bf16 %v4230_v62 }
 0x155   : > { %7553 = vmatpush3.bf16.msra.mxu1 %v7943_v27  ;;  %v1654_v44 = vpop.f32.mrf.mxu0  ;;  %7530 = vmatprep.subr.bf16.mxu0 %v7946_v0  ;;  %v4236_v21 = vunpack.c.l.bf16 %v4228_v41  ;;  %v4232_v52 = vld [vmem:[%s8911_s17 + $0x30] sm:$0xe]  ;;  %v4266_v47 = vrot.slane %v4031_v46, 2  ;;  %v7960_v46 = vld [vmem:[%s9914_s3 + $0x5b8] sm:$0xff]  }
 0x156   : > { %v9267_v38 = vadd.f32 %v7233_v3, %v1685_v10  ;;  %v1683_v45 = vadd.f32 %v1654_v44, %v9145_v22  ;;  %v1876_v18 = vpop.f32.mrf.mxu1  ;;  %7554 = vmatprep.subr.bf16.mxu1 %v7947_v51  ;;  %v7950_v22 = vld [vmem:[%s9914_s3 + $0x518] sm:$0xff]   ;;  %v4240_v33 = vunpack.c.l.bf16 %v4232_v52  ;;  %v4261_v10 = vsel %vm777_vm1, %v4259_v34, %v4260_v48  ;;  %v7963_v41 = vld [vmem:[%s9914_s3 + $0x5f0] sm:$0xff]  }
 0x157   : > { %v7212_v29 = vpop.f32.mrf.mxu0  ;;  %7499 = vmatmul.mubr.bf16.gmra.mxu0 %v7945_v54  ;;  %v4256_v15 = vrot.slane %v4236_v21, 2  ;;  %v4233_v54 = vld [vmem:[%s8911_s17 + $0x38] sm:$0xe]  ;;  %v4262_v3 = vrot.slane %v4238_v53, 2 }
 0x158   : > { %v9274_v9 = vadd.f32 %v1876_v18, %v1683_v45  ;;  %v1688_v58 = vadd.f32 %v7212_v29, %v9152_v25  ;;  %7531 = vmatpush3.bf16.msra.mxu0 %v7946_v0  ;;  %v7236_v14 = vpop.f32.mrf.mxu1  ;;  %7523 = vmatmul.mubr.bf16.gmra.mxu1 %v4087_v7  ;;  %v4257_v0 = vrot.slane %v4025_v39, 2  ;;  %v4241_v44 = vunpack.c.l.bf16 %v4233_v54  ;;  %v6498_v45 = vld [vmem:[%s8911_s17 + $0xc] sm:$0x1]  ;;  %v6538_v29 = vld [vmem:[%s8911_s17 + $0x10] sm:$0xe] }
 0x159   : > { %7555 = vmatpush3.bf16.msra.mxu1 %v7947_v51  ;;  %v1667_v24 = vpop.f32.mrf.mxu0  ;;  %7532 = vmatprep.subr.bf16.mxu0 %v7948_v42  ;;  %v4239_v51 = vunpack.c.l.bf16 %v4231_v13  ;;  %v4268_v18 = vrot.slane %v4240_v33, 2 }
 0x15a   : > { %v1686_v23 = vadd.f32 %v1667_v24, %v9162_v28  ;;  %v9284_v11 = vadd.f32 %v7236_v14, %v1688_v58  ;;  %v1889_v25 = vpop.f32.mrf.mxu1  ;;  %7556 = vmatprep.subr.bf16.mxu1 %v7949_v19  ;;  %7542 = vmatprep.mubr.bf16.mxu0 %v4282_v57  ;;  %v7952_v28 = vld [vmem:[%s9914_s3 + $0x510] sm:$0xff]   ;;  %v4258_v39 = vsel %vm777_vm1, %v4256_v15, %v4257_v0  ;;  %v4272_v57 = vrot.slane %v4035_v56, 2 }
 0x15b   : > { %v7213_v27 = vpop.f32.mrf.mxu0  ;;  %7566 = vmatprep.mubr.bf16.mxu1 %v7958_v4  ;;  %v4265_v7 = vrot.slane %v4239_v51, 2  ;;  %v4283_v49 = vpack.c.bf16 %v4261_v10, %v4258_v39  ;;  %v7961_v4 = vld [vmem:[%s9914_s3 + $0x5f8] sm:$0xff]   ;;  %v4264_v58 = vsel %vm777_vm1, %v4262_v3, %v4263_v8  ;;  %v7962_v56 = vld [vmem:[%s9914_s3 + $0x5b0] sm:$0xff]   ;;  %v7968_v3 = vld [vmem:[%s9914_s3 + $0x5a0] sm:$0xff]  }
 0x15c   : > { %v1689_v31 = vadd.f32 %v7213_v27, %v9171_v35  ;;  %v9289_v12 = vadd.f32 %v1889_v25, %v1686_v23  ;;  %7533 = vmatpush3.bf16.msra.mxu0 %v7948_v42  ;;  %v7237_v32 = vpop.f32.mrf.mxu1  ;;  %v7953_v35 = vld [vmem:[%s9914_s3 + $0x550] sm:$0xff]   ;;  %v4602_v25 = vunpack.c.l.bf16 %v6500_v26  ;;  %v6501_v26 = vld [vmem:[%s8911_s17 + $0x18] ss:$8 sps:$4 sm:$0xff]  }
 0x15d   : > { %7557 = vmatpush3.bf16.msra.mxu1 %v7949_v19  ;;  %v1670_v37 = vpop.f32.mrf.mxu0  ;;  %7534 = vmatprep.subr.bf16.mxu0 %v7950_v22  ;;  %v6497_v42 = vld [vmem:[%s8911_s17 + $0x8] ss:$8 sps:$4 sm:$0xff]   ;;  %v4269_v19 = vrot.slane %v4033_v6, 2  ;;  %v4267_v14 = vsel %vm777_vm1, %v4265_v7, %v4266_v47  ;;  %v4814_v6 = vunpack.c.l.bf16 %v6538_v29  ;;  %v7967_v47 = vld [vmem:[%s8911_s17 + $0x38] ss:$8 sps:$4 sm:$0xff]  }
 0x15e   : > { %v1687_v17 = vadd.f32 %v1670_v37, %v9185_v50  ;;  %v9295_v20 = vadd.f32 %v7237_v32, %v1689_v31  ;;  %v1892_v43 = vpop.f32.mrf.mxu1  ;;  %7558 = vmatprep.subr.bf16.mxu1 %v7951_v5  ;;  %v7954_v50 = vld [vmem:[%s9914_s3 + $0x508] sm:$0xff]   ;;  %v4599_v24 = vunpack.c.l.bf16 %v6497_v42  ;;  %v4601_v23 = vunpack.c.h.bf16 %v6497_v42  ;;  %v7969_v42 = vld [vmem:[%s9914_s3 + $0x5e0] sm:$0xff]   ;;  %v6539_v29 = vld [vmem:[%s8911_s17 + $0x18] sm:$0xe] }
 0x15f   : > { %v4284_v27 = vpack.c.bf16 %v4267_v14, %v4264_v58  ;;  %v4270_v61 = vsel %vm777_vm1, %v4268_v18, %v4269_v19  ;;  %v4833_v15 = vrot.slane %v4602_v25, 2  ;;  %v7970_v58 = vld [vmem:[%s9914_s3 + $0x598] sm:$0xff]   ;;  %v4603_v14 = vunpack.c.l.bf16 %v6501_v26 }
 0x160   : > { %v9302_v40 = vadd.f32 %v1892_v43, %v1687_v17  ;;  %7535 = vmatpush3.bf16.msra.mxu0 %v7950_v22  ;;  %v4271_v22 = vrot.slane %v4241_v44, 2  ;;  %v4631_v32 = vrot.slane %v4599_v24, 1  ;;  %v4634_v17 = vrot.slane %v4601_v23, 1 }
 0x161   : > { %7559 = vmatpush3.bf16.msra.mxu1 %v7951_v5  ;;  %7536 = vmatprep.subr.bf16.mxu0 %v7952_v28  ;;  %v4600_v5 = vunpack.c.l.bf16 %v6498_v45  ;;  %v4635_v43 = vrot.slane %v4602_v25, 1 }
 0x162   : > { %7560 = vmatprep.subr.bf16.mxu1 %v7953_v35  ;;  %v4273_v31 = vsel %vm777_vm1, %v4271_v22, %v4272_v57  ;;  %v6504_v57 = vld [vmem:[%s8911_s17 + $0x24] sm:$0x1]  ;;  %v6540_v22 = vld [vmem:[%s8911_s17 + $0x20] sm:$0xe] }
 0x163   : > { %v4632_v21 = vrot.slane %v4600_v5, 1  ;;  %v4830_v13 = vrot.slane %v4600_v5, 2  ;;  %v4285_v52 = vpack.c.bf16 %v4273_v31, %v4270_v61  ;;  %v4816_v61 = vunpack.c.l.bf16 %v6540_v22 }
 0x164   : > { %7537 = vmatpush3.bf16.msra.mxu0 %v7952_v28  ;;  %v7966_v28 = vld [vmem:[%s8911_s17 + $0x28] ss:$8 sps:$4 sm:$0xff]  }
 0x165   : > { %7561 = vmatpush3.bf16.msra.mxu1 %v7953_v35  ;;  %7538 = vmatprep.subr.bf16.mxu0 %v7954_v50  ;;  %v4829_v35 = vrot.slane %v4813_v2, 2  ;;  %v4633_v54 = vsel %vm473_vm0, %v4631_v32, %v4632_v21  ;;  %v4605_v2 = vunpack.c.h.bf16 %v6501_v26  ;;  %v7972_v32 = vld [vmem:[%s9914_s3 + $0x590] sm:$0xff]   ;;  %v6506_v21 = vld [vmem:[%s8911_s17 + $0x2c] sm:$0x1] }
 0x166   : > { %7562 = vmatprep.subr.bf16.mxu1 %v7955_v59 }
 0x167   : > { %v4831_v33 = vsel %vm777_vm1, %v4829_v35, %v4830_v13  ;;  %v7973_v35 = vld [vmem:[%s9914_s3 + $0x5d0] sm:$0xff]  }
 0x168   : > { %7539 = vmatpush3.bf16.msra.mxu0 %v7954_v50  ;;  %v4832_v50 = vrot.slane %v4814_v6, 2  ;;  %v4606_v6 = vunpack.c.l.bf16 %v6504_v57  ;;  %v6508_v13 = vld [vmem:[%s8911_s17 + $0x34] sm:$0x1] }
 0x169   : > { %7563 = vmatpush3.bf16.msra.mxu1 %v7955_v59  ;;  %7540 = vmatprep.subr.bf16.mxu0 %v7956_v1  ;;  %v7964_v59 = vld [vmem:[%s9914_s3 + $0x5a8] sm:$0xff]  }
 0x16a   : > { %7564 = vmatprep.subr.bf16.mxu1 %v7957_v63 }
 0x16c   : > { %7541 = vmatpush3.bf16.msra.mxu0 %v7956_v1  ;;  %v4636_v1 = vsel %vm473_vm0, %v4634_v17, %v4635_v43 }
 0x16d   : > { %7565 = vmatpush3.bf16.msra.mxu1 %v7957_v63  ;;  %7574 = vmatprep.subr.bf16.mxu0 %v7960_v46  ;;  %v4834_v63 = vsel %vm777_vm1, %v4832_v50, %v4833_v15  ;;  %v4663_v45 = vpack.c.bf16 %v4636_v1, %v4633_v54  ;;  %v4641_v50 = vrot.slane %v4606_v6, 1  ;;  %v4610_v1 = vunpack.c.l.bf16 %v6508_v13 }
 0x16e   : > { %7598 = vmatprep.subr.bf16.mxu1 %v7961_v4 }
 0x16f   : > { %v7256_v37 = vpop.f32.mrf.mxu0  ;;  %7543 = vmatmul.mubr.bf16.vlgmr.msra.gmra.mxu0 %v4283_v49  ;;  %v4861_v49 = vpack.c.bf16 %v4834_v63, %v4831_v33  ;;  %v6510_v33 = vld [vmem:[%s8911_s17 + $0x3c] sm:$0x1]  ;;  %v4647_v57 = vrot.slane %v4610_v1, 1 }
 0x170   : > { %v2104_v55 = vadd.f32 %v7256_v37, %v9252_v36  ;;  %v7280_v62 = vpop.f32.mrf.mxu1  ;;  %7567 = vmatmul.mubr.bf16.vlgmr.msra.gmra.mxu1 %v7959_v60  ;;  %7575 = vmatpush3.bf16.msra.mxu0 %v7960_v46  ;;  %v7965_v36 = vld [vmem:[%s9914_s3 + $0x5e8] sm:$0xff]   ;;  %v6502_v46 = vld [vmem:[%s8911_s17 + $0x1c] sm:$0x1]  ;;  %v4637_v37 = vrot.slane %v4603_v14, 1 }
 0x171   : > { %7599 = vmatpush3.bf16.msra.mxu1 %v7961_v4  ;;  %v2071_v0 = vpop.f32.mrf.mxu0  ;;  %7576 = vmatprep.subr.bf16.mxu0 %v7962_v56  ;;  %v4604_v25 = vunpack.c.l.bf16 %v6502_v46  ;;  %v6544_v46 = vld [vmem:[%s8911_s17 + $0x40] sm:$0xe] }
 0x172   : > { %v9359_v34 = vadd.f32 %v7280_v62, %v2104_v55  ;;  %v2102_v48 = vadd.f32 %v2071_v0, %v9261_v16  ;;  %v2229_v53 = vpop.f32.mrf.mxu1  ;;  %7600 = vmatprep.subr.bf16.mxu1 %v7963_v41  ;;  %7546 = vmatprep.mubr.bf16.mxu0 %v4284_v27  ;;  %v4640_v62 = vrot.slane %v4605_v2, 1 }
 0x173   : > { %v7257_v51 = vpop.f32.mrf.mxu0  ;;  %7570 = vmatprep.mubr.bf16.mxu1 %v7966_v28  ;;  %v6505_v28 = vld [vmem:[%s8911_s17 + $0x28] ss:$8 sps:$4 sm:$0xff]   ;;  %v4638_v55 = vrot.slane %v4604_v25, 1  ;;  %v4836_v0 = vrot.slane %v4604_v25, 2  ;;  %v4820_v25 = vunpack.c.l.bf16 %v6544_v46 }
 0x174   : > { %v9367_v39 = vadd.f32 %v2229_v53, %v2102_v48  ;;  %v2105_v8 = vadd.f32 %v7257_v51, %v9267_v38  ;;  %v7281_v16 = vpop.f32.mrf.mxu1  ;;  %7577 = vmatpush3.bf16.msra.mxu0 %v7962_v56  ;;  %v4815_v56 = vunpack.c.l.bf16 %v6539_v29  ;;  %v6541_v48 = vld [vmem:[%s8911_s17 + $0x28] sm:$0xe]  ;;  %v4838_v53 = vrot.slane %v4816_v61, 2 }
 0x175   : > { %7601 = vmatpush3.bf16.msra.mxu1 %v7963_v41  ;;  %v2074_v10 = vpop.f32.mrf.mxu0  ;;  %7578 = vmatprep.subr.bf16.mxu0 %v7964_v59  ;;  %v4608_v51 = vunpack.c.l.bf16 %v6506_v21  ;;  %v4609_v54 = vunpack.c.h.bf16 %v6505_v28  ;;  %v4817_v63 = vunpack.c.l.bf16 %v6541_v48  ;;  %v9461_v21 = vld [vmem:[%s8911_s17 + $0x1c] sm:$0x1] }
 0x176   : > { %v9376_v7 = vadd.f32 %v7281_v16, %v2105_v8  ;;  %v2103_v38 = vadd.f32 %v2074_v10, %v9274_v9  ;;  %v2232_v44 = vpop.f32.mrf.mxu1  ;;  %7602 = vmatprep.subr.bf16.mxu1 %v7965_v36  ;;  %v4835_v15 = vrot.slane %v4815_v56, 2  ;;  %v6542_v8 = vld [vmem:[%s8911_s17 + $0x30] sm:$0xe]  ;;  %v7975_v16 = vld [vmem:[%s9914_s3 + $0x5c8] sm:$0xff]   ;;  %v9427_v10 = vsel %vm473_vm0, %v4637_v37, %v4638_v55 }
 0x177   : > { %v7260_v30 = vpop.f32.mrf.mxu0  ;;  %7547 = vmatmul.mubr.bf16.gmra.mxu0 %v4285_v52  ;;  %v7974_v52 = vld [vmem:[%s9914_s3 + $0x588] sm:$0xff]   ;;  %v4644_v26 = vrot.slane %v4608_v51, 1 }
 0x178   : > { %v9384_v18 = vadd.f32 %v2232_v44, %v2103_v38  ;;  %v2108_v19 = vadd.f32 %v7260_v30, %v9284_v11  ;;  %7579 = vmatpush3.bf16.msra.mxu0 %v7964_v59  ;;  %v7284_v9 = vpop.f32.mrf.mxu1  ;;  %7571 = vmatmul.mubr.bf16.gmra.mxu1 %v7967_v47  ;;  %v7971_v11 = vld [vmem:[%s9914_s3 + $0x5d8] sm:$0xff]   ;;  %v4839_v59 = vrot.slane %v4606_v6, 2  ;;  %v9433_v38 = vsel %vm777_vm1, %v4835_v15, %v4836_v0  ;;  %v6512_v44 = vld [vmem:[%s8911_s17 + $0x44] sm:$0x1] }
 0x179   : > { %7603 = vmatpush3.bf16.msra.mxu1 %v7965_v36  ;;  %v2087_v4 = vpop.f32.mrf.mxu0  ;;  %7580 = vmatprep.subr.bf16.mxu0 %v7968_v3  ;;  %v4607_v36 = vunpack.c.l.bf16 %v6505_v28  ;;  %v6509_v47 = vld [vmem:[%s8911_s17 + $0x38] ss:$8 sps:$4 sm:$0xff]   ;;  %v4818_v30 = vunpack.c.l.bf16 %v6542_v8  ;;  %v4614_v22 = vunpack.c.l.bf16 %v6512_v44  ;;  %v9458_v28 = vld [vmem:[%s8911_s17 + $0x14] sm:$0x1] }
 0x17a   : > { %v2106_v24 = vadd.f32 %v2087_v4, %v9289_v12  ;;  %v9394_v5 = vadd.f32 %v7284_v9, %v2108_v19  ;;  %v2245_v23 = vpop.f32.mrf.mxu1  ;;  %7604 = vmatprep.subr.bf16.mxu1 %v7969_v42  ;;  %7590 = vmatprep.mubr.bf16.mxu0 %v4663_v45  ;;  %v7976_v19 = vld [vmem:[%s9914_s3 + $0x580] sm:$0xff]   ;;  %v4646_v9 = vrot.slane %v4609_v54, 1  ;;  %v4611_v29 = vunpack.c.l.bf16 %v6509_v47  ;;  %v7978_v6 = vld [vmem:[%s9914_s3 + $0x638] sm:$0xff]  }
 0x17b   : > { %v7261_v60 = vpop.f32.mrf.mxu0  ;;  %7614 = vmatprep.mubr.bf16.mxu1 %v4861_v49  ;;  %v4643_v45 = vrot.slane %v4607_v36, 1  ;;  %v6543_v49 = vld [vmem:[%s8911_s17 + $0x38] sm:$0xe]  ;;  %v4612_v4 = vunpack.c.l.bf16 %v6510_v33  ;;  %v4613_v14 = vunpack.c.h.bf16 %v6509_v47  ;;  %v4844_v56 = vrot.slane %v4818_v30, 2  ;;  %v7982_v30 = vld [vmem:[%s9914_s3 + $0x628] sm:$0xff]  }
 0x17c   : > { %v2109_v41 = vadd.f32 %v7261_v60, %v9295_v20  ;;  %v9400_v12 = vadd.f32 %v2245_v23, %v2106_v24  ;;  %7581 = vmatpush3.bf16.msra.mxu0 %v7968_v3  ;;  %v7285_v27 = vpop.f32.mrf.mxu1  ;;  %v9430_v3 = vsel %vm473_vm0, %v4640_v62, %v4641_v50  ;;  %v4841_v24 = vrot.slane %v4817_v63, 2 }
 0x17d   : > { %7605 = vmatpush3.bf16.msra.mxu1 %v7969_v42  ;;  %v2090_v31 = vpop.f32.mrf.mxu0  ;;  %7582 = vmatprep.subr.bf16.mxu0 %v7970_v58  ;;  %v9437_v42 = vsel %vm777_vm1, %v4838_v53, %v4839_v59  ;;  %v4842_v23 = vrot.slane %v4608_v51, 2  ;;  %v4664_v2 = vpack.c.bf16 %v9430_v3, %v9427_v10  ;;  %v4645_v61 = vsel %vm473_vm0, %v4643_v45, %v4644_v26  ;;  %v7980_v51 = vld [vmem:[%s9914_s3 + $0x630] sm:$0xff]  }
 0x17e   : > { %v2107_v17 = vadd.f32 %v2090_v31, %v9302_v40  ;;  %v9408_v20 = vadd.f32 %v7285_v27, %v2109_v41  ;;  %v2248_v43 = vpop.f32.mrf.mxu1  ;;  %7606 = vmatprep.subr.bf16.mxu1 %v7971_v11  ;;  %v4862_v60 = vpack.c.bf16 %v9437_v42, %v9433_v38  ;;  %v4845_v41 = vrot.slane %v4610_v1, 2  ;;  %v6605_v27 = vld [vmem:[%s8911_s17 + $0x10] ss:$8 sps:$4 sm:$0xff]  }
 0x17f   : > { %v4648_v31 = vsel %vm473_vm0, %v4646_v9, %v4647_v57  ;;  %v4650_v37 = vrot.slane %v4612_v4, 1  ;;  %v4843_v55 = vsel %vm777_vm1, %v4841_v24, %v4842_v23  ;;  %v4848_v62 = vrot.slane %v4612_v4, 2  ;;  %v7984_v23 = vld [vmem:[%s9914_s3 + $0x620] sm:$0xff]  }
 0x180   : > { %v9415_v40 = vadd.f32 %v2248_v43, %v2107_v17  ;;  %7583 = vmatpush3.bf16.msra.mxu0 %v7970_v58  ;;  %v7977_v58 = vld [vmem:[%s9914_s3 + $0x5c0] sm:$0xff]   ;;  %v7979_v17 = vld [vmem:[%s9914_s3 + $0x678] sm:$0xff]   ;;  %v4652_v43 = vrot.slane %v4613_v14, 1  ;;  %v4850_v50 = vrot.slane %v4820_v25, 2  ;;  %v4851_v15 = vrot.slane %v4614_v22, 2 }
 0x181   : > { %7607 = vmatpush3.bf16.msra.mxu1 %v7971_v11  ;;  %7584 = vmatprep.subr.bf16.mxu0 %v7972_v32  ;;  %v4819_v11 = vunpack.c.l.bf16 %v6543_v49  ;;  %v5178_v0 = vunpack.c.l.bf16 %v6605_v27  ;;  %v4846_v59 = vsel %vm777_vm1, %v4844_v56, %v4845_v41  ;;  %v5179_v48 = vunpack.c.l.bf16 %v9458_v28 }
 0x182   : > { %7608 = vmatprep.subr.bf16.mxu1 %v7973_v35  ;;  %v5180_v53 = vunpack.c.h.bf16 %v6605_v27  ;;  %v5181_v36 = vunpack.c.l.bf16 %v9461_v21  ;;  %v4665_v54 = vpack.c.bf16 %v4648_v31, %v4645_v61  ;;  %v4863_v47 = vpack.c.bf16 %v4846_v59, %v4843_v55 }
 0x183   : > { %v4847_v13 = vrot.slane %v4819_v11, 2  ;;  %v4852_v63 = vsel %vm777_vm1, %v4850_v50, %v4851_v15  ;;  %v5210_v10 = vrot.slane %v5178_v0, 1  ;;  %v5211_v44 = vrot.slane %v5179_v48, 1  ;;  %v6609_v50 = vld [vmem:[%s8911_s17 + $0x20] ss:$8 sps:$4 sm:$0xff]  }
 0x184   : > { %7585 = vmatpush3.bf16.msra.mxu0 %v7972_v32  ;;  %v4649_v32 = vrot.slane %v4611_v29, 1  ;;  %v5213_v42 = vrot.slane %v5180_v53, 1  ;;  %v5214_v45 = vrot.slane %v5181_v36, 1  ;;  %v9529_v15 = vld [vmem:[%s8911_s17 + $0x24] sm:$0x1]  ;;  %v7989_v53 = vld [vmem:[%s9914_s3 + $0x650] sm:$0xff]  }
 0x185   : > { %7609 = vmatpush3.bf16.msra.mxu1 %v7973_v35  ;;  %7586 = vmatprep.subr.bf16.mxu0 %v7974_v52  ;;  %v4653_v35 = vrot.slane %v4614_v22, 1  ;;  %v4849_v33 = vsel %vm777_vm1, %v4847_v13, %v4848_v62  ;;  %v7988_v13 = vld [vmem:[%s9914_s3 + $0x610] sm:$0xff]  }
 0x186   : > { %7610 = vmatprep.subr.bf16.mxu1 %v7975_v16  ;;  %v4651_v1 = vsel %vm473_vm0, %v4649_v32, %v4650_v37  ;;  %v4864_v29 = vpack.c.bf16 %v4852_v63, %v4849_v33  ;;  %v5215_v22 = vsel %vm473_vm0, %v5213_v42, %v5214_v45  ;;  %v5184_v33 = vunpack.c.h.bf16 %v6609_v50  ;;  %v6617_v45 = vld [vmem:[%s8911_s17 + $0x40] ss:$8 sps:$4 sm:$0xff]  }
 0x187   : > { %v4654_v8 = vsel %vm473_vm0, %v4652_v43, %v4653_v35 }
 0x188   : > { %7587 = vmatpush3.bf16.msra.mxu0 %v7974_v52  ;;  %v7981_v52 = vld [vmem:[%s9914_s3 + $0x670] sm:$0xff]   ;;  %v4666_v57 = vpack.c.bf16 %v4654_v8, %v4651_v1  ;;  %v9545_v1 = vld [vmem:[%s8911_s17 + $0x3c] sm:$0x1] }
 0x189   : > { %7611 = vmatpush3.bf16.msra.mxu1 %v7975_v16  ;;  %7588 = vmatprep.subr.bf16.mxu0 %v7976_v19  ;;  %v5189_v42 = vunpack.c.l.bf16 %v9545_v1 }
 0x18a   : > { %7612 = vmatprep.subr.bf16.mxu1 %v7977_v58 }
 0x18b   : > { %v5424_v28 = vrot.slane %v5189_v42, 2 }
 0x18c   : > { %7589 = vmatpush3.bf16.msra.mxu0 %v7976_v19  ;;  %v7983_v19 = vld [vmem:[%s9914_s3 + $0x668] sm:$0xff]  }
 0x18d   : > { %7613 = vmatpush3.bf16.msra.mxu1 %v7977_v58  ;;  %7622 = vmatprep.subr.bf16.mxu0 %v7978_v6 }
 0x18e   : > { %7646 = vmatprep.subr.bf16.mxu1 %v7979_v17 }
 0x18f   : > { %v7304_v16 = vpop.f32.mrf.mxu0  ;;  %7591 = vmatmul.mubr.bf16.vlgmr.msra.gmra.mxu0 %v4664_v2 }
 0x190   : > { %v2484_v3 = vadd.f32 %v7304_v16, %v9359_v34  ;;  %v7328_v38 = vpop.f32.mrf.mxu1  ;;  %7615 = vmatmul.mubr.bf16.vlgmr.msra.gmra.mxu1 %v4862_v60  ;;  %7623 = vmatpush3.bf16.msra.mxu0 %v7978_v6  ;;  %v7994_v60 = vld [vmem:[%s8911_s17 + $0x10] ss:$8 sps:$4 sm:$0xff]   ;;  %v5183_v16 = vunpack.c.l.bf16 %v9529_v15 }
 0x191   : > { %7647 = vmatpush3.bf16.msra.mxu1 %v7979_v17  ;;  %v2451_v26 = vpop.f32.mrf.mxu0  ;;  %7624 = vmatprep.subr.bf16.mxu0 %v7980_v51 }
 0x192   : > { %v9488_v49 = vadd.f32 %v7328_v38, %v2484_v3  ;;  %v2482_v34 = vadd.f32 %v2451_v26, %v9367_v39  ;;  %v2649_v46 = vpop.f32.mrf.mxu1  ;;  %7648 = vmatprep.subr.bf16.mxu1 %v7981_v52  ;;  %7594 = vmatprep.mubr.bf16.mxu0 %v4665_v54  ;;  %v5212_v39 = vsel %vm473_vm0, %v5210_v10, %v5211_v44  ;;  %v9542_v54 = vld [vmem:[%s8911_s17 + $0x34] sm:$0x1]  ;;  %v7991_v3 = vld [vmem:[%s9914_s3 + $0x648] sm:$0xff]   ;;  %v9561_v26 = vld [vmem:[%s8911_s17 + $0x44] sm:$0x1] }
 0x193   : > { %v7305_v9 = vpop.f32.mrf.mxu0  ;;  %7618 = vmatprep.mubr.bf16.mxu1 %v4863_v47  ;;  %v5242_v56 = vpack.c.bf16 %v5215_v22, %v5212_v39  ;;  %v7990_v47 = vld [vmem:[%s9914_s3 + $0x608] sm:$0xff]   ;;  %v5187_v38 = vunpack.c.l.bf16 %v9542_v54 }
 0x194   : > { %v9494_v4 = vadd.f32 %v2649_v46, %v2482_v34  ;;  %v2485_v58 = vadd.f32 %v7305_v9, %v9376_v7  ;;  %v7329_v14 = vpop.f32.mrf.mxu1  ;;  %7625 = vmatpush3.bf16.msra.mxu0 %v7980_v51  ;;  %v7985_v7 = vld [vmem:[%s9914_s3 + $0x660] sm:$0xff]   ;;  %v9538_v51 = vld [vmem:[%s8911_s17 + $0x2c] sm:$0x1]  ;;  %v5217_v34 = vrot.slane %v5183_v16, 1  ;;  %v5219_v9 = vrot.slane %v5184_v33, 1 }
 0x195   : > { %7649 = vmatpush3.bf16.msra.mxu1 %v7981_v52  ;;  %v2454_v24 = vpop.f32.mrf.mxu0  ;;  %7626 = vmatprep.subr.bf16.mxu0 %v7982_v30  ;;  %v6613_v52 = vld [vmem:[%s8911_s17 + $0x30] ss:$8 sps:$4 sm:$0xff]   ;;  %v5185_v63 = vunpack.c.l.bf16 %v9538_v51  ;;  %v9566_v46 = vld [vmem:[%s8911_s17 + $0x4c] sm:$0x1]  ;;  %v5223_v39 = vrot.slane %v5187_v38, 1  ;;  %v5412_v33 = vrot.slane %v5181_v36, 2 }
 0x196   : > { %v9502_v11 = vadd.f32 %v7329_v14, %v2485_v58  ;;  %v2483_v25 = vadd.f32 %v2454_v24, %v9384_v18  ;;  %v2652_v2 = vpop.f32.mrf.mxu1  ;;  %7650 = vmatprep.subr.bf16.mxu1 %v7983_v19  ;;  %v7986_v18 = vld [vmem:[%s9914_s3 + $0x618] sm:$0xff]   ;;  %v5186_v10 = vunpack.c.l.bf16 %v6613_v52  ;;  %v5188_v44 = vunpack.c.h.bf16 %v6613_v52  ;;  %v7993_v14 = vld [vmem:[%s9914_s3 + $0x640] sm:$0xff]  }
 0x197   : > { %v7308_v6 = vpop.f32.mrf.mxu0  ;;  %7595 = vmatmul.mubr.bf16.gmra.mxu0 %v4666_v57  ;;  %v5220_v57 = vrot.slane %v5185_v63, 1  ;;  %v5190_v58 = vunpack.c.l.bf16 %v6617_v45  ;;  %v5226_v24 = vrot.slane %v5189_v42, 1  ;;  %v7998_v52 = vld [vmem:[%s8911_s17 + $0x30] ss:$8 sps:$4 sm:$0xff]  }
 0x198   : > { %v9509_v41 = vadd.f32 %v2652_v2, %v2483_v25  ;;  %v2488_v27 = vadd.f32 %v7308_v6, %v9394_v5  ;;  %7627 = vmatpush3.bf16.msra.mxu0 %v7982_v30  ;;  %v7332_v61 = vpop.f32.mrf.mxu1  ;;  %7619 = vmatmul.mubr.bf16.gmra.mxu1 %v4864_v29  ;;  %v7987_v5 = vld [vmem:[%s9914_s3 + $0x658] sm:$0xff]   ;;  %v5222_v29 = vrot.slane %v5186_v10, 1  ;;  %v5225_v22 = vrot.slane %v5188_v44, 1 }
 0x199   : > { %7651 = vmatpush3.bf16.msra.mxu1 %v7983_v19  ;;  %v2467_v31 = vpop.f32.mrf.mxu0  ;;  %7628 = vmatprep.subr.bf16.mxu0 %v7984_v23  ;;  %v7992_v19 = vld [vmem:[%s9914_s3 + $0x600] sm:$0xff]   ;;  %v5192_v25 = vunpack.c.h.bf16 %v6617_v45  ;;  %v5193_v2 = vunpack.c.l.bf16 %v9566_v46 }
 0x19a   : > { %v2486_v32 = vadd.f32 %v2467_v31, %v9400_v12  ;;  %v9516_v37 = vadd.f32 %v7332_v61, %v2488_v27  ;;  %v2665_v17 = vpop.f32.mrf.mxu1  ;;  %7652 = vmatprep.subr.bf16.mxu1 %v7985_v7  ;;  %7638 = vmatprep.mubr.bf16.mxu0 %v7994_v60  ;;  %v6646_v60 = vld [vmem:[%s8911_s17 + $0x18] sm:$0xe]  ;;  %v6649_v61 = vld [vmem:[%s8911_s17 + $0x30] sm:$0xe] }
 0x19b   : > { %v7309_v43 = vpop.f32.mrf.mxu0  ;;  %7662 = vmatprep.mubr.bf16.mxu1 %v5242_v56  ;;  %v5221_v56 = vsel %vm473_vm0, %v5219_v9, %v5220_v57  ;;  %v7996_v27 = vld [vmem:[%s9914_s3 + $0x6b8] sm:$0xff]  }
 0x19c   : > { %v2489_v35 = vadd.f32 %v7309_v43, %v9408_v20  ;;  %v9522_v55 = vadd.f32 %v2665_v17, %v2486_v32  ;;  %7629 = vmatpush3.bf16.msra.mxu0 %v7984_v23  ;;  %v7333_v12 = vpop.f32.mrf.mxu1  ;;  %v5191_v23 = vunpack.c.l.bf16 %v9561_v26  ;;  %v6650_v31 = vld [vmem:[%s8911_s17 + $0x38] sm:$0xe]  ;;  %v5227_v32 = vsel %vm473_vm0, %v5225_v22, %v5226_v24  ;;  %v7995_v43 = vld [vmem:[%s8911_s17 + $0x20] ss:$8 sps:$4 sm:$0xff]  }
 0x19d   : > { %7653 = vmatpush3.bf16.msra.mxu1 %v7985_v7  ;;  %v2470_v62 = vpop.f32.mrf.mxu0  ;;  %7630 = vmatprep.subr.bf16.mxu0 %v7986_v18  ;;  %v6645_v7 = vld [vmem:[%s8911_s17 + $0x10] sm:$0xe]  ;;  %v5228_v17 = vrot.slane %v5190_v58, 1  ;;  %v7999_v58 = vld [vmem:[%s8911_s17 + $0x40] ss:$8 sps:$4 sm:$0xff]  }
 0x19e   : > { %v2487_v0 = vadd.f32 %v2470_v62, %v9415_v40  ;;  %v9532_v20 = vadd.f32 %v7333_v12, %v2489_v35  ;;  %v2668_v59 = vpop.f32.mrf.mxu1  ;;  %7654 = vmatprep.subr.bf16.mxu1 %v7987_v5  ;;  %v5182_v40 = vunpack.c.l.bf16 %v6609_v50  ;;  %v5231_v35 = vrot.slane %v5192_v25, 1 }
 0x19f   : > { %v5232_v12 = vrot.slane %v5193_v2, 1  ;;  %v5392_v62 = vunpack.c.l.bf16 %v6645_v7 }
 0x1a0   : > { %v9547_v8 = vadd.f32 %v2668_v59, %v2487_v0  ;;  %7631 = vmatpush3.bf16.msra.mxu0 %v7986_v18  ;;  %v5216_v30 = vrot.slane %v5182_v40, 1  ;;  %v5224_v18 = vsel %vm473_vm0, %v5222_v29, %v5223_v39  ;;  %v5396_v0 = vunpack.c.l.bf16 %v6649_v61 }
 0x1a1   : > { %7655 = vmatpush3.bf16.msra.mxu1 %v7987_v5  ;;  %7632 = vmatprep.subr.bf16.mxu0 %v7988_v13  ;;  %v5229_v5 = vrot.slane %v5191_v23, 1  ;;  %v5397_v59 = vunpack.c.l.bf16 %v6650_v31  ;;  %v5244_v54 = vpack.c.bf16 %v5227_v32, %v5224_v18  ;;  %v5408_v44 = vrot.slane %v5392_v62, 2 }
 0x1a2   : > { %7656 = vmatprep.subr.bf16.mxu1 %v7989_v53  ;;  %v5218_v6 = vsel %vm473_vm0, %v5216_v30, %v5217_v34  ;;  %v5421_v30 = vrot.slane %v5187_v38, 2  ;;  %v5420_v9 = vrot.slane %v5396_v0, 2 }
 0x1a3   : > { %v5243_v50 = vpack.c.bf16 %v5221_v56, %v5218_v6  ;;  %v5230_v40 = vsel %vm473_vm0, %v5228_v17, %v5229_v5  ;;  %v5423_v57 = vrot.slane %v5397_v59, 2  ;;  %v6647_v59 = vld [vmem:[%s8911_s17 + $0x20] sm:$0xe] }
 0x1a4   : > { %7633 = vmatpush3.bf16.msra.mxu0 %v7988_v13  ;;  %v5393_v13 = vunpack.c.l.bf16 %v6646_v60  ;;  %v5422_v25 = vsel %vm777_vm1, %v5420_v9, %v5421_v30  ;;  %v8001_v60 = vld [vmem:[%s9914_s3 + $0x6a0] sm:$0xff]   ;;  %v5418_v9 = vrot.slane %v5185_v63, 2 }
 0x1a5   : > { %7657 = vmatpush3.bf16.msra.mxu1 %v7989_v53  ;;  %7634 = vmatprep.subr.bf16.mxu0 %v7990_v47  ;;  %v7997_v53 = vld [vmem:[%s9914_s3 + $0x6b0] sm:$0xff]  }
 0x1a6   : > { %7658 = vmatprep.subr.bf16.mxu1 %v7991_v3  ;;  %v5411_v45 = vrot.slane %v5393_v13, 2 }
 0x1a8   : > { %7635 = vmatpush3.bf16.msra.mxu0 %v7990_v47  ;;  %v5409_v47 = vrot.slane %v5179_v48, 2  ;;  %v8000_v48 = vld [vmem:[%s9914_s3 + $0x6a8] sm:$0xff]   ;;  %v5413_v42 = vsel %vm777_vm1, %v5411_v45, %v5412_v33 }
 0x1a9   : > { %7659 = vmatpush3.bf16.msra.mxu1 %v7991_v3  ;;  %7636 = vmatprep.subr.bf16.mxu0 %v7992_v19  ;;  %v5233_v3 = vsel %vm473_vm0, %v5231_v35, %v5232_v12 }
 0x1aa   : > { %7660 = vmatprep.subr.bf16.mxu1 %v7993_v14  ;;  %v5410_v1 = vsel %vm777_vm1, %v5408_v44, %v5409_v47  ;;  %v6652_v47 = vld [vmem:[%s8911_s17 + $0x48] sm:$0xe] }
 0x1ab   : > { %v8004_v44 = vld [vmem:[%s9914_s3 + $0x688] sm:$0xff]   ;;  %v5399_v30 = vunpack.c.l.bf16 %v6652_v47 }
 0x1ac   : > { %7637 = vmatpush3.bf16.msra.mxu0 %v7992_v19 }
 0x1ad   : > { %7661 = vmatpush3.bf16.msra.mxu1 %v7993_v14  ;;  %7670 = vmatprep.subr.bf16.mxu0 %v7996_v27  ;;  %v5245_v14 = vpack.c.bf16 %v5233_v3, %v5230_v40 }
 0x1ae   : > { %7694 = vmatprep.subr.bf16.mxu1 %v7996_v27 }
 0x1af   : > { %v7352_v10 = vpop.f32.mrf.mxu0  ;;  %7639 = vmatmul.mubr.bf16.vlgmr.msra.gmra.mxu0 %v7995_v43 }
 0x1b0   : > { %v2841_v34 = vadd.f32 %v7352_v10, %v9488_v49  ;;  %v7376_v19 = vpop.f32.mrf.mxu1  ;;  %7663 = vmatmul.mubr.bf16.vlgmr.msra.gmra.mxu1 %v5243_v50  ;;  %7671 = vmatpush3.bf16.msra.mxu0 %v7996_v27  ;;  %v5394_v10 = vunpack.c.l.bf16 %v6647_v59 }
 0x1b1   : > { %7702 = vmatpush3.bf16.msra.mxu1 %v7996_v27  ;;  %v2808_v21 = vpop.f32.mrf.mxu0  ;;  %7672 = vmatprep.subr.bf16.mxu0 %v7997_v53 }
 0x1b2   : > { %v9612_v36 = vadd.f32 %v7376_v19, %v2841_v34  ;;  %v2839_v49 = vadd.f32 %v2808_v21, %v9494_v4  ;;  %v3030_v38 = vpop.f32.mrf.mxu1  ;;  %7695 = vmatprep.subr.bf16.mxu1 %v7997_v53  ;;  %7642 = vmatprep.mubr.bf16.mxu0 %v7998_v52  ;;  %v5425_v4 = vsel %vm777_vm1, %v5423_v57, %v5424_v28  ;;  %v5415_v34 = vrot.slane %v5183_v16, 2  ;;  %v8005_v21 = vld [vmem:[%s9914_s3 + $0x680] sm:$0xff]  }
 0x1b3   : > { %v7353_v29 = vpop.f32.mrf.mxu0  ;;  %7666 = vmatprep.mubr.bf16.mxu1 %v5244_v54  ;;  %v5442_v31 = vpack.c.bf16 %v5425_v4, %v5422_v25  ;;  %v5427_v57 = vrot.slane %v5191_v23, 2  ;;  %v5430_v28 = vrot.slane %v5193_v2, 2 }
 0x1b4   : > { %v9618_v39 = vadd.f32 %v3030_v38, %v2839_v49  ;;  %v2842_v22 = vadd.f32 %v7353_v29, %v9502_v11  ;;  %v7377_v24 = vpop.f32.mrf.mxu1  ;;  %7673 = vmatpush3.bf16.msra.mxu0 %v7997_v53  ;;  %v5440_v11 = vpack.c.bf16 %v5413_v42, %v5410_v1  ;;  %v5429_v49 = vrot.slane %v5399_v30, 2 }
 0x1b5   : > { %7703 = vmatpush3.bf16.msra.mxu1 %v7997_v53  ;;  %v2811_v7 = vpop.f32.mrf.mxu0  ;;  %7674 = vmatprep.subr.bf16.mxu0 %v8000_v48  ;;  %v6648_v53 = vld [vmem:[%s8911_s17 + $0x28] sm:$0xe] }
 0x1b6   : > { %v9626_v6 = vadd.f32 %v7377_v24, %v2842_v22  ;;  %v2840_v56 = vadd.f32 %v2811_v7, %v9509_v41  ;;  %v3033_v27 = vpop.f32.mrf.mxu1  ;;  %7696 = vmatprep.subr.bf16.mxu1 %v8000_v48  ;;  %v8002_v41 = vld [vmem:[%s9914_s3 + $0x698] sm:$0xff]   ;;  %v5395_v3 = vunpack.c.l.bf16 %v6648_v53  ;;  %v5431_v63 = vsel %vm777_vm1, %v5429_v49, %v5430_v28 }
 0x1b7   : > { %v7356_v61 = vpop.f32.mrf.mxu0  ;;  %7643 = vmatmul.mubr.bf16.gmra.mxu0 %v7999_v58 }
 0x1b8   : > { %v9629_v18 = vadd.f32 %v3033_v27, %v2840_v56  ;;  %v2845_v32 = vadd.f32 %v7356_v61, %v9516_v37  ;;  %7675 = vmatpush3.bf16.msra.mxu0 %v8000_v48  ;;  %v7380_v17 = vpop.f32.mrf.mxu1  ;;  %7667 = vmatmul.mubr.bf16.gmra.mxu1 %v5245_v14  ;;  %v5417_v19 = vrot.slane %v5395_v3, 2 }
 0x1b9   : > { %7704 = vmatpush3.bf16.msra.mxu1 %v8000_v48  ;;  %v2824_v5 = vpop.f32.mrf.mxu0  ;;  %7676 = vmatprep.subr.bf16.mxu0 %v8001_v60 }
 0x1ba   : > { %v2843_v43 = vadd.f32 %v2824_v5, %v9522_v55  ;;  %v9636_v35 = vadd.f32 %v7380_v17, %v2845_v32  ;;  %v3046_v12 = vpop.f32.mrf.mxu1  ;;  %7697 = vmatprep.subr.bf16.mxu1 %v8001_v60  ;;  %7686 = vmatprep.mubr.bf16.mxu0 %v5440_v11  ;;  %v8003_v55 = vld [vmem:[%s9914_s3 + $0x690] sm:$0xff]   ;;  %v5419_v51 = vsel %vm777_vm1, %v5417_v19, %v5418_v9 }
 0x1bb   : > { %v7357_v37 = vpop.f32.mrf.mxu0  ;;  %7690 = vmatprep.mubr.bf16.mxu1 %v5442_v31 }
 0x1bc   : > { %v2846_v62 = vadd.f32 %v7357_v37, %v9532_v20  ;;  %v9639_v13 = vadd.f32 %v3046_v12, %v2843_v43  ;;  %7677 = vmatpush3.bf16.msra.mxu0 %v8001_v60  ;;  %v7381_v50 = vpop.f32.mrf.mxu1  ;;  %v6651_v20 = vld [vmem:[%s8911_s17 + $0x40] sm:$0xe] }
 0x1bd   : > { %7705 = vmatpush3.bf16.msra.mxu1 %v8001_v60  ;;  %v2827_v0 = vpop.f32.mrf.mxu0  ;;  %7678 = vmatprep.subr.bf16.mxu0 %v8002_v41  ;;  %v5398_v45 = vunpack.c.l.bf16 %v6651_v20 }
 0x1be   : > { %v2844_v52 = vadd.f32 %v2827_v0, %v9547_v8  ;;  %v9647_v54 = vadd.f32 %v7381_v50, %v2846_v62  ;;  %v3049_v40 = vpop.f32.mrf.mxu1  ;;  %7698 = vmatprep.subr.bf16.mxu1 %v8002_v41  ;;  %v5414_v8 = vrot.slane %v5394_v10, 2 }
 0x1bf   : > { %v5426_v48 = vrot.slane %v5398_v45, 2 }
 0x1c0   : > { %v9651_v33 = vadd.f32 %v3049_v40, %v2844_v52  ;;  %7679 = vmatpush3.bf16.msra.mxu0 %v8002_v41  ;;  %v5416_v15 = vsel %vm777_vm1, %v5414_v8, %v5415_v34 }
 0x1c1   : > { %7706 = vmatpush3.bf16.msra.mxu1 %v8002_v41  ;;  %7680 = vmatprep.subr.bf16.mxu0 %v8003_v55  ;;  %v5428_v16 = vsel %vm777_vm1, %v5426_v48, %v5427_v57  ;;  %v5441_v26 = vpack.c.bf16 %v5419_v51, %v5416_v15 }
 0x1c2   : > { %7699 = vmatprep.subr.bf16.mxu1 %v8003_v55  ;;  %v5443_v46 = vpack.c.bf16 %v5431_v63, %v5428_v16 }
 0x1c4   : > { %7681 = vmatpush3.bf16.msra.mxu0 %v8003_v55 }
 0x1c5   : > { %7707 = vmatpush3.bf16.msra.mxu1 %v8003_v55  ;;  %7682 = vmatprep.subr.bf16.mxu0 %v8004_v44 }
 0x1c6   : > { %7700 = vmatprep.subr.bf16.mxu1 %v8004_v44 }
 0x1c8   : > { %7683 = vmatpush3.bf16.msra.mxu0 %v8004_v44 }
 0x1c9   : > { %7708 = vmatpush3.bf16.msra.mxu1 %v8004_v44  ;;  %7684 = vmatprep.subr.bf16.mxu0 %v8005_v21 }
 0x1ca   : > { %7701 = vmatprep.subr.bf16.mxu1 %v8005_v21 }
 0x1cc   : > { %7685 = vmatpush3.bf16.msra.mxu0 %v8005_v21 }
 0x1cd   : > { %7709 = vmatpush3.bf16.msra.mxu1 %v8005_v21 }
 0x1cf   : > { %v7400_v23 = vpop.f32.mrf.mxu0  ;;  %7687 = vmatmul.mubr.bf16.vlgmr.msra.gmra.mxu0 %v5441_v26 }
 0x1d0   : > { %v3261_v2 = vadd.f32 %v7400_v23, %v9612_v36  ;;  %v7424_v38 = vpop.f32.mrf.mxu1  ;;  %7691 = vmatmul.mubr.bf16.vlgmr.msra.gmra.mxu1 %v5443_v46 }
 0x1d1   : > { %v3228_v29 = vpop.f32.mrf.mxu0 }
 0x1d2   : > { %v3420_v58 = vadd.f32 %v7424_v38, %v3261_v2  ;;  %v3259_v14 = vadd.f32 %v3228_v29, %v9618_v39  ;;  %v3387_v1 = vpop.f32.mrf.mxu1 }
 0x1d3   : > { %v7401_v42 = vpop.f32.mrf.mxu0 }
 0x1d4   : > { %v3418_v22 = vadd.f32 %v3387_v1, %v3259_v14  ;;  %v3262_v24 = vadd.f32 %v7401_v42, %v9626_v6  ;;  %v7425_v25 = vpop.f32.mrf.mxu1 }
 0x1d5   : > { %v3231_v4 = vpop.f32.mrf.mxu0 }
 0x1d6   : > { %v9674_v7 = vadd.f32 %v7425_v25, %v3262_v24  ;;  %v3260_v60 = vadd.f32 %v3231_v4, %v9629_v18  ;;  %v3390_v56 = vpop.f32.mrf.mxu1 }
 0x1d7   : > { %v7404_v27 = vpop.f32.mrf.mxu0 }
 0x1d8   : > { %v9677_v36 = vadd.f32 %v3390_v56, %v3260_v60  ;;  %v3265_v11 = vadd.f32 %v7404_v27, %v9636_v35  ;;  %v7428_v61 = vpop.f32.mrf.mxu1 }
 0x1d9   : > { %v3244_v31 = vpop.f32.mrf.mxu0 }
 0x1da   : > { %v3263_v39 = vadd.f32 %v3244_v31, %v9639_v13  ;;  %v9681_v32 = vadd.f32 %v7428_v61, %v3265_v11  ;;  %v3403_v17 = vpop.f32.mrf.mxu1 }
 0x1db   : > { %v7405_v6 = vpop.f32.mrf.mxu0 }
 0x1dc   : > { %v3266_v5 = vadd.f32 %v7405_v6, %v9647_v54  ;;  %v9684_v41 = vadd.f32 %v3403_v17, %v3263_v39  ;;  %v7429_v43 = vpop.f32.mrf.mxu1 }
 0x1dd   : > { %v3247_v18 = vpop.f32.mrf.mxu0 }
 0x1de   : > { %v3264_v12 = vadd.f32 %v3247_v18, %v9651_v33  ;;  %v9687_v37 = vadd.f32 %v7429_v43, %v3266_v5  ;;  %v3406_v62 = vpop.f32.mrf.mxu1 }
 0x1e0   : > { %v9689_v35 = vadd.f32 %v3406_v62, %v3264_v12 }
 0x1ef   : > { %v7448_v50 = vpop.f32.mrf.mxu0 }
 0x1f0   : > { %v3642_v0 = vadd.f32 %v7448_v50, %v3420_v58  ;;  %v7472_v13 = vpop.f32.mrf.mxu1 }
 0x1f1   : > { %v3609_v55 = vpop.f32.mrf.mxu0 }
 0x1f2   : > { %v9691_v59 = vadd.f32 %v7472_v13, %v3642_v0  ;;  %v3640_v53 = vadd.f32 %v3609_v55, %v3418_v22  ;;  %v3807_v52 = vpop.f32.mrf.mxu1 }
 0x1f3   : > { %v9695_v40 = vpop.f32.mrf.mxu0 }
 0x1f4   : > { %v9693_v54 = vadd.f32 %v3807_v52, %v3640_v53  ;;  %v9699_v33 = vpop.f32.mrf.mxu1 }
 0x1f5   : > { %v9697_v20 = vpop.f32.mrf.mxu0 }
 0x1f6   : > { %v9701_v3 = vpop.f32.mrf.mxu1 }
 0x1f7   : > { %v7452_v47 = vpop.f32.mrf.mxu0 }
 0x1f8   : > { %v7476_v45 = vpop.f32.mrf.mxu1 }
 0x1f9   : > { %v3625_v10 = vpop.f32.mrf.mxu0 }
 0x1fa   : > { %v3823_v8 = vpop.f32.mrf.mxu1 }
 0x1fb   : > { %v7453_v44 = vpop.f32.mrf.mxu0 }
 0x1fc   : > { %v9705_v19 = vpop.f32.mrf.mxu1 }
 0x1fd   : > { %v9703_v30 = vpop.f32.mrf.mxu0 }
 0x1fe   : > { %v9709_v57 = vpop.f32.mrf.mxu1 }
 0x20f   : > { %v7496_v34 = vpop.f32.mrf.mxu0 }
 0x210   : > { %v9713_v21 = vpop.f32.mrf.mxu1 }
 0x211   : > { %v9707_v9 = vpop.f32.mrf.mxu0 }
 0x212   : > { %v9717_v49 = vpop.f32.mrf.mxu1 }
 0x213   : > { %v9711_v28 = vpop.f32.mrf.mxu0 }
 0x214   : > { %v9719_v51 = vpop.f32.mrf.mxu1 }
 0x215   : > { %v9715_v48 = vpop.f32.mrf.mxu0 }
 0x216   : > { %v9721_v63 = vpop.f32.mrf.mxu1 }
 0x217   : > { %v7500_v15 = vpop.f32.mrf.mxu0 }
 0x218   : > { %v9723_v26 = vpop.f32.mrf.mxu1 }
 0x219   : > { %v3981_v16 = vpop.f32.mrf.mxu0 }
 0x21a   : > { %v9727_v23 = vpop.f32.mrf.mxu1 }
 0x21b   : > { %v9725_v46 = vpop.f32.mrf.mxu0 }
 0x21c   : > { %v9733_v29 = vpop.f32.mrf.mxu1 }
 0x21d   : > { %v9729_v2 = vpop.f32.mrf.mxu0 }
 0x21e   : > { %v9737_v14 = vpop.f32.mrf.mxu1 }
 0x22f   : > { %v9731_v38 = vpop.f32.mrf.mxu0 }
 0x230   : > { %v9739_v1 = vpop.f32.mrf.mxu1 }
 0x231   : > { %v9735_v58 = vpop.f32.mrf.mxu0 }
 0x232   : > { %v9743_v22 = vpop.f32.mrf.mxu1 }
 0x233   : > { %v9741_v42 = vpop.f32.mrf.mxu0 }
 0x234   : > { %v9747_v25 = vpop.f32.mrf.mxu1 }
 0x235   : > { %v9745_v24 = vpop.f32.mrf.mxu0 }
 0x236   : > { %v9749_v60 = vpop.f32.mrf.mxu1 }
 0x237   : > { %v7548_v4 = vpop.f32.mrf.mxu0  ;;  %9920 = vst [vmem:[#allocation2_spill] sm:$0xff] %v9749_v60 }
 0x238   : > { %v9751_v27 = vpop.f32.mrf.mxu1 }
 0x239   : > { %v4401_v56 = vpop.f32.mrf.mxu0 }
 0x23a   : > { %v9755_v61 = vpop.f32.mrf.mxu1 }
 0x23b   : > { %v9753_v11 = vpop.f32.mrf.mxu0 }
 0x23c   : > { %v9759_v39 = vpop.f32.mrf.mxu1 }
 0x23d   : > { %v9757_v31 = vpop.f32.mrf.mxu0 }
 0x23e   : > { %v9763_v6 = vpop.f32.mrf.mxu1 }
 0x23f   : > { %9921 = vst [vmem:[#allocation3_spill] sm:$0xff] %v9763_v6 }
 0x24f   : > { %v9761_v17 = vpop.f32.mrf.mxu0 }
 0x250   : > { %v9767_v43 = vpop.f32.mrf.mxu1 }
 0x251   : > { %v9765_v5 = vpop.f32.mrf.mxu0  ;;  %9922 = vst [vmem:[#allocation4_spill] sm:$0xff] %v9767_v43 }
 0x252   : > { %v9771_v12 = vpop.f32.mrf.mxu1 }
 0x253   : > { %v9769_v18 = vpop.f32.mrf.mxu0  ;;  %9924 = vst [vmem:[#allocation6_spill] sm:$0xff] %v9771_v12 }
 0x254   : > { %9923 = vst [vmem:[#allocation5_spill] sm:$0xff] %v9769_v18  ;;  %v9775_v50 = vpop.f32.mrf.mxu1 }
 0x255   : > { %v9773_v62 = vpop.f32.mrf.mxu0  ;;  %9926 = vst [vmem:[#allocation8_spill] sm:$0xff] %v9775_v50 }
 0x256   : > { %9925 = vst [vmem:[#allocation7_spill] sm:$0xff] %v9773_v62  ;;  %v9779_v13 = vpop.f32.mrf.mxu1  ;;  %v3646_v62 = vadd.f32 %v7452_v47, %v9681_v32  ;;  %v3645_v47 = vadd.f32 %v9703_v30, %v9689_v35 }
 0x257   : > { %v9777_v0 = vpop.f32.mrf.mxu0  ;;  %9927 = vst [vmem:[#allocation9_spill] sm:$0xff] %v9779_v13 }
 0x258   : > { %v9781_v55 = vpop.f32.mrf.mxu1 }
 0x259   : > { %9928 = vst [vmem:[#allocation10_spill] sm:$0xff] %v9781_v55  ;;  %v9783_v53 = vpop.f32.mrf.mxu0  ;;  %v3644_v55 = vadd.f32 %v3625_v10, %v9684_v41 }
 0x25a   : > { %v9785_v52 = vpop.f32.mrf.mxu1 }
 0x25b   : > { %9929 = vst [vmem:[#allocation11_spill] sm:$0xff] %v9785_v52  ;;  %v9787_v6 = vpop.f32.mrf.mxu0  ;;  %v3643_v52 = vadd.f32 %v9695_v40, %v9674_v7  ;;  %v3842_v32 = vadd.f32 %v3823_v8, %v3644_v55 }
 0x25c   : > { %9930 = vst [vmem:[#allocation12_spill] sm:$0xff] %v9787_v6  ;;  %v9789_v43 = vpop.f32.mrf.mxu1  ;;  %v3844_v6 = vadd.f32 %v7476_v45, %v3646_v62  ;;  %v3843_v45 = vadd.f32 %v9709_v57, %v3645_v47  ;;  %v9938_v62 = vld [vmem:[#allocation3_spill] sm:$0xff]  ;;  %v9941_v47 = vld [vmem:[#allocation6_spill] sm:$0xff] }
 0x25d   : > { %9931 = vst [vmem:[#allocation13_spill] sm:$0xff] %v9789_v43  ;;  %v9791_v18 = vpop.f32.mrf.mxu0  ;;  %v3647_v43 = vadd.f32 %v7453_v44, %v9687_v37  ;;  %v3841_v7 = vadd.f32 %v9699_v33, %v3643_v52  ;;  %v3996_v37 = vadd.f32 %v9707_v9, %v9693_v54  ;;  %v4000_v40 = vadd.f32 %v3981_v16, %v3842_v32 }
 0x25e   : > { %9932 = vst [vmem:[#allocation14_spill] sm:$0xff] %v9791_v18  ;;  %v9795_v50 = vpop.f32.mrf.mxu1  ;;  %v3641_v18 = vadd.f32 %v9697_v20, %v9677_v36  ;;  %v4002_v41 = vadd.f32 %v7500_v15, %v3844_v6  ;;  %v4001_v9 = vadd.f32 %v9729_v2, %v3843_v45  ;;  %v9935_v6 = vld [vmem:[#allocation2_spill] sm:$0xff] }
 0x25f   : > { %9934 = vst [vmem:[#allocation16_spill] sm:$0xff] %v9795_v50  ;;  %v3845_v36 = vadd.f32 %v9705_v19, %v3647_v43  ;;  %v3999_v44 = vadd.f32 %v9711_v28, %v3841_v7  ;;  %v4218_v54 = vadd.f32 %v9717_v49, %v3996_v37  ;;  %v4222_v19 = vadd.f32 %v9727_v23, %v4000_v40  ;;  %v9942_v7 = vld [vmem:[#allocation7_spill] sm:$0xff] }
 0x260   : > { %v4224_v30 = vadd.f32 %v9723_v26, %v4002_v41  ;;  %v9939_v55 = vld [vmem:[#allocation10_spill] sm:$0xff] }
 0x261   : > { %v4003_v33 = vadd.f32 %v9725_v46, %v3845_v36  ;;  %v4221_v57 = vadd.f32 %v9719_v51, %v3999_v44  ;;  %v4420_v26 = vadd.f32 %v4401_v56, %v4222_v19 }
 0x262   : > { %v4422_v28 = vadd.f32 %v7548_v4, %v4224_v30  ;;  %v9944_v40 = vld [vmem:[#allocation11_spill] sm:$0xff]  ;;  %v9946_v30 = vld [vmem:[#allocation8_spill] sm:$0xff] }
 0x263   : > { %v4225_v16 = vadd.f32 %v9733_v29, %v4003_v33  ;;  %v4419_v23 = vadd.f32 %v9741_v42, %v4221_v57  ;;  %v9948_v57 = vld [vmem:[#allocation9_spill] sm:$0xff] }
 0x264   : > { %v4581_v51 = vadd.f32 %v9751_v27, %v4422_v28  ;;  %v6716_v28 = vld [vmem:[%s394_s16 + $0x8] sm:$0xff]  }
 0x265   : > { %v4578_v27 = vadd.f32 %v9747_v25, %v4419_v23  ;;  %v9940_v25 = vld [vmem:[#allocation12_spill] sm:$0xff] }
 0x266   : > { %v4803_v42 = vadd.f32 %v9777_v0, %v4581_v51  ;;  %v9949_v23 = vld [vmem:[#allocation16_spill] sm:$0xff] }
 0x268   : > { %v5001_v52 = vadd.f32 %v9939_v55, %v4803_v42 }
 0x26f   : > { %v9793_v12 = vpop.f32.mrf.mxu0 }
 0x270   : > { %9933 = vst [vmem:[#allocation15_spill] sm:$0xff] %v9793_v12  ;;  %v9798_v13 = vpop.f32.mrf.mxu1  ;;  %v3998_v12 = vadd.f32 %v7496_v34, %v9691_v59  ;;  %v3839_v59 = vadd.f32 %v9701_v3, %v3641_v18  ;;  %v9936_v18 = vld [vmem:[#allocation4_spill] sm:$0xff] }
 0x271   : > { %v9801_v60 = vpop.f32.mrf.mxu0 }
 0x272   : > { %v9809_v50 = vpop.f32.mrf.mxu1  ;;  %v4220_v20 = vadd.f32 %v9713_v21, %v3998_v12  ;;  %v3997_v3 = vadd.f32 %v9715_v48, %v3839_v59  ;;  %v4416_v21 = vadd.f32 %v9735_v58, %v4218_v54  ;;  %v4423_v58 = vadd.f32 %v9753_v11, %v4225_v16  ;;  %v9937_v12 = vld [vmem:[#allocation5_spill] sm:$0xff] }
 0x273   : > { %v9813_v10 = vpop.f32.mrf.mxu0 }
 0x274   : > { %v9823_v35 = vpop.f32.mrf.mxu1  ;;  %v4418_v34 = vadd.f32 %v9731_v38, %v4220_v20  ;;  %v4219_v48 = vadd.f32 %v9721_v63, %v3997_v3  ;;  %v4223_v38 = vadd.f32 %v9737_v14, %v4001_v9  ;;  %v4575_v4 = vadd.f32 %v9743_v22, %v4416_v21  ;;  %v9945_v20 = vld [vmem:[#allocation14_spill] sm:$0xff]  ;;  %v9947_v3 = vld [vmem:[#allocation13_spill] sm:$0xff] }
 0x275   : > { %v9828_v8 = vpop.f32.mrf.mxu0  ;;  %v4579_v63 = vadd.f32 %v9755_v61, %v4420_v26 }
 0x276   : > { %v9838_v15 = vpop.f32.mrf.mxu1  ;;  %v4577_v49 = vadd.f32 %v9739_v1, %v4418_v34  ;;  %v4417_v29 = vadd.f32 %v9745_v24, %v4219_v48  ;;  %v4421_v1 = vadd.f32 %v9757_v31, %v4223_v38  ;;  %v4797_v11 = vadd.f32 %v9765_v5, %v4575_v4  ;;  %v6681_v4 = vld [vmem:[%s394_s16] sm:$0xff]  }
 0x277   : > { %v7644_v46 = vpop.f32.mrf.mxu0  ;;  %v4582_v24 = vadd.f32 %v9759_v39, %v4423_v58  ;;  %v4800_v31 = vadd.f32 %v9937_v12, %v4578_v27  ;;  %v9943_v37 = vld [vmem:[#allocation15_spill] sm:$0xff] }
 0x278   : > { %v7668_v2 = vpop.f32.mrf.mxu1  ;;  %v4799_v56 = vadd.f32 %v9761_v17, %v4577_v49  ;;  %v4801_v17 = vadd.f32 %v9783_v53, %v4579_v63  ;;  %v4576_v43 = vadd.f32 %v9935_v6, %v4417_v29  ;;  %v4580_v0 = vadd.f32 %v9938_v62, %v4421_v1  ;;  %v6718_v49 = vld [vmem:[%s394_s16 + $0x18] sm:$0xff]  }
 0x279   : > { %v5139_v14 = vpop.f32.mrf.mxu0  ;;  %v4804_v32 = vadd.f32 %v9940_v25, %v4582_v24  ;;  %v4995_v41 = vadd.f32 %v9941_v47, %v4797_v11  ;;  %v5160_v45 = vadd.f32 %v7644_v46, %v5001_v52  ;;  %v4998_v33 = vadd.f32 %v9946_v30, %v4800_v31 }
 0x27a   : > { %v5361_v22 = vpop.f32.mrf.mxu1  ;;  %v4997_v61 = vadd.f32 %v9936_v18, %v4799_v56  ;;  %v4798_v39 = vadd.f32 %v9942_v7, %v4576_v43  ;;  %v4999_v59 = vadd.f32 %v9944_v40, %v4801_v17  ;;  %v4802_v44 = vadd.f32 %v9945_v20, %v4580_v0 }
 0x27b   : > { %v7645_v5 = vpop.f32.mrf.mxu0  ;;  %v5154_v54 = vadd.f32 %v9801_v60, %v4995_v41  ;;  %v5002_v34 = vadd.f32 %v9947_v3, %v4804_v32  ;;  %v5157_v26 = vadd.f32 %v9813_v10, %v4998_v33  ;;  %v5382_v46 = vadd.f32 %v7668_v2, %v5160_v45  ;;  %v6677_v60 = vld [vmem:[%s9915_s4] ss:$0 sm:$0xff]  ;;  %v6717_v10 = vld [vmem:[%s394_s16 + $0x10] sm:$0xff]  }
 0x27c   : > { %v5156_v53 = vadd.f32 %v9943_v37, %v4997_v61  ;;  %v7669_v36 = vpop.f32.mrf.mxu1  ;;  %v5158_v19 = vadd.f32 %v5139_v14, %v4999_v59  ;;  %v4996_v21 = vadd.f32 %v9948_v57, %v4798_v39  ;;  %v5000_v38 = vadd.f32 %v9949_v23, %v4802_v44 }
 0x27d   : > { %v5142_v9 = vpop.f32.mrf.mxu0  ;;  %v5161_v51 = vadd.f32 %v7645_v5, %v5002_v34  ;;  %v5376_v29 = vadd.f32 %v9809_v50, %v5154_v54  ;;  %v6694_v11 = vunpack.c.l.bf16 %v6718_v49  ;;  %v5379_v24 = vadd.f32 %v9823_v35, %v5157_v26 }
 0x27e   : > { %v5378_v16 = vadd.f32 %v9798_v13, %v5156_v53  ;;  %v5364_v48 = vpop.f32.mrf.mxu1  ;;  %v5155_v56 = vadd.f32 %v9828_v8, %v4996_v21  ;;  %v6686_v13 = vunpack.c.l.bf16 %v6716_v28  ;;  %v5380_v42 = vadd.f32 %v5361_v22, %v5158_v19 }
 0x27f   : > { %v5159_v14 = vadd.f32 %v5142_v9, %v5000_v38  ;;  %v6682_v43 = vunpack.c.l.bf16 %v6681_v4  ;;  %v5383_v61 = vadd.f32 %v7669_v36, %v5161_v51  ;;  %v6690_v31 = vunpack.c.l.bf16 %v6717_v10 }
 0x280   : > { %v5377_v62 = vadd.f32 %v9838_v15, %v5155_v56  ;;  %v6687_v22 = vunpack.c.h.bf16 %v6716_v28  ;;  %v6695_v47 = vunpack.c.h.bf16 %v6718_v49  ;;  %v6683_v37 = vunpack.c.h.bf16 %v6681_v4 }
 0x281   : > { %v5381_v25 = vadd.f32 %v5364_v48, %v5159_v14  ;;  %v6691_v20 = vunpack.c.h.bf16 %v6717_v10 }
 0x28f   : > { %v7688_v58 = vpop.f32.mrf.mxu0 }
 0x290   : > { %v5576_v63 = vadd.f32 %v7688_v58, %v5378_v16  ;;  %v7692_v1 = vpop.f32.mrf.mxu1 }
 0x291   : > { %v5580_v27 = vadd.f32 %v7692_v1, %v5382_v46  ;;  %v5543_v2 = vpop.f32.mrf.mxu0 }
 0x292   : > { %v5591_v17 = vadd.f32 %v6677_v60, %v5576_v63  ;;  %v5574_v6 = vadd.f32 %v5543_v2, %v5376_v29  ;;  %v5559_v18 = vpop.f32.mrf.mxu1 }
 0x293   : > { %v5595_v12 = vadd.f32 %v6677_v60, %v5580_v27  ;;  %v5578_v50 = vadd.f32 %v5559_v18, %v5380_v42  ;;  %v7689_v8 = vpop.f32.mrf.mxu0 }
 0x294   : > { %v5589_v0 = vadd.f32 %v6677_v60, %v5574_v6  ;;  %v5577_v55 = vadd.f32 %v7689_v8, %v5379_v24  ;;  %v7693_v52 = vpop.f32.mrf.mxu1  ;;  %v5615_v41 = vadd.f32 %v6686_v13, %v5591_v17 }
 0x295   : > { %v5593_v32 = vadd.f32 %v6677_v60, %v5578_v50  ;;  %v5581_v5 = vadd.f32 %v7693_v52, %v5383_v61  ;;  %v5546_v35 = vpop.f32.mrf.mxu0  ;;  %v5619_v36 = vadd.f32 %v6694_v11, %v5595_v12 }
 0x296   : > { %v5592_v7 = vadd.f32 %v6677_v60, %v5577_v55  ;;  %v5575_v39 = vadd.f32 %v5546_v35, %v5377_v62  ;;  %v5562_v53 = vpop.f32.mrf.mxu1  ;;  %v5613_v15 = vadd.f32 %v6682_v43, %v5589_v0  ;;  %v5623_v3 = vmax.f32 %v5615_v41, 0.0 }
 0x297   : > { %v5596_v40 = vadd.f32 %v6677_v60, %v5581_v5  ;;  %v5579_v59 = vadd.f32 %v5562_v53, %v5381_v25  ;;  %v5617_v30 = vadd.f32 %v6690_v31, %v5593_v32  ;;  %v5627_v9 = vmax.f32 %v5619_v36, 0.0 }
 0x298   : > { %v5616_v44 = vadd.f32 %v6687_v22, %v5592_v7  ;;  %v5590_v45 = vadd.f32 %v6677_v60, %v5575_v39  ;;  %v5621_v21 = vmax.f32 %v5613_v15, 0.0 }
 0x299   : > { %v5620_v33 = vadd.f32 %v6695_v47, %v5596_v40  ;;  %v5594_v54 = vadd.f32 %v6677_v60, %v5579_v59  ;;  %v5625_v48 = vmax.f32 %v5617_v30, 0.0 }
 0x29a   : > { %v5624_v34 = vmax.f32 %v5616_v44, 0.0  ;;  %v5614_v19 = vadd.f32 %v6683_v37, %v5590_v45 }
 0x29b   : > { %v5628_v28 = vmax.f32 %v5620_v33, 0.0  ;;  %v5618_v57 = vadd.f32 %v6691_v20, %v5594_v54 }
 0x29c   : > { %v6704_v16 = vpack.c.bf16 %v5624_v34, %v5623_v3  ;;  %v5622_v26 = vmax.f32 %v5614_v19, 0.0 }
 0x29d   : > { %v6714_v49 = vpack.c.bf16 %v5628_v28, %v5627_v9  ;;  %v5626_v23 = vmax.f32 %v5618_v57, 0.0 }
 0x29e   : > { %6719 = vst [vmem:[%s403_s7 + $0x8] sm:$0xff] %v6704_v16   ;;  %v6699_v38 = vpack.c.bf16 %v5622_v26, %v5621_v21 }
 0x29f   : > { %6721 = vst [vmem:[%s403_s7 + $0x18] sm:$0xff] %v6714_v49   ;;  %v6709_v46 = vpack.c.bf16 %v5626_v23, %v5625_v48 }
 0x2a0   : > { %6700 = vst [vmem:[%s403_s7] sm:$0xff] %v6699_v38  }
 0x2a1   : > { %6720 = vst [vmem:[%s403_s7 + $0x10] sm:$0xff] %v6709_v46  }
 0x2a2 PF: > { %s16_s25 = sadd.s32 1, %s8044_s25   ;;  %s9950_s21 = smov %s8036_s23 }
 0x2a3   : > { %p13_p10 = scmp.ge.s32.totalorder %s16_s25, 18   ;;  %s9951_s22 = smov %s8040_s24 }
 0x2a4   : > { %s9952_s23 = smov %s9955_s26  ;;  %s9953_s24 = smov %s9959_s27 }
 0x2a5   :  { %15 = sbr.rel (!%p13_p10) target bundleno = 3 (0x3), region = 115 }

</bundles_post_ra>
